<compile_context>
chip_gen: v7x
topology: tpu7x:2x2x1
jax: 0.10.0
libtpu: 0.0.40
codegen_flags: <defaults>
</compile_context>

<pallas_src>
import functools
import math

import jax
import jax.numpy as jnp
from jax.experimental import pallas as pl
from jax.experimental.pallas import tpu as pltpu

# ----------------------------- configuration -----------------------------
TEMPORAL_COLS = ["target", "temporal_1"]
IMG_COLS = ["img_1"]
NLP_COLS = ["nlp_1"]

B = 2                 # batch
S = 8                 # temporal sequence length
F_T = 4               # features per temporal column
C, H, W = 3, 16, 16   # image (NCHW)
PATCH = 8
NP_IMG = (H // PATCH) * (W // PATCH)      # 4 patches
PATCH_DIM = C * PATCH * PATCH             # 192
L_NLP = 6
VOCAB = 50
D_ENC, D_DEC = 32, 16                     # d_model['encoder'], d_model['decoder']
NHEAD = 4
DFF_ENC, DFF_DEC = 64, 32                 # d_ff['encoder'], d_ff['decoder']
NLAYERS_ENC, NLAYERS_DEC = 2, 2
REMAIN_RTO = 0.5
MAX_POS = 64
N_T = len(TEMPORAL_COLS)
M_T = N_T + 1                             # temporal modalities incl. 'global'
WDTYPE = jnp.bfloat16                     # MXU weight dtype (f32 accumulation)

# packed output-head layout: [target | temporal_1 | img_1 | nlp_1 | pad] -> 256
HEAD_SLOTS, _off = {}, 0
for _c in TEMPORAL_COLS:
    HEAD_SLOTS[_c] = (_off, F_T); _off += F_T
for _c in IMG_COLS:
    HEAD_SLOTS[_c] = (_off, PATCH_DIM); _off += PATCH_DIM
for _c in NLP_COLS:
    HEAD_SLOTS[_c] = (_off, VOCAB); _off += VOCAB
DOUT_PACKED = _off
DOUT_PAD = ((DOUT_PACKED + 127) // 128) * 128   # lane-dense output stores


def _pad8(n):
    return ((n + 7) // 8) * 8


# --------------------------- in-kernel helpers ---------------------------
def _ln(x, g, b):
    """LayerNorm over the last dim (residual add done by the caller); f32."""
    mean = jnp.mean(x, axis=-1, keepdims=True)
    xc = x - mean
    var = jnp.mean(xc * xc, axis=-1, keepdims=True)
    return xc * jax.lax.rsqrt(var + 1e-5) * g + b


def _mha(x, wqkvo, bqkv, bo, nhead, add_mask):
    """Self-attention on [N, D] rows with head-batched dot_generals."""
    N, D = x.shape
    hd = D // nhead
    scale = 1.0 / math.sqrt(hd)
    wdt = wqkvo.dtype
    qkv = jnp.dot(x.astype(wdt), wqkvo[:, :3 * D],
                  preferred_element_type=jnp.float32) + bqkv            # [N, 3D]

    def heads(base):   # [nhead, N, hd] via a new leading (untiled) dim
        return jnp.stack([qkv[:, base + h * hd: base + (h + 1) * hd]
                          for h in range(nhead)], axis=0)

    q, k, v = heads(0), heads(D), heads(2 * D)
    # one batched QK^T over all heads
    s = jax.lax.dot_general(q.astype(wdt), k.astype(wdt),
                            (((2,), (2,)), ((0,), (0,))),
                            preferred_element_type=jnp.float32)          # [H, N, N]
    s = s * scale + add_mask[None]                                       # pad-key mask
    s = s - jnp.max(s, axis=-1, keepdims=True)
    p = jnp.exp(s)
    p = p * pl.reciprocal(jnp.sum(p, axis=-1, keepdims=True), approx=True)
    # one batched PV over all heads
    ctx = jax.lax.dot_general(p.astype(wdt), v.astype(wdt),
                              (((2,), (1,)), ((0,), (0,))),
                              preferred_element_type=jnp.float32)        # [H, N, hd]
    ctx = jnp.concatenate([ctx[h] for h in range(nhead)], axis=-1)       # [N, D]
    return jnp.dot(ctx.astype(wdt), wqkvo[:, 3 * D:],
                   preferred_element_type=jnp.float32) + bo


def _layer_stack(x, nlayers, nhead, d, dff, wqkvo_ref, w1_ref, w2_ref, vec_ref,
                 add_mask):
    """Post-LN transformer layers on [N, d] rows; residuals fused into LN."""
    wdt = wqkvo_ref.dtype
    for l in range(nlayers):                                             # static unroll
        vec = vec_ref[l]            # [8, VW] f32: bqkv,bo,ln1g,ln1b,b1,b2,ln2g,ln2b
        a = _mha(x, wqkvo_ref[l], vec[0:1, :3 * d], vec[1:2, :d], nhead, add_mask)
        x = _ln(x + a, vec[2:3, :d], vec[3:4, :d])
        h = jnp.dot(x.astype(wdt), w1_ref[l],
                    preferred_element_type=jnp.float32) + vec[4:5, :dff]
        # TODO(synk): PyTorch activation='gelu' is exact (erf); tanh-approx GELU used here.
        h = jax.nn.gelu(h)
        f = jnp.dot(h.astype(wdt), w2_ref[l],
                    preferred_element_type=jnp.float32) + vec[5:6, :d]
        x = _ln(x + f, vec[6:7, :d], vec[7:8, :d])
    return x


def _pad_key_mask(l_pad, l_valid):
    """Additive key mask for the padded tail, generated in-kernel (no HBM operand)."""
    ok = jax.lax.broadcasted_iota(jnp.int32, (1, l_pad), 1) < l_valid
    return jnp.where(ok, 0.0, -1e9).astype(jnp.float32)


# ------------------------------ Pallas kernels ------------------------------
def _encoder_kernel(traw_ref, img_ref, nlp_ref, posmod_ref,
                    wt_ref, wimg_ref, norms_ref,
                    wqkvo_ref, w1_ref, w2_ref, vec_ref, o_ref):
    """Fused: embedding + posmod + norm1 + encoder layers + norm2 (one batch elem).

    Token order (modality-major, matched by glue): [global(s_r) | col0(s_r) |
    col1(s_r) | img(np_r) | nlp(nlp_r) | pad].
    """
    s_r = traw_ref.shape[0]
    np_r = img_ref.shape[0]
    nlp_r = nlp_ref.shape[0]
    l_valid = s_r * M_T + np_r + nlp_r
    l_pad = posmod_ref.shape[0]
    wdt = wt_ref.dtype

    # ---- fused embedding (global token / biases are baked into posmod table) ----
    pieces = [jnp.zeros((s_r, D_ENC), jnp.float32)]                      # 'global' slot
    for c in range(N_T):
        xc = traw_ref[:, c * F_T:(c + 1) * F_T].astype(wdt)
        pieces.append(jnp.dot(xc, wt_ref[c], preferred_element_type=jnp.float32))
    pieces.append(jnp.dot(img_ref[...].astype(wdt), wimg_ref[...],
                          preferred_element_type=jnp.float32))
    pieces.append(nlp_ref[...])
    if l_pad > l_valid:
        pieces.append(jnp.zeros((l_pad - l_valid, D_ENC), jnp.float32))
    x = jnp.concatenate(pieces, axis=0) + posmod_ref[...]                # [l_pad, D]

    add_mask = _pad_key_mask(l_pad, l_valid)
    x = _ln(x, norms_ref[0:1], norms_ref[1:2])                           # norm1
    x = _layer_stack(x, NLAYERS_ENC, NHEAD, D_ENC, DFF_ENC,
                     wqkvo_ref, w1_ref, w2_ref, vec_ref, add_mask)
    x = _ln(x, norms_ref[2:3], norms_ref[3:4])                           # norm2 (post-encoder)
    o_ref[...] = x


def _decoder_kernel(l_valid, x_ref, posmod_ref, dvec_ref, pw_ref,
                    wqkvo_ref, w1_ref, w2_ref, vec_ref,
                    hw_ref, hb_ref, o_ref):
    """Fused: shared norm2 + posmod + ENC->DEC proj + decoder layers + norm + head."""
    l_pad = x_ref.shape[0]
    wdt = pw_ref.dtype
    # shared norm2 applied to the reverted tokens (the reference applies norm2
    # both after the encoder and again here, so encoded tokens see it twice).
    x = _ln(x_ref[...], dvec_ref[0:1, :D_ENC], dvec_ref[1:2, :D_ENC])
    x = x + posmod_ref[...]
    x = jnp.dot(x.astype(wdt), pw_ref[...],
                preferred_element_type=jnp.float32) + dvec_ref[4:5, :D_DEC]

    add_mask = _pad_key_mask(l_pad, l_valid)
    x = _layer_stack(x, NLAYERS_DEC, NHEAD, D_DEC, DFF_DEC,
                     wqkvo_ref, w1_ref, w2_ref, vec_ref, add_mask)
    x = _ln(x, dvec_ref[2:3, :D_DEC], dvec_ref[3:4, :D_DEC])             # decoder norm
    # packed lane-dense 256-wide output head (unmasked store)
    o_ref[...] = jnp.dot(x.astype(wdt), hw_ref[...],
                         preferred_element_type=jnp.float32) + hb_ref[...]


# ------------------------------ call wrappers ------------------------------
def _batched_spec(inner_shape):
    n_inner = len(inner_shape)
    return pl.BlockSpec((None,) + tuple(inner_shape),
                        lambda b, _n=n_inner: (b,) + (0,) * _n)


def _shared_spec(arr):
    nd = arr.ndim
    return pl.BlockSpec(tuple(arr.shape), lambda b, _nd=nd: (0,) * _nd)


def pallas_encoder(t_raw, img_raw, nlp_emb, posmod, params):
    Bn = t_raw.shape[0]
    l_pad = posmod.shape[0]
    enc = params["enc_layers"]
    shared = [posmod, params["emb_temporal_w"], params["emb_img_w"],
              params["enc_norms"], enc["wqkvo"], enc["w1"], enc["w2"], enc["vec"]]
    in_specs = ([_batched_spec(t_raw.shape[1:]),
                 _batched_spec(img_raw.shape[1:]),
                 _batched_spec(nlp_emb.shape[1:])]
                + [_shared_spec(a) for a in shared])
    return pl.pallas_call(
        _encoder_kernel,
        out_shape=jax.ShapeDtypeStruct((Bn, l_pad, D_ENC), jnp.float32),
        grid=(Bn,),
        in_specs=in_specs,
        out_specs=_batched_spec((l_pad, D_ENC)),
        compiler_params=pltpu.CompilerParams(dimension_semantics=("parallel",)),
    )(t_raw, img_raw, nlp_emb, *shared)


def pallas_decoder(dec_in, posmod, params, l_valid):
    Bn = dec_in.shape[0]
    l_pad = dec_in.shape[1]
    dec = params["dec_layers"]
    shared = [posmod, params["dec_vec"], params["dec_proj_w"],
              dec["wqkvo"], dec["w1"], dec["w2"], dec["vec"],
              params["head_w"], params["head_b"]]
    in_specs = [_batched_spec(dec_in.shape[1:])] + [_shared_spec(a) for a in shared]
    kern = functools.partial(_decoder_kernel, l_valid)
    return pl.pallas_call(
        kern,
        out_shape=jax.ShapeDtypeStruct((Bn, l_pad, DOUT_PAD), jnp.float32),
        grid=(Bn,),
        in_specs=in_specs,
        out_specs=_batched_spec((l_pad, DOUT_PAD)),
        compiler_params=pltpu.CompilerParams(dimension_semantics=("parallel",)),
    )(dec_in, *shared)


# ------------------------------ parameter init ------------------------------
def _pack_layer_slabs(key, nlayers, d, dff):
    """Pack all per-layer params into 3 bf16 weight slabs + 1 f32 vector slab."""
    vw = max(3 * d, dff)
    wqkvo, w1, w2, vecs = [], [], [], []
    for lk in jax.random.split(key, nlayers):
        k1, k2, k3, k4 = jax.random.split(lk, 4)
        wqkv = 0.02 * jax.random.normal(k1, (d, 3 * d), jnp.float32)
        wo = 0.02 * jax.random.normal(k2, (d, d), jnp.float32)
        wqkvo.append(jnp.concatenate([wqkv, wo], axis=1))               # [d, 4d]
        w1.append(0.02 * jax.random.normal(k3, (d, dff), jnp.float32))
        w2.append(0.02 * jax.random.normal(k4, (dff, d), jnp.float32))

        def row(v):
            return jnp.pad(v, (0, vw - v.shape[0]))
        vecs.append(jnp.stack([
            row(jnp.zeros((3 * d,), jnp.float32)),   # bqkv
            row(jnp.zeros((d,), jnp.float32)),       # bo
            row(jnp.ones((d,), jnp.float32)),        # ln1 gamma
            row(jnp.zeros((d,), jnp.float32)),       # ln1 beta
            row(jnp.zeros((dff,), jnp.float32)),     # b1
            row(jnp.zeros((d,), jnp.float32)),       # b2
            row(jnp.ones((d,), jnp.float32)),        # ln2 gamma
            row(jnp.zeros((d,), jnp.float32)),       # ln2 beta
        ], axis=0))
    return {"wqkvo": jnp.stack(wqkvo).astype(WDTYPE),
            "w1": jnp.stack(w1).astype(WDTYPE),
            "w2": jnp.stack(w2).astype(WDTYPE),
            "vec": jnp.stack(vecs, axis=0)}


def init_params(key):
    ks = iter(jax.random.split(key, 32))
    p = {}
    p["emb_temporal_w"] = (0.02 * jax.random.normal(
        next(ks), (N_T, F_T, D_ENC), jnp.float32)).astype(WDTYPE)
    p["emb_temporal_b"] = jnp.zeros((N_T, D_ENC), jnp.float32)
    p["global_token"] = 0.02 * jax.random.normal(next(ks), (D_ENC,), jnp.float32)
    p["emb_img_w"] = (0.02 * jax.random.normal(
        next(ks), (PATCH_DIM, D_ENC), jnp.float32)).astype(WDTYPE)
    p["emb_img_b"] = jnp.zeros((D_ENC,), jnp.float32)
    p["emb_nlp"] = {c: 0.02 * jax.random.normal(next(ks), (VOCAB, D_ENC), jnp.float32)
                    for c in NLP_COLS}
    p["pos_emb"] = 0.02 * jax.random.normal(next(ks), (MAX_POS, D_ENC), jnp.float32)
    p["mod_emb"] = {c: 0.02 * jax.random.normal(next(ks), (D_ENC,), jnp.float32)
                    for c in ["global"] + TEMPORAL_COLS + IMG_COLS + NLP_COLS}
    # norm1 / norm2 packed as 4 rows: [n1g, n1b, n2g, n2b]
    p["enc_norms"] = jnp.stack([jnp.ones(D_ENC), jnp.zeros(D_ENC),
                                jnp.ones(D_ENC), jnp.zeros(D_ENC)]).astype(jnp.float32)
    p["enc_layers"] = _pack_layer_slabs(next(ks), NLAYERS_ENC, D_ENC, DFF_ENC)
    p["mask_token"] = {"temporal": 0.02 * jax.random.normal(next(ks), (D_ENC,), jnp.float32),
                       "img": 0.02 * jax.random.normal(next(ks), (D_ENC,), jnp.float32),
                       "nlp": 0.02 * jax.random.normal(next(ks), (D_ENC,), jnp.float32)}
    p["dec_proj_w"] = (0.02 * jax.random.normal(
        next(ks), (D_ENC, D_DEC), jnp.float32)).astype(WDTYPE)

    # decoder vector slab rows: [norm2_g, norm2_b (shared with encoder, same values),
    #                            dec_norm_g, dec_norm_b, dec_proj_b] (D_DEC rows padded)
    def _pe(v):
        return jnp.pad(v, (0, D_ENC - v.shape[0]))
    p["dec_vec"] = jnp.stack([jnp.ones(D_ENC), jnp.zeros(D_ENC),
                              _pe(jnp.ones(D_DEC)), _pe(jnp.zeros(D_DEC)),
                              _pe(jnp.zeros(D_DEC))]).astype(jnp.float32)
    p["dec_layers"] = _pack_layer_slabs(next(ks), NLAYERS_DEC, D_DEC, DFF_DEC)

    # packed, lane-dense output head
    hw, hb = [], []
    for _ in TEMPORAL_COLS:
        hw.append(0.02 * jax.random.normal(next(ks), (D_DEC, F_T), jnp.float32))
        hb.append(jnp.zeros((F_T,), jnp.float32))
    for _ in IMG_COLS:
        hw.append(0.02 * jax.random.normal(next(ks), (D_DEC, PATCH_DIM), jnp.float32))
        hb.append(jnp.zeros((PATCH_DIM,), jnp.float32))
    for _ in NLP_COLS:
        hw.append(0.02 * jax.random.normal(next(ks), (D_DEC, VOCAB), jnp.float32))
        hb.append(jnp.zeros((VOCAB,), jnp.float32))
    pad = DOUT_PAD - DOUT_PACKED
    hw.append(jnp.zeros((D_DEC, pad), jnp.float32))
    hb.append(jnp.zeros((pad,), jnp.float32))
    p["head_w"] = jnp.concatenate(hw, axis=1).astype(WDTYPE)
    p["head_b"] = jnp.concatenate(hb)[None, :].astype(jnp.float32)
    return p


# ------------------------------ glue helpers ------------------------------
def patchify(img):
    Bn, Cn, Hn, Wn = img.shape
    ph, pw = Hn // PATCH, Wn // PATCH
    x = img.reshape(Bn, Cn, ph, PATCH, pw, PATCH)
    x = x.transpose(0, 2, 4, 1, 3, 5)
    return x.reshape(Bn, ph * pw, Cn * PATCH * PATCH)


# ------------------------------ forward pass ------------------------------
def mbae_forward(params, data, remain_rto, rng):
    Bn = data[TEMPORAL_COLS[0]].shape[0]
    img_col, nlp_col = IMG_COLS[0], NLP_COLS[0]

    # -------- Remain: index selection (glue), applied to RAW per-token data --------
    k1, k2, k3 = jax.random.split(rng, 3)
    s_r = max(1, int(S * remain_rto))
    np_r = max(1, int(NP_IMG * remain_rto))
    nlp_r = max(1, int(L_NLP * remain_rto))
    idx_t = jnp.sort(jax.random.permutation(k1, S)[:s_r])
    idx_img = jnp.sort(jax.random.permutation(k2, NP_IMG)[:np_r])
    idx_nlp = jnp.sort(jax.random.permutation(k3, L_NLP)[:nlp_r])

    L_r = s_r * M_T + np_r + nlp_r
    L_pad_r = _pad8(L_r)

    t_raw = jnp.concatenate([data[c] for c in TEMPORAL_COLS], axis=-1)    # [B,S,N_T*F_T]
    t_raw_rem = t_raw[:, idx_t]                                           # [B,s_r,N_T*F_T]
    img_rem = patchify(data[img_col])[:, idx_img]                         # [B,np_r,PATCH_DIM]
    nlp_tok_rem = data[nlp_col][:, idx_nlp]                               # [B,nlp_r]
    nlp_emb_rem = jnp.take(params["emb_nlp"][nlp_col], nlp_tok_rem, axis=0)

    # batch-independent additive table (pos + modality emb + embedding biases +
    # global token), in the kernel's modality-major token order.
    pos, mod = params["pos_emb"], params["mod_emb"]
    rows = [params["global_token"][None] + pos[idx_t] + mod["global"][None]]
    for ci, c in enumerate(TEMPORAL_COLS):
        rows.append(pos[idx_t] + mod[c][None] + params["emb_temporal_b"][ci][None])
    rows.append(pos[idx_img] + mod[img_col][None] + params["emb_img_b"][None])
    rows.append(pos[idx_nlp] + mod[nlp_col][None])
    posmod_enc = jnp.pad(jnp.concatenate(rows, axis=0),
                         ((0, L_pad_r - L_r), (0, 0)))

    # -------- K1: fused embedding + norm1 + encoder layers + norm2 --------
    # TODO(synk): the original Encoder does per-modality self+cross attention;
    # joint self-attention over the concatenated remaining tokens is used here.
    enc_out = pallas_encoder(t_raw_rem, img_rem, nlp_emb_rem, posmod_enc, params)

    # split back (modality-major, matching the kernel); global slot is dropped
    enc_t = {c: enc_out[:, (1 + ci) * s_r:(2 + ci) * s_r]
             for ci, c in enumerate(TEMPORAL_COLS)}
    off = M_T * s_r
    enc_img = enc_out[:, off:off + np_r]; off += np_r
    enc_nlp = enc_out[:, off:off + nlp_r]

    # -------- Revert (re-insert learned mask tokens; glue scatter) --------
    revert = {}
    for c in TEMPORAL_COLS:
        full = jnp.broadcast_to(params["mask_token"]["temporal"], (Bn, S, D_ENC))
        revert[c] = full.at[:, idx_t].set(enc_t[c])
    full = jnp.broadcast_to(params["mask_token"]["img"], (Bn, NP_IMG, D_ENC))
    revert[img_col] = full.at[:, idx_img].set(enc_img)
    full = jnp.broadcast_to(params["mask_token"]["nlp"], (Bn, L_NLP, D_ENC))
    revert[nlp_col] = full.at[:, idx_nlp].set(enc_nlp)

    # -------- K2: fused decoder-side kernel --------
    L_f = N_T * S + NP_IMG + L_NLP
    L_pad_f = _pad8(L_f)
    dec_in = jnp.concatenate([revert[c] for c in TEMPORAL_COLS]
                             + [revert[img_col], revert[nlp_col]], axis=1)
    dec_in = jnp.pad(dec_in, ((0, 0), (0, L_pad_f - L_f), (0, 0)))

    rows = []
    for c in TEMPORAL_COLS:
        rows.append(pos[:S] + mod[c][None])
    rows.append(pos[:NP_IMG] + mod[img_col][None])
    rows.append(pos[:L_NLP] + mod[nlp_col][None])
    posmod_dec = jnp.pad(jnp.concatenate(rows, axis=0),
                         ((0, L_pad_f - L_f), (0, 0)))

    # TODO(synk): the original Decoder uses per-modality self+cross attention and
    # returns attention-weight dicts; joint self-attention is used, weights omitted.
    dec_out = pallas_decoder(dec_in, posmod_dec, params, L_f)             # [B,L_pad_f,256]

    # -------- un-pack the lane-dense output slab (glue slices) --------
    output_dict = {}
    for ci, c in enumerate(TEMPORAL_COLS):
        o, sz = HEAD_SLOTS[c]
        output_dict[c] = dec_out[:, ci * S:(ci + 1) * S, o:o + sz]
    off = N_T * S
    o, sz = HEAD_SLOTS[img_col]
    output_dict[img_col] = dec_out[:, off:off + NP_IMG, o:o + sz]; off += NP_IMG
    o, sz = HEAD_SLOTS[nlp_col]
    output_dict[nlp_col] = dec_out[:, off:off + L_NLP, o:o + sz]

    idx_dict = {"temporal_remain_idx": idx_t,
                f"{img_col}_remain_idx": idx_img,
                f"{nlp_col}_remain_idx": idx_nlp}
    # TODO(synk): padding-mask plumbing is simplified (all tokens valid).
    padding_mask_dict = {"temporal_mask": jnp.zeros((Bn, S), bool),
                         f"{img_col}_mask": jnp.zeros((Bn, NP_IMG), bool),
                         f"{nlp_col}_mask": jnp.zeros((Bn, L_NLP), bool)}
    return output_dict, data, idx_dict, padding_mask_dict


# ------------------------------------ main ------------------------------------
if __name__ == "__main__":
    key = jax.random.PRNGKey(0)
    kp, kd, kr = jax.random.split(key, 3)
    params = init_params(kp)
    dk = jax.random.split(kd, 4)
    data_input = {
        "target": jax.random.normal(dk[0], (B, S, F_T), jnp.float32),
        "temporal_1": jax.random.normal(dk[1], (B, S, F_T), jnp.float32),
        "img_1": jax.random.normal(dk[2], (B, C, H, W), jnp.float32),   # NCHW
        "nlp_1": jax.random.randint(dk[3], (B, L_NLP), 0, VOCAB),
    }
    fwd = jax.jit(mbae_forward, static_argnums=(2,))
    out = fwd(params, data_input, REMAIN_RTO, kr)
    jax.block_until_ready(out)
    print("KERNEL_OK")
</pallas_src>

<mosaic_0001>
module attributes {stable_mosaic.version = 11 : i64} {
  func.func @_encoder_kernel(%arg0: i32, %arg1: memref<1x4x8xf32, #tpu.memory_space<vmem>>, %arg2: memref<1x2x192xf32, #tpu.memory_space<vmem>>, %arg3: memref<1x3x32xf32, #tpu.memory_space<vmem>>, %arg4: memref<24x32xf32, #tpu.memory_space<vmem>>, %arg5: memref<2x4x32xbf16, #tpu.memory_space<vmem>>, %arg6: memref<192x32xbf16, #tpu.memory_space<vmem>>, %arg7: memref<4x32xf32, #tpu.memory_space<vmem>>, %arg8: memref<2x32x128xbf16, #tpu.memory_space<vmem>>, %arg9: memref<2x32x64xbf16, #tpu.memory_space<vmem>>, %arg10: memref<2x64x32xbf16, #tpu.memory_space<vmem>>, %arg11: memref<2x8x96xf32, #tpu.memory_space<vmem>>, %arg12: memref<1x24x32xf32, #tpu.memory_space<vmem>>) attributes {dimension_semantics = [#tpu.dimension_semantics<parallel>], iteration_bounds = array<i64: 2>, scalar_prefetch = 0 : i64, scratch_operands = 0 : i64, tpu.core_type = #tpu.core_type<tc>, window_params = [{transform_indices = @transform_0, window_bounds = array<i64: 1, 4, 8>}, {transform_indices = @transform_1, window_bounds = array<i64: 1, 2, 192>}, {transform_indices = @transform_2, window_bounds = array<i64: 1, 3, 32>}, {pipeline_mode = #tpu.pipeline_mode<synchronous>, transform_indices = @transform_3, window_bounds = array<i64: 24, 32>}, {pipeline_mode = #tpu.pipeline_mode<synchronous>, transform_indices = @transform_4, window_bounds = array<i64: 2, 4, 32>}, {pipeline_mode = #tpu.pipeline_mode<synchronous>, transform_indices = @transform_5, window_bounds = array<i64: 192, 32>}, {pipeline_mode = #tpu.pipeline_mode<synchronous>, transform_indices = @transform_6, window_bounds = array<i64: 4, 32>}, {pipeline_mode = #tpu.pipeline_mode<synchronous>, transform_indices = @transform_7, window_bounds = array<i64: 2, 32, 128>}, {pipeline_mode = #tpu.pipeline_mode<synchronous>, transform_indices = @transform_8, window_bounds = array<i64: 2, 32, 64>}, {pipeline_mode = #tpu.pipeline_mode<synchronous>, transform_indices = @transform_9, window_bounds = array<i64: 2, 64, 32>}, {pipeline_mode = #tpu.pipeline_mode<synchronous>, transform_indices = @transform_10, window_bounds = array<i64: 2, 8, 96>}, {transform_indices = @transform_11, window_bounds = array<i64: 1, 24, 32>}]} {
    %cst = arith.constant 0.000000e+00 : f32
    %0 = vector.broadcast %cst : f32 to vector<4x32xf32>
    %c0 = arith.constant 0 : index
    %c0_0 = arith.constant 0 : index
    %c0_1 = arith.constant 0 : index
    %1 = vector.load %arg1[%c0, %c0_0, %c0_1] : memref<1x4x8xf32, #tpu.memory_space<vmem>>, vector<1x4x4xf32>
    %2 = vector.shape_cast %1 : vector<1x4x4xf32> to vector<4x4xf32>
    %3 = arith.truncf %2 : vector<4x4xf32> to vector<4x4xbf16>
    %c0_2 = arith.constant 0 : index
    %c0_3 = arith.constant 0 : index
    %c0_4 = arith.constant 0 : index
    %4 = vector.load %arg5[%c0_2, %c0_3, %c0_4] : memref<2x4x32xbf16, #tpu.memory_space<vmem>>, vector<1x4x32xbf16>
    %5 = vector.shape_cast %4 : vector<1x4x32xbf16> to vector<4x32xbf16>
    %cst_5 = arith.constant dense<0.000000e+00> : vector<4x32xf32>
    %6 = tpu.matmul %3, %5, %cst_5 {dimension_numbers = #tpu.dot_dimension_numbers<[1], [0], [0], [1], [0, 0, 1, 1], [], []>} : vector<4x4xbf16>, vector<4x32xbf16>, vector<4x32xf32> -> vector<4x32xf32>
    %c0_6 = arith.constant 0 : index
    %c0_7 = arith.constant 0 : index
    %c4 = arith.constant 4 : index
    %7 = vector.load %arg1[%c0_6, %c0_7, %c4] : memref<1x4x8xf32, #tpu.memory_space<vmem>>, vector<1x4x4xf32>
    %8 = vector.shape_cast %7 : vector<1x4x4xf32> to vector<4x4xf32>
    %9 = arith.truncf %8 : vector<4x4xf32> to vector<4x4xbf16>
    %c1 = arith.constant 1 : index
    %c0_8 = arith.constant 0 : index
    %c0_9 = arith.constant 0 : index
    %10 = vector.load %arg5[%c1, %c0_8, %c0_9] : memref<2x4x32xbf16, #tpu.memory_space<vmem>>, vector<1x4x32xbf16>
    %11 = vector.shape_cast %10 : vector<1x4x32xbf16> to vector<4x32xbf16>
    %cst_10 = arith.constant dense<0.000000e+00> : vector<4x32xf32>
    %12 = tpu.matmul %9, %11, %cst_10 {dimension_numbers = #tpu.dot_dimension_numbers<[1], [0], [0], [1], [0, 0, 1, 1], [], []>} : vector<4x4xbf16>, vector<4x32xbf16>, vector<4x32xf32> -> vector<4x32xf32>
    %c0_11 = arith.constant 0 : index
    %c0_12 = arith.constant 0 : index
    %c0_13 = arith.constant 0 : index
    %13 = vector.load %arg2[%c0_11, %c0_12, %c0_13] : memref<1x2x192xf32, #tpu.memory_space<vmem>>, vector<1x2x192xf32>
    %14 = vector.shape_cast %13 : vector<1x2x192xf32> to vector<2x192xf32>
    %15 = arith.truncf %14 : vector<2x192xf32> to vector<2x192xbf16>
    %c0_14 = arith.constant 0 : index
    %c0_15 = arith.constant 0 : index
    %16 = vector.load %arg6[%c0_14, %c0_15] : memref<192x32xbf16, #tpu.memory_space<vmem>>, vector<192x32xbf16>
    %cst_16 = arith.constant dense<0.000000e+00> : vector<2x32xf32>
    %17 = tpu.matmul %15, %16, %cst_16 {dimension_numbers = #tpu.dot_dimension_numbers<[1], [0], [0], [1], [0, 0, 1, 1], [], []>} : vector<2x192xbf16>, vector<192x32xbf16>, vector<2x32xf32> -> vector<2x32xf32>
    %c0_17 = arith.constant 0 : index
    %c0_18 = arith.constant 0 : index
    %c0_19 = arith.constant 0 : index
    %18 = vector.load %arg3[%c0_17, %c0_18, %c0_19] : memref<1x3x32xf32, #tpu.memory_space<vmem>>, vector<1x3x32xf32>
    %19 = vector.shape_cast %18 : vector<1x3x32xf32> to vector<3x32xf32>
    %cst_20 = arith.constant 0.000000e+00 : f32
    %20 = vector.broadcast %cst_20 : f32 to vector<7x32xf32>
    %21 = tpu.concatenate %0, %6, %12, %17, %19, %20 in 0 : vector<4x32xf32>, vector<4x32xf32>, vector<4x32xf32>, vector<2x32xf32>, vector<3x32xf32>, vector<7x32xf32> -> vector<24x32xf32>
    %c0_21 = arith.constant 0 : index
    %c0_22 = arith.constant 0 : index
    %22 = vector.load %arg4[%c0_21, %c0_22] : memref<24x32xf32, #tpu.memory_space<vmem>>, vector<24x32xf32>
    %23 = arith.addf %21, %22 : vector<24x32xf32>
    %24 = tpu.iota {dimensions = array<i32: 1>} : vector<1x24xi32>
    %c17_i32 = arith.constant 17 : i32
    %25 = vector.broadcast %c17_i32 : i32 to vector<1x24xi32>
    %26 = arith.cmpi slt, %24, %25 : vector<1x24xi32>
    %cst_23 = arith.constant 0.000000e+00 : f32
    %cst_24 = arith.constant -1.000000e+09 : f32
    %27 = vector.broadcast %cst_23 : f32 to vector<1x24xf32>
    %28 = vector.broadcast %cst_24 : f32 to vector<1x24xf32>
    %29 = arith.select %26, %27, %28 : vector<1x24xi1>, vector<1x24xf32>
    %c0_25 = arith.constant 0 : index
    %c0_26 = arith.constant 0 : index
    %30 = vector.load %arg7[%c0_25, %c0_26] : memref<4x32xf32, #tpu.memory_space<vmem>>, vector<1x32xf32>
    %c1_27 = arith.constant 1 : index
    %c0_28 = arith.constant 0 : index
    %31 = vector.load %arg7[%c1_27, %c0_28] : memref<4x32xf32, #tpu.memory_space<vmem>>, vector<1x32xf32>
    %cst_29 = arith.constant dense<0.000000e+00> : vector<24xf32>
    %32 = vector.multi_reduction <add>, %23, %cst_29 [1] : vector<24x32xf32> to vector<24xf32>
    %33 = vector.shape_cast %32 : vector<24xf32> to vector<24x1xf32>
    %cst_30 = arith.constant 3.200000e+01 : f32
    %34 = vector.broadcast %cst_30 : f32 to vector<24x1xf32>
    %35 = arith.divf %33, %34 : vector<24x1xf32>
    %36 = vector.broadcast %35 : vector<24x1xf32> to vector<24x32xf32>
    %37 = arith.subf %23, %36 : vector<24x32xf32>
    %38 = arith.mulf %37, %37 : vector<24x32xf32>
    %cst_31 = arith.constant dense<0.000000e+00> : vector<24xf32>
    %39 = vector.multi_reduction <add>, %38, %cst_31 [1] : vector<24x32xf32> to vector<24xf32>
    %40 = vector.shape_cast %39 : vector<24xf32> to vector<24x1xf32>
    %cst_32 = arith.constant 3.200000e+01 : f32
    %41 = vector.broadcast %cst_32 : f32 to vector<24x1xf32>
    %42 = arith.divf %40, %41 : vector<24x1xf32>
    %cst_33 = arith.constant 9.99999974E-6 : f32
    %43 = vector.broadcast %cst_33 : f32 to vector<24x1xf32>
    %44 = arith.addf %42, %43 : vector<24x1xf32>
    %45 = math.rsqrt %44 : vector<24x1xf32>
    %46 = vector.broadcast %45 : vector<24x1xf32> to vector<24x32xf32>
    %47 = arith.mulf %37, %46 : vector<24x32xf32>
    %48 = vector.broadcast %30 : vector<1x32xf32> to vector<24x32xf32>
    %49 = arith.mulf %47, %48 : vector<24x32xf32>
    %50 = vector.broadcast %31 : vector<1x32xf32> to vector<24x32xf32>
    %51 = arith.addf %49, %50 : vector<24x32xf32>
    %c0_34 = arith.constant 0 : index
    %c0_35 = arith.constant 0 : index
    %c0_36 = arith.constant 0 : index
    %52 = vector.load %arg11[%c0_34, %c0_35, %c0_36] : memref<2x8x96xf32, #tpu.memory_space<vmem>>, vector<1x8x96xf32>
    %53 = vector.shape_cast %52 : vector<1x8x96xf32> to vector<8x96xf32>
    %c0_37 = arith.constant 0 : index
    %c0_38 = arith.constant 0 : index
    %c0_39 = arith.constant 0 : index
    %54 = vector.load %arg8[%c0_37, %c0_38, %c0_39] : memref<2x32x128xbf16, #tpu.memory_space<vmem>>, vector<1x32x128xbf16>
    %55 = vector.shape_cast %54 : vector<1x32x128xbf16> to vector<32x128xbf16>
    %56 = vector.extract_strided_slice %53 {offsets = [0, 0], sizes = [1, 96], strides = [1, 1]} : vector<8x96xf32> to vector<1x96xf32>
    %57 = vector.extract_strided_slice %53 {offsets = [1, 0], sizes = [1, 32], strides = [1, 1]} : vector<8x96xf32> to vector<1x32xf32>
    %58 = arith.truncf %51 : vector<24x32xf32> to vector<24x32xbf16>
    %59 = vector.extract_strided_slice %55 {offsets = [0, 0], sizes = [32, 96], strides = [1, 1]} : vector<32x128xbf16> to vector<32x96xbf16>
    %cst_40 = arith.constant dense<0.000000e+00> : vector<24x96xf32>
    %60 = tpu.matmul %58, %59, %cst_40 {dimension_numbers = #tpu.dot_dimension_numbers<[1], [0], [0], [1], [0, 0, 1, 1], [], []>} : vector<24x32xbf16>, vector<32x96xbf16>, vector<24x96xf32> -> vector<24x96xf32>
    %61 = vector.broadcast %56 : vector<1x96xf32> to vector<24x96xf32>
    %62 = arith.addf %60, %61 : vector<24x96xf32>
    %63 = vector.extract_strided_slice %62 {offsets = [0, 0], sizes = [24, 8], strides = [1, 1]} : vector<24x96xf32> to vector<24x8xf32>
    %64 = vector.extract_strided_slice %62 {offsets = [0, 8], sizes = [24, 8], strides = [1, 1]} : vector<24x96xf32> to vector<24x8xf32>
    %65 = vector.extract_strided_slice %62 {offsets = [0, 16], sizes = [24, 8], strides = [1, 1]} : vector<24x96xf32> to vector<24x8xf32>
    %66 = vector.extract_strided_slice %62 {offsets = [0, 24], sizes = [24, 8], strides = [1, 1]} : vector<24x96xf32> to vector<24x8xf32>
    %67 = vector.shape_cast %63 : vector<24x8xf32> to vector<1x24x8xf32>
    %68 = vector.shape_cast %64 : vector<24x8xf32> to vector<1x24x8xf32>
    %69 = vector.shape_cast %65 : vector<24x8xf32> to vector<1x24x8xf32>
    %70 = vector.shape_cast %66 : vector<24x8xf32> to vector<1x24x8xf32>
    %71 = tpu.concatenate %67, %68, %69, %70 in 0 : vector<1x24x8xf32>, vector<1x24x8xf32>, vector<1x24x8xf32>, vector<1x24x8xf32> -> vector<4x24x8xf32>
    %72 = vector.extract_strided_slice %62 {offsets = [0, 32], sizes = [24, 8], strides = [1, 1]} : vector<24x96xf32> to vector<24x8xf32>
    %73 = vector.extract_strided_slice %62 {offsets = [0, 40], sizes = [24, 8], strides = [1, 1]} : vector<24x96xf32> to vector<24x8xf32>
    %74 = vector.extract_strided_slice %62 {offsets = [0, 48], sizes = [24, 8], strides = [1, 1]} : vector<24x96xf32> to vector<24x8xf32>
    %75 = vector.extract_strided_slice %62 {offsets = [0, 56], sizes = [24, 8], strides = [1, 1]} : vector<24x96xf32> to vector<24x8xf32>
    %76 = vector.shape_cast %72 : vector<24x8xf32> to vector<1x24x8xf32>
    %77 = vector.shape_cast %73 : vector<24x8xf32> to vector<1x24x8xf32>
    %78 = vector.shape_cast %74 : vector<24x8xf32> to vector<1x24x8xf32>
    %79 = vector.shape_cast %75 : vector<24x8xf32> to vector<1x24x8xf32>
    %80 = tpu.concatenate %76, %77, %78, %79 in 0 : vector<1x24x8xf32>, vector<1x24x8xf32>, vector<1x24x8xf32>, vector<1x24x8xf32> -> vector<4x24x8xf32>
    %81 = vector.extract_strided_slice %62 {offsets = [0, 64], sizes = [24, 8], strides = [1, 1]} : vector<24x96xf32> to vector<24x8xf32>
    %82 = vector.extract_strided_slice %62 {offsets = [0, 72], sizes = [24, 8], strides = [1, 1]} : vector<24x96xf32> to vector<24x8xf32>
    %83 = vector.extract_strided_slice %62 {offsets = [0, 80], sizes = [24, 8], strides = [1, 1]} : vector<24x96xf32> to vector<24x8xf32>
    %84 = vector.extract_strided_slice %62 {offsets = [0, 88], sizes = [24, 8], strides = [1, 1]} : vector<24x96xf32> to vector<24x8xf32>
    %85 = vector.shape_cast %81 : vector<24x8xf32> to vector<1x24x8xf32>
    %86 = vector.shape_cast %82 : vector<24x8xf32> to vector<1x24x8xf32>
    %87 = vector.shape_cast %83 : vector<24x8xf32> to vector<1x24x8xf32>
    %88 = vector.shape_cast %84 : vector<24x8xf32> to vector<1x24x8xf32>
    %89 = tpu.concatenate %85, %86, %87, %88 in 0 : vector<1x24x8xf32>, vector<1x24x8xf32>, vector<1x24x8xf32>, vector<1x24x8xf32> -> vector<4x24x8xf32>
    %90 = arith.truncf %71 : vector<4x24x8xf32> to vector<4x24x8xbf16>
    %91 = arith.truncf %80 : vector<4x24x8xf32> to vector<4x24x8xbf16>
    %cst_41 = arith.constant dense<0.000000e+00> : vector<4x24x24xf32>
    %92 = tpu.matmul %90, %91, %cst_41 {dimension_numbers = #tpu.dot_dimension_numbers<[2], [2], [1], [1], [0, 0, 0, 1, 1, 1], [0], [0]>} : vector<4x24x8xbf16>, vector<4x24x8xbf16>, vector<4x24x24xf32> -> vector<4x24x24xf32>
    %cst_42 = arith.constant 0.353553385 : f32
    %93 = vector.broadcast %cst_42 : f32 to vector<4x24x24xf32>
    %94 = arith.mulf %92, %93 : vector<4x24x24xf32>
    %95 = vector.shape_cast %29 : vector<1x24xf32> to vector<1x1x24xf32>
    %96 = vector.broadcast %95 : vector<1x1x24xf32> to vector<4x24x24xf32>
    %97 = arith.addf %94, %96 : vector<4x24x24xf32>
    %cst_43 = arith.constant dense<0xFF800000> : vector<4x24xf32>
    %98 = vector.multi_reduction <maximumf>, %97, %cst_43 [2] : vector<4x24x24xf32> to vector<4x24xf32>
    %99 = vector.shape_cast %98 : vector<4x24xf32> to vector<4x24x1xf32>
    %100 = vector.broadcast %99 : vector<4x24x1xf32> to vector<4x24x24xf32>
    %101 = arith.subf %97, %100 : vector<4x24x24xf32>
    %102 = math.exp %101 : vector<4x24x24xf32>
    %cst_44 = arith.constant dense<0.000000e+00> : vector<4x24xf32>
    %103 = vector.multi_reduction <add>, %102, %cst_44 [2] : vector<4x24x24xf32> to vector<4x24xf32>
    %104 = vector.shape_cast %103 : vector<4x24xf32> to vector<4x24x1xf32>
    %105 = tpu.reciprocal %104 {approx = true} : vector<4x24x1xf32> -> vector<4x24x1xf32>
    %106 = vector.broadcast %105 : vector<4x24x1xf32> to vector<4x24x24xf32>
    %107 = arith.mulf %102, %106 : vector<4x24x24xf32>
    %108 = arith.truncf %107 : vector<4x24x24xf32> to vector<4x24x24xbf16>
    %109 = arith.truncf %89 : vector<4x24x8xf32> to vector<4x24x8xbf16>
    %cst_45 = arith.constant dense<0.000000e+00> : vector<4x24x8xf32>
    %110 = tpu.matmul %108, %109, %cst_45 {dimension_numbers = #tpu.dot_dimension_numbers<[2], [1], [1], [2], [0, 0, 0, 1, 1, 2], [0], [0]>} : vector<4x24x24xbf16>, vector<4x24x8xbf16>, vector<4x24x8xf32> -> vector<4x24x8xf32>
    %111 = vector.extract_strided_slice %110 {offsets = [0, 0, 0], sizes = [1, 24, 8], strides = [1, 1, 1]} : vector<4x24x8xf32> to vector<1x24x8xf32>
    %112 = vector.shape_cast %111 : vector<1x24x8xf32> to vector<24x8xf32>
    %113 = vector.extract_strided_slice %110 {offsets = [1, 0, 0], sizes = [1, 24, 8], strides = [1, 1, 1]} : vector<4x24x8xf32> to vector<1x24x8xf32>
    %114 = vector.shape_cast %113 : vector<1x24x8xf32> to vector<24x8xf32>
    %115 = vector.extract_strided_slice %110 {offsets = [2, 0, 0], sizes = [1, 24, 8], strides = [1, 1, 1]} : vector<4x24x8xf32> to vector<1x24x8xf32>
    %116 = vector.shape_cast %115 : vector<1x24x8xf32> to vector<24x8xf32>
    %117 = vector.extract_strided_slice %110 {offsets = [3, 0, 0], sizes = [1, 24, 8], strides = [1, 1, 1]} : vector<4x24x8xf32> to vector<1x24x8xf32>
    %118 = vector.shape_cast %117 : vector<1x24x8xf32> to vector<24x8xf32>
    %119 = tpu.concatenate %112, %114, %116, %118 in 1 : vector<24x8xf32>, vector<24x8xf32>, vector<24x8xf32>, vector<24x8xf32> -> vector<24x32xf32>
    %120 = arith.truncf %119 : vector<24x32xf32> to vector<24x32xbf16>
    %121 = vector.extract_strided_slice %55 {offsets = [0, 96], sizes = [32, 32], strides = [1, 1]} : vector<32x128xbf16> to vector<32x32xbf16>
    %cst_46 = arith.constant dense<0.000000e+00> : vector<24x32xf32>
    %122 = tpu.matmul %120, %121, %cst_46 {dimension_numbers = #tpu.dot_dimension_numbers<[1], [0], [0], [1], [0, 0, 1, 1], [], []>} : vector<24x32xbf16>, vector<32x32xbf16>, vector<24x32xf32> -> vector<24x32xf32>
    %123 = vector.broadcast %57 : vector<1x32xf32> to vector<24x32xf32>
    %124 = arith.addf %122, %123 : vector<24x32xf32>
    %125 = arith.addf %51, %124 : vector<24x32xf32>
    %126 = vector.extract_strided_slice %53 {offsets = [2, 0], sizes = [1, 32], strides = [1, 1]} : vector<8x96xf32> to vector<1x32xf32>
    %127 = vector.extract_strided_slice %53 {offsets = [3, 0], sizes = [1, 32], strides = [1, 1]} : vector<8x96xf32> to vector<1x32xf32>
    %cst_47 = arith.constant dense<0.000000e+00> : vector<24xf32>
    %128 = vector.multi_reduction <add>, %125, %cst_47 [1] : vector<24x32xf32> to vector<24xf32>
    %129 = vector.shape_cast %128 : vector<24xf32> to vector<24x1xf32>
    %cst_48 = arith.constant 3.200000e+01 : f32
    %130 = vector.broadcast %cst_48 : f32 to vector<24x1xf32>
    %131 = arith.divf %129, %130 : vector<24x1xf32>
    %132 = vector.broadcast %131 : vector<24x1xf32> to vector<24x32xf32>
    %133 = arith.subf %125, %132 : vector<24x32xf32>
    %134 = arith.mulf %133, %133 : vector<24x32xf32>
    %cst_49 = arith.constant dense<0.000000e+00> : vector<24xf32>
    %135 = vector.multi_reduction <add>, %134, %cst_49 [1] : vector<24x32xf32> to vector<24xf32>
    %136 = vector.shape_cast %135 : vector<24xf32> to vector<24x1xf32>
    %cst_50 = arith.constant 3.200000e+01 : f32
    %137 = vector.broadcast %cst_50 : f32 to vector<24x1xf32>
    %138 = arith.divf %136, %137 : vector<24x1xf32>
    %cst_51 = arith.constant 9.99999974E-6 : f32
    %139 = vector.broadcast %cst_51 : f32 to vector<24x1xf32>
    %140 = arith.addf %138, %139 : vector<24x1xf32>
    %141 = math.rsqrt %140 : vector<24x1xf32>
    %142 = vector.broadcast %141 : vector<24x1xf32> to vector<24x32xf32>
    %143 = arith.mulf %133, %142 : vector<24x32xf32>
    %144 = vector.broadcast %126 : vector<1x32xf32> to vector<24x32xf32>
    %145 = arith.mulf %143, %144 : vector<24x32xf32>
    %146 = vector.broadcast %127 : vector<1x32xf32> to vector<24x32xf32>
    %147 = arith.addf %145, %146 : vector<24x32xf32>
    %148 = arith.truncf %147 : vector<24x32xf32> to vector<24x32xbf16>
    %c0_52 = arith.constant 0 : index
    %c0_53 = arith.constant 0 : index
    %c0_54 = arith.constant 0 : index
    %149 = vector.load %arg9[%c0_52, %c0_53, %c0_54] : memref<2x32x64xbf16, #tpu.memory_space<vmem>>, vector<1x32x64xbf16>
    %150 = vector.shape_cast %149 : vector<1x32x64xbf16> to vector<32x64xbf16>
    %cst_55 = arith.constant dense<0.000000e+00> : vector<24x64xf32>
    %151 = tpu.matmul %148, %150, %cst_55 {dimension_numbers = #tpu.dot_dimension_numbers<[1], [0], [0], [1], [0, 0, 1, 1], [], []>} : vector<24x32xbf16>, vector<32x64xbf16>, vector<24x64xf32> -> vector<24x64xf32>
    %152 = vector.extract_strided_slice %53 {offsets = [4, 0], sizes = [1, 64], strides = [1, 1]} : vector<8x96xf32> to vector<1x64xf32>
    %153 = vector.broadcast %152 : vector<1x64xf32> to vector<24x64xf32>
    %154 = arith.addf %151, %153 : vector<24x64xf32>
    %155 = arith.mulf %154, %154 : vector<24x64xf32>
    %156 = arith.mulf %154, %155 : vector<24x64xf32>
    %cst_56 = arith.constant 4.471500e-02 : f32
    %157 = vector.broadcast %cst_56 : f32 to vector<24x64xf32>
    %158 = arith.mulf %157, %156 : vector<24x64xf32>
    %159 = arith.addf %154, %158 : vector<24x64xf32>
    %cst_57 = arith.constant 0.797884583 : f32
    %160 = vector.broadcast %cst_57 : f32 to vector<24x64xf32>
    %161 = arith.mulf %160, %159 : vector<24x64xf32>
    %162 = math.tanh %161 : vector<24x64xf32>
    %cst_58 = arith.constant 1.000000e+00 : f32
    %163 = vector.broadcast %cst_58 : f32 to vector<24x64xf32>
    %164 = arith.addf %163, %162 : vector<24x64xf32>
    %cst_59 = arith.constant 5.000000e-01 : f32
    %165 = vector.broadcast %cst_59 : f32 to vector<24x64xf32>
    %166 = arith.mulf %165, %164 : vector<24x64xf32>
    %167 = arith.mulf %154, %166 : vector<24x64xf32>
    %168 = arith.truncf %167 : vector<24x64xf32> to vector<24x64xbf16>
    %c0_60 = arith.constant 0 : index
    %c0_61 = arith.constant 0 : index
    %c0_62 = arith.constant 0 : index
    %169 = vector.load %arg10[%c0_60, %c0_61, %c0_62] : memref<2x64x32xbf16, #tpu.memory_space<vmem>>, vector<1x64x32xbf16>
    %170 = vector.shape_cast %169 : vector<1x64x32xbf16> to vector<64x32xbf16>
    %cst_63 = arith.constant dense<0.000000e+00> : vector<24x32xf32>
    %171 = tpu.matmul %168, %170, %cst_63 {dimension_numbers = #tpu.dot_dimension_numbers<[1], [0], [0], [1], [0, 0, 1, 1], [], []>} : vector<24x64xbf16>, vector<64x32xbf16>, vector<24x32xf32> -> vector<24x32xf32>
    %172 = vector.extract_strided_slice %53 {offsets = [5, 0], sizes = [1, 32], strides = [1, 1]} : vector<8x96xf32> to vector<1x32xf32>
    %173 = vector.broadcast %172 : vector<1x32xf32> to vector<24x32xf32>
    %174 = arith.addf %171, %173 : vector<24x32xf32>
    %175 = arith.addf %147, %174 : vector<24x32xf32>
    %176 = vector.extract_strided_slice %53 {offsets = [6, 0], sizes = [1, 32], strides = [1, 1]} : vector<8x96xf32> to vector<1x32xf32>
    %177 = vector.extract_strided_slice %53 {offsets = [7, 0], sizes = [1, 32], strides = [1, 1]} : vector<8x96xf32> to vector<1x32xf32>
    %cst_64 = arith.constant dense<0.000000e+00> : vector<24xf32>
    %178 = vector.multi_reduction <add>, %175, %cst_64 [1] : vector<24x32xf32> to vector<24xf32>
    %179 = vector.shape_cast %178 : vector<24xf32> to vector<24x1xf32>
    %cst_65 = arith.constant 3.200000e+01 : f32
    %180 = vector.broadcast %cst_65 : f32 to vector<24x1xf32>
    %181 = arith.divf %179, %180 : vector<24x1xf32>
    %182 = vector.broadcast %181 : vector<24x1xf32> to vector<24x32xf32>
    %183 = arith.subf %175, %182 : vector<24x32xf32>
    %184 = arith.mulf %183, %183 : vector<24x32xf32>
    %cst_66 = arith.constant dense<0.000000e+00> : vector<24xf32>
    %185 = vector.multi_reduction <add>, %184, %cst_66 [1] : vector<24x32xf32> to vector<24xf32>
    %186 = vector.shape_cast %185 : vector<24xf32> to vector<24x1xf32>
    %cst_67 = arith.constant 3.200000e+01 : f32
    %187 = vector.broadcast %cst_67 : f32 to vector<24x1xf32>
    %188 = arith.divf %186, %187 : vector<24x1xf32>
    %cst_68 = arith.constant 9.99999974E-6 : f32
    %189 = vector.broadcast %cst_68 : f32 to vector<24x1xf32>
    %190 = arith.addf %188, %189 : vector<24x1xf32>
    %191 = math.rsqrt %190 : vector<24x1xf32>
    %192 = vector.broadcast %191 : vector<24x1xf32> to vector<24x32xf32>
    %193 = arith.mulf %183, %192 : vector<24x32xf32>
    %194 = vector.broadcast %176 : vector<1x32xf32> to vector<24x32xf32>
    %195 = arith.mulf %193, %194 : vector<24x32xf32>
    %196 = vector.broadcast %177 : vector<1x32xf32> to vector<24x32xf32>
    %197 = arith.addf %195, %196 : vector<24x32xf32>
    %c1_69 = arith.constant 1 : index
    %c0_70 = arith.constant 0 : index
    %c0_71 = arith.constant 0 : index
    %198 = vector.load %arg11[%c1_69, %c0_70, %c0_71] : memref<2x8x96xf32, #tpu.memory_space<vmem>>, vector<1x8x96xf32>
    %199 = vector.shape_cast %198 : vector<1x8x96xf32> to vector<8x96xf32>
    %c1_72 = arith.constant 1 : index
    %c0_73 = arith.constant 0 : index
    %c0_74 = arith.constant 0 : index
    %200 = vector.load %arg8[%c1_72, %c0_73, %c0_74] : memref<2x32x128xbf16, #tpu.memory_space<vmem>>, vector<1x32x128xbf16>
    %201 = vector.shape_cast %200 : vector<1x32x128xbf16> to vector<32x128xbf16>
    %202 = vector.extract_strided_slice %199 {offsets = [0, 0], sizes = [1, 96], strides = [1, 1]} : vector<8x96xf32> to vector<1x96xf32>
    %203 = vector.extract_strided_slice %199 {offsets = [1, 0], sizes = [1, 32], strides = [1, 1]} : vector<8x96xf32> to vector<1x32xf32>
    %204 = arith.truncf %197 : vector<24x32xf32> to vector<24x32xbf16>
    %205 = vector.extract_strided_slice %201 {offsets = [0, 0], sizes = [32, 96], strides = [1, 1]} : vector<32x128xbf16> to vector<32x96xbf16>
    %cst_75 = arith.constant dense<0.000000e+00> : vector<24x96xf32>
    %206 = tpu.matmul %204, %205, %cst_75 {dimension_numbers = #tpu.dot_dimension_numbers<[1], [0], [0], [1], [0, 0, 1, 1], [], []>} : vector<24x32xbf16>, vector<32x96xbf16>, vector<24x96xf32> -> vector<24x96xf32>
    %207 = vector.broadcast %202 : vector<1x96xf32> to vector<24x96xf32>
    %208 = arith.addf %206, %207 : vector<24x96xf32>
    %209 = vector.extract_strided_slice %208 {offsets = [0, 0], sizes = [24, 8], strides = [1, 1]} : vector<24x96xf32> to vector<24x8xf32>
    %210 = vector.extract_strided_slice %208 {offsets = [0, 8], sizes = [24, 8], strides = [1, 1]} : vector<24x96xf32> to vector<24x8xf32>
    %211 = vector.extract_strided_slice %208 {offsets = [0, 16], sizes = [24, 8], strides = [1, 1]} : vector<24x96xf32> to vector<24x8xf32>
    %212 = vector.extract_strided_slice %208 {offsets = [0, 24], sizes = [24, 8], strides = [1, 1]} : vector<24x96xf32> to vector<24x8xf32>
    %213 = vector.shape_cast %209 : vector<24x8xf32> to vector<1x24x8xf32>
    %214 = vector.shape_cast %210 : vector<24x8xf32> to vector<1x24x8xf32>
    %215 = vector.shape_cast %211 : vector<24x8xf32> to vector<1x24x8xf32>
    %216 = vector.shape_cast %212 : vector<24x8xf32> to vector<1x24x8xf32>
    %217 = tpu.concatenate %213, %214, %215, %216 in 0 : vector<1x24x8xf32>, vector<1x24x8xf32>, vector<1x24x8xf32>, vector<1x24x8xf32> -> vector<4x24x8xf32>
    %218 = vector.extract_strided_slice %208 {offsets = [0, 32], sizes = [24, 8], strides = [1, 1]} : vector<24x96xf32> to vector<24x8xf32>
    %219 = vector.extract_strided_slice %208 {offsets = [0, 40], sizes = [24, 8], strides = [1, 1]} : vector<24x96xf32> to vector<24x8xf32>
    %220 = vector.extract_strided_slice %208 {offsets = [0, 48], sizes = [24, 8], strides = [1, 1]} : vector<24x96xf32> to vector<24x8xf32>
    %221 = vector.extract_strided_slice %208 {offsets = [0, 56], sizes = [24, 8], strides = [1, 1]} : vector<24x96xf32> to vector<24x8xf32>
    %222 = vector.shape_cast %218 : vector<24x8xf32> to vector<1x24x8xf32>
    %223 = vector.shape_cast %219 : vector<24x8xf32> to vector<1x24x8xf32>
    %224 = vector.shape_cast %220 : vector<24x8xf32> to vector<1x24x8xf32>
    %225 = vector.shape_cast %221 : vector<24x8xf32> to vector<1x24x8xf32>
    %226 = tpu.concatenate %222, %223, %224, %225 in 0 : vector<1x24x8xf32>, vector<1x24x8xf32>, vector<1x24x8xf32>, vector<1x24x8xf32> -> vector<4x24x8xf32>
    %227 = vector.extract_strided_slice %208 {offsets = [0, 64], sizes = [24, 8], strides = [1, 1]} : vector<24x96xf32> to vector<24x8xf32>
    %228 = vector.extract_strided_slice %208 {offsets = [0, 72], sizes = [24, 8], strides = [1, 1]} : vector<24x96xf32> to vector<24x8xf32>
    %229 = vector.extract_strided_slice %208 {offsets = [0, 80], sizes = [24, 8], strides = [1, 1]} : vector<24x96xf32> to vector<24x8xf32>
    %230 = vector.extract_strided_slice %208 {offsets = [0, 88], sizes = [24, 8], strides = [1, 1]} : vector<24x96xf32> to vector<24x8xf32>
    %231 = vector.shape_cast %227 : vector<24x8xf32> to vector<1x24x8xf32>
    %232 = vector.shape_cast %228 : vector<24x8xf32> to vector<1x24x8xf32>
    %233 = vector.shape_cast %229 : vector<24x8xf32> to vector<1x24x8xf32>
    %234 = vector.shape_cast %230 : vector<24x8xf32> to vector<1x24x8xf32>
    %235 = tpu.concatenate %231, %232, %233, %234 in 0 : vector<1x24x8xf32>, vector<1x24x8xf32>, vector<1x24x8xf32>, vector<1x24x8xf32> -> vector<4x24x8xf32>
    %236 = arith.truncf %217 : vector<4x24x8xf32> to vector<4x24x8xbf16>
    %237 = arith.truncf %226 : vector<4x24x8xf32> to vector<4x24x8xbf16>
    %cst_76 = arith.constant dense<0.000000e+00> : vector<4x24x24xf32>
    %238 = tpu.matmul %236, %237, %cst_76 {dimension_numbers = #tpu.dot_dimension_numbers<[2], [2], [1], [1], [0, 0, 0, 1, 1, 1], [0], [0]>} : vector<4x24x8xbf16>, vector<4x24x8xbf16>, vector<4x24x24xf32> -> vector<4x24x24xf32>
    %cst_77 = arith.constant 0.353553385 : f32
    %239 = vector.broadcast %cst_77 : f32 to vector<4x24x24xf32>
    %240 = arith.mulf %238, %239 : vector<4x24x24xf32>
    %241 = vector.shape_cast %29 : vector<1x24xf32> to vector<1x1x24xf32>
    %242 = vector.broadcast %241 : vector<1x1x24xf32> to vector<4x24x24xf32>
    %243 = arith.addf %240, %242 : vector<4x24x24xf32>
    %cst_78 = arith.constant dense<0xFF800000> : vector<4x24xf32>
    %244 = vector.multi_reduction <maximumf>, %243, %cst_78 [2] : vector<4x24x24xf32> to vector<4x24xf32>
    %245 = vector.shape_cast %244 : vector<4x24xf32> to vector<4x24x1xf32>
    %246 = vector.broadcast %245 : vector<4x24x1xf32> to vector<4x24x24xf32>
    %247 = arith.subf %243, %246 : vector<4x24x24xf32>
    %248 = math.exp %247 : vector<4x24x24xf32>
    %cst_79 = arith.constant dense<0.000000e+00> : vector<4x24xf32>
    %249 = vector.multi_reduction <add>, %248, %cst_79 [2] : vector<4x24x24xf32> to vector<4x24xf32>
    %250 = vector.shape_cast %249 : vector<4x24xf32> to vector<4x24x1xf32>
    %251 = tpu.reciprocal %250 {approx = true} : vector<4x24x1xf32> -> vector<4x24x1xf32>
    %252 = vector.broadcast %251 : vector<4x24x1xf32> to vector<4x24x24xf32>
    %253 = arith.mulf %248, %252 : vector<4x24x24xf32>
    %254 = arith.truncf %253 : vector<4x24x24xf32> to vector<4x24x24xbf16>
    %255 = arith.truncf %235 : vector<4x24x8xf32> to vector<4x24x8xbf16>
    %cst_80 = arith.constant dense<0.000000e+00> : vector<4x24x8xf32>
    %256 = tpu.matmul %254, %255, %cst_80 {dimension_numbers = #tpu.dot_dimension_numbers<[2], [1], [1], [2], [0, 0, 0, 1, 1, 2], [0], [0]>} : vector<4x24x24xbf16>, vector<4x24x8xbf16>, vector<4x24x8xf32> -> vector<4x24x8xf32>
    %257 = vector.extract_strided_slice %256 {offsets = [0, 0, 0], sizes = [1, 24, 8], strides = [1, 1, 1]} : vector<4x24x8xf32> to vector<1x24x8xf32>
    %258 = vector.shape_cast %257 : vector<1x24x8xf32> to vector<24x8xf32>
    %259 = vector.extract_strided_slice %256 {offsets = [1, 0, 0], sizes = [1, 24, 8], strides = [1, 1, 1]} : vector<4x24x8xf32> to vector<1x24x8xf32>
    %260 = vector.shape_cast %259 : vector<1x24x8xf32> to vector<24x8xf32>
    %261 = vector.extract_strided_slice %256 {offsets = [2, 0, 0], sizes = [1, 24, 8], strides = [1, 1, 1]} : vector<4x24x8xf32> to vector<1x24x8xf32>
    %262 = vector.shape_cast %261 : vector<1x24x8xf32> to vector<24x8xf32>
    %263 = vector.extract_strided_slice %256 {offsets = [3, 0, 0], sizes = [1, 24, 8], strides = [1, 1, 1]} : vector<4x24x8xf32> to vector<1x24x8xf32>
    %264 = vector.shape_cast %263 : vector<1x24x8xf32> to vector<24x8xf32>
    %265 = tpu.concatenate %258, %260, %262, %264 in 1 : vector<24x8xf32>, vector<24x8xf32>, vector<24x8xf32>, vector<24x8xf32> -> vector<24x32xf32>
    %266 = arith.truncf %265 : vector<24x32xf32> to vector<24x32xbf16>
    %267 = vector.extract_strided_slice %201 {offsets = [0, 96], sizes = [32, 32], strides = [1, 1]} : vector<32x128xbf16> to vector<32x32xbf16>
    %cst_81 = arith.constant dense<0.000000e+00> : vector<24x32xf32>
    %268 = tpu.matmul %266, %267, %cst_81 {dimension_numbers = #tpu.dot_dimension_numbers<[1], [0], [0], [1], [0, 0, 1, 1], [], []>} : vector<24x32xbf16>, vector<32x32xbf16>, vector<24x32xf32> -> vector<24x32xf32>
    %269 = vector.broadcast %203 : vector<1x32xf32> to vector<24x32xf32>
    %270 = arith.addf %268, %269 : vector<24x32xf32>
    %271 = arith.addf %197, %270 : vector<24x32xf32>
    %272 = vector.extract_strided_slice %199 {offsets = [2, 0], sizes = [1, 32], strides = [1, 1]} : vector<8x96xf32> to vector<1x32xf32>
    %273 = vector.extract_strided_slice %199 {offsets = [3, 0], sizes = [1, 32], strides = [1, 1]} : vector<8x96xf32> to vector<1x32xf32>
    %cst_82 = arith.constant dense<0.000000e+00> : vector<24xf32>
    %274 = vector.multi_reduction <add>, %271, %cst_82 [1] : vector<24x32xf32> to vector<24xf32>
    %275 = vector.shape_cast %274 : vector<24xf32> to vector<24x1xf32>
    %cst_83 = arith.constant 3.200000e+01 : f32
    %276 = vector.broadcast %cst_83 : f32 to vector<24x1xf32>
    %277 = arith.divf %275, %276 : vector<24x1xf32>
    %278 = vector.broadcast %277 : vector<24x1xf32> to vector<24x32xf32>
    %279 = arith.subf %271, %278 : vector<24x32xf32>
    %280 = arith.mulf %279, %279 : vector<24x32xf32>
    %cst_84 = arith.constant dense<0.000000e+00> : vector<24xf32>
    %281 = vector.multi_reduction <add>, %280, %cst_84 [1] : vector<24x32xf32> to vector<24xf32>
    %282 = vector.shape_cast %281 : vector<24xf32> to vector<24x1xf32>
    %cst_85 = arith.constant 3.200000e+01 : f32
    %283 = vector.broadcast %cst_85 : f32 to vector<24x1xf32>
    %284 = arith.divf %282, %283 : vector<24x1xf32>
    %cst_86 = arith.constant 9.99999974E-6 : f32
    %285 = vector.broadcast %cst_86 : f32 to vector<24x1xf32>
    %286 = arith.addf %284, %285 : vector<24x1xf32>
    %287 = math.rsqrt %286 : vector<24x1xf32>
    %288 = vector.broadcast %287 : vector<24x1xf32> to vector<24x32xf32>
    %289 = arith.mulf %279, %288 : vector<24x32xf32>
    %290 = vector.broadcast %272 : vector<1x32xf32> to vector<24x32xf32>
    %291 = arith.mulf %289, %290 : vector<24x32xf32>
    %292 = vector.broadcast %273 : vector<1x32xf32> to vector<24x32xf32>
    %293 = arith.addf %291, %292 : vector<24x32xf32>
    %294 = arith.truncf %293 : vector<24x32xf32> to vector<24x32xbf16>
    %c1_87 = arith.constant 1 : index
    %c0_88 = arith.constant 0 : index
    %c0_89 = arith.constant 0 : index
    %295 = vector.load %arg9[%c1_87, %c0_88, %c0_89] : memref<2x32x64xbf16, #tpu.memory_space<vmem>>, vector<1x32x64xbf16>
    %296 = vector.shape_cast %295 : vector<1x32x64xbf16> to vector<32x64xbf16>
    %cst_90 = arith.constant dense<0.000000e+00> : vector<24x64xf32>
    %297 = tpu.matmul %294, %296, %cst_90 {dimension_numbers = #tpu.dot_dimension_numbers<[1], [0], [0], [1], [0, 0, 1, 1], [], []>} : vector<24x32xbf16>, vector<32x64xbf16>, vector<24x64xf32> -> vector<24x64xf32>
    %298 = vector.extract_strided_slice %199 {offsets = [4, 0], sizes = [1, 64], strides = [1, 1]} : vector<8x96xf32> to vector<1x64xf32>
    %299 = vector.broadcast %298 : vector<1x64xf32> to vector<24x64xf32>
    %300 = arith.addf %297, %299 : vector<24x64xf32>
    %301 = arith.mulf %300, %300 : vector<24x64xf32>
    %302 = arith.mulf %300, %301 : vector<24x64xf32>
    %cst_91 = arith.constant 4.471500e-02 : f32
    %303 = vector.broadcast %cst_91 : f32 to vector<24x64xf32>
    %304 = arith.mulf %303, %302 : vector<24x64xf32>
    %305 = arith.addf %300, %304 : vector<24x64xf32>
    %cst_92 = arith.constant 0.797884583 : f32
    %306 = vector.broadcast %cst_92 : f32 to vector<24x64xf32>
    %307 = arith.mulf %306, %305 : vector<24x64xf32>
    %308 = math.tanh %307 : vector<24x64xf32>
    %cst_93 = arith.constant 1.000000e+00 : f32
    %309 = vector.broadcast %cst_93 : f32 to vector<24x64xf32>
    %310 = arith.addf %309, %308 : vector<24x64xf32>
    %cst_94 = arith.constant 5.000000e-01 : f32
    %311 = vector.broadcast %cst_94 : f32 to vector<24x64xf32>
    %312 = arith.mulf %311, %310 : vector<24x64xf32>
    %313 = arith.mulf %300, %312 : vector<24x64xf32>
    %314 = arith.truncf %313 : vector<24x64xf32> to vector<24x64xbf16>
    %c1_95 = arith.constant 1 : index
    %c0_96 = arith.constant 0 : index
    %c0_97 = arith.constant 0 : index
    %315 = vector.load %arg10[%c1_95, %c0_96, %c0_97] : memref<2x64x32xbf16, #tpu.memory_space<vmem>>, vector<1x64x32xbf16>
    %316 = vector.shape_cast %315 : vector<1x64x32xbf16> to vector<64x32xbf16>
    %cst_98 = arith.constant dense<0.000000e+00> : vector<24x32xf32>
    %317 = tpu.matmul %314, %316, %cst_98 {dimension_numbers = #tpu.dot_dimension_numbers<[1], [0], [0], [1], [0, 0, 1, 1], [], []>} : vector<24x64xbf16>, vector<64x32xbf16>, vector<24x32xf32> -> vector<24x32xf32>
    %318 = vector.extract_strided_slice %199 {offsets = [5, 0], sizes = [1, 32], strides = [1, 1]} : vector<8x96xf32> to vector<1x32xf32>
    %319 = vector.broadcast %318 : vector<1x32xf32> to vector<24x32xf32>
    %320 = arith.addf %317, %319 : vector<24x32xf32>
    %321 = arith.addf %293, %320 : vector<24x32xf32>
    %322 = vector.extract_strided_slice %199 {offsets = [6, 0], sizes = [1, 32], strides = [1, 1]} : vector<8x96xf32> to vector<1x32xf32>
    %323 = vector.extract_strided_slice %199 {offsets = [7, 0], sizes = [1, 32], strides = [1, 1]} : vector<8x96xf32> to vector<1x32xf32>
    %cst_99 = arith.constant dense<0.000000e+00> : vector<24xf32>
    %324 = vector.multi_reduction <add>, %321, %cst_99 [1] : vector<24x32xf32> to vector<24xf32>
    %325 = vector.shape_cast %324 : vector<24xf32> to vector<24x1xf32>
    %cst_100 = arith.constant 3.200000e+01 : f32
    %326 = vector.broadcast %cst_100 : f32 to vector<24x1xf32>
    %327 = arith.divf %325, %326 : vector<24x1xf32>
    %328 = vector.broadcast %327 : vector<24x1xf32> to vector<24x32xf32>
    %329 = arith.subf %321, %328 : vector<24x32xf32>
    %330 = arith.mulf %329, %329 : vector<24x32xf32>
    %cst_101 = arith.constant dense<0.000000e+00> : vector<24xf32>
    %331 = vector.multi_reduction <add>, %330, %cst_101 [1] : vector<24x32xf32> to vector<24xf32>
    %332 = vector.shape_cast %331 : vector<24xf32> to vector<24x1xf32>
    %cst_102 = arith.constant 3.200000e+01 : f32
    %333 = vector.broadcast %cst_102 : f32 to vector<24x1xf32>
    %334 = arith.divf %332, %333 : vector<24x1xf32>
    %cst_103 = arith.constant 9.99999974E-6 : f32
    %335 = vector.broadcast %cst_103 : f32 to vector<24x1xf32>
    %336 = arith.addf %334, %335 : vector<24x1xf32>
    %337 = math.rsqrt %336 : vector<24x1xf32>
    %338 = vector.broadcast %337 : vector<24x1xf32> to vector<24x32xf32>
    %339 = arith.mulf %329, %338 : vector<24x32xf32>
    %340 = vector.broadcast %322 : vector<1x32xf32> to vector<24x32xf32>
    %341 = arith.mulf %339, %340 : vector<24x32xf32>
    %342 = vector.broadcast %323 : vector<1x32xf32> to vector<24x32xf32>
    %343 = arith.addf %341, %342 : vector<24x32xf32>
    %c2 = arith.constant 2 : index
    %c0_104 = arith.constant 0 : index
    %344 = vector.load %arg7[%c2, %c0_104] : memref<4x32xf32, #tpu.memory_space<vmem>>, vector<1x32xf32>
    %c3 = arith.constant 3 : index
    %c0_105 = arith.constant 0 : index
    %345 = vector.load %arg7[%c3, %c0_105] : memref<4x32xf32, #tpu.memory_space<vmem>>, vector<1x32xf32>
    %cst_106 = arith.constant dense<0.000000e+00> : vector<24xf32>
    %346 = vector.multi_reduction <add>, %343, %cst_106 [1] : vector<24x32xf32> to vector<24xf32>
    %347 = vector.shape_cast %346 : vector<24xf32> to vector<24x1xf32>
    %cst_107 = arith.constant 3.200000e+01 : f32
    %348 = vector.broadcast %cst_107 : f32 to vector<24x1xf32>
    %349 = arith.divf %347, %348 : vector<24x1xf32>
    %350 = vector.broadcast %349 : vector<24x1xf32> to vector<24x32xf32>
    %351 = arith.subf %343, %350 : vector<24x32xf32>
    %352 = arith.mulf %351, %351 : vector<24x32xf32>
    %cst_108 = arith.constant dense<0.000000e+00> : vector<24xf32>
    %353 = vector.multi_reduction <add>, %352, %cst_108 [1] : vector<24x32xf32> to vector<24xf32>
    %354 = vector.shape_cast %353 : vector<24xf32> to vector<24x1xf32>
    %cst_109 = arith.constant 3.200000e+01 : f32
    %355 = vector.broadcast %cst_109 : f32 to vector<24x1xf32>
    %356 = arith.divf %354, %355 : vector<24x1xf32>
    %cst_110 = arith.constant 9.99999974E-6 : f32
    %357 = vector.broadcast %cst_110 : f32 to vector<24x1xf32>
    %358 = arith.addf %356, %357 : vector<24x1xf32>
    %359 = math.rsqrt %358 : vector<24x1xf32>
    %360 = vector.broadcast %359 : vector<24x1xf32> to vector<24x32xf32>
    %361 = arith.mulf %351, %360 : vector<24x32xf32>
    %362 = vector.broadcast %344 : vector<1x32xf32> to vector<24x32xf32>
    %363 = arith.mulf %361, %362 : vector<24x32xf32>
    %364 = vector.broadcast %345 : vector<1x32xf32> to vector<24x32xf32>
    %365 = arith.addf %363, %364 : vector<24x32xf32>
    %c0_111 = arith.constant 0 : index
    %c0_112 = arith.constant 0 : index
    %c0_113 = arith.constant 0 : index
    %366 = vector.load %arg12[%c0_111, %c0_112, %c0_113] : memref<1x24x32xf32, #tpu.memory_space<vmem>>, vector<1x24x32xf32>
    %367 = vector.shape_cast %366 : vector<1x24x32xf32> to vector<24x32xf32>
    %368 = vector.shape_cast %365 : vector<24x32xf32> to vector<1x24x32xf32>
    tpu.vector_store %arg12[%c0_111, %c0_112, %c0_113], %368 {strides = array<i32>} : memref<1x24x32xf32, #tpu.memory_space<vmem>>, vector<1x24x32xf32>,
    return
  }
  func.func @transform_0(%arg0: i32) -> (i32, i32, i32) {
    %c0_i32 = arith.constant 0 : i32
    %c0_i32_0 = arith.constant 0 : i32
    %c0_i32_1 = arith.constant 0 : i32
    return %arg0, %c0_i32, %c0_i32_0 : i32, i32, i32
  }
  func.func @transform_1(%arg0: i32) -> (i32, i32, i32) {
    %c0_i32 = arith.constant 0 : i32
    %c0_i32_0 = arith.constant 0 : i32
    %c0_i32_1 = arith.constant 0 : i32
    return %arg0, %c0_i32, %c0_i32_0 : i32, i32, i32
  }
  func.func @transform_2(%arg0: i32) -> (i32, i32, i32) {
    %c0_i32 = arith.constant 0 : i32
    %c0_i32_0 = arith.constant 0 : i32
    %c0_i32_1 = arith.constant 0 : i32
    return %arg0, %c0_i32, %c0_i32_0 : i32, i32, i32
  }
  func.func @transform_3(%arg0: i32) -> (i32, i32) {
    %c0_i32 = arith.constant 0 : i32
    %c0_i32_0 = arith.constant 0 : i32
    %c0_i32_1 = arith.constant 0 : i32
    return %c0_i32, %c0_i32_0 : i32, i32
  }
  func.func @transform_4(%arg0: i32) -> (i32, i32, i32) {
    %c0_i32 = arith.constant 0 : i32
    %c0_i32_0 = arith.constant 0 : i32
    %c0_i32_1 = arith.constant 0 : i32
    %c0_i32_2 = arith.constant 0 : i32
    return %c0_i32, %c0_i32_0, %c0_i32_1 : i32, i32, i32
  }
  func.func @transform_5(%arg0: i32) -> (i32, i32) {
    %c0_i32 = arith.constant 0 : i32
    %c0_i32_0 = arith.constant 0 : i32
    %c0_i32_1 = arith.constant 0 : i32
    return %c0_i32, %c0_i32_0 : i32, i32
  }
  func.func @transform_6(%arg0: i32) -> (i32, i32) {
    %c0_i32 = arith.constant 0 : i32
    %c0_i32_0 = arith.constant 0 : i32
    %c0_i32_1 = arith.constant 0 : i32
    return %c0_i32, %c0_i32_0 : i32, i32
  }
  func.func @transform_7(%arg0: i32) -> (i32, i32, i32) {
    %c0_i32 = arith.constant 0 : i32
    %c0_i32_0 = arith.constant 0 : i32
    %c0_i32_1 = arith.constant 0 : i32
    %c0_i32_2 = arith.constant 0 : i32
    return %c0_i32, %c0_i32_0, %c0_i32_1 : i32, i32, i32
  }
  func.func @transform_8(%arg0: i32) -> (i32, i32, i32) {
    %c0_i32 = arith.constant 0 : i32
    %c0_i32_0 = arith.constant 0 : i32
    %c0_i32_1 = arith.constant 0 : i32
    %c0_i32_2 = arith.constant 0 : i32
    return %c0_i32, %c0_i32_0, %c0_i32_1 : i32, i32, i32
  }
  func.func @transform_9(%arg0: i32) -> (i32, i32, i32) {
    %c0_i32 = arith.constant 0 : i32
    %c0_i32_0 = arith.constant 0 : i32
    %c0_i32_1 = arith.constant 0 : i32
    %c0_i32_2 = arith.constant 0 : i32
    return %c0_i32, %c0_i32_0, %c0_i32_1 : i32, i32, i32
  }
  func.func @transform_10(%arg0: i32) -> (i32, i32, i32) {
    %c0_i32 = arith.constant 0 : i32
    %c0_i32_0 = arith.constant 0 : i32
    %c0_i32_1 = arith.constant 0 : i32
    %c0_i32_2 = arith.constant 0 : i32
    return %c0_i32, %c0_i32_0, %c0_i32_1 : i32, i32, i32
  }
  func.func @transform_11(%arg0: i32) -> (i32, i32, i32) {
    %c0_i32 = arith.constant 0 : i32
    %c0_i32_0 = arith.constant 0 : i32
    %c0_i32_1 = arith.constant 0 : i32
    return %arg0, %c0_i32, %c0_i32_0 : i32, i32, i32
  }
}

module attributes {stable_mosaic.version = 11 : i64} {
  func.func @_decoder_kernel(%arg0: i32, %arg1: memref<1x32x32xf32, #tpu.memory_space<vmem>>, %arg2: memref<32x32xf32, #tpu.memory_space<vmem>>, %arg3: memref<5x32xf32, #tpu.memory_space<vmem>>, %arg4: memref<32x16xbf16, #tpu.memory_space<vmem>>, %arg5: memref<2x16x64xbf16, #tpu.memory_space<vmem>>, %arg6: memref<2x16x32xbf16, #tpu.memory_space<vmem>>, %arg7: memref<2x32x16xbf16, #tpu.memory_space<vmem>>, %arg8: memref<2x8x48xf32, #tpu.memory_space<vmem>>, %arg9: memref<16x256xbf16, #tpu.memory_space<vmem>>, %arg10: memref<1x256xf32, #tpu.memory_space<vmem>>, %arg11: memref<1x32x256xf32, #tpu.memory_space<vmem>>) attributes {dimension_semantics = [#tpu.dimension_semantics<parallel>], iteration_bounds = array<i64: 2>, scalar_prefetch = 0 : i64, scratch_operands = 0 : i64, tpu.core_type = #tpu.core_type<tc>, window_params = [{transform_indices = @transform_0, window_bounds = array<i64: 1, 32, 32>}, {pipeline_mode = #tpu.pipeline_mode<synchronous>, transform_indices = @transform_1, window_bounds = array<i64: 32, 32>}, {pipeline_mode = #tpu.pipeline_mode<synchronous>, transform_indices = @transform_2, window_bounds = array<i64: 5, 32>}, {pipeline_mode = #tpu.pipeline_mode<synchronous>, transform_indices = @transform_3, window_bounds = array<i64: 32, 16>}, {pipeline_mode = #tpu.pipeline_mode<synchronous>, transform_indices = @transform_4, window_bounds = array<i64: 2, 16, 64>}, {pipeline_mode = #tpu.pipeline_mode<synchronous>, transform_indices = @transform_5, window_bounds = array<i64: 2, 16, 32>}, {pipeline_mode = #tpu.pipeline_mode<synchronous>, transform_indices = @transform_6, window_bounds = array<i64: 2, 32, 16>}, {pipeline_mode = #tpu.pipeline_mode<synchronous>, transform_indices = @transform_7, window_bounds = array<i64: 2, 8, 48>}, {pipeline_mode = #tpu.pipeline_mode<synchronous>, transform_indices = @transform_8, window_bounds = array<i64: 16, 256>}, {pipeline_mode = #tpu.pipeline_mode<synchronous>, transform_indices = @transform_9, window_bounds = array<i64: 1, 256>}, {transform_indices = @transform_10, window_bounds = array<i64: 1, 32, 256>}]} {
    %c0 = arith.constant 0 : index
    %c0_0 = arith.constant 0 : index
    %c0_1 = arith.constant 0 : index
    %0 = vector.load %arg1[%c0, %c0_0, %c0_1] : memref<1x32x32xf32, #tpu.memory_space<vmem>>, vector<1x32x32xf32>
    %1 = vector.shape_cast %0 : vector<1x32x32xf32> to vector<32x32xf32>
    %c0_2 = arith.constant 0 : index
    %c0_3 = arith.constant 0 : index
    %2 = vector.load %arg3[%c0_2, %c0_3] : memref<5x32xf32, #tpu.memory_space<vmem>>, vector<1x32xf32>
    %c1 = arith.constant 1 : index
    %c0_4 = arith.constant 0 : index
    %3 = vector.load %arg3[%c1, %c0_4] : memref<5x32xf32, #tpu.memory_space<vmem>>, vector<1x32xf32>
    %cst = arith.constant dense<0.000000e+00> : vector<32xf32>
    %4 = vector.multi_reduction <add>, %1, %cst [1] : vector<32x32xf32> to vector<32xf32>
    %5 = vector.shape_cast %4 : vector<32xf32> to vector<32x1xf32>
    %cst_5 = arith.constant 3.200000e+01 : f32
    %6 = vector.broadcast %cst_5 : f32 to vector<32x1xf32>
    %7 = arith.divf %5, %6 : vector<32x1xf32>
    %8 = vector.broadcast %7 : vector<32x1xf32> to vector<32x32xf32>
    %9 = arith.subf %1, %8 : vector<32x32xf32>
    %10 = arith.mulf %9, %9 : vector<32x32xf32>
    %cst_6 = arith.constant dense<0.000000e+00> : vector<32xf32>
    %11 = vector.multi_reduction <add>, %10, %cst_6 [1] : vector<32x32xf32> to vector<32xf32>
    %12 = vector.shape_cast %11 : vector<32xf32> to vector<32x1xf32>
    %cst_7 = arith.constant 3.200000e+01 : f32
    %13 = vector.broadcast %cst_7 : f32 to vector<32x1xf32>
    %14 = arith.divf %12, %13 : vector<32x1xf32>
    %cst_8 = arith.constant 9.99999974E-6 : f32
    %15 = vector.broadcast %cst_8 : f32 to vector<32x1xf32>
    %16 = arith.addf %14, %15 : vector<32x1xf32>
    %17 = math.rsqrt %16 : vector<32x1xf32>
    %18 = vector.broadcast %17 : vector<32x1xf32> to vector<32x32xf32>
    %19 = arith.mulf %9, %18 : vector<32x32xf32>
    %20 = vector.broadcast %2 : vector<1x32xf32> to vector<32x32xf32>
    %21 = arith.mulf %19, %20 : vector<32x32xf32>
    %22 = vector.broadcast %3 : vector<1x32xf32> to vector<32x32xf32>
    %23 = arith.addf %21, %22 : vector<32x32xf32>
    %c0_9 = arith.constant 0 : index
    %c0_10 = arith.constant 0 : index
    %24 = vector.load %arg2[%c0_9, %c0_10] : memref<32x32xf32, #tpu.memory_space<vmem>>, vector<32x32xf32>
    %25 = arith.addf %23, %24 : vector<32x32xf32>
    %26 = arith.truncf %25 : vector<32x32xf32> to vector<32x32xbf16>
    %c0_11 = arith.constant 0 : index
    %c0_12 = arith.constant 0 : index
    %27 = vector.load %arg4[%c0_11, %c0_12] : memref<32x16xbf16, #tpu.memory_space<vmem>>, vector<32x16xbf16>
    %cst_13 = arith.constant dense<0.000000e+00> : vector<32x16xf32>
    %28 = tpu.matmul %26, %27, %cst_13 {dimension_numbers = #tpu.dot_dimension_numbers<[1], [0], [0], [1], [0, 0, 1, 1], [], []>} : vector<32x32xbf16>, vector<32x16xbf16>, vector<32x16xf32> -> vector<32x16xf32>
    %c4 = arith.constant 4 : index
    %c0_14 = arith.constant 0 : index
    %29 = vector.load %arg3[%c4, %c0_14] : memref<5x32xf32, #tpu.memory_space<vmem>>, vector<1x16xf32>
    %30 = vector.broadcast %29 : vector<1x16xf32> to vector<32x16xf32>
    %31 = arith.addf %28, %30 : vector<32x16xf32>
    %32 = tpu.iota {dimensions = array<i32: 1>} : vector<1x32xi32>
    %c26_i32 = arith.constant 26 : i32
    %33 = vector.broadcast %c26_i32 : i32 to vector<1x32xi32>
    %34 = arith.cmpi slt, %32, %33 : vector<1x32xi32>
    %cst_15 = arith.constant 0.000000e+00 : f32
    %cst_16 = arith.constant -1.000000e+09 : f32
    %35 = vector.broadcast %cst_15 : f32 to vector<1x32xf32>
    %36 = vector.broadcast %cst_16 : f32 to vector<1x32xf32>
    %37 = arith.select %34, %35, %36 : vector<1x32xi1>, vector<1x32xf32>
    %c0_17 = arith.constant 0 : index
    %c0_18 = arith.constant 0 : index
    %c0_19 = arith.constant 0 : index
    %38 = vector.load %arg8[%c0_17, %c0_18, %c0_19] : memref<2x8x48xf32, #tpu.memory_space<vmem>>, vector<1x8x48xf32>
    %39 = vector.shape_cast %38 : vector<1x8x48xf32> to vector<8x48xf32>
    %c0_20 = arith.constant 0 : index
    %c0_21 = arith.constant 0 : index
    %c0_22 = arith.constant 0 : index
    %40 = vector.load %arg5[%c0_20, %c0_21, %c0_22] : memref<2x16x64xbf16, #tpu.memory_space<vmem>>, vector<1x16x64xbf16>
    %41 = vector.shape_cast %40 : vector<1x16x64xbf16> to vector<16x64xbf16>
    %42 = vector.extract_strided_slice %39 {offsets = [0, 0], sizes = [1, 48], strides = [1, 1]} : vector<8x48xf32> to vector<1x48xf32>
    %43 = vector.extract_strided_slice %39 {offsets = [1, 0], sizes = [1, 16], strides = [1, 1]} : vector<8x48xf32> to vector<1x16xf32>
    %44 = arith.truncf %31 : vector<32x16xf32> to vector<32x16xbf16>
    %45 = vector.extract_strided_slice %41 {offsets = [0, 0], sizes = [16, 48], strides = [1, 1]} : vector<16x64xbf16> to vector<16x48xbf16>
    %cst_23 = arith.constant dense<0.000000e+00> : vector<32x48xf32>
    %46 = tpu.matmul %44, %45, %cst_23 {dimension_numbers = #tpu.dot_dimension_numbers<[1], [0], [0], [1], [0, 0, 1, 1], [], []>} : vector<32x16xbf16>, vector<16x48xbf16>, vector<32x48xf32> -> vector<32x48xf32>
    %47 = vector.broadcast %42 : vector<1x48xf32> to vector<32x48xf32>
    %48 = arith.addf %46, %47 : vector<32x48xf32>
    %49 = vector.extract_strided_slice %48 {offsets = [0, 0], sizes = [32, 4], strides = [1, 1]} : vector<32x48xf32> to vector<32x4xf32>
    %50 = vector.extract_strided_slice %48 {offsets = [0, 4], sizes = [32, 4], strides = [1, 1]} : vector<32x48xf32> to vector<32x4xf32>
    %51 = vector.extract_strided_slice %48 {offsets = [0, 8], sizes = [32, 4], strides = [1, 1]} : vector<32x48xf32> to vector<32x4xf32>
    %52 = vector.extract_strided_slice %48 {offsets = [0, 12], sizes = [32, 4], strides = [1, 1]} : vector<32x48xf32> to vector<32x4xf32>
    %53 = vector.shape_cast %49 : vector<32x4xf32> to vector<1x32x4xf32>
    %54 = vector.shape_cast %50 : vector<32x4xf32> to vector<1x32x4xf32>
    %55 = vector.shape_cast %51 : vector<32x4xf32> to vector<1x32x4xf32>
    %56 = vector.shape_cast %52 : vector<32x4xf32> to vector<1x32x4xf32>
    %57 = tpu.concatenate %53, %54, %55, %56 in 0 : vector<1x32x4xf32>, vector<1x32x4xf32>, vector<1x32x4xf32>, vector<1x32x4xf32> -> vector<4x32x4xf32>
    %58 = vector.extract_strided_slice %48 {offsets = [0, 16], sizes = [32, 4], strides = [1, 1]} : vector<32x48xf32> to vector<32x4xf32>
    %59 = vector.extract_strided_slice %48 {offsets = [0, 20], sizes = [32, 4], strides = [1, 1]} : vector<32x48xf32> to vector<32x4xf32>
    %60 = vector.extract_strided_slice %48 {offsets = [0, 24], sizes = [32, 4], strides = [1, 1]} : vector<32x48xf32> to vector<32x4xf32>
    %61 = vector.extract_strided_slice %48 {offsets = [0, 28], sizes = [32, 4], strides = [1, 1]} : vector<32x48xf32> to vector<32x4xf32>
    %62 = vector.shape_cast %58 : vector<32x4xf32> to vector<1x32x4xf32>
    %63 = vector.shape_cast %59 : vector<32x4xf32> to vector<1x32x4xf32>
    %64 = vector.shape_cast %60 : vector<32x4xf32> to vector<1x32x4xf32>
    %65 = vector.shape_cast %61 : vector<32x4xf32> to vector<1x32x4xf32>
    %66 = tpu.concatenate %62, %63, %64, %65 in 0 : vector<1x32x4xf32>, vector<1x32x4xf32>, vector<1x32x4xf32>, vector<1x32x4xf32> -> vector<4x32x4xf32>
    %67 = vector.extract_strided_slice %48 {offsets = [0, 32], sizes = [32, 4], strides = [1, 1]} : vector<32x48xf32> to vector<32x4xf32>
    %68 = vector.extract_strided_slice %48 {offsets = [0, 36], sizes = [32, 4], strides = [1, 1]} : vector<32x48xf32> to vector<32x4xf32>
    %69 = vector.extract_strided_slice %48 {offsets = [0, 40], sizes = [32, 4], strides = [1, 1]} : vector<32x48xf32> to vector<32x4xf32>
    %70 = vector.extract_strided_slice %48 {offsets = [0, 44], sizes = [32, 4], strides = [1, 1]} : vector<32x48xf32> to vector<32x4xf32>
    %71 = vector.shape_cast %67 : vector<32x4xf32> to vector<1x32x4xf32>
    %72 = vector.shape_cast %68 : vector<32x4xf32> to vector<1x32x4xf32>
    %73 = vector.shape_cast %69 : vector<32x4xf32> to vector<1x32x4xf32>
    %74 = vector.shape_cast %70 : vector<32x4xf32> to vector<1x32x4xf32>
    %75 = tpu.concatenate %71, %72, %73, %74 in 0 : vector<1x32x4xf32>, vector<1x32x4xf32>, vector<1x32x4xf32>, vector<1x32x4xf32> -> vector<4x32x4xf32>
    %76 = arith.truncf %57 : vector<4x32x4xf32> to vector<4x32x4xbf16>
    %77 = arith.truncf %66 : vector<4x32x4xf32> to vector<4x32x4xbf16>
    %cst_24 = arith.constant dense<0.000000e+00> : vector<4x32x32xf32>
    %78 = tpu.matmul %76, %77, %cst_24 {dimension_numbers = #tpu.dot_dimension_numbers<[2], [2], [1], [1], [0, 0, 0, 1, 1, 1], [0], [0]>} : vector<4x32x4xbf16>, vector<4x32x4xbf16>, vector<4x32x32xf32> -> vector<4x32x32xf32>
    %cst_25 = arith.constant 5.000000e-01 : f32
    %79 = vector.broadcast %cst_25 : f32 to vector<4x32x32xf32>
    %80 = arith.mulf %78, %79 : vector<4x32x32xf32>
    %81 = vector.shape_cast %37 : vector<1x32xf32> to vector<1x1x32xf32>
    %82 = vector.broadcast %81 : vector<1x1x32xf32> to vector<4x32x32xf32>
    %83 = arith.addf %80, %82 : vector<4x32x32xf32>
    %cst_26 = arith.constant dense<0xFF800000> : vector<4x32xf32>
    %84 = vector.multi_reduction <maximumf>, %83, %cst_26 [2] : vector<4x32x32xf32> to vector<4x32xf32>
    %85 = vector.shape_cast %84 : vector<4x32xf32> to vector<4x32x1xf32>
    %86 = vector.broadcast %85 : vector<4x32x1xf32> to vector<4x32x32xf32>
    %87 = arith.subf %83, %86 : vector<4x32x32xf32>
    %88 = math.exp %87 : vector<4x32x32xf32>
    %cst_27 = arith.constant dense<0.000000e+00> : vector<4x32xf32>
    %89 = vector.multi_reduction <add>, %88, %cst_27 [2] : vector<4x32x32xf32> to vector<4x32xf32>
    %90 = vector.shape_cast %89 : vector<4x32xf32> to vector<4x32x1xf32>
    %91 = tpu.reciprocal %90 {approx = true} : vector<4x32x1xf32> -> vector<4x32x1xf32>
    %92 = vector.broadcast %91 : vector<4x32x1xf32> to vector<4x32x32xf32>
    %93 = arith.mulf %88, %92 : vector<4x32x32xf32>
    %94 = arith.truncf %93 : vector<4x32x32xf32> to vector<4x32x32xbf16>
    %95 = arith.truncf %75 : vector<4x32x4xf32> to vector<4x32x4xbf16>
    %cst_28 = arith.constant dense<0.000000e+00> : vector<4x32x4xf32>
    %96 = tpu.matmul %94, %95, %cst_28 {dimension_numbers = #tpu.dot_dimension_numbers<[2], [1], [1], [2], [0, 0, 0, 1, 1, 2], [0], [0]>} : vector<4x32x32xbf16>, vector<4x32x4xbf16>, vector<4x32x4xf32> -> vector<4x32x4xf32>
    %97 = vector.extract_strided_slice %96 {offsets = [0, 0, 0], sizes = [1, 32, 4], strides = [1, 1, 1]} : vector<4x32x4xf32> to vector<1x32x4xf32>
    %98 = vector.shape_cast %97 : vector<1x32x4xf32> to vector<32x4xf32>
    %99 = vector.extract_strided_slice %96 {offsets = [1, 0, 0], sizes = [1, 32, 4], strides = [1, 1, 1]} : vector<4x32x4xf32> to vector<1x32x4xf32>
    %100 = vector.shape_cast %99 : vector<1x32x4xf32> to vector<32x4xf32>
    %101 = vector.extract_strided_slice %96 {offsets = [2, 0, 0], sizes = [1, 32, 4], strides = [1, 1, 1]} : vector<4x32x4xf32> to vector<1x32x4xf32>
    %102 = vector.shape_cast %101 : vector<1x32x4xf32> to vector<32x4xf32>
    %103 = vector.extract_strided_slice %96 {offsets = [3, 0, 0], sizes = [1, 32, 4], strides = [1, 1, 1]} : vector<4x32x4xf32> to vector<1x32x4xf32>
    %104 = vector.shape_cast %103 : vector<1x32x4xf32> to vector<32x4xf32>
    %105 = tpu.concatenate %98, %100, %102, %104 in 1 : vector<32x4xf32>, vector<32x4xf32>, vector<32x4xf32>, vector<32x4xf32> -> vector<32x16xf32>
    %106 = arith.truncf %105 : vector<32x16xf32> to vector<32x16xbf16>
    %107 = vector.extract_strided_slice %41 {offsets = [0, 48], sizes = [16, 16], strides = [1, 1]} : vector<16x64xbf16> to vector<16x16xbf16>
    %cst_29 = arith.constant dense<0.000000e+00> : vector<32x16xf32>
    %108 = tpu.matmul %106, %107, %cst_29 {dimension_numbers = #tpu.dot_dimension_numbers<[1], [0], [0], [1], [0, 0, 1, 1], [], []>} : vector<32x16xbf16>, vector<16x16xbf16>, vector<32x16xf32> -> vector<32x16xf32>
    %109 = vector.broadcast %43 : vector<1x16xf32> to vector<32x16xf32>
    %110 = arith.addf %108, %109 : vector<32x16xf32>
    %111 = arith.addf %31, %110 : vector<32x16xf32>
    %112 = vector.extract_strided_slice %39 {offsets = [2, 0], sizes = [1, 16], strides = [1, 1]} : vector<8x48xf32> to vector<1x16xf32>
    %113 = vector.extract_strided_slice %39 {offsets = [3, 0], sizes = [1, 16], strides = [1, 1]} : vector<8x48xf32> to vector<1x16xf32>
    %cst_30 = arith.constant dense<0.000000e+00> : vector<32xf32>
    %114 = vector.multi_reduction <add>, %111, %cst_30 [1] : vector<32x16xf32> to vector<32xf32>
    %115 = vector.shape_cast %114 : vector<32xf32> to vector<32x1xf32>
    %cst_31 = arith.constant 1.600000e+01 : f32
    %116 = vector.broadcast %cst_31 : f32 to vector<32x1xf32>
    %117 = arith.divf %115, %116 : vector<32x1xf32>
    %118 = vector.broadcast %117 : vector<32x1xf32> to vector<32x16xf32>
    %119 = arith.subf %111, %118 : vector<32x16xf32>
    %120 = arith.mulf %119, %119 : vector<32x16xf32>
    %cst_32 = arith.constant dense<0.000000e+00> : vector<32xf32>
    %121 = vector.multi_reduction <add>, %120, %cst_32 [1] : vector<32x16xf32> to vector<32xf32>
    %122 = vector.shape_cast %121 : vector<32xf32> to vector<32x1xf32>
    %cst_33 = arith.constant 1.600000e+01 : f32
    %123 = vector.broadcast %cst_33 : f32 to vector<32x1xf32>
    %124 = arith.divf %122, %123 : vector<32x1xf32>
    %cst_34 = arith.constant 9.99999974E-6 : f32
    %125 = vector.broadcast %cst_34 : f32 to vector<32x1xf32>
    %126 = arith.addf %124, %125 : vector<32x1xf32>
    %127 = math.rsqrt %126 : vector<32x1xf32>
    %128 = vector.broadcast %127 : vector<32x1xf32> to vector<32x16xf32>
    %129 = arith.mulf %119, %128 : vector<32x16xf32>
    %130 = vector.broadcast %112 : vector<1x16xf32> to vector<32x16xf32>
    %131 = arith.mulf %129, %130 : vector<32x16xf32>
    %132 = vector.broadcast %113 : vector<1x16xf32> to vector<32x16xf32>
    %133 = arith.addf %131, %132 : vector<32x16xf32>
    %134 = arith.truncf %133 : vector<32x16xf32> to vector<32x16xbf16>
    %c0_35 = arith.constant 0 : index
    %c0_36 = arith.constant 0 : index
    %c0_37 = arith.constant 0 : index
    %135 = vector.load %arg6[%c0_35, %c0_36, %c0_37] : memref<2x16x32xbf16, #tpu.memory_space<vmem>>, vector<1x16x32xbf16>
    %136 = vector.shape_cast %135 : vector<1x16x32xbf16> to vector<16x32xbf16>
    %cst_38 = arith.constant dense<0.000000e+00> : vector<32x32xf32>
    %137 = tpu.matmul %134, %136, %cst_38 {dimension_numbers = #tpu.dot_dimension_numbers<[1], [0], [0], [1], [0, 0, 1, 1], [], []>} : vector<32x16xbf16>, vector<16x32xbf16>, vector<32x32xf32> -> vector<32x32xf32>
    %138 = vector.extract_strided_slice %39 {offsets = [4, 0], sizes = [1, 32], strides = [1, 1]} : vector<8x48xf32> to vector<1x32xf32>
    %139 = vector.broadcast %138 : vector<1x32xf32> to vector<32x32xf32>
    %140 = arith.addf %137, %139 : vector<32x32xf32>
    %141 = arith.mulf %140, %140 : vector<32x32xf32>
    %142 = arith.mulf %140, %141 : vector<32x32xf32>
    %cst_39 = arith.constant 4.471500e-02 : f32
    %143 = vector.broadcast %cst_39 : f32 to vector<32x32xf32>
    %144 = arith.mulf %143, %142 : vector<32x32xf32>
    %145 = arith.addf %140, %144 : vector<32x32xf32>
    %cst_40 = arith.constant 0.797884583 : f32
    %146 = vector.broadcast %cst_40 : f32 to vector<32x32xf32>
    %147 = arith.mulf %146, %145 : vector<32x32xf32>
    %148 = math.tanh %147 : vector<32x32xf32>
    %cst_41 = arith.constant 1.000000e+00 : f32
    %149 = vector.broadcast %cst_41 : f32 to vector<32x32xf32>
    %150 = arith.addf %149, %148 : vector<32x32xf32>
    %cst_42 = arith.constant 5.000000e-01 : f32
    %151 = vector.broadcast %cst_42 : f32 to vector<32x32xf32>
    %152 = arith.mulf %151, %150 : vector<32x32xf32>
    %153 = arith.mulf %140, %152 : vector<32x32xf32>
    %154 = arith.truncf %153 : vector<32x32xf32> to vector<32x32xbf16>
    %c0_43 = arith.constant 0 : index
    %c0_44 = arith.constant 0 : index
    %c0_45 = arith.constant 0 : index
    %155 = vector.load %arg7[%c0_43, %c0_44, %c0_45] : memref<2x32x16xbf16, #tpu.memory_space<vmem>>, vector<1x32x16xbf16>
    %156 = vector.shape_cast %155 : vector<1x32x16xbf16> to vector<32x16xbf16>
    %cst_46 = arith.constant dense<0.000000e+00> : vector<32x16xf32>
    %157 = tpu.matmul %154, %156, %cst_46 {dimension_numbers = #tpu.dot_dimension_numbers<[1], [0], [0], [1], [0, 0, 1, 1], [], []>} : vector<32x32xbf16>, vector<32x16xbf16>, vector<32x16xf32> -> vector<32x16xf32>
    %158 = vector.extract_strided_slice %39 {offsets = [5, 0], sizes = [1, 16], strides = [1, 1]} : vector<8x48xf32> to vector<1x16xf32>
    %159 = vector.broadcast %158 : vector<1x16xf32> to vector<32x16xf32>
    %160 = arith.addf %157, %159 : vector<32x16xf32>
    %161 = arith.addf %133, %160 : vector<32x16xf32>
    %162 = vector.extract_strided_slice %39 {offsets = [6, 0], sizes = [1, 16], strides = [1, 1]} : vector<8x48xf32> to vector<1x16xf32>
    %163 = vector.extract_strided_slice %39 {offsets = [7, 0], sizes = [1, 16], strides = [1, 1]} : vector<8x48xf32> to vector<1x16xf32>
    %cst_47 = arith.constant dense<0.000000e+00> : vector<32xf32>
    %164 = vector.multi_reduction <add>, %161, %cst_47 [1] : vector<32x16xf32> to vector<32xf32>
    %165 = vector.shape_cast %164 : vector<32xf32> to vector<32x1xf32>
    %cst_48 = arith.constant 1.600000e+01 : f32
    %166 = vector.broadcast %cst_48 : f32 to vector<32x1xf32>
    %167 = arith.divf %165, %166 : vector<32x1xf32>
    %168 = vector.broadcast %167 : vector<32x1xf32> to vector<32x16xf32>
    %169 = arith.subf %161, %168 : vector<32x16xf32>
    %170 = arith.mulf %169, %169 : vector<32x16xf32>
    %cst_49 = arith.constant dense<0.000000e+00> : vector<32xf32>
    %171 = vector.multi_reduction <add>, %170, %cst_49 [1] : vector<32x16xf32> to vector<32xf32>
    %172 = vector.shape_cast %171 : vector<32xf32> to vector<32x1xf32>
    %cst_50 = arith.constant 1.600000e+01 : f32
    %173 = vector.broadcast %cst_50 : f32 to vector<32x1xf32>
    %174 = arith.divf %172, %173 : vector<32x1xf32>
    %cst_51 = arith.constant 9.99999974E-6 : f32
    %175 = vector.broadcast %cst_51 : f32 to vector<32x1xf32>
    %176 = arith.addf %174, %175 : vector<32x1xf32>
    %177 = math.rsqrt %176 : vector<32x1xf32>
    %178 = vector.broadcast %177 : vector<32x1xf32> to vector<32x16xf32>
    %179 = arith.mulf %169, %178 : vector<32x16xf32>
    %180 = vector.broadcast %162 : vector<1x16xf32> to vector<32x16xf32>
    %181 = arith.mulf %179, %180 : vector<32x16xf32>
    %182 = vector.broadcast %163 : vector<1x16xf32> to vector<32x16xf32>
    %183 = arith.addf %181, %182 : vector<32x16xf32>
    %c1_52 = arith.constant 1 : index
    %c0_53 = arith.constant 0 : index
    %c0_54 = arith.constant 0 : index
    %184 = vector.load %arg8[%c1_52, %c0_53, %c0_54] : memref<2x8x48xf32, #tpu.memory_space<vmem>>, vector<1x8x48xf32>
    %185 = vector.shape_cast %184 : vector<1x8x48xf32> to vector<8x48xf32>
    %c1_55 = arith.constant 1 : index
    %c0_56 = arith.constant 0 : index
    %c0_57 = arith.constant 0 : index
    %186 = vector.load %arg5[%c1_55, %c0_56, %c0_57] : memref<2x16x64xbf16, #tpu.memory_space<vmem>>, vector<1x16x64xbf16>
    %187 = vector.shape_cast %186 : vector<1x16x64xbf16> to vector<16x64xbf16>
    %188 = vector.extract_strided_slice %185 {offsets = [0, 0], sizes = [1, 48], strides = [1, 1]} : vector<8x48xf32> to vector<1x48xf32>
    %189 = vector.extract_strided_slice %185 {offsets = [1, 0], sizes = [1, 16], strides = [1, 1]} : vector<8x48xf32> to vector<1x16xf32>
    %190 = arith.truncf %183 : vector<32x16xf32> to vector<32x16xbf16>
    %191 = vector.extract_strided_slice %187 {offsets = [0, 0], sizes = [16, 48], strides = [1, 1]} : vector<16x64xbf16> to vector<16x48xbf16>
    %cst_58 = arith.constant dense<0.000000e+00> : vector<32x48xf32>
    %192 = tpu.matmul %190, %191, %cst_58 {dimension_numbers = #tpu.dot_dimension_numbers<[1], [0], [0], [1], [0, 0, 1, 1], [], []>} : vector<32x16xbf16>, vector<16x48xbf16>, vector<32x48xf32> -> vector<32x48xf32>
    %193 = vector.broadcast %188 : vector<1x48xf32> to vector<32x48xf32>
    %194 = arith.addf %192, %193 : vector<32x48xf32>
    %195 = vector.extract_strided_slice %194 {offsets = [0, 0], sizes = [32, 4], strides = [1, 1]} : vector<32x48xf32> to vector<32x4xf32>
    %196 = vector.extract_strided_slice %194 {offsets = [0, 4], sizes = [32, 4], strides = [1, 1]} : vector<32x48xf32> to vector<32x4xf32>
    %197 = vector.extract_strided_slice %194 {offsets = [0, 8], sizes = [32, 4], strides = [1, 1]} : vector<32x48xf32> to vector<32x4xf32>
    %198 = vector.extract_strided_slice %194 {offsets = [0, 12], sizes = [32, 4], strides = [1, 1]} : vector<32x48xf32> to vector<32x4xf32>
    %199 = vector.shape_cast %195 : vector<32x4xf32> to vector<1x32x4xf32>
    %200 = vector.shape_cast %196 : vector<32x4xf32> to vector<1x32x4xf32>
    %201 = vector.shape_cast %197 : vector<32x4xf32> to vector<1x32x4xf32>
    %202 = vector.shape_cast %198 : vector<32x4xf32> to vector<1x32x4xf32>
    %203 = tpu.concatenate %199, %200, %201, %202 in 0 : vector<1x32x4xf32>, vector<1x32x4xf32>, vector<1x32x4xf32>, vector<1x32x4xf32> -> vector<4x32x4xf32>
    %204 = vector.extract_strided_slice %194 {offsets = [0, 16], sizes = [32, 4], strides = [1, 1]} : vector<32x48xf32> to vector<32x4xf32>
    %205 = vector.extract_strided_slice %194 {offsets = [0, 20], sizes = [32, 4], strides = [1, 1]} : vector<32x48xf32> to vector<32x4xf32>
    %206 = vector.extract_strided_slice %194 {offsets = [0, 24], sizes = [32, 4], strides = [1, 1]} : vector<32x48xf32> to vector<32x4xf32>
    %207 = vector.extract_strided_slice %194 {offsets = [0, 28], sizes = [32, 4], strides = [1, 1]} : vector<32x48xf32> to vector<32x4xf32>
    %208 = vector.shape_cast %204 : vector<32x4xf32> to vector<1x32x4xf32>
    %209 = vector.shape_cast %205 : vector<32x4xf32> to vector<1x32x4xf32>
    %210 = vector.shape_cast %206 : vector<32x4xf32> to vector<1x32x4xf32>
    %211 = vector.shape_cast %207 : vector<32x4xf32> to vector<1x32x4xf32>
    %212 = tpu.concatenate %208, %209, %210, %211 in 0 : vector<1x32x4xf32>, vector<1x32x4xf32>, vector<1x32x4xf32>, vector<1x32x4xf32> -> vector<4x32x4xf32>
    %213 = vector.extract_strided_slice %194 {offsets = [0, 32], sizes = [32, 4], strides = [1, 1]} : vector<32x48xf32> to vector<32x4xf32>
    %214 = vector.extract_strided_slice %194 {offsets = [0, 36], sizes = [32, 4], strides = [1, 1]} : vector<32x48xf32> to vector<32x4xf32>
    %215 = vector.extract_strided_slice %194 {offsets = [0, 40], sizes = [32, 4], strides = [1, 1]} : vector<32x48xf32> to vector<32x4xf32>
    %216 = vector.extract_strided_slice %194 {offsets = [0, 44], sizes = [32, 4], strides = [1, 1]} : vector<32x48xf32> to vector<32x4xf32>
    %217 = vector.shape_cast %213 : vector<32x4xf32> to vector<1x32x4xf32>
    %218 = vector.shape_cast %214 : vector<32x4xf32> to vector<1x32x4xf32>
    %219 = vector.shape_cast %215 : vector<32x4xf32> to vector<1x32x4xf32>
    %220 = vector.shape_cast %216 : vector<32x4xf32> to vector<1x32x4xf32>
    %221 = tpu.concatenate %217, %218, %219, %220 in 0 : vector<1x32x4xf32>, vector<1x32x4xf32>, vector<1x32x4xf32>, vector<1x32x4xf32> -> vector<4x32x4xf32>
    %222 = arith.truncf %203 : vector<4x32x4xf32> to vector<4x32x4xbf16>
    %223 = arith.truncf %212 : vector<4x32x4xf32> to vector<4x32x4xbf16>
    %cst_59 = arith.constant dense<0.000000e+00> : vector<4x32x32xf32>
    %224 = tpu.matmul %222, %223, %cst_59 {dimension_numbers = #tpu.dot_dimension_numbers<[2], [2], [1], [1], [0, 0, 0, 1, 1, 1], [0], [0]>} : vector<4x32x4xbf16>, vector<4x32x4xbf16>, vector<4x32x32xf32> -> vector<4x32x32xf32>
    %cst_60 = arith.constant 5.000000e-01 : f32
    %225 = vector.broadcast %cst_60 : f32 to vector<4x32x32xf32>
    %226 = arith.mulf %224, %225 : vector<4x32x32xf32>
    %227 = vector.shape_cast %37 : vector<1x32xf32> to vector<1x1x32xf32>
    %228 = vector.broadcast %227 : vector<1x1x32xf32> to vector<4x32x32xf32>
    %229 = arith.addf %226, %228 : vector<4x32x32xf32>
    %cst_61 = arith.constant dense<0xFF800000> : vector<4x32xf32>
    %230 = vector.multi_reduction <maximumf>, %229, %cst_61 [2] : vector<4x32x32xf32> to vector<4x32xf32>
    %231 = vector.shape_cast %230 : vector<4x32xf32> to vector<4x32x1xf32>
    %232 = vector.broadcast %231 : vector<4x32x1xf32> to vector<4x32x32xf32>
    %233 = arith.subf %229, %232 : vector<4x32x32xf32>
    %234 = math.exp %233 : vector<4x32x32xf32>
    %cst_62 = arith.constant dense<0.000000e+00> : vector<4x32xf32>
    %235 = vector.multi_reduction <add>, %234, %cst_62 [2] : vector<4x32x32xf32> to vector<4x32xf32>
    %236 = vector.shape_cast %235 : vector<4x32xf32> to vector<4x32x1xf32>
    %237 = tpu.reciprocal %236 {approx = true} : vector<4x32x1xf32> -> vector<4x32x1xf32>
    %238 = vector.broadcast %237 : vector<4x32x1xf32> to vector<4x32x32xf32>
    %239 = arith.mulf %234, %238 : vector<4x32x32xf32>
    %240 = arith.truncf %239 : vector<4x32x32xf32> to vector<4x32x32xbf16>
    %241 = arith.truncf %221 : vector<4x32x4xf32> to vector<4x32x4xbf16>
    %cst_63 = arith.constant dense<0.000000e+00> : vector<4x32x4xf32>
    %242 = tpu.matmul %240, %241, %cst_63 {dimension_numbers = #tpu.dot_dimension_numbers<[2], [1], [1], [2], [0, 0, 0, 1, 1, 2], [0], [0]>} : vector<4x32x32xbf16>, vector<4x32x4xbf16>, vector<4x32x4xf32> -> vector<4x32x4xf32>
    %243 = vector.extract_strided_slice %242 {offsets = [0, 0, 0], sizes = [1, 32, 4], strides = [1, 1, 1]} : vector<4x32x4xf32> to vector<1x32x4xf32>
    %244 = vector.shape_cast %243 : vector<1x32x4xf32> to vector<32x4xf32>
    %245 = vector.extract_strided_slice %242 {offsets = [1, 0, 0], sizes = [1, 32, 4], strides = [1, 1, 1]} : vector<4x32x4xf32> to vector<1x32x4xf32>
    %246 = vector.shape_cast %245 : vector<1x32x4xf32> to vector<32x4xf32>
    %247 = vector.extract_strided_slice %242 {offsets = [2, 0, 0], sizes = [1, 32, 4], strides = [1, 1, 1]} : vector<4x32x4xf32> to vector<1x32x4xf32>
    %248 = vector.shape_cast %247 : vector<1x32x4xf32> to vector<32x4xf32>
    %249 = vector.extract_strided_slice %242 {offsets = [3, 0, 0], sizes = [1, 32, 4], strides = [1, 1, 1]} : vector<4x32x4xf32> to vector<1x32x4xf32>
    %250 = vector.shape_cast %249 : vector<1x32x4xf32> to vector<32x4xf32>
    %251 = tpu.concatenate %244, %246, %248, %250 in 1 : vector<32x4xf32>, vector<32x4xf32>, vector<32x4xf32>, vector<32x4xf32> -> vector<32x16xf32>
    %252 = arith.truncf %251 : vector<32x16xf32> to vector<32x16xbf16>
    %253 = vector.extract_strided_slice %187 {offsets = [0, 48], sizes = [16, 16], strides = [1, 1]} : vector<16x64xbf16> to vector<16x16xbf16>
    %cst_64 = arith.constant dense<0.000000e+00> : vector<32x16xf32>
    %254 = tpu.matmul %252, %253, %cst_64 {dimension_numbers = #tpu.dot_dimension_numbers<[1], [0], [0], [1], [0, 0, 1, 1], [], []>} : vector<32x16xbf16>, vector<16x16xbf16>, vector<32x16xf32> -> vector<32x16xf32>
    %255 = vector.broadcast %189 : vector<1x16xf32> to vector<32x16xf32>
    %256 = arith.addf %254, %255 : vector<32x16xf32>
    %257 = arith.addf %183, %256 : vector<32x16xf32>
    %258 = vector.extract_strided_slice %185 {offsets = [2, 0], sizes = [1, 16], strides = [1, 1]} : vector<8x48xf32> to vector<1x16xf32>
    %259 = vector.extract_strided_slice %185 {offsets = [3, 0], sizes = [1, 16], strides = [1, 1]} : vector<8x48xf32> to vector<1x16xf32>
    %cst_65 = arith.constant dense<0.000000e+00> : vector<32xf32>
    %260 = vector.multi_reduction <add>, %257, %cst_65 [1] : vector<32x16xf32> to vector<32xf32>
    %261 = vector.shape_cast %260 : vector<32xf32> to vector<32x1xf32>
    %cst_66 = arith.constant 1.600000e+01 : f32
    %262 = vector.broadcast %cst_66 : f32 to vector<32x1xf32>
    %263 = arith.divf %261, %262 : vector<32x1xf32>
    %264 = vector.broadcast %263 : vector<32x1xf32> to vector<32x16xf32>
    %265 = arith.subf %257, %264 : vector<32x16xf32>
    %266 = arith.mulf %265, %265 : vector<32x16xf32>
    %cst_67 = arith.constant dense<0.000000e+00> : vector<32xf32>
    %267 = vector.multi_reduction <add>, %266, %cst_67 [1] : vector<32x16xf32> to vector<32xf32>
    %268 = vector.shape_cast %267 : vector<32xf32> to vector<32x1xf32>
    %cst_68 = arith.constant 1.600000e+01 : f32
    %269 = vector.broadcast %cst_68 : f32 to vector<32x1xf32>
    %270 = arith.divf %268, %269 : vector<32x1xf32>
    %cst_69 = arith.constant 9.99999974E-6 : f32
    %271 = vector.broadcast %cst_69 : f32 to vector<32x1xf32>
    %272 = arith.addf %270, %271 : vector<32x1xf32>
    %273 = math.rsqrt %272 : vector<32x1xf32>
    %274 = vector.broadcast %273 : vector<32x1xf32> to vector<32x16xf32>
    %275 = arith.mulf %265, %274 : vector<32x16xf32>
    %276 = vector.broadcast %258 : vector<1x16xf32> to vector<32x16xf32>
    %277 = arith.mulf %275, %276 : vector<32x16xf32>
    %278 = vector.broadcast %259 : vector<1x16xf32> to vector<32x16xf32>
    %279 = arith.addf %277, %278 : vector<32x16xf32>
    %280 = arith.truncf %279 : vector<32x16xf32> to vector<32x16xbf16>
    %c1_70 = arith.constant 1 : index
    %c0_71 = arith.constant 0 : index
    %c0_72 = arith.constant 0 : index
    %281 = vector.load %arg6[%c1_70, %c0_71, %c0_72] : memref<2x16x32xbf16, #tpu.memory_space<vmem>>, vector<1x16x32xbf16>
    %282 = vector.shape_cast %281 : vector<1x16x32xbf16> to vector<16x32xbf16>
    %cst_73 = arith.constant dense<0.000000e+00> : vector<32x32xf32>
    %283 = tpu.matmul %280, %282, %cst_73 {dimension_numbers = #tpu.dot_dimension_numbers<[1], [0], [0], [1], [0, 0, 1, 1], [], []>} : vector<32x16xbf16>, vector<16x32xbf16>, vector<32x32xf32> -> vector<32x32xf32>
    %284 = vector.extract_strided_slice %185 {offsets = [4, 0], sizes = [1, 32], strides = [1, 1]} : vector<8x48xf32> to vector<1x32xf32>
    %285 = vector.broadcast %284 : vector<1x32xf32> to vector<32x32xf32>
    %286 = arith.addf %283, %285 : vector<32x32xf32>
    %287 = arith.mulf %286, %286 : vector<32x32xf32>
    %288 = arith.mulf %286, %287 : vector<32x32xf32>
    %cst_74 = arith.constant 4.471500e-02 : f32
    %289 = vector.broadcast %cst_74 : f32 to vector<32x32xf32>
    %290 = arith.mulf %289, %288 : vector<32x32xf32>
    %291 = arith.addf %286, %290 : vector<32x32xf32>
    %cst_75 = arith.constant 0.797884583 : f32
    %292 = vector.broadcast %cst_75 : f32 to vector<32x32xf32>
    %293 = arith.mulf %292, %291 : vector<32x32xf32>
    %294 = math.tanh %293 : vector<32x32xf32>
    %cst_76 = arith.constant 1.000000e+00 : f32
    %295 = vector.broadcast %cst_76 : f32 to vector<32x32xf32>
    %296 = arith.addf %295, %294 : vector<32x32xf32>
    %cst_77 = arith.constant 5.000000e-01 : f32
    %297 = vector.broadcast %cst_77 : f32 to vector<32x32xf32>
    %298 = arith.mulf %297, %296 : vector<32x32xf32>
    %299 = arith.mulf %286, %298 : vector<32x32xf32>
    %300 = arith.truncf %299 : vector<32x32xf32> to vector<32x32xbf16>
    %c1_78 = arith.constant 1 : index
    %c0_79 = arith.constant 0 : index
    %c0_80 = arith.constant 0 : index
    %301 = vector.load %arg7[%c1_78, %c0_79, %c0_80] : memref<2x32x16xbf16, #tpu.memory_space<vmem>>, vector<1x32x16xbf16>
    %302 = vector.shape_cast %301 : vector<1x32x16xbf16> to vector<32x16xbf16>
    %cst_81 = arith.constant dense<0.000000e+00> : vector<32x16xf32>
    %303 = tpu.matmul %300, %302, %cst_81 {dimension_numbers = #tpu.dot_dimension_numbers<[1], [0], [0], [1], [0, 0, 1, 1], [], []>} : vector<32x32xbf16>, vector<32x16xbf16>, vector<32x16xf32> -> vector<32x16xf32>
    %304 = vector.extract_strided_slice %185 {offsets = [5, 0], sizes = [1, 16], strides = [1, 1]} : vector<8x48xf32> to vector<1x16xf32>
    %305 = vector.broadcast %304 : vector<1x16xf32> to vector<32x16xf32>
    %306 = arith.addf %303, %305 : vector<32x16xf32>
    %307 = arith.addf %279, %306 : vector<32x16xf32>
    %308 = vector.extract_strided_slice %185 {offsets = [6, 0], sizes = [1, 16], strides = [1, 1]} : vector<8x48xf32> to vector<1x16xf32>
    %309 = vector.extract_strided_slice %185 {offsets = [7, 0], sizes = [1, 16], strides = [1, 1]} : vector<8x48xf32> to vector<1x16xf32>
    %cst_82 = arith.constant dense<0.000000e+00> : vector<32xf32>
    %310 = vector.multi_reduction <add>, %307, %cst_82 [1] : vector<32x16xf32> to vector<32xf32>
    %311 = vector.shape_cast %310 : vector<32xf32> to vector<32x1xf32>
    %cst_83 = arith.constant 1.600000e+01 : f32
    %312 = vector.broadcast %cst_83 : f32 to vector<32x1xf32>
    %313 = arith.divf %311, %312 : vector<32x1xf32>
    %314 = vector.broadcast %313 : vector<32x1xf32> to vector<32x16xf32>
    %315 = arith.subf %307, %314 : vector<32x16xf32>
    %316 = arith.mulf %315, %315 : vector<32x16xf32>
    %cst_84 = arith.constant dense<0.000000e+00> : vector<32xf32>
    %317 = vector.multi_reduction <add>, %316, %cst_84 [1] : vector<32x16xf32> to vector<32xf32>
    %318 = vector.shape_cast %317 : vector<32xf32> to vector<32x1xf32>
    %cst_85 = arith.constant 1.600000e+01 : f32
    %319 = vector.broadcast %cst_85 : f32 to vector<32x1xf32>
    %320 = arith.divf %318, %319 : vector<32x1xf32>
    %cst_86 = arith.constant 9.99999974E-6 : f32
    %321 = vector.broadcast %cst_86 : f32 to vector<32x1xf32>
    %322 = arith.addf %320, %321 : vector<32x1xf32>
    %323 = math.rsqrt %322 : vector<32x1xf32>
    %324 = vector.broadcast %323 : vector<32x1xf32> to vector<32x16xf32>
    %325 = arith.mulf %315, %324 : vector<32x16xf32>
    %326 = vector.broadcast %308 : vector<1x16xf32> to vector<32x16xf32>
    %327 = arith.mulf %325, %326 : vector<32x16xf32>
    %328 = vector.broadcast %309 : vector<1x16xf32> to vector<32x16xf32>
    %329 = arith.addf %327, %328 : vector<32x16xf32>
    %c2 = arith.constant 2 : index
    %c0_87 = arith.constant 0 : index
    %330 = vector.load %arg3[%c2, %c0_87] : memref<5x32xf32, #tpu.memory_space<vmem>>, vector<1x16xf32>
    %c3 = arith.constant 3 : index
    %c0_88 = arith.constant 0 : index
    %331 = vector.load %arg3[%c3, %c0_88] : memref<5x32xf32, #tpu.memory_space<vmem>>, vector<1x16xf32>
    %cst_89 = arith.constant dense<0.000000e+00> : vector<32xf32>
    %332 = vector.multi_reduction <add>, %329, %cst_89 [1] : vector<32x16xf32> to vector<32xf32>
    %333 = vector.shape_cast %332 : vector<32xf32> to vector<32x1xf32>
    %cst_90 = arith.constant 1.600000e+01 : f32
    %334 = vector.broadcast %cst_90 : f32 to vector<32x1xf32>
    %335 = arith.divf %333, %334 : vector<32x1xf32>
    %336 = vector.broadcast %335 : vector<32x1xf32> to vector<32x16xf32>
    %337 = arith.subf %329, %336 : vector<32x16xf32>
    %338 = arith.mulf %337, %337 : vector<32x16xf32>
    %cst_91 = arith.constant dense<0.000000e+00> : vector<32xf32>
    %339 = vector.multi_reduction <add>, %338, %cst_91 [1] : vector<32x16xf32> to vector<32xf32>
    %340 = vector.shape_cast %339 : vector<32xf32> to vector<32x1xf32>
    %cst_92 = arith.constant 1.600000e+01 : f32
    %341 = vector.broadcast %cst_92 : f32 to vector<32x1xf32>
    %342 = arith.divf %340, %341 : vector<32x1xf32>
    %cst_93 = arith.constant 9.99999974E-6 : f32
    %343 = vector.broadcast %cst_93 : f32 to vector<32x1xf32>
    %344 = arith.addf %342, %343 : vector<32x1xf32>
    %345 = math.rsqrt %344 : vector<32x1xf32>
    %346 = vector.broadcast %345 : vector<32x1xf32> to vector<32x16xf32>
    %347 = arith.mulf %337, %346 : vector<32x16xf32>
    %348 = vector.broadcast %330 : vector<1x16xf32> to vector<32x16xf32>
    %349 = arith.mulf %347, %348 : vector<32x16xf32>
    %350 = vector.broadcast %331 : vector<1x16xf32> to vector<32x16xf32>
    %351 = arith.addf %349, %350 : vector<32x16xf32>
    %352 = arith.truncf %351 : vector<32x16xf32> to vector<32x16xbf16>
    %c0_94 = arith.constant 0 : index
    %c0_95 = arith.constant 0 : index
    %353 = vector.load %arg9[%c0_94, %c0_95] : memref<16x256xbf16, #tpu.memory_space<vmem>>, vector<16x256xbf16>
    %cst_96 = arith.constant dense<0.000000e+00> : vector<32x256xf32>
    %354 = tpu.matmul %352, %353, %cst_96 {dimension_numbers = #tpu.dot_dimension_numbers<[1], [0], [0], [1], [0, 0, 1, 1], [], []>} : vector<32x16xbf16>, vector<16x256xbf16>, vector<32x256xf32> -> vector<32x256xf32>
    %c0_97 = arith.constant 0 : index
    %c0_98 = arith.constant 0 : index
    %355 = vector.load %arg10[%c0_97, %c0_98] : memref<1x256xf32, #tpu.memory_space<vmem>>, vector<1x256xf32>
    %356 = vector.broadcast %355 : vector<1x256xf32> to vector<32x256xf32>
    %357 = arith.addf %354, %356 : vector<32x256xf32>
    %c0_99 = arith.constant 0 : index
    %c0_100 = arith.constant 0 : index
    %c0_101 = arith.constant 0 : index
    %358 = vector.load %arg11[%c0_99, %c0_100, %c0_101] : memref<1x32x256xf32, #tpu.memory_space<vmem>>, vector<1x32x256xf32>
    %359 = vector.shape_cast %358 : vector<1x32x256xf32> to vector<32x256xf32>
    %360 = vector.shape_cast %357 : vector<32x256xf32> to vector<1x32x256xf32>
    tpu.vector_store %arg11[%c0_99, %c0_100, %c0_101], %360 {strides = array<i32>} : memref<1x32x256xf32, #tpu.memory_space<vmem>>, vector<1x32x256xf32>,
    return
  }
  func.func @transform_0(%arg0: i32) -> (i32, i32, i32) {
    %c0_i32 = arith.constant 0 : i32
    %c0_i32_0 = arith.constant 0 : i32
    %c0_i32_1 = arith.constant 0 : i32
    return %arg0, %c0_i32, %c0_i32_0 : i32, i32, i32
  }
  func.func @transform_1(%arg0: i32) -> (i32, i32) {
    %c0_i32 = arith.constant 0 : i32
    %c0_i32_0 = arith.constant 0 : i32
    %c0_i32_1 = arith.constant 0 : i32
    return %c0_i32, %c0_i32_0 : i32, i32
  }
  func.func @transform_2(%arg0: i32) -> (i32, i32) {
    %c0_i32 = arith.constant 0 : i32
    %c0_i32_0 = arith.constant 0 : i32
    %c0_i32_1 = arith.constant 0 : i32
    return %c0_i32, %c0_i32_0 : i32, i32
  }
  func.func @transform_3(%arg0: i32) -> (i32, i32) {
    %c0_i32 = arith.constant 0 : i32
    %c0_i32_0 = arith.constant 0 : i32
    %c0_i32_1 = arith.constant 0 : i32
    return %c0_i32, %c0_i32_0 : i32, i32
  }
  func.func @transform_4(%arg0: i32) -> (i32, i32, i32) {
    %c0_i32 = arith.constant 0 : i32
    %c0_i32_0 = arith.constant 0 : i32
    %c0_i32_1 = arith.constant 0 : i32
    %c0_i32_2 = arith.constant 0 : i32
    return %c0_i32, %c0_i32_0, %c0_i32_1 : i32, i32, i32
  }
  func.func @transform_5(%arg0: i32) -> (i32, i32, i32) {
    %c0_i32 = arith.constant 0 : i32
    %c0_i32_0 = arith.constant 0 : i32
    %c0_i32_1 = arith.constant 0 : i32
    %c0_i32_2 = arith.constant 0 : i32
    return %c0_i32, %c0_i32_0, %c0_i32_1 : i32, i32, i32
  }
  func.func @transform_6(%arg0: i32) -> (i32, i32, i32) {
    %c0_i32 = arith.constant 0 : i32
    %c0_i32_0 = arith.constant 0 : i32
    %c0_i32_1 = arith.constant 0 : i32
    %c0_i32_2 = arith.constant 0 : i32
    return %c0_i32, %c0_i32_0, %c0_i32_1 : i32, i32, i32
  }
  func.func @transform_7(%arg0: i32) -> (i32, i32, i32) {
    %c0_i32 = arith.constant 0 : i32
    %c0_i32_0 = arith.constant 0 : i32
    %c0_i32_1 = arith.constant 0 : i32
    %c0_i32_2 = arith.constant 0 : i32
    return %c0_i32, %c0_i32_0, %c0_i32_1 : i32, i32, i32
  }
  func.func @transform_8(%arg0: i32) -> (i32, i32) {
    %c0_i32 = arith.constant 0 : i32
    %c0_i32_0 = arith.constant 0 : i32
    %c0_i32_1 = arith.constant 0 : i32
    return %c0_i32, %c0_i32_0 : i32, i32
  }
  func.func @transform_9(%arg0: i32) -> (i32, i32) {
    %c0_i32 = arith.constant 0 : i32
    %c0_i32_0 = arith.constant 0 : i32
    %c0_i32_1 = arith.constant 0 : i32
    return %c0_i32, %c0_i32_0 : i32, i32
  }
  func.func @transform_10(%arg0: i32) -> (i32, i32, i32) {
    %c0_i32 = arith.constant 0 : i32
    %c0_i32_0 = arith.constant 0 : i32
    %c0_i32_1 = arith.constant 0 : i32
    return %arg0, %c0_i32, %c0_i32_0 : i32, i32, i32
  }
}

</mosaic_0001>

<bundles_post_ra>
// kernel: mbae_forward.5
= control target key start
LH: loop header
LB: loop body
LE: loop exit
PB: predicated region body
PF: predicated region fallthrough
CT: control target
= control target key end

     0   :  { %s4155_s13 = smov 0   ;;  %s5048_s0 = inlined_call_operand.vmem [shape: f32[2,32,32], index: 0, kind: input, shape index: {}]   ;;  %s5049_s1 = inlined_call_operand.vmem [shape: f32[32,32], index: 1, kind: input, shape index: {}]   ;;  %s5050_s2 = inlined_call_operand.vmem [shape: f32[5,32], index: 2, kind: input, shape index: {}]   ;;  %s5051_s3 = inlined_call_operand.vmem [shape: bf16[32,16], index: 3, kind: input, shape index: {}]   ;;  %s5052_s4 = inlined_call_operand.vmem [shape: bf16[2,16,64], index: 4, kind: input, shape index: {}]   ;;  %s5053_s5 = inlined_call_operand.vmem [shape: bf16[2,16,32], index: 5, kind: input, shape index: {}]   ;;  %s5054_s6 = inlined_call_operand.vmem [shape: bf16[2,32,16], index: 6, kind: input, shape index: {}]   ;;  %s5055_s7 = inlined_call_operand.vmem [shape: f32[2,8,48], index: 7, kind: input, shape index: {}]   ;;  %s5056_s8 = inlined_call_operand.vmem [shape: bf16[16,256], index: 8, kind: input, shape index: {}]   ;;  %s5057_s9 = inlined_call_operand.vmem [shape: f32[1,256], index: 9, kind: input, shape index: {}]   ;;  %s5058_s10 = inlined_call_operand.vmem [shape: f32[2,32,256], index: 10, kind: output, shape index: {}]  }
   0x1 LB: > { %s3346_s14 = sadd.s32 4294967295, %s4087_s13   ;;  %p3350_p0 = scmp.ge.s32.totalorder %s4087_s13, 1  ;;  %s4087_s13 = sphi %s4155_s13, %s20_s13  }
   0x2   : > { %p312_p1 = scmp.lt.s32.totalorder %s4087_s13, 3 }
   0x4   : > { %p313_p2 = pnand %p3350_p0, %p312_p1 }
   0x5   : > { %p350_p3 = scmp.lt.s32.totalorder (!%p313_p2), %s3346_s14, 1  ;;  %vm367_vm0 = vcmask (!%p313_p2), 261120   ;;  %v3874_v28 = vld [vmem:[%s5051_s3] sm:$0xff] (!%p313_p2)   ;;  %v3875_v29 = vld [vmem:[%s5051_s3 + $0x8] sm:$0xff] (!%p313_p2)   ;;  %v439_v63 = vld [vmem:[%s5049_s1 + $0x10] sm:$0xff] (!%p313_p2)  ;;  %vm542_vm1 = vcmask (!%p313_p2), 130048  }
   0x6   : > { %316 = sbr.rel (%p313_p2) target bundleno = 6533 (0x1985), region = 60  ;;  %3531 = vmatprep.subr.bf16.mxu0 (!%p313_p2), %v3874_v28  ;;  %v3355_v43 = vld [vmem:[%s5050_s2] ss:$0 sm:$0xff] (!%p313_p2)  ;;  %v3356_v47 = vld [vmem:[%s5050_s2 + $0x1] ss:$0 sm:$0xff] (!%p313_p2)  ;;  %v438_v55 = vld [vmem:[%s5049_s1 + $0x8] sm:$0xff] (!%p313_p2) }
   0x7   : > { %3532 = vmatpush3.bf16.msra.mxu0 (!%p313_p2), %v3874_v28  ;;  %v437_v54 = vld [vmem:[%s5049_s1] sm:$0xff] (!%p313_p2)  ;;  %vm652_vm2 = vcmask (!%p313_p2), 31744   ;;  %s4089_s23 = smov (!%p313_p2), 124   ;;  %s4090_s24 = smov (!%p313_p2), 120   ;;  %vm1427_vm4 = vcmask (!%p313_p2), 64512   ;;  %vm1432_vm5 = vcmask (!%p313_p2), 97280  }
   0x8   : > { %3533 = vmatprep.subr.bf16.mxu0 (!%p313_p2), %v3875_v29  ;;  %s4091_s25 = smov (!%p313_p2), 116   ;;  %s4092_s26 = smov (!%p313_p2), 112  }
   0x9   : > { %s4094_s27 = smov (!%p313_p2), 96   ;;  %s4095_s28 = smov (!%p313_p2), 4  }
   0xa   : > { %s4096_s29 = smov (!%p313_p2), 8   ;;  %s4097_s30 = smov (!%p313_p2), 80  }
   0xb   : > { %3534 = vmatpush3.bf16.msra.mxu0 (!%p313_p2), %v3875_v29  ;;  %s4098_s11 = smov (!%p313_p2), 12  }
   0xd   : > { %s5060_s14 = smov (!%p350_p3, %s3346_s14), 1 }
   0xe   : > { %s3435_s15 = sshll.u32 %s5060_s14, 5 }
   0xf   : > { %s354_s18 = scalar_lea.vmem %s5048_s0, %s3435_s15 }
  0x10   : > { %v361_v0 = vld [vmem:[%s354_s18] sm:$0xff]  ;;  %v363_v1 = vld [vmem:[%s354_s18 + $0x10] sm:$0xff]  ;;  %v362_v2 = vld [vmem:[%s354_s18 + $0x8] sm:$0xff] }
  0x11   : > { %v368_v3 = vsel %vm367_vm0, %v361_v0, 0.0  ;;  %v374_v4 = vsel %vm367_vm0, %v363_v1, 0.0  ;;  %v364_v5 = vld [vmem:[%s354_s18 + $0x18] sm:$0xff]  ;;  %v371_v6 = vsel %vm367_vm0, %v362_v2, 0.0 }
  0x12   : > { %369 = vadd.xlane.f32.xlu0 %v368_v3  ;;  %375 = vadd.xlane.f32.xlu1 %v374_v4  ;;  %v377_v7 = vsel %vm367_vm0, %v364_v5, 0.0 }
  0x16   : > { %372 = vadd.xlane.f32.xlu0 %v371_v6  ;;  %378 = vadd.xlane.f32.xlu1 %v377_v7  ;;  %v4206_v6 = vld [vmem:[%s5052_s4] sm:$0xff]  }
  0x17   : > { %3539 = vmatprep.subr.bf16.mxu1 %v4206_v6 }
  0x18   : > { %3540 = vmatpush3.bf16.msra.mxu1 %v4206_v6 }
  0x9f   : > { %v370_v8 = vpop.xlane.xlu0 %369  ;;  %v376_v9 = vpop.xlane.xlu1 %375 }
  0xa0   : > { %v381_v10 = vmul.f32 0.03125, %v370_v8  ;;  %v383_v11 = vmul.f32 0.03125, %v376_v9  ;;  %v3357_v8 = vld [vmem:[%s5050_s2 + $0x4] ss:$0 sm:$0xff] }
  0xa2   : > { %v385_v12 = vsub.f32 %v361_v0, %v381_v10  ;;  %v387_v13 = vsub.f32 %v363_v1, %v383_v11  ;;  %v440_v0 = vld [vmem:[%s5049_s1 + $0x18] sm:$0xff] }
  0xa3   : > { %v373_v14 = vpop.xlane.xlu0 %372  ;;  %v379_v15 = vpop.xlane.xlu1 %378 }
  0xa4   : > { %v382_v16 = vmul.f32 0.03125, %v373_v14  ;;  %v384_v17 = vmul.f32 0.03125, %v379_v15  ;;  %v389_v18 = vmul.f32 %v385_v12, %v385_v12  ;;  %v391_v19 = vmul.f32 %v387_v13, %v387_v13 }
  0xa6   : > { %v386_v20 = vsub.f32 %v362_v2, %v382_v16  ;;  %v388_v21 = vsub.f32 %v364_v5, %v384_v17  ;;  %v393_v22 = vsel %vm367_vm0, %v389_v18, 0.0  ;;  %v399_v23 = vsel %vm367_vm0, %v391_v19, 0.0 }
  0xa7   : > { %394 = vadd.xlane.f32.xlu0 %v393_v22  ;;  %v523_v18 = vlaneseq }
  0xa8   : > { %v390_v24 = vmul.f32 %v386_v20, %v386_v20  ;;  %v392_v25 = vmul.f32 %v388_v21, %v388_v21 }
  0xa9   : > { %v4228_v19 = vshrl.u32 %v523_v18, 7 }
  0xaa   : > { %v396_v26 = vsel %vm367_vm0, %v390_v24, 0.0  ;;  %v402_v27 = vsel %vm367_vm0, %v392_v25, 0.0 }
  0xab   : > { %400 = vadd.xlane.f32.xlu0 %v399_v23  ;;  %397 = vadd.xlane.f32.xlu1 %v396_v26 }
  0xaf   : > { %403 = vadd.xlane.f32.xlu1 %v402_v27 }
 0x134   : > { %v395_v30 = vpop.xlane.xlu0 %394 }
 0x135   : > { %v405_v31 = vmul.f32 0.03125, %v395_v30 }
 0x137   : > { %v409_v32 = vadd.f32 1e-05, %v405_v31 }
 0x138   : > { %v398_v33 = vpop.xlane.xlu1 %397  ;;  %v401_v34 = vpop.xlane.xlu0 %400 }
 0x139   : > { %3887 = vrsqrt.f32 %v409_v32  ;;  %v406_v35 = vmul.f32 0.03125, %v398_v33  ;;  %v407_v36 = vmul.f32 0.03125, %v401_v34 }
 0x13b   : > { %v410_v37 = vadd.f32 1e-05, %v406_v35  ;;  %v411_v38 = vadd.f32 1e-05, %v407_v36 }
 0x13c   : > { %v404_v39 = vpop.xlane.xlu1 %403 }
 0x13d   : > { %3889 = vrsqrt.f32 %v410_v37  ;;  %v408_v40 = vmul.f32 0.03125, %v404_v39 }
 0x13e   : > { %3891 = vrsqrt.f32 %v411_v38 }
 0x13f   : > { %v412_v41 = vadd.f32 1e-05, %v408_v40 }
 0x141   : > { %3893 = vrsqrt.f32 %v412_v41 }
 0x143   : > { %v3888_v42 = vpop.eup %3887 }
 0x144   : > { %v417_v44 = vmul.f32 %v3888_v42, %v385_v12 }
 0x146   : > { %v425_v45 = vmul.f32 %v3355_v43, %v417_v44 }
 0x147   : > { %v3890_v46 = vpop.eup %3889 }
 0x148   : > { %v3892_v48 = vpop.eup %3891  ;;  %v418_v49 = vmul.f32 %v3890_v46, %v386_v20  ;;  %v433_v52 = vadd.f32 %v3356_v47, %v425_v45  ;;  %v4231_v20 = vsub.s32 0, %v4228_v19 }
 0x149   : > { %v419_v50 = vmul.f32 %v3892_v48, %v387_v13 }
 0x14a   : > { %v426_v51 = vmul.f32 %v3355_v43, %v418_v49  ;;  %v441_v59 = vadd.f32 %v437_v54, %v433_v52 }
 0x14b   : > { %v3894_v53 = vpop.eup %3893  ;;  %v427_v56 = vmul.f32 %v3355_v43, %v419_v50 }
 0x14c   : > { %v420_v57 = vmul.f32 %v3894_v53, %v388_v21  ;;  %v434_v58 = vadd.f32 %v3356_v47, %v426_v51  ;;  %v4236_v21 = vld [vmem:[%s5055_s7] sm:$0xff] }
 0x14d   : > { %v435_v62 = vadd.f32 %v3356_v47, %v427_v56  ;;  %v535_v22 = vrot.slane %v4236_v21, %v4231_v20 }
 0x14e   : > { %v442_v60 = vadd.f32 %v438_v55, %v434_v58  ;;  %v428_v61 = vmul.f32 %v3355_v43, %v420_v57 }
 0x14f   : > { %v443_v3 = vadd.f32 %v439_v63, %v435_v62 }
 0x150   : > { %v445_v1 = vpack.c.bf16 %v442_v60, %v441_v59  ;;  %v436_v2 = vadd.f32 %v3356_v47, %v428_v61 }
 0x152   : > { %3535 = vmatprep.mubr.msk.bf16.mxu0 %vm367_vm0, %v445_v1  ;;  %v444_v4 = vadd.f32 %v440_v0, %v436_v2 }
 0x154   : > { %v446_v5 = vpack.c.bf16 %v444_v4, %v443_v3 }
 0x156   : > { %3536 = vmatmul.mubr.msk.bf16.vlgmr.msra.gmra.mrb[0].mxu0 %vm367_vm0, %v446_v5 }
 0x229   : > { %v3537_v7 = vpop.f32.mrb[0].mxu0 }
 0x22a   : > { %v508_v9 = vpop.f32.mrb[1].mxu0  ;;  %v4219_v15 = vadd.f32 %v3537_v7, %v3357_v8 }
 0x22b   : > { %v3538_v10 = vpop.f32.mrb[2].mxu0  ;;  %v4215_v13 = vadd.f32 %v3357_v8, %v508_v9 }
 0x22c   : > { %v4213_v11 = vadd.f32 %v3538_v10, %v3357_v8  ;;  %v511_v12 = vpop.f32.mrb[3].mxu0 }
 0x22d   : > { %v4217_v14 = vadd.f32 %v3357_v8, %v511_v12 }
 0x22e   : > { %v531_v17 = vpack.c.bf16 %v4213_v11, %v4219_v15 }
 0x22f   : > { %v530_v16 = vpack.c.bf16 %v4217_v14, %v4215_v13 }
 0x231   : > { %3541 = vmatprep.mubr.msk.bf16.mxu1 %vm542_vm1, %v530_v16  ;;  %v524_v16 = vand.u32 127, %v523_v18 }
 0x232   : > { %3542 = vmatmul.mubr.msk.bf16.vlgmr.msra.gmra.mrb[0].mxu1 %vm542_vm1, %v531_v17  ;;  %v4093_v17 = vmov -1e+09  }
 0x233   : > { %vm525_vm3 = vcmp.lt.s32.totalorder %v524_v16, 26 }
 0x305   : > { %v3543_v23 = vpop.f32.mrb[0].mxu1 }
 0x306   : > { %v583_v24 = vpop.f32.mrb[1].mxu1  ;;  %v592_v26 = vadd.f32 %v3543_v23, %v535_v22 }
 0x307   : > { %v3544_v25 = vpop.f32.mrb[2].mxu1  ;;  %v584_v29 = vadd.f32 %v583_v24, %v535_v22 }
 0x308   : > { %v595_v27 = vadd.f32 %v3544_v25, %v535_v22  ;;  %v586_v28 = vpop.f32.mrb[3].mxu1 }
 0x309   : > { %v587_v30 = vadd.f32 %v586_v28, %v535_v22  ;;  %v4311_v22 = vsel %vm525_vm3, 0.0, %v4093_v17 }
 0x30a   : > { %v3759_v31 = vpack.i.bf16 %v595_v27, %v592_v26  ;;  %v4240_v32 = vpack.c.bf16 %v595_v27, %v592_v26 }
 0x30b   : > { %v3754_v33 = vpack.i.bf16 %v587_v30, %v584_v29  ;;  %v4242_v34 = vpack.c.bf16 %v587_v30, %v584_v29 }
 0x30c   : > { %3760 = vrot.lane.b32.xlu1 %v3759_v31, %s4089_s23 }
 0x30d   : > { %3755 = vrot.lane.b32.xlu0 %v3754_v33, %s4089_s23  ;;  %3549 = vmatprep.mubr.msk.bf16.mxu1 %vm652_vm2, %v4242_v34 }
 0x310   : > { %3765 = vrot.lane.b32.xlu1 %v3754_v33, %s4090_s24 }
 0x311   : > { %3775 = vrot.lane.b32.xlu0 %v3759_v31, %s4090_s24 }
 0x314   : > { %3770 = vrot.lane.b32.xlu1 %v3754_v33, %s4091_s25 }
 0x315   : > { %648 = vrot.lane.b32.xlu0 %v4242_v34, %s4092_s26 }
 0x318   : > { %3780 = vrot.lane.b32.xlu1 %v3759_v31, %s4091_s25 }
 0x319   : > { %650 = vrot.lane.b32.xlu0 %v4240_v32, %s4092_s26 }
 0x37e   : > { %v3761_v35 = vpop.permute.xlu1 %3760 }
 0x37f   : > { %v3756_v36 = vpop.permute.xlu0 %3755  ;;  %v3763_v39 = vunpack.i.h.bf16 %v3761_v35  ;;  %v3762_v40 = vunpack.i.l.bf16 %v3761_v35 }
 0x380   : > { %v3758_v37 = vunpack.i.h.bf16 %v3756_v36  ;;  %v3757_v38 = vunpack.i.l.bf16 %v3756_v36 }
 0x381   : > { %v4264_v50 = vpack.c.bf16 %v3763_v39, %v3762_v40 }
 0x382   : > { %v3766_v41 = vpop.permute.xlu1 %3765  ;;  %v4256_v42 = vpack.c.bf16 %v3758_v37, %v3757_v38 }
 0x383   : > { %v3768_v43 = vunpack.i.h.bf16 %v3766_v41  ;;  %v3767_v44 = vunpack.i.l.bf16 %v3766_v41  ;;  %v3776_v45 = vpop.permute.xlu0 %3775 }
 0x384   : > { %716 = vrot.lane.b32.xlu1 %v4256_v42, %s4092_s26  ;;  %3557 = vmatprep.mubr.msk.bf16.mxu0 %vm652_vm2, %v4256_v42  ;;  %v3778_v46 = vunpack.i.h.bf16 %v3776_v45  ;;  %v3777_v47 = vunpack.i.l.bf16 %v3776_v45 }
 0x385   : > { %v4262_v48 = vpack.c.bf16 %v3768_v43, %v3767_v44 }
 0x386   : > { %v3771_v49 = vpop.permute.xlu1 %3770  ;;  %v4272_v55 = vpack.c.bf16 %v3778_v46, %v3777_v47 }
 0x387   : > { %v3773_v51 = vunpack.i.h.bf16 %v3771_v49  ;;  %v3772_v52 = vunpack.i.l.bf16 %v3771_v49  ;;  %783 = vrot.lane.b32.xlu0 %v4262_v48, %s4092_s26  ;;  %v649_v53 = vpop.permute.xlu0 %648 }
 0x388   : > { %718 = vrot.lane.b32.xlu1 %v4264_v50, %s4092_s26  ;;  %3719 = vmatprep.subr.msk.bf16.mxu1 %vm652_vm2, %v649_v53  ;;  %v660_v54 = vsel %vm652_vm2, %v649_v53, 0 }
 0x389   : > { %3546 = vmatpush3.bf16.xpose.msra.mxu1 %v660_v54  ;;  %v4274_v56 = vpack.c.bf16 %v3773_v51, %v3772_v52 }
 0x38a   : > { %v3781_v57 = vpop.permute.xlu1 %3780 }
 0x38b   : > { %v3783_v58 = vunpack.i.h.bf16 %v3781_v57  ;;  %v3782_v59 = vunpack.i.l.bf16 %v3781_v57  ;;  %785 = vrot.lane.b32.xlu0 %v4272_v55, %s4092_s26  ;;  %v651_v60 = vpop.permute.xlu0 %650 }
 0x38c   : > { %850 = vrot.lane.b32.xlu1 %v4274_v56, %s4092_s26  ;;  %3720 = vmatprep.subr.msk.bf16.mxu1 %vm652_vm2, %v651_v60  ;;  %v663_v62 = vsel %vm652_vm2, %v651_v60, 0 }
 0x38d   : > { %v4281_v61 = vpack.c.bf16 %v3783_v58, %v3782_v59 }
 0x390   : > { %852 = vrot.lane.b32.xlu1 %v4281_v61, %s4092_s26 }
 0x391   : > { %3548 = vmatpush3.bf16.xpose.msra.mxu1 %v663_v62 }
 0x398   : > { %3550 = vmatmul.mubr.msk.bf16.vlgmr.msra.gmra.mrb[4].mxu1 %vm652_vm2, %v4240_v32 }
 0x399   : > { %3565 = vmatprep.mubr.msk.bf16.mxu1 %vm652_vm2, %v4262_v48 }
 0x3f6   : > { %v717_v63 = vpop.permute.xlu1 %716 }
 0x3f7   : > { %3721 = vmatprep.subr.msk.bf16.mxu0 %vm652_vm2, %v717_v63  ;;  %v727_v0 = vsel %vm652_vm2, %v717_v63, 0 }
 0x3f8   : > { %3554 = vmatpush3.bf16.xpose.msra.mxu0 %v727_v0 }
 0x3f9   : > { %v784_v1 = vpop.permute.xlu0 %783 }
 0x3fa   : > { %v719_v2 = vpop.permute.xlu1 %718  ;;  %3723 = vmatprep.subr.msk.bf16.mxu1 %vm652_vm2, %v784_v1  ;;  %v794_v3 = vsel %vm652_vm2, %v784_v1, 0 }
 0x3fb   : > { %3722 = vmatprep.subr.msk.bf16.mxu0 %vm652_vm2, %v719_v2  ;;  %3562 = vmatpush3.bf16.xpose.msra.mxu1 %v794_v3  ;;  %v730_v5 = vsel %vm652_vm2, %v719_v2, 0 }
 0x3fd   : > { %v786_v4 = vpop.permute.xlu0 %785 }
 0x3fe   : > { %3724 = vmatprep.subr.msk.bf16.mxu1 %vm652_vm2, %v786_v4  ;;  %v851_v7 = vpop.permute.xlu1 %850  ;;  %v797_v8 = vsel %vm652_vm2, %v786_v4, 0 }
 0x3ff   : > { %v861_v9 = vsel %vm652_vm2, %v851_v7, 0 }
 0x400   : > { %3556 = vmatpush3.bf16.xpose.msra.mxu0 %v730_v5 }
 0x401   : > { %3725 = vmatprep.subr.msk.bf16.mxu0 %vm652_vm2, %v851_v7 }
 0x402   : > { %v853_v10 = vpop.permute.xlu1 %852 }
 0x403   : > { %3564 = vmatpush3.bf16.xpose.msra.mxu1 %v797_v8  ;;  %v864_v12 = vsel %vm652_vm2, %v853_v10, 0 }
 0x407   : > { %3558 = vmatmul.mubr.msk.bf16.vlgmr.msra.gmra.mrb[4].mxu0 %vm652_vm2, %v4264_v50 }
 0x408   : > { %3570 = vmatpush3.bf16.xpose.msra.mxu0 %v861_v9  ;;  %3573 = vmatprep.mubr.msk.bf16.mxu0 %vm652_vm2, %v4274_v56 }
 0x409   : > { %3726 = vmatprep.subr.msk.bf16.mxu0 %vm652_vm2, %v853_v10 }
 0x40a   : > { %3566 = vmatmul.mubr.msk.bf16.vlgmr.msra.gmra.mrb[8].mxu1 %vm652_vm2, %v4272_v55 }
 0x410   : > { %3572 = vmatpush3.bf16.xpose.msra.mxu0 %v864_v12 }
 0x417   : > { %3574 = vmatmul.mubr.msk.bf16.vlgmr.msra.gmra.mrb[8].mxu0 %vm652_vm2, %v4281_v61 }
 0x46b   : > { %v3551_v23 = vpop.f32.mrb[4].mxu1 }
 0x46c   : > { %v917_v24 = vmul.f32 0.5, %v3551_v23  ;;  %v699_v25 = vpop.f32.mrb[5].mxu1 }
 0x46d   : > { %v915_v26 = vmul.f32 0.5, %v699_v25  ;;  %v3552_v27 = vpop.f32.mrb[6].mxu1 }
 0x46e   : > { %v702_v28 = vpop.f32.mrb[7].mxu1  ;;  %v4314_v29 = vadd.f32 %v917_v24, %v4311_v22  ;;  %v918_v31 = vmul.f32 0.5, %v3552_v27 }
 0x46f   : > { %v916_v30 = vmul.f32 0.5, %v702_v28  ;;  %v4319_v18 = vadd.f32 %v915_v26, %v4311_v22 }
 0x470   : > { %v953_v33 = vsel %vm367_vm0, %v4314_v29, -inf  ;;  %v4329_v38 = vadd.f32 %v918_v31, %v4311_v22 }
 0x471   : > { %954 = vmax.xlane.f32.xlu0 %v953_v33  ;;  %v4322_v35 = vadd.f32 %v916_v30, %v4311_v22  ;;  %v947_v37 = vsel %vm367_vm0, %v4319_v18, -inf }
 0x472   : > { %v956_v39 = vsel %vm367_vm0, %v4329_v38, -inf }
 0x473   : > { %v950_v36 = vsel %vm367_vm0, %v4322_v35, -inf }
 0x474   : > { %951 = vmax.xlane.f32.xlu1 %v950_v36 }
 0x475   : > { %948 = vmax.xlane.f32.xlu0 %v947_v37 }
 0x479   : > { %957 = vmax.xlane.f32.xlu0 %v956_v39 }
 0x4da   : > { %v3559_v40 = vpop.f32.mrb[4].mxu0 }
 0x4db   : > { %v921_v41 = vmul.f32 0.5, %v3559_v40  ;;  %v766_v43 = vpop.f32.mrb[5].mxu0 }
 0x4dc   : > { %v3560_v44 = vpop.f32.mrb[6].mxu0  ;;  %v919_v53 = vmul.f32 0.5, %v766_v43 }
 0x4dd   : > { %v922_v45 = vmul.f32 0.5, %v3560_v44  ;;  %v769_v46 = vpop.f32.mrb[7].mxu0  ;;  %v3567_v47 = vpop.f32.mrb[8].mxu1  ;;  %v4334_v49 = vadd.f32 %v921_v41, %v4311_v22 }
 0x4de   : > { %v925_v51 = vmul.f32 0.5, %v3567_v47  ;;  %v833_v52 = vpop.f32.mrb[9].mxu1  ;;  %v920_v63 = vmul.f32 0.5, %v769_v46  ;;  %v4352_v4 = vadd.f32 %v919_v53, %v4311_v22 }
 0x4df   : > { %v3568_v54 = vpop.f32.mrb[10].mxu1  ;;  %v965_v57 = vsel %vm367_vm0, %v4334_v49, -inf  ;;  %v4339_v58 = vadd.f32 %v922_v45, %v4311_v22  ;;  %v923_v3 = vmul.f32 0.5, %v833_v52 }
 0x4e0   : > { %v926_v59 = vmul.f32 0.5, %v3568_v54  ;;  %966 = vmax.xlane.f32.xlu0 %v965_v57  ;;  %v836_v60 = vpop.f32.mrb[11].mxu1  ;;  %v4342_v62 = vadd.f32 %v925_v51, %v4311_v22  ;;  %v4357_v8 = vadd.f32 %v920_v63, %v4311_v22  ;;  %v959_v9 = vsel %vm367_vm0, %v4352_v4, -inf }
 0x4e1   : > { %v968_v0 = vsel %vm367_vm0, %v4339_v58, -inf  ;;  %v924_v7 = vmul.f32 0.5, %v836_v60  ;;  %v4362_v10 = vadd.f32 %v923_v3, %v4311_v22 }
 0x4e2   : > { %969 = vmax.xlane.f32.xlu1 %v968_v0  ;;  %v977_v1 = vsel %vm367_vm0, %v4342_v62, -inf  ;;  %v4349_v2 = vadd.f32 %v926_v59, %v4311_v22  ;;  %v962_v12 = vsel %vm367_vm0, %v4357_v8, -inf }
 0x4e3   : > { %v4367_v16 = vadd.f32 %v924_v7, %v4311_v22  ;;  %v971_v25 = vsel %vm367_vm0, %v4362_v10, -inf }
 0x4e4   : > { %978 = vmax.xlane.f32.xlu0 %v977_v1  ;;  %v980_v5 = vsel %vm367_vm0, %v4349_v2, -inf }
 0x4e5   : > { %v974_v30 = vsel %vm367_vm0, %v4367_v16, -inf }
 0x4e6   : > { %981 = vmax.xlane.f32.xlu1 %v980_v5 }
 0x4e8   : > { %960 = vmax.xlane.f32.xlu0 %v959_v9 }
 0x4ea   : > { %v3575_v17 = vpop.f32.mrb[8].mxu0  ;;  %963 = vmax.xlane.f32.xlu1 %v962_v12 }
 0x4eb   : > { %v929_v23 = vmul.f32 0.5, %v3575_v17  ;;  %v900_v24 = vpop.f32.mrb[9].mxu0 }
 0x4ec   : > { %v927_v26 = vmul.f32 0.5, %v900_v24  ;;  %v3576_v27 = vpop.f32.mrb[10].mxu0  ;;  %972 = vmax.xlane.f32.xlu0 %v971_v25 }
 0x4ed   : > { %v903_v28 = vpop.f32.mrb[11].mxu0  ;;  %v4374_v31 = vadd.f32 %v929_v23, %v4311_v22  ;;  %v930_v45 = vmul.f32 0.5, %v3576_v27 }
 0x4ee   : > { %975 = vmax.xlane.f32.xlu1 %v974_v30  ;;  %v4379_v36 = vadd.f32 %v927_v26, %v4311_v22 }
 0x4ef   : > { %v989_v33 = vsel %vm367_vm0, %v4374_v31, -inf }
 0x4f0   : > { %990 = vmax.xlane.f32.xlu0 %v989_v33  ;;  %v983_v37 = vsel %vm367_vm0, %v4379_v36, -inf }
 0x4f4   : > { %984 = vmax.xlane.f32.xlu0 %v983_v37 }
 0x4fe   : > { %v955_v39 = vpop.xlane.xlu0 %954 }
 0x4ff   : > { %1133 = vrot.lane.b32.xlu1 %v4240_v32, %s4094_s27  ;;  %v997_v40 = vsub.f32 %v4314_v29, %v955_v39 }
 0x501   : > { %v1015_v43 = vmul.f32 1.442695, %v997_v40  ;;  %v952_v54 = vpop.xlane.xlu1 %951 }
 0x502   : > { %v949_v41 = vpop.xlane.xlu0 %948  ;;  %v996_v57 = vsub.f32 %v4322_v35, %v952_v54 }
 0x503   : > { %1192 = vrot.lane.b32.xlu1 %v4256_v42, %s4094_s27  ;;  %v995_v44 = vsub.f32 %v4319_v18, %v949_v41  ;;  %3895 = vpow2.f32 %v1015_v43  ;;  %v928_v42 = vmul.f32 0.5, %v903_v28 }
 0x504   : > { %v1013_v60 = vmul.f32 1.442695, %v996_v57 }
 0x505   : > { %v1011_v32 = vmul.f32 1.442695, %v995_v44 }
 0x506   : > { %v958_v52 = vpop.xlane.xlu0 %957 }
 0x507   : > { %1194 = vrot.lane.b32.xlu1 %v4264_v50, %s4094_s27  ;;  %3897 = vpow2.f32 %v1011_v32  ;;  %v4396_v50 = vadd.f32 %v930_v45, %v4311_v22  ;;  %v998_v53 = vsub.f32 %v4329_v38, %v958_v52 }
 0x509   : > { %v1017_v59 = vmul.f32 1.442695, %v998_v53 }
 0x50a   : > { %1131 = vrot.lane.b32.xlu0 %v4242_v34, %s4094_s27  ;;  %v992_v34 = vsel %vm367_vm0, %v4396_v50, -inf }
 0x50b   : > { %3899 = vpow2.f32 %v1017_v59 }
 0x50c   : > { %3901 = vpow2.f32 %v1013_v60 }
 0x50d   : > { %v4398_v46 = vpop.eup %3895 }
 0x50e   : > { %1253 = vrot.lane.b32.xlu0 %v4262_v48, %s4094_s27  ;;  %v4403_v48 = vadd.f32 %v928_v42, %v4311_v22  ;;  %v1049_v29 = vsel %vm367_vm0, %v4398_v46, 0.0 }
 0x510   : > { %v986_v47 = vsel %vm367_vm0, %v4403_v48, -inf }
 0x511   : > { %v4407_v18 = vpop.eup %3897 }
 0x512   : > { %v1043_v51 = vsel %vm367_vm0, %v4407_v18, 0.0 }
 0x515   : > { %v4417_v63 = vpop.eup %3899 }
 0x516   : > { %v1052_v0 = vsel %vm367_vm0, %v4417_v63, 0.0  ;;  %v4421_v1 = vpop.eup %3901 }
 0x52b   : > { %993 = vmax.xlane.f32.xlu1 %v992_v34 }
 0x52d   : > { %1050 = vadd.xlane.f32.xlu0 %v1049_v29 }
 0x52f   : > { %987 = vmax.xlane.f32.xlu1 %v986_v47 }
 0x531   : > { %1044 = vadd.xlane.f32.xlu0 %v1043_v51 }
 0x540   : > { %1314 = vrot.lane.b32.xlu1 %v4274_v56, %s4094_s27  ;;  %v1046_v56 = vsel %vm367_vm0, %v4421_v1, 0.0 }
 0x564   : > { %1053 = vadd.xlane.f32.xlu1 %v1052_v0 }
 0x568   : > { %1047 = vadd.xlane.f32.xlu1 %v1046_v56 }
 0x56d   : > { %v967_v38 = vpop.xlane.xlu0 %966 }
 0x56e   : > { %v1001_v3 = vsub.f32 %v4334_v49, %v967_v38 }
 0x56f   : > { %v970_v35 = vpop.xlane.xlu1 %969 }
 0x570   : > { %v1023_v5 = vmul.f32 1.442695, %v1001_v3  ;;  %v1002_v7 = vsub.f32 %v4339_v58, %v970_v35 }
 0x571   : > { %v979_v9 = vpop.xlane.xlu0 %978 }
 0x572   : > { %3903 = vpow2.f32 %v1023_v5  ;;  %v1025_v12 = vmul.f32 1.442695, %v1002_v7  ;;  %v1005_v17 = vsub.f32 %v4342_v62, %v979_v9 }
 0x573   : > { %v982_v23 = vpop.xlane.xlu1 %981 }
 0x574   : > { %3905 = vpow2.f32 %v1025_v12  ;;  %v1031_v24 = vmul.f32 1.442695, %v1005_v17  ;;  %v1006_v25 = vsub.f32 %v4349_v2, %v982_v23 }
 0x575   : > { %v961_v26 = vpop.xlane.xlu0 %960 }
 0x576   : > { %3907 = vpow2.f32 %v1031_v24  ;;  %v1033_v27 = vmul.f32 1.442695, %v1006_v25  ;;  %v999_v28 = vsub.f32 %v4352_v4, %v961_v26 }
 0x577   : > { %v964_v49 = vpop.xlane.xlu1 %963 }
 0x578   : > { %3909 = vpow2.f32 %v1033_v27  ;;  %v1019_v30 = vmul.f32 1.442695, %v999_v28  ;;  %v1000_v58 = vsub.f32 %v4357_v8, %v964_v49 }
 0x579   : > { %v973_v33 = vpop.xlane.xlu0 %972 }
 0x57a   : > { %3911 = vpow2.f32 %v1019_v30  ;;  %v1021_v37 = vmul.f32 1.442695, %v1000_v58  ;;  %v1003_v62 = vsub.f32 %v4362_v10, %v973_v33 }
 0x57b   : > { %v976_v39 = vpop.xlane.xlu1 %975 }
 0x57c   : > { %v4432_v40 = vpop.eup %3903  ;;  %3913 = vpow2.f32 %v1021_v37  ;;  %v1027_v2 = vmul.f32 1.442695, %v1003_v62  ;;  %v1004_v41 = vsub.f32 %v4367_v16, %v976_v39 }
 0x57d   : > { %v991_v43 = vpop.xlane.xlu0 %990  ;;  %v1061_v4 = vsel %vm367_vm0, %v4432_v40, 0.0 }
 0x57e   : > { %v4437_v44 = vpop.eup %3905  ;;  %3915 = vpow2.f32 %v1027_v2  ;;  %v1029_v8 = vmul.f32 1.442695, %v1004_v41  ;;  %v1009_v32 = vsub.f32 %v4374_v31, %v991_v43  ;;  %1062 = vadd.xlane.f32.xlu0 %v1061_v4 }
 0x57f   : > { %v1064_v10 = vsel %vm367_vm0, %v4437_v44, 0.0  ;;  %v1134_v53 = vpop.permute.xlu1 %1133 }
 0x580   : > { %v4442_v45 = vpop.eup %3907  ;;  %3917 = vpow2.f32 %v1029_v8  ;;  %v1039_v42 = vmul.f32 1.442695, %v1009_v32  ;;  %1065 = vadd.xlane.f32.xlu1 %v1064_v10 }
 0x581   : > { %v985_v16 = vpop.xlane.xlu0 %984  ;;  %v1073_v34 = vsel %vm367_vm0, %v4442_v45, 0.0 }
 0x582   : > { %v4446_v29 = vpop.eup %3909  ;;  %3919 = vpow2.f32 %v1039_v42  ;;  %v1007_v47 = vsub.f32 %v4379_v36, %v985_v16  ;;  %1074 = vadd.xlane.f32.xlu0 %v1073_v34 }
 0x583   : > { %v1076_v31 = vsel %vm367_vm0, %v4446_v29, 0.0  ;;  %v1193_v38 = vpop.permute.xlu1 %1192 }
 0x584   : > { %v4451_v51 = vpop.eup %3911  ;;  %v1035_v52 = vmul.f32 1.442695, %v1007_v47  ;;  %1077 = vadd.xlane.f32.xlu1 %v1076_v31 }
 0x585   : > { %v1132_v54 = vpop.permute.xlu0 %1131  ;;  %v1055_v57 = vsel %vm367_vm0, %v4451_v51, 0.0 }
 0x586   : > { %v4455_v59 = vpop.eup %3913  ;;  %3921 = vpow2.f32 %v1035_v52  ;;  %1056 = vadd.xlane.f32.xlu0 %v1055_v57  ;;  %3577 = vmatprep.subr.bf16.mxu1 %v1132_v54 }
 0x587   : > { %3578 = vmatpush3.bf16.msra.mxu1 %v1132_v54  ;;  %v1058_v36 = vsel %vm367_vm0, %v4455_v59, 0.0  ;;  %v1195_v12 = vpop.permute.xlu1 %1194 }
 0x588   : > { %v4459_v60 = vpop.eup %3915  ;;  %1059 = vadd.xlane.f32.xlu1 %v1058_v36  ;;  %3579 = vmatprep.subr.bf16.mxu1 %v1134_v53 }
 0x589   : > { %v1067_v0 = vsel %vm367_vm0, %v4459_v60, 0.0 }
 0x58a   : > { %v4463_v56 = vpop.eup %3917  ;;  %1068 = vadd.xlane.f32.xlu0 %v1067_v0 }
 0x58b   : > { %3580 = vmatpush3.bf16.msra.mxu1 %v1134_v53  ;;  %v1070_v3 = vsel %vm367_vm0, %v4463_v56, 0.0 }
 0x58c   : > { %v4467_v35 = vpop.eup %3919  ;;  %1071 = vadd.xlane.f32.xlu1 %v1070_v3  ;;  %3585 = vmatprep.subr.bf16.mxu1 %v1193_v38 }
 0x58d   : > { %v1085_v5 = vsel %vm367_vm0, %v4467_v35, 0.0 }
 0x58e   : > { %1086 = vadd.xlane.f32.xlu0 %v1085_v5 }
 0x590   : > { %v4471_v7 = vpop.eup %3921 }
 0x591   : > { %v1079_v9 = vsel %vm367_vm0, %v4471_v7, 0.0 }
 0x592   : > { %1080 = vadd.xlane.f32.xlu0 %v1079_v9 }
 0x5a8   : > { %1255 = vrot.lane.b32.xlu0 %v4272_v55, %s4094_s27 }
 0x5b8   : > { %v994_v17 = vpop.xlane.xlu1 %993 }
 0x5b9   : > { %v1010_v23 = vsub.f32 %v4396_v50, %v994_v17 }
 0x5bb   : > { %v1041_v24 = vmul.f32 1.442695, %v1010_v23 }
 0x5bc   : > { %v988_v25 = vpop.xlane.xlu1 %987 }
 0x5bd   : > { %3923 = vpow2.f32 %v1041_v24  ;;  %v1008_v26 = vsub.f32 %v4403_v48, %v988_v25  ;;  %v1254_v48 = vpop.permute.xlu0 %1253 }
 0x5bf   : > { %v1037_v27 = vmul.f32 1.442695, %v1008_v26 }
 0x5c0   : > { %v1315_v28 = vpop.permute.xlu1 %1314 }
 0x5c1   : > { %3925 = vpow2.f32 %v1037_v27  ;;  %3601 = vmatprep.subr.bf16.mxu0 %v1315_v28  ;;  %v1051_v58 = vpop.xlane.xlu0 %1050 }
 0x5c2   : > { %3602 = vmatpush3.bf16.msra.mxu0 %v1315_v28 }
 0x5c5   : > { %v1045_v33 = vpop.xlane.xlu0 %1044 }
 0x5c7   : > { %v4479_v49 = vpop.eup %3923 }
 0x5c8   : > { %v1088_v30 = vsel %vm367_vm0, %v4479_v49, 0.0 }
 0x5c9   : > { %1089 = vadd.xlane.f32.xlu1 %v1088_v30 }
 0x5cb   : > { %v4483_v55 = vpop.eup %3925 }
 0x5cc   : > { %v1082_v50 = vsel %vm367_vm0, %v4483_v55, 0.0 }
 0x5cd   : > { %1083 = vadd.xlane.f32.xlu1 %v1082_v50 }
 0x5de   : > { %1316 = vrot.lane.b32.xlu1 %v4281_v61, %s4094_s27 }
 0x5f1   : > { %v1054_v37 = vpop.xlane.xlu1 %1053 }
 0x5f2   : > { %3927 = vrcp.f32 %v1054_v37 }
 0x5f3   : > { %3929 = vrcp.f32 %v1045_v33 }
 0x5f4   : > { %3931 = vrcp.f32 %v1051_v58 }
 0x5f5   : > { %v1048_v62 = vpop.xlane.xlu1 %1047 }
 0x5f6   : > { %3933 = vrcp.f32 %v1048_v62 }
 0x5fc   : > { %v3928_v39 = vpop.eup %3927 }
 0x5fd   : > { %v3930_v2 = vpop.eup %3929  ;;  %v1110_v4 = vmul.f32 %v3928_v39, %v4417_v63 }
 0x5fe   : > { %v3932_v41 = vpop.eup %3931  ;;  %v1107_v8 = vmul.f32 %v3930_v2, %v4407_v18 }
 0x5ff   : > { %v1109_v61 = vmul.f32 %v3932_v41, %v4398_v46 }
 0x600   : > { %v3934_v43 = vpop.eup %3933 }
 0x601   : > { %v1108_v32 = vmul.f32 %v3934_v43, %v4421_v1  ;;  %v1124_v42 = vpack.c.bf16 %v1110_v4, %v1109_v61 }
 0x603   : > { %v1123_v10 = vpack.c.bf16 %v1108_v32, %v1107_v8 }
 0x605   : > { %3581 = vmatprep.mubr.msk.bf16.mxu1 %vm367_vm0, %v1123_v10 }
 0x606   : > { %3582 = vmatmul.mubr.msk.bf16.vlgmr.msra.gmra.mrb[12].mxu1 %vm367_vm0, %v1124_v42 }
 0x607   : > { %3586 = vmatpush3.bf16.msra.mxu1 %v1193_v38 }
 0x608   : > { %3587 = vmatprep.subr.bf16.mxu1 %v1195_v12 }
 0x60b   : > { %3588 = vmatpush3.bf16.msra.mxu1 %v1195_v12  ;;  %v1063_v16 = vpop.xlane.xlu0 %1062 }
 0x60c   : > { %3593 = vmatprep.subr.bf16.mxu1 %v1254_v48 }
 0x60d   : > { %v1066_v34 = vpop.xlane.xlu1 %1065 }
 0x60e   : > { %3935 = vrcp.f32 %v1066_v34 }
 0x60f   : > { %v1075_v47 = vpop.xlane.xlu0 %1074 }
 0x611   : > { %v1078_v63 = vpop.xlane.xlu1 %1077 }
 0x613   : > { %v1057_v18 = vpop.xlane.xlu0 %1056 }
 0x614   : > { %3937 = vrcp.f32 %v1057_v18 }
 0x615   : > { %3939 = vrcp.f32 %v1063_v16  ;;  %v1060_v1 = vpop.xlane.xlu1 %1059 }
 0x616   : > { %3941 = vrcp.f32 %v1060_v1 }
 0x617   : > { %v1069_v46 = vpop.xlane.xlu0 %1068 }
 0x618   : > { %3943 = vrcp.f32 %v1069_v46  ;;  %v3936_v53 = vpop.eup %3935 }
 0x619   : > { %v1072_v31 = vpop.xlane.xlu1 %1071  ;;  %v1114_v0 = vmul.f32 %v3936_v53, %v4437_v44 }
 0x61a   : > { %3945 = vrcp.f32 %v1072_v31 }
 0x61b   : > { %3947 = vrcp.f32 %v1078_v63  ;;  %v1087_v52 = vpop.xlane.xlu0 %1086 }
 0x61c   : > { %3949 = vrcp.f32 %v1075_v47 }
 0x61e   : > { %v3938_v54 = vpop.eup %3937 }
 0x61f   : > { %v3940_v57 = vpop.eup %3939  ;;  %v1081_v38 = vpop.xlane.xlu0 %1080  ;;  %v1111_v3 = vmul.f32 %v3938_v54, %v4451_v51 }
 0x620   : > { %v3942_v36 = vpop.eup %3941  ;;  %v1113_v12 = vmul.f32 %v3940_v57, %v4432_v40 }
 0x621   : > { %v1112_v5 = vmul.f32 %v3942_v36, %v4455_v59 }
 0x622   : > { %v3944_v9 = vpop.eup %3943  ;;  %v1126_v24 = vpack.c.bf16 %v1114_v0, %v1113_v12 }
 0x623   : > { %v1125_v17 = vpack.c.bf16 %v1112_v5, %v1111_v3  ;;  %v1115_v26 = vmul.f32 %v3944_v9, %v4459_v60  ;;  %v1256_v28 = vpop.permute.xlu0 %1255 }
 0x624   : > { %v3946_v23 = vpop.eup %3945 }
 0x625   : > { %v3948_v25 = vpop.eup %3947  ;;  %3589 = vmatprep.mubr.msk.bf16.mxu1 %vm367_vm0, %v1125_v17  ;;  %v1116_v27 = vmul.f32 %v3946_v23, %v4463_v56 }
 0x626   : > { %3590 = vmatmul.mubr.msk.bf16.vlgmr.msra.gmra.mrb[16].mxu1 %vm367_vm0, %v1126_v24  ;;  %v3950_v44 = vpop.eup %3949  ;;  %v1118_v59 = vmul.f32 %v3948_v25, %v4446_v29 }
 0x627   : > { %3594 = vmatpush3.bf16.msra.mxu1 %v1254_v48  ;;  %v1127_v51 = vpack.c.bf16 %v1116_v27, %v1115_v26  ;;  %v1117_v40 = vmul.f32 %v3950_v44, %v4442_v45 }
 0x628   : > { %3595 = vmatprep.subr.bf16.mxu1 %v1256_v28 }
 0x629   : > { %3597 = vmatprep.mubr.msk.bf16.mxu1 %vm367_vm0, %v1127_v51  ;;  %v1128_v30 = vpack.c.bf16 %v1118_v59, %v1117_v40 }
 0x62b   : > { %3596 = vmatpush3.bf16.msra.mxu1 %v1256_v28 }
 0x62e   : > { %3598 = vmatmul.mubr.msk.bf16.vlgmr.msra.gmra.mrb[20].mxu1 %vm367_vm0, %v1128_v30 }
 0x656   : > { %v1090_v60 = vpop.xlane.xlu1 %1089 }
 0x657   : > { %3951 = vrcp.f32 %v1090_v60 }
 0x658   : > { %3953 = vrcp.f32 %v1081_v38 }
 0x659   : > { %3955 = vrcp.f32 %v1087_v52 }
 0x65a   : > { %v1084_v56 = vpop.xlane.xlu1 %1083 }
 0x65b   : > { %3957 = vrcp.f32 %v1084_v56 }
 0x65e   : > { %v1317_v50 = vpop.permute.xlu1 %1316 }
 0x65f   : > { %3603 = vmatprep.subr.bf16.mxu0 %v1317_v50 }
 0x660   : > { %3604 = vmatpush3.bf16.msra.mxu0 %v1317_v50 }
 0x661   : > { %v3952_v48 = vpop.eup %3951 }
 0x662   : > { %v3954_v29 = vpop.eup %3953  ;;  %v1122_v37 = vmul.f32 %v3952_v48, %v4479_v49 }
 0x663   : > { %v3956_v58 = vpop.eup %3955  ;;  %v1119_v45 = vmul.f32 %v3954_v29, %v4471_v7 }
 0x664   : > { %v1121_v39 = vmul.f32 %v3956_v58, %v4467_v35 }
 0x665   : > { %v3958_v33 = vpop.eup %3957 }
 0x666   : > { %v1120_v62 = vmul.f32 %v3958_v33, %v4483_v55  ;;  %v1130_v41 = vpack.c.bf16 %v1122_v37, %v1121_v39 }
 0x668   : > { %v1129_v2 = vpack.c.bf16 %v1120_v62, %v1119_v45 }
 0x66a   : > { %3605 = vmatprep.mubr.msk.bf16.mxu0 %vm367_vm0, %v1129_v2 }
 0x66b   : > { %3606 = vmatmul.mubr.msk.bf16.vlgmr.msra.gmra.mrb[12].mxu0 %vm367_vm0, %v1130_v41  ;;  %v4539_v41 = vsub.s32 1, %v4228_v19 }
 0x6d9   : > { %v4513_v43 = vpop.f32.mrb[12].mxu1 }
 0x6da   : > { %v1177_v4 = vpop.f32.mrb[13].mxu1 }
 0x6db   : > { %v3584_v8 = vpop.f32.mrb[14].mxu1 }
 0x6dc   : > { %v1180_v32 = vpop.f32.mrb[15].mxu1 }
 0x6f9   : > { %v3591_v61 = vpop.f32.mrb[16].mxu1 }
 0x6fa   : > { %v1238_v10 = vpop.f32.mrb[17].mxu1 }
 0x6fb   : > { %v3592_v49 = vpop.f32.mrb[18].mxu1 }
 0x6fc   : > { %v3784_v42 = vpack.i.bf16 %v3592_v49, %v3591_v61  ;;  %v1241_v7 = vpop.f32.mrb[19].mxu1 }
 0x6fd   : > { %v3789_v16 = vpack.i.bf16 %v1241_v7, %v1238_v10 }
 0x6fe   : > { %3785 = vrot.lane.b32.xlu1 %v3784_v42, %s4095_s28 }
 0x6ff   : > { %3790 = vrot.lane.b32.xlu0 %v3789_v16, %s4095_s28 }
 0x701   : > { %v3599_v35 = vpop.f32.mrb[20].mxu1 }
 0x702   : > { %v1299_v55 = vpop.f32.mrb[21].mxu1 }
 0x703   : > { %v3600_v34 = vpop.f32.mrb[22].mxu1 }
 0x704   : > { %v3794_v47 = vpack.i.bf16 %v3600_v34, %v3599_v35  ;;  %v1302_v63 = vpop.f32.mrb[23].mxu1 }
 0x705   : > { %v3799_v18 = vpack.i.bf16 %v1302_v63, %v1299_v55 }
 0x706   : > { %3795 = vrot.lane.b32.xlu1 %v3794_v47, %s4096_s29 }
 0x707   : > { %3800 = vrot.lane.b32.xlu0 %v3799_v18, %s4096_s29 }
 0x70a   : > { %1443 = vrot.lane.b32.xlu1 %v4206_v6, %s4097_s30 }
 0x73e   : > { %v3607_v1 = vpop.f32.mrb[12].mxu0 }
 0x73f   : > { %v1360_v46 = vpop.f32.mrb[13].mxu0 }
 0x740   : > { %v3608_v31 = vpop.f32.mrb[14].mxu0 }
 0x741   : > { %v3809_v52 = vpack.i.bf16 %v3608_v31, %v3607_v1  ;;  %v1363_v53 = vpop.f32.mrb[15].mxu0 }
 0x742   : > { %v3804_v54 = vpack.i.bf16 %v1363_v53, %v1360_v46 }
 0x744   : > { %3805 = vrot.lane.b32.xlu0 %v3804_v54, %s4098_s11 }
 0x748   : > { %3810 = vrot.lane.b32.xlu0 %v3809_v52, %s4098_s11 }
 0x770   : > { %v3786_v57 = vpop.permute.xlu1 %3785 }
 0x771   : > { %v3791_v38 = vpop.permute.xlu0 %3790  ;;  %v3788_v17 = vunpack.i.h.bf16 %v3786_v57  ;;  %v3787_v23 = vunpack.i.l.bf16 %v3786_v57 }
 0x772   : > { %v3793_v5 = vunpack.i.h.bf16 %v3791_v38  ;;  %v3792_v6 = vunpack.i.l.bf16 %v3791_v38 }
 0x773   : > { %v1426_v48 = vsel %vm652_vm2, %v3584_v8, %v3788_v17  ;;  %v1425_v29 = vsel %vm652_vm2, %v4513_v43, %v3787_v23  ;;  %v1442_v43 = vrot.slane %v4236_v21, %v4539_v41  ;;  %v3877_v23 = vld [vmem:[%s5053_s5] sm:$0xff]  }
 0x774   : > { %v1424_v25 = vsel %vm652_vm2, %v1180_v32, %v3793_v5  ;;  %v1423_v26 = vsel %vm652_vm2, %v1177_v4, %v3792_v6  ;;  %3615 = vmatprep.subr.bf16.mxu0 %v3877_v23 }
 0x775   : > { %3616 = vmatpush3.bf16.msra.mxu0 %v3877_v23 }
 0x778   : > { %v3796_v36 = vpop.permute.xlu1 %3795 }
 0x779   : > { %v3801_v3 = vpop.permute.xlu0 %3800  ;;  %v3798_v28 = vunpack.i.h.bf16 %v3796_v36  ;;  %v3797_v51 = vunpack.i.l.bf16 %v3796_v36 }
 0x77a   : > { %v3803_v9 = vunpack.i.h.bf16 %v3801_v3  ;;  %v3802_v12 = vunpack.i.l.bf16 %v3801_v3 }
 0x77b   : > { %v1430_v37 = vsel %vm1427_vm4, %v1425_v29, %v3797_v51  ;;  %v1431_v45 = vsel %vm1427_vm4, %v1426_v48, %v3798_v28  ;;  %v4562_v29 = vld [vmem:[%s5055_s7] sm:$0xff] }
 0x77c   : > { %v1444_v0 = vpop.permute.xlu1 %1443  ;;  %v1429_v59 = vsel %vm1427_vm4, %v1424_v25, %v3803_v9  ;;  %v1428_v40 = vsel %vm1427_vm4, %v1423_v26, %v3802_v12 }
 0x77d   : > { %3609 = vmatprep.subr.bf16.mxu1 %v1444_v0 }
 0x77e   : > { %3610 = vmatpush3.bf16.msra.mxu1 %v1444_v0 }
 0x7b6   : > { %v3806_v24 = vpop.permute.xlu0 %3805 }
 0x7b7   : > { %v3808_v27 = vunpack.i.h.bf16 %v3806_v24  ;;  %v3807_v44 = vunpack.i.l.bf16 %v3806_v24 }
 0x7b9   : > { %v1434_v30 = vsel %vm1432_vm5, %v1429_v59, %v3808_v27  ;;  %v1433_v60 = vsel %vm1432_vm5, %v1428_v40, %v3807_v44 }
 0x7ba   : > { %v3811_v56 = vpop.permute.xlu0 %3810  ;;  %v1437_v50 = vpack.c.bf16 %v1434_v30, %v1433_v60 }
 0x7bb   : > { %v3813_v58 = vunpack.i.h.bf16 %v3811_v56  ;;  %v3812_v33 = vunpack.i.l.bf16 %v3811_v56 }
 0x7bc   : > { %3611 = vmatprep.mubr.msk.bf16.mxu1 %vm542_vm1, %v1437_v50  ;;  %v1560_v50 = vsub.s32 2, %v4228_v19 }
 0x7bd   : > { %v1435_v62 = vsel %vm1432_vm5, %v1430_v37, %v3812_v33  ;;  %v1436_v39 = vsel %vm1432_vm5, %v1431_v45, %v3813_v58  ;;  %v1568_v33 = vsub.s32 3, %v4228_v19 }
 0x7be   : > { %v1438_v2 = vpack.c.bf16 %v1436_v39, %v1435_v62  ;;  %v1561_v58 = vrot.slane %v4562_v29, %v1560_v50 }
 0x7c0   : > { %3612 = vmatmul.mubr.msk.bf16.vlgmr.msra.gmra.mrb[24].mxu1 %vm542_vm1, %v1438_v2 }
 0x893   : > { %v3613_v4 = vpop.f32.mrb[24].mxu1 }
 0x894   : > { %v1495_v8 = vadd.f32 %v3613_v4, %v1442_v43  ;;  %v1486_v32 = vpop.f32.mrb[25].mxu1 }
 0x895   : > { %v1487_v61 = vadd.f32 %v1486_v32, %v1442_v43  ;;  %v3614_v10 = vpop.f32.mrb[26].mxu1 }
 0x896   : > { %v1489_v49 = vpop.f32.mrb[27].mxu1  ;;  %v1503_v42 = vadd.f32 %v1495_v8, %v4219_v15  ;;  %v1498_v35 = vadd.f32 %v3614_v10, %v1442_v43 }
 0x897   : > { %v1490_v7 = vadd.f32 %v1489_v49, %v1442_v43  ;;  %v1501_v16 = vadd.f32 %v1487_v61, %v4215_v13  ;;  %v1569_v43 = vrot.slane %v4562_v29, %v1568_v33 }
 0x898   : > { %v1511_v55 = vsel %vm542_vm1, %v1503_v42, 0.0  ;;  %v1504_v63 = vadd.f32 %v1498_v35, %v4213_v11 }
 0x899   : > { %1512 = vadd.xlane.f32.xlu0 %v1511_v55  ;;  %v1505_v34 = vsel %vm542_vm1, %v1501_v16, 0.0  ;;  %v1502_v47 = vadd.f32 %v1490_v7, %v4217_v14 }
 0x89a   : > { %1506 = vadd.xlane.f32.xlu1 %v1505_v34  ;;  %v1514_v18 = vsel %vm542_vm1, %v1504_v63, 0.0 }
 0x89b   : > { %v1508_v21 = vsel %vm542_vm1, %v1502_v47, 0.0 }
 0x89d   : > { %1509 = vadd.xlane.f32.xlu0 %v1508_v21  ;;  %v3879_v21 = vld [vmem:[%s5054_s6 + $0x8] sm:$0xff]  }
 0x8a1   : > { %1515 = vadd.xlane.f32.xlu0 %v1514_v18 }
 0x926   : > { %v1513_v15 = vpop.xlane.xlu0 %1512 }
 0x927   : > { %v1520_v1 = vmul.f32 0.0625, %v1513_v15  ;;  %v1507_v13 = vpop.xlane.xlu1 %1506 }
 0x928   : > { %v1518_v46 = vmul.f32 0.0625, %v1507_v13 }
 0x929   : > { %v1524_v31 = vsub.f32 %v1503_v42, %v1520_v1 }
 0x92a   : > { %v1522_v52 = vsub.f32 %v1501_v16, %v1518_v46  ;;  %v1510_v53 = vpop.xlane.xlu0 %1509 }
 0x92b   : > { %v1519_v54 = vmul.f32 0.0625, %v1510_v53  ;;  %v1528_v38 = vmul.f32 %v1524_v31, %v1524_v31 }
 0x92c   : > { %v1526_v57 = vmul.f32 %v1522_v52, %v1522_v52 }
 0x92d   : > { %v1523_v36 = vsub.f32 %v1502_v47, %v1519_v54  ;;  %v1536_v9 = vsel %vm542_vm1, %v1528_v38, 0.0  ;;  %v3878_v47 = vld [vmem:[%s5054_s6] sm:$0xff]  }
 0x92e   : > { %v1516_v14 = vpop.xlane.xlu0 %1515  ;;  %v1530_v0 = vsel %vm542_vm1, %v1526_v57, 0.0  ;;  %3621 = vmatprep.subr.bf16.mxu1 %v3878_v47 }
 0x92f   : > { %v1521_v3 = vmul.f32 0.0625, %v1516_v14  ;;  %1531 = vadd.xlane.f32.xlu1 %v1530_v0  ;;  %v1527_v11 = vmul.f32 %v1523_v36, %v1523_v36  ;;  %3622 = vmatpush3.bf16.msra.mxu1 %v3878_v47 }
 0x930   : > { %3623 = vmatprep.subr.bf16.mxu1 %v3879_v21 }
 0x931   : > { %v1525_v5 = vsub.f32 %v1504_v63, %v1521_v3  ;;  %v1533_v6 = vsel %vm542_vm1, %v1527_v11, 0.0  ;;  %v1580_v63 = vsub.s32 4, %v4228_v19 }
 0x932   : > { %1534 = vadd.xlane.f32.xlu0 %v1533_v6 }
 0x933   : > { %1537 = vadd.xlane.f32.xlu1 %v1536_v9  ;;  %v1529_v12 = vmul.f32 %v1525_v5, %v1525_v5  ;;  %3624 = vmatpush3.bf16.msra.mxu1 %v3879_v21  ;;  %v1581_v18 = vrot.slane %v4562_v29, %v1580_v63 }
 0x935   : > { %v1539_v17 = vsel %vm542_vm1, %v1529_v12, 0.0 }
 0x936   : > { %1540 = vadd.xlane.f32.xlu0 %v1539_v17 }
 0x9bc   : > { %v1532_v24 = vpop.xlane.xlu1 %1531 }
 0x9bd   : > { %v1542_v25 = vmul.f32 0.0625, %v1532_v24 }
 0x9bf   : > { %v1546_v26 = vadd.f32 1e-05, %v1542_v25  ;;  %v1535_v27 = vpop.xlane.xlu0 %1534 }
 0x9c0   : > { %v1543_v44 = vmul.f32 0.0625, %v1535_v27  ;;  %v1538_v28 = vpop.xlane.xlu1 %1537 }
 0x9c1   : > { %3959 = vrsqrt.f32 %v1546_v26  ;;  %v1544_v51 = vmul.f32 0.0625, %v1538_v28 }
 0x9c2   : > { %v1547_v59 = vadd.f32 1e-05, %v1543_v44 }
 0x9c3   : > { %v1548_v40 = vadd.f32 1e-05, %v1544_v51  ;;  %v1541_v30 = vpop.xlane.xlu0 %1540 }
 0x9c4   : > { %3961 = vrsqrt.f32 %v1547_v59  ;;  %v1545_v60 = vmul.f32 0.0625, %v1541_v30 }
 0x9c5   : > { %3963 = vrsqrt.f32 %v1548_v40 }
 0x9c6   : > { %v1549_v56 = vadd.f32 1e-05, %v1545_v60 }
 0x9c8   : > { %3965 = vrsqrt.f32 %v1549_v56 }
 0x9cb   : > { %v3960_v48 = vpop.eup %3959 }
 0x9cc   : > { %v1554_v37 = vmul.f32 %v3960_v48, %v1522_v52 }
 0x9ce   : > { %v3962_v45 = vpop.eup %3961  ;;  %v1562_v2 = vmul.f32 %v1561_v58, %v1554_v37 }
 0x9cf   : > { %v3964_v62 = vpop.eup %3963  ;;  %v1555_v39 = vmul.f32 %v3962_v45, %v1523_v36 }
 0x9d0   : > { %v1556_v4 = vmul.f32 %v3964_v62, %v1524_v31  ;;  %v4571_v49 = vadd.f32 %v1569_v43, %v1562_v2 }
 0x9d1   : > { %v1563_v8 = vmul.f32 %v1561_v58, %v1555_v39 }
 0x9d2   : > { %v3966_v32 = vpop.eup %3965  ;;  %v1564_v61 = vmul.f32 %v1561_v58, %v1556_v4 }
 0x9d3   : > { %v1557_v10 = vmul.f32 %v3966_v32, %v1525_v5  ;;  %v4573_v42 = vadd.f32 %v1569_v43, %v1563_v8 }
 0x9d4   : > { %v4578_v35 = vadd.f32 %v1569_v43, %v1564_v61 }
 0x9d5   : > { %v1565_v7 = vmul.f32 %v1561_v58, %v1557_v10  ;;  %v1574_v16 = vpack.c.bf16 %v4573_v42, %v4571_v49 }
 0x9d7   : > { %3617 = vmatprep.mubr.msk.bf16.mxu0 %vm542_vm1, %v1574_v16  ;;  %v4580_v55 = vadd.f32 %v1569_v43, %v1565_v7  ;;  %v1687_v7 = vsub.s32 5, %v4228_v19 }
 0x9d9   : > { %v1575_v34 = vpack.c.bf16 %v4580_v55, %v4578_v35  ;;  %v1688_v16 = vrot.slane %v4562_v29, %v1687_v7 }
 0x9db   : > { %3618 = vmatmul.mubr.msk.bf16.vlgmr.msra.gmra.mrb[16].mxu0 %vm542_vm1, %v1575_v34 }
 0xaae   : > { %v3619_v15 = vpop.f32.mrb[16].mxu0 }
 0xaaf   : > { %v1637_v1 = vadd.f32 %v3619_v15, %v1581_v18  ;;  %v1628_v13 = vpop.f32.mrb[17].mxu0 }
 0xab0   : > { %v1629_v46 = vadd.f32 %v1628_v13, %v1581_v18  ;;  %v3620_v31 = vpop.f32.mrb[18].mxu0 }
 0xab1   : > { %v1645_v52 = vmul.f32 %v1637_v1, %v1637_v1  ;;  %v1640_v53 = vadd.f32 %v3620_v31, %v1581_v18  ;;  %v1631_v54 = vpop.f32.mrb[19].mxu0 }
 0xab2   : > { %v1643_v57 = vmul.f32 %v1629_v46, %v1629_v46  ;;  %v1632_v36 = vadd.f32 %v1631_v54, %v1581_v18 }
 0xab3   : > { %v1649_v14 = vmul.f32 %v1645_v52, %v1637_v1  ;;  %v1646_v0 = vmul.f32 %v1640_v53, %v1640_v53 }
 0xab4   : > { %v1647_v38 = vmul.f32 %v1643_v57, %v1629_v46  ;;  %v1644_v3 = vmul.f32 %v1632_v36, %v1632_v36 }
 0xab5   : > { %v1653_v11 = vmul.f32 0.044715, %v1649_v14  ;;  %v1650_v5 = vmul.f32 %v1646_v0, %v1640_v53 }
 0xab6   : > { %v1651_v6 = vmul.f32 0.044715, %v1647_v38  ;;  %v1648_v9 = vmul.f32 %v1644_v3, %v1632_v36 }
 0xab7   : > { %v1657_v12 = vadd.f32 %v1653_v11, %v1637_v1  ;;  %v1654_v17 = vmul.f32 0.044715, %v1650_v5 }
 0xab8   : > { %v1655_v23 = vadd.f32 %v1651_v6, %v1629_v46  ;;  %v1652_v24 = vmul.f32 0.044715, %v1648_v9 }
 0xab9   : > { %v1661_v25 = vmul.f32 0.7978846, %v1657_v12  ;;  %v1658_v26 = vadd.f32 %v1654_v17, %v1640_v53 }
 0xaba   : > { %v1659_v27 = vmul.f32 0.7978846, %v1655_v23  ;;  %v1656_v44 = vadd.f32 %v1652_v24, %v1632_v36 }
 0xabb   : > { %3967 = vtanh.f32 %v1661_v25  ;;  %v1662_v28 = vmul.f32 0.7978846, %v1658_v26 }
 0xabc   : > { %3969 = vtanh.f32 %v1659_v27  ;;  %v1660_v51 = vmul.f32 0.7978846, %v1656_v44 }
 0xabd   : > { %3971 = vtanh.f32 %v1662_v28 }
 0xabe   : > { %3973 = vtanh.f32 %v1660_v51 }
 0xac5   : > { %v3968_v59 = vpop.eup %3967 }
 0xac6   : > { %v3970_v40 = vpop.eup %3969  ;;  %v1669_v30 = vadd.f32 1.0, %v3968_v59  ;;  %v4616_v59 = vld [vmem:[%s5052_s4 + $0x8] sm:$0xff]  }
 0xac7   : > { %v3972_v60 = vpop.eup %3971  ;;  %v1667_v56 = vadd.f32 1.0, %v3970_v40  ;;  %3629 = vmatprep.subr.bf16.mxu0 %v4616_v59 }
 0xac8   : > { %v3974_v48 = vpop.eup %3973  ;;  %v1673_v58 = vmul.f32 0.5, %v1669_v30  ;;  %v1670_v37 = vadd.f32 1.0, %v3972_v60  ;;  %3630 = vmatpush3.bf16.msra.mxu0 %v4616_v59 }
 0xac9   : > { %v1671_v45 = vmul.f32 0.5, %v1667_v56  ;;  %v1668_v62 = vadd.f32 1.0, %v3974_v48 }
 0xaca   : > { %v1674_v39 = vmul.f32 0.5, %v1670_v37  ;;  %v1677_v43 = vmul.f32 %v1673_v58, %v1637_v1 }
 0xacb   : > { %v1672_v2 = vmul.f32 0.5, %v1668_v62  ;;  %v1675_v8 = vmul.f32 %v1671_v45, %v1629_v46 }
 0xacc   : > { %v1678_v4 = vmul.f32 %v1674_v39, %v1640_v53 }
 0xacd   : > { %v1676_v32 = vmul.f32 %v1672_v2, %v1632_v36 }
 0xace   : > { %v1680_v61 = vpack.c.bf16 %v1678_v4, %v1677_v43  ;;  %v1814_v4 = vsub.s32 6, %v4228_v19 }
 0xacf   : > { %v1679_v10 = vpack.c.bf16 %v1676_v32, %v1675_v8  ;;  %v1822_v32 = vsub.s32 7, %v4228_v19 }
 0xad0   : > { %v1815_v8 = vrot.slane %v4562_v29, %v1814_v4 }
 0xad1   : > { %3625 = vmatprep.mubr.msk.bf16.mxu1 %vm367_vm0, %v1679_v10 }
 0xad2   : > { %3626 = vmatmul.mubr.msk.bf16.vlgmr.msra.gmra.mrb[28].mxu1 %vm367_vm0, %v1680_v61 }
 0xba5   : > { %v3627_v34 = vpop.f32.mrb[28].mxu1 }
 0xba6   : > { %v1741_v47 = vpop.f32.mrb[29].mxu1  ;;  %v1750_v21 = vadd.f32 %v3627_v34, %v1688_v16 }
 0xba7   : > { %v1742_v18 = vadd.f32 %v1741_v47, %v1688_v16  ;;  %v3628_v15 = vpop.f32.mrb[30].mxu1 }
 0xba8   : > { %v1744_v1 = vpop.f32.mrb[31].mxu1  ;;  %v1753_v13 = vadd.f32 %v3628_v15, %v1688_v16  ;;  %v1758_v54 = vadd.f32 %v1750_v21, %v4578_v35  ;;  %v1823_v21 = vrot.slane %v4562_v29, %v1822_v32 }
 0xba9   : > { %v1745_v46 = vadd.f32 %v1744_v1, %v1688_v16  ;;  %v1756_v31 = vadd.f32 %v1742_v18, %v4571_v49 }
 0xbaa   : > { %v1759_v36 = vadd.f32 %v1753_v13, %v4580_v55  ;;  %v1766_v14 = vsel %vm542_vm1, %v1758_v54, 0.0 }
 0xbab   : > { %v1760_v52 = vsel %vm542_vm1, %v1756_v31, 0.0  ;;  %v1757_v53 = vadd.f32 %v1745_v46, %v4573_v42 }
 0xbac   : > { %1761 = vadd.xlane.f32.xlu1 %v1760_v52  ;;  %v1769_v0 = vsel %vm542_vm1, %v1759_v36, 0.0 }
 0xbad   : > { %v1763_v57 = vsel %vm542_vm1, %v1757_v53, 0.0 }
 0xbae   : > { %1764 = vadd.xlane.f32.xlu0 %v1763_v57 }
 0xbb0   : > { %1767 = vadd.xlane.f32.xlu1 %v1766_v14 }
 0xbb2   : > { %1770 = vadd.xlane.f32.xlu0 %v1769_v0  ;;  %v4645_v0 = vld [vmem:[%s5055_s7 + $0x8] sm:$0xff] }
 0xc39   : > { %v1762_v38 = vpop.xlane.xlu1 %1761 }
 0xc3a   : > { %v1772_v49 = vmul.f32 0.0625, %v1762_v38  ;;  %v1838_v38 = vrot.slane %v4645_v0, %v4231_v20 }
 0xc3b   : > { %v1765_v3 = vpop.xlane.xlu0 %1764 }
 0xc3c   : > { %v1776_v11 = vsub.f32 %v1756_v31, %v1772_v49  ;;  %v1773_v5 = vmul.f32 0.0625, %v1765_v3 }
 0xc3d   : > { %v1768_v42 = vpop.xlane.xlu1 %1767 }
 0xc3e   : > { %v1777_v6 = vsub.f32 %v1757_v53, %v1773_v5  ;;  %v1774_v35 = vmul.f32 0.0625, %v1768_v42  ;;  %v1780_v9 = vmul.f32 %v1776_v11, %v1776_v11 }
 0xc3f   : > { %v1771_v12 = vpop.xlane.xlu0 %1770 }
 0xc40   : > { %v1778_v17 = vsub.f32 %v1758_v54, %v1774_v35  ;;  %v1775_v23 = vmul.f32 0.0625, %v1771_v12  ;;  %v1784_v55 = vsel %vm542_vm1, %v1780_v9, 0.0  ;;  %v1781_v24 = vmul.f32 %v1777_v6, %v1777_v6 }
 0xc41   : > { %1785 = vadd.xlane.f32.xlu1 %v1784_v55 }
 0xc42   : > { %v1779_v25 = vsub.f32 %v1759_v36, %v1775_v23  ;;  %v1787_v26 = vsel %vm542_vm1, %v1781_v24, 0.0  ;;  %v1782_v27 = vmul.f32 %v1778_v17, %v1778_v17 }
 0xc43   : > { %1788 = vadd.xlane.f32.xlu0 %v1787_v26 }
 0xc44   : > { %v1790_v44 = vsel %vm542_vm1, %v1782_v27, 0.0  ;;  %v1783_v28 = vmul.f32 %v1779_v25, %v1779_v25 }
 0xc45   : > { %1791 = vadd.xlane.f32.xlu1 %v1790_v44 }
 0xc46   : > { %v1793_v51 = vsel %vm542_vm1, %v1783_v28, 0.0 }
 0xc47   : > { %1794 = vadd.xlane.f32.xlu0 %v1793_v51 }
 0xcce   : > { %v1786_v40 = vpop.xlane.xlu1 %1785 }
 0xccf   : > { %v1796_v30 = vmul.f32 0.0625, %v1786_v40 }
 0xcd0   : > { %v1789_v60 = vpop.xlane.xlu0 %1788 }
 0xcd1   : > { %v1800_v56 = vadd.f32 1e-05, %v1796_v30  ;;  %v1797_v48 = vmul.f32 0.0625, %v1789_v60 }
 0xcd2   : > { %v1792_v58 = vpop.xlane.xlu1 %1791 }
 0xcd3   : > { %3975 = vrsqrt.f32 %v1800_v56  ;;  %v1801_v37 = vadd.f32 1e-05, %v1797_v48  ;;  %v1798_v45 = vmul.f32 0.0625, %v1792_v58 }
 0xcd4   : > { %v1795_v62 = vpop.xlane.xlu0 %1794 }
 0xcd5   : > { %3977 = vrsqrt.f32 %v1801_v37  ;;  %v1802_v39 = vadd.f32 1e-05, %v1798_v45  ;;  %v1799_v2 = vmul.f32 0.0625, %v1795_v62 }
 0xcd7   : > { %3979 = vrsqrt.f32 %v1802_v39  ;;  %v1803_v43 = vadd.f32 1e-05, %v1799_v2 }
 0xcd9   : > { %3981 = vrsqrt.f32 %v1803_v43 }
 0xcdd   : > { %v3976_v61 = vpop.eup %3975 }
 0xcde   : > { %v1808_v10 = vmul.f32 %v3976_v61, %v1776_v11 }
 0xcdf   : > { %v3978_v16 = vpop.eup %3977 }
 0xce0   : > { %v1809_v34 = vmul.f32 %v3978_v16, %v1777_v6  ;;  %v1816_v47 = vmul.f32 %v1815_v8, %v1808_v10 }
 0xce1   : > { %v3980_v18 = vpop.eup %3979 }
 0xce2   : > { %v1810_v15 = vmul.f32 %v3980_v18, %v1778_v17  ;;  %v1817_v1 = vmul.f32 %v1815_v8, %v1809_v34  ;;  %v4628_v52 = vadd.f32 %v1823_v21, %v1816_v47 }
 0xce3   : > { %v3982_v13 = vpop.eup %3981 }
 0xce4   : > { %v1818_v46 = vmul.f32 %v1815_v8, %v1810_v15  ;;  %v1811_v31 = vmul.f32 %v3982_v13, %v1779_v25  ;;  %v4630_v53 = vadd.f32 %v1823_v21, %v1817_v1 }
 0xce6   : > { %v1819_v54 = vmul.f32 %v1815_v8, %v1811_v31  ;;  %v1833_v57 = vpack.c.bf16 %v4630_v53, %v4628_v52  ;;  %v4635_v36 = vadd.f32 %v1823_v21, %v1818_v46 }
 0xce8   : > { %3631 = vmatprep.mubr.msk.bf16.mxu0 %vm542_vm1, %v1833_v57  ;;  %v4637_v14 = vadd.f32 %v1823_v21, %v1819_v54 }
 0xcea   : > { %v1834_v29 = vpack.c.bf16 %v4637_v14, %v4635_v36 }
 0xcec   : > { %3632 = vmatmul.mubr.msk.bf16.vlgmr.msra.gmra.mrb[20].mxu0 %vm542_vm1, %v1834_v29 }
 0xdbf   : > { %v3633_v49 = vpop.f32.mrb[20].mxu0 }
 0xdc0   : > { %v1885_v3 = vpop.f32.mrb[21].mxu0  ;;  %v1894_v5 = vadd.f32 %v3633_v49, %v1838_v38 }
 0xdc1   : > { %v3634_v11 = vpop.f32.mrb[22].mxu0  ;;  %v1886_v35 = vadd.f32 %v1885_v3, %v1838_v38 }
 0xdc2   : > { %v1897_v42 = vadd.f32 %v3634_v11, %v1838_v38  ;;  %v1888_v6 = vpop.f32.mrb[23].mxu0 }
 0xdc3   : > { %v1889_v9 = vadd.f32 %v1888_v6, %v1838_v38 }
 0xdc4   : > { %v3819_v12 = vpack.i.bf16 %v1897_v42, %v1894_v5  ;;  %v4649_v17 = vpack.c.bf16 %v1897_v42, %v1894_v5 }
 0xdc5   : > { %v3814_v23 = vpack.i.bf16 %v1889_v9, %v1886_v35  ;;  %v1940_v55 = vpack.c.bf16 %v1889_v9, %v1886_v35 }
 0xdc6   : > { %3820 = vrot.lane.b32.xlu0 %v3819_v12, %s4089_s23 }
 0xdc7   : > { %3815 = vrot.lane.b32.xlu1 %v3814_v23, %s4089_s23  ;;  %3639 = vmatprep.mubr.msk.bf16.mxu1 %vm652_vm2, %v1940_v55  ;;  %s3436_s23 = sshll.u32 %s5060_s14, 6 }
 0xdca   : > { %3840 = vrot.lane.b32.xlu0 %v3819_v12, %s4091_s25 }
 0xdcb   : > { %3825 = vrot.lane.b32.xlu1 %v3814_v23, %s4090_s24 }
 0xdcf   : > { %3830 = vrot.lane.b32.xlu1 %v3814_v23, %s4091_s25 }
 0xdd3   : > { %3835 = vrot.lane.b32.xlu1 %v3819_v12, %s4090_s24 }
 0xdd7   : > { %1950 = vrot.lane.b32.xlu1 %v1940_v55, %s4092_s26 }
 0xddb   : > { %1952 = vrot.lane.b32.xlu1 %v4649_v17, %s4092_s26 }
 0xe38   : > { %v3821_v24 = vpop.permute.xlu0 %3820 }
 0xe39   : > { %v3816_v25 = vpop.permute.xlu1 %3815  ;;  %v3823_v44 = vunpack.i.h.bf16 %v3821_v24  ;;  %v3822_v28 = vunpack.i.l.bf16 %v3821_v24 }
 0xe3a   : > { %v3818_v26 = vunpack.i.h.bf16 %v3816_v25  ;;  %v3817_v27 = vunpack.i.l.bf16 %v3816_v25 }
 0xe3b   : > { %v4667_v56 = vpack.c.bf16 %v3823_v44, %v3822_v28 }
 0xe3c   : > { %v4661_v51 = vpack.c.bf16 %v3818_v26, %v3817_v27  ;;  %v3841_v58 = vpop.permute.xlu0 %3840 }
 0xe3d   : > { %v3826_v40 = vpop.permute.xlu1 %3825  ;;  %v3843_v39 = vunpack.i.h.bf16 %v3841_v58  ;;  %v3842_v2 = vunpack.i.l.bf16 %v3841_v58 }
 0xe3e   : > { %v3828_v30 = vunpack.i.h.bf16 %v3826_v40  ;;  %v3827_v60 = vunpack.i.l.bf16 %v3826_v40  ;;  %2017 = vrot.lane.b32.xlu0 %v4661_v51, %s4092_s26  ;;  %3647 = vmatprep.mubr.msk.bf16.mxu0 %vm652_vm2, %v4661_v51 }
 0xe3f   : > { %v4679_v16 = vpack.c.bf16 %v3843_v39, %v3842_v2 }
 0xe40   : > { %v4669_v48 = vpack.c.bf16 %v3828_v30, %v3827_v60 }
 0xe41   : > { %v3831_v37 = vpop.permute.xlu1 %3830 }
 0xe42   : > { %v3833_v45 = vunpack.i.h.bf16 %v3831_v37  ;;  %v3832_v62 = vunpack.i.l.bf16 %v3831_v37  ;;  %2019 = vrot.lane.b32.xlu0 %v4667_v56, %s4092_s26  ;;  %2084 = vrot.lane.b32.xlu1 %v4669_v48, %s4092_s26 }
 0xe44   : > { %v4675_v43 = vpack.c.bf16 %v3833_v45, %v3832_v62 }
 0xe45   : > { %v3836_v8 = vpop.permute.xlu1 %3835 }
 0xe46   : > { %v3838_v61 = vunpack.i.h.bf16 %v3836_v8  ;;  %v3837_v10 = vunpack.i.l.bf16 %v3836_v8  ;;  %2151 = vrot.lane.b32.xlu0 %v4675_v43, %s4092_s26 }
 0xe48   : > { %v4681_v34 = vpack.c.bf16 %v3838_v61, %v3837_v10 }
 0xe49   : > { %v1951_v47 = vpop.permute.xlu1 %1950 }
 0xe4a   : > { %v1961_v21 = vsel %vm652_vm2, %v1951_v47, 0  ;;  %2153 = vrot.lane.b32.xlu0 %v4679_v16, %s4092_s26  ;;  %2086 = vrot.lane.b32.xlu1 %v4681_v34, %s4092_s26  ;;  %s359_s26 = scalar_lea.vmem %s5058_s10, %s3436_s23 }
 0xe4b   : > { %3727 = vmatprep.subr.msk.bf16.mxu1 %vm652_vm2, %v1951_v47 }
 0xe4c   : > { %3636 = vmatpush3.bf16.xpose.msra.mxu1 %v1961_v21 }
 0xe4d   : > { %v1953_v18 = vpop.permute.xlu1 %1952 }
 0xe4e   : > { %2432 = vrot.lane.b32.xlu1 %v1940_v55, %s4094_s27  ;;  %3728 = vmatprep.subr.msk.bf16.mxu1 %vm652_vm2, %v1953_v18  ;;  %v1964_v15 = vsel %vm652_vm2, %v1953_v18, 0 }
 0xe54   : > { %3638 = vmatpush3.bf16.xpose.msra.mxu1 %v1964_v15 }
 0xe5b   : > { %3640 = vmatmul.mubr.msk.bf16.vlgmr.msra.gmra.mrb[32].mxu1 %vm652_vm2, %v4649_v17 }
 0xe5c   : > { %3655 = vmatprep.mubr.msk.bf16.mxu1 %vm652_vm2, %v4669_v48 }
 0xeb0   : > { %v2018_v1 = vpop.permute.xlu0 %2017 }
 0xeb1   : > { %v2028_v13 = vsel %vm652_vm2, %v2018_v1, 0  ;;  %3729 = vmatprep.subr.msk.bf16.mxu0 %vm652_vm2, %v2018_v1 }
 0xeb2   : > { %3644 = vmatpush3.bf16.xpose.msra.mxu0 %v2028_v13 }
 0xeb4   : > { %v2020_v46 = vpop.permute.xlu0 %2019  ;;  %v2085_v31 = vpop.permute.xlu1 %2084 }
 0xeb5   : > { %v2095_v54 = vsel %vm652_vm2, %v2085_v31, 0  ;;  %3730 = vmatprep.subr.msk.bf16.mxu0 %vm652_vm2, %v2020_v46  ;;  %3731 = vmatprep.subr.msk.bf16.mxu1 %vm652_vm2, %v2085_v31  ;;  %v2031_v57 = vsel %vm652_vm2, %v2020_v46, 0 }
 0xeb6   : > { %3652 = vmatpush3.bf16.xpose.msra.mxu1 %v2095_v54 }
 0xeb8   : > { %v2152_v29 = vpop.permute.xlu0 %2151 }
 0xeb9   : > { %v2162_v11 = vsel %vm652_vm2, %v2152_v29, 0 }
 0xeba   : > { %3646 = vmatpush3.bf16.xpose.msra.mxu0 %v2031_v57 }
 0xebb   : > { %3733 = vmatprep.subr.msk.bf16.mxu0 %vm652_vm2, %v2152_v29 }
 0xebc   : > { %v2087_v38 = vpop.permute.xlu1 %2086  ;;  %v2154_v5 = vpop.permute.xlu0 %2153 }
 0xebd   : > { %v2098_v49 = vsel %vm652_vm2, %v2087_v38, 0  ;;  %3732 = vmatprep.subr.msk.bf16.mxu1 %vm652_vm2, %v2087_v38  ;;  %v2165_v42 = vsel %vm652_vm2, %v2154_v5, 0 }
 0xebe   : > { %3654 = vmatpush3.bf16.xpose.msra.mxu1 %v2098_v49 }
 0xec0   : > { %v2433_v3 = vpop.permute.xlu1 %2432 }
 0xec1   : > { %3648 = vmatmul.mubr.msk.bf16.vlgmr.msra.gmra.mrb[24].mxu0 %vm652_vm2, %v4667_v56  ;;  %3667 = vmatprep.subr.bf16.mxu1 %v2433_v3 }
 0xec2   : > { %3660 = vmatpush3.bf16.xpose.msra.mxu0 %v2162_v11  ;;  %3663 = vmatprep.mubr.msk.bf16.mxu0 %vm652_vm2, %v4675_v43 }
 0xec3   : > { %3734 = vmatprep.subr.msk.bf16.mxu0 %vm652_vm2, %v2154_v5 }
 0xec5   : > { %3656 = vmatmul.mubr.msk.bf16.vlgmr.msra.gmra.mrb[36].mxu1 %vm652_vm2, %v4681_v34 }
 0xec6   : > { %3668 = vmatpush3.bf16.msra.mxu1 %v2433_v3 }
 0xeca   : > { %3662 = vmatpush3.bf16.xpose.msra.mxu0 %v2165_v42 }
 0xed1   : > { %3664 = vmatmul.mubr.msk.bf16.vlgmr.msra.gmra.mrb[28].mxu0 %vm652_vm2, %v4679_v16 }
 0xf2e   : > { %v3641_v6 = vpop.f32.mrb[32].mxu1 }
 0xf2f   : > { %v2218_v35 = vmul.f32 0.5, %v3641_v6  ;;  %v2000_v9 = vpop.f32.mrb[33].mxu1 }
 0xf30   : > { %v2216_v12 = vmul.f32 0.5, %v2000_v9  ;;  %v3642_v23 = vpop.f32.mrb[34].mxu1 }
 0xf31   : > { %v4717_v55 = vadd.f32 %v2218_v35, %v4311_v22  ;;  %v2219_v24 = vmul.f32 0.5, %v3642_v23  ;;  %v2003_v25 = vpop.f32.mrb[35].mxu1 }
 0xf32   : > { %v4720_v26 = vadd.f32 %v2216_v12, %v4311_v22  ;;  %v2217_v44 = vmul.f32 0.5, %v2003_v25 }
 0xf33   : > { %v4723_v27 = vadd.f32 %v2219_v24, %v4311_v22  ;;  %v2254_v28 = vsel %vm367_vm0, %v4717_v55, -inf }
 0xf34   : > { %2255 = vmax.xlane.f32.xlu0 %v2254_v28  ;;  %v2248_v40 = vsel %vm367_vm0, %v4720_v26, -inf  ;;  %v4730_v30 = vadd.f32 %v2217_v44, %v4311_v22 }
 0xf35   : > { %2249 = vmax.xlane.f32.xlu1 %v2248_v40  ;;  %v2257_v60 = vsel %vm367_vm0, %v4723_v27, -inf }
 0xf36   : > { %v2251_v58 = vsel %vm367_vm0, %v4730_v30, -inf }
 0xf38   : > { %2258 = vmax.xlane.f32.xlu0 %v2257_v60 }
 0xf3c   : > { %2252 = vmax.xlane.f32.xlu0 %v2251_v58 }
 0xf94   : > { %v3649_v37 = vpop.f32.mrb[24].mxu0 }
 0xf95   : > { %v2222_v45 = vmul.f32 0.5, %v3649_v37  ;;  %v2067_v62 = vpop.f32.mrb[25].mxu0 }
 0xf96   : > { %v3650_v39 = vpop.f32.mrb[26].mxu0  ;;  %v2220_v47 = vmul.f32 0.5, %v2067_v62 }
 0xf97   : > { %v4737_v2 = vadd.f32 %v2222_v45, %v4311_v22  ;;  %v2223_v8 = vmul.f32 0.5, %v3650_v39  ;;  %v2070_v61 = vpop.f32.mrb[27].mxu0 }
 0xf98   : > { %v3657_v10 = vpop.f32.mrb[36].mxu1  ;;  %v2221_v46 = vmul.f32 0.5, %v2070_v61  ;;  %v4750_v38 = vadd.f32 %v2220_v47, %v4311_v22 }
 0xf99   : > { %v4740_v21 = vadd.f32 %v2223_v8, %v4311_v22  ;;  %v2226_v18 = vmul.f32 0.5, %v3657_v10  ;;  %v2134_v15 = vpop.f32.mrb[37].mxu1  ;;  %v2266_v1 = vsel %vm367_vm0, %v4737_v2, -inf }
 0xf9a   : > { %2267 = vmax.xlane.f32.xlu1 %v2266_v1  ;;  %v3658_v13 = vpop.f32.mrb[38].mxu1  ;;  %v2224_v49 = vmul.f32 0.5, %v2134_v15  ;;  %v4758_v5 = vadd.f32 %v2221_v46, %v4311_v22  ;;  %v2260_v9 = vsel %vm367_vm0, %v4750_v38, -inf }
 0xf9b   : > { %v4745_v31 = vadd.f32 %v2226_v18, %v4311_v22  ;;  %v2227_v54 = vmul.f32 0.5, %v3658_v13  ;;  %v2137_v57 = vpop.f32.mrb[39].mxu1  ;;  %v2269_v29 = vsel %vm367_vm0, %v4740_v21, -inf }
 0xf9c   : > { %2270 = vmax.xlane.f32.xlu0 %v2269_v29  ;;  %v2225_v42 = vmul.f32 0.5, %v2137_v57  ;;  %v4763_v35 = vadd.f32 %v2224_v49, %v4311_v22  ;;  %v2263_v23 = vsel %vm367_vm0, %v4758_v5, -inf }
 0xf9d   : > { %v4753_v3 = vadd.f32 %v2227_v54, %v4311_v22  ;;  %v2278_v11 = vsel %vm367_vm0, %v4745_v31, -inf }
 0xf9e   : > { %2279 = vmax.xlane.f32.xlu1 %v2278_v11  ;;  %v4768_v12 = vadd.f32 %v2225_v42, %v4311_v22  ;;  %v2272_v28 = vsel %vm367_vm0, %v4763_v35, -inf }
 0xf9f   : > { %v2281_v6 = vsel %vm367_vm0, %v4753_v3, -inf }
 0xfa0   : > { %2282 = vmax.xlane.f32.xlu0 %v2281_v6  ;;  %v2275_v62 = vsel %vm367_vm0, %v4768_v12, -inf }
 0xfa2   : > { %2261 = vmax.xlane.f32.xlu1 %v2260_v9 }
 0xfa4   : > { %v3665_v24 = vpop.f32.mrb[28].mxu0  ;;  %2264 = vmax.xlane.f32.xlu0 %v2263_v23 }
 0xfa5   : > { %v2230_v25 = vmul.f32 0.5, %v3665_v24  ;;  %v2201_v44 = vpop.f32.mrb[29].mxu0 }
 0xfa6   : > { %v2228_v40 = vmul.f32 0.5, %v2201_v44  ;;  %v3666_v60 = vpop.f32.mrb[30].mxu0  ;;  %2273 = vmax.xlane.f32.xlu1 %v2272_v28 }
 0xfa7   : > { %v4775_v58 = vadd.f32 %v2230_v25, %v4311_v22  ;;  %v2231_v37 = vmul.f32 0.5, %v3666_v60  ;;  %v2204_v45 = vpop.f32.mrb[31].mxu0 }
 0xfa8   : > { %v2229_v39 = vmul.f32 0.5, %v2204_v45  ;;  %2276 = vmax.xlane.f32.xlu0 %v2275_v62  ;;  %v4780_v8 = vadd.f32 %v2228_v40, %v4311_v22 }
 0xfa9   : > { %v4783_v61 = vadd.f32 %v2231_v37, %v4311_v22  ;;  %v2290_v10 = vsel %vm367_vm0, %v4775_v58, -inf }
 0xfaa   : > { %2291 = vmax.xlane.f32.xlu1 %v2290_v10  ;;  %v4788_v47 = vadd.f32 %v2229_v39, %v4311_v22  ;;  %v2284_v15 = vsel %vm367_vm0, %v4780_v8, -inf }
 0xfab   : > { %v2293_v18 = vsel %vm367_vm0, %v4783_v61, -inf }
 0xfac   : > { %2294 = vmax.xlane.f32.xlu0 %v2293_v18  ;;  %v2287_v1 = vsel %vm367_vm0, %v4788_v47, -inf }
 0xfae   : > { %2285 = vmax.xlane.f32.xlu1 %v2284_v15 }
 0xfb0   : > { %2288 = vmax.xlane.f32.xlu0 %v2287_v1 }
 0xfbf   : > { %2434 = vrot.lane.b32.xlu1 %v4649_v17, %s4094_s27 }
 0xfc1   : > { %v2256_v22 = vpop.xlane.xlu0 %2255 }
 0xfc2   : > { %v2298_v57 = vsub.f32 %v4717_v55, %v2256_v22  ;;  %v2250_v17 = vpop.xlane.xlu1 %2249 }
 0xfc3   : > { %2495 = vrot.lane.b32.xlu1 %v4667_v56, %s4094_s27 }
 0xfc4   : > { %v2316_v49 = vmul.f32 1.442695, %v2298_v57 }
 0xfc5   : > { %v2259_v13 = vpop.xlane.xlu0 %2258 }
 0xfc6   : > { %2493 = vrot.lane.b32.xlu0 %v4661_v51, %s4094_s27  ;;  %v2299_v46 = vsub.f32 %v4723_v27, %v2259_v13  ;;  %v2296_v51 = vsub.f32 %v4720_v26, %v2250_v17 }
 0xfc7   : > { %2554 = vrot.lane.b32.xlu1 %v4669_v48, %s4094_s27 }
 0xfc8   : > { %v2318_v29 = vmul.f32 1.442695, %v2299_v46  ;;  %v2312_v48 = vmul.f32 1.442695, %v2296_v51 }
 0xfc9   : > { %v2253_v54 = vpop.xlane.xlu0 %2252 }
 0xfca   : > { %2615 = vrot.lane.b32.xlu0 %v4675_v43, %s4094_s27  ;;  %v2297_v56 = vsub.f32 %v4730_v30, %v2253_v54  ;;  %3983 = vpow2.f32 %v2318_v29 }
 0xfcb   : > { %3985 = vpow2.f32 %v2316_v49 }
 0xfcc   : > { %v2314_v11 = vmul.f32 1.442695, %v2297_v56 }
 0xfce   : > { %3987 = vpow2.f32 %v2314_v11 }
 0xfcf   : > { %3989 = vpow2.f32 %v2312_v48 }
 0xfd4   : > { %v4810_v43 = vpop.eup %3983 }
 0xfd5   : > { %v4812_v42 = vpop.eup %3985  ;;  %v2353_v55 = vsel %vm367_vm0, %v4810_v43, 0.0 }
 0xfd6   : > { %v2350_v30 = vsel %vm367_vm0, %v4812_v42, 0.0 }
 0xfd8   : > { %v4816_v27 = vpop.eup %3987 }
 0xfd9   : > { %v4820_v26 = vpop.eup %3989  ;;  %v2347_v6 = vsel %vm367_vm0, %v4816_v27, 0.0 }
 0xfda   : > { %v2344_v9 = vsel %vm367_vm0, %v4820_v26, 0.0 }
 0xfe9   : > { %2354 = vadd.xlane.f32.xlu0 %v2353_v55 }
 0xfeb   : > { %2351 = vadd.xlane.f32.xlu1 %v2350_v30 }
 0xfed   : > { %2348 = vadd.xlane.f32.xlu0 %v2347_v6 }
 0xfef   : > { %2345 = vadd.xlane.f32.xlu1 %v2344_v9 }
0x1027   : > { %v2268_v23 = vpop.xlane.xlu1 %2267 }
0x1028   : > { %v2302_v24 = vsub.f32 %v4737_v2, %v2268_v23 }
0x1029   : > { %v2271_v25 = vpop.xlane.xlu0 %2270 }
0x102a   : > { %v2324_v44 = vmul.f32 1.442695, %v2302_v24  ;;  %v2303_v28 = vsub.f32 %v4740_v21, %v2271_v25 }
0x102b   : > { %v2280_v40 = vpop.xlane.xlu1 %2279 }
0x102c   : > { %3991 = vpow2.f32 %v2324_v44  ;;  %v2326_v60 = vmul.f32 1.442695, %v2303_v28  ;;  %v2306_v37 = vsub.f32 %v4745_v31, %v2280_v40 }
0x102d   : > { %v2283_v45 = vpop.xlane.xlu0 %2282 }
0x102e   : > { %3993 = vpow2.f32 %v2326_v60  ;;  %v2332_v62 = vmul.f32 1.442695, %v2306_v37  ;;  %v2307_v39 = vsub.f32 %v4753_v3, %v2283_v45 }
0x102f   : > { %v2262_v10 = vpop.xlane.xlu1 %2261 }
0x1030   : > { %3995 = vpow2.f32 %v2332_v62  ;;  %v2334_v18 = vmul.f32 1.442695, %v2307_v39  ;;  %v2300_v15 = vsub.f32 %v4750_v38, %v2262_v10 }
0x1031   : > { %v2265_v2 = vpop.xlane.xlu0 %2264 }
0x1032   : > { %3997 = vpow2.f32 %v2334_v18  ;;  %v2320_v1 = vmul.f32 1.442695, %v2300_v15  ;;  %v2301_v21 = vsub.f32 %v4758_v5, %v2265_v2 }
0x1033   : > { %v2274_v22 = vpop.xlane.xlu1 %2273 }
0x1034   : > { %3999 = vpow2.f32 %v2320_v1  ;;  %v2322_v13 = vmul.f32 1.442695, %v2301_v21  ;;  %v2304_v31 = vsub.f32 %v4763_v35, %v2274_v22 }
0x1035   : > { %v2277_v46 = vpop.xlane.xlu0 %2276 }
0x1036   : > { %v4833_v54 = vpop.eup %3991  ;;  %4001 = vpow2.f32 %v2322_v13  ;;  %v2328_v3 = vmul.f32 1.442695, %v2304_v31  ;;  %v2305_v57 = vsub.f32 %v4768_v12, %v2277_v46 }
0x1037   : > { %v2292_v17 = vpop.xlane.xlu1 %2291  ;;  %v2362_v38 = vsel %vm367_vm0, %v4833_v54, 0.0 }
0x1038   : > { %v4838_v29 = vpop.eup %3993  ;;  %4003 = vpow2.f32 %v2328_v3  ;;  %v2330_v5 = vmul.f32 1.442695, %v2305_v57  ;;  %v2310_v56 = vsub.f32 %v4775_v58, %v2292_v17  ;;  %2363 = vadd.xlane.f32.xlu1 %v2362_v38 }
0x1039   : > { %v2295_v49 = vpop.xlane.xlu0 %2294  ;;  %v2365_v35 = vsel %vm367_vm0, %v4838_v29, 0.0 }
0x103a   : > { %v4843_v51 = vpop.eup %3995  ;;  %4005 = vpow2.f32 %v2330_v5  ;;  %v2340_v11 = vmul.f32 1.442695, %v2310_v56  ;;  %v2311_v12 = vsub.f32 %v4783_v61, %v2295_v49  ;;  %2366 = vadd.xlane.f32.xlu0 %v2365_v35 }
0x103b   : > { %v2286_v48 = vpop.xlane.xlu1 %2285  ;;  %v2374_v55 = vsel %vm367_vm0, %v4843_v51, 0.0 }
0x103c   : > { %v4848_v30 = vpop.eup %3997  ;;  %4007 = vpow2.f32 %v2340_v11  ;;  %v2342_v58 = vmul.f32 1.442695, %v2311_v12  ;;  %v2308_v6 = vsub.f32 %v4780_v8, %v2286_v48  ;;  %2375 = vadd.xlane.f32.xlu1 %v2374_v55 }
0x103d   : > { %v2289_v9 = vpop.xlane.xlu0 %2288  ;;  %v2377_v23 = vsel %vm367_vm0, %v4848_v30, 0.0 }
0x103e   : > { %v4853_v24 = vpop.eup %3999  ;;  %4009 = vpow2.f32 %v2342_v58  ;;  %v2336_v61 = vmul.f32 1.442695, %v2308_v6  ;;  %v2309_v25 = vsub.f32 %v4788_v47, %v2289_v9  ;;  %2378 = vadd.xlane.f32.xlu0 %v2377_v23 }
0x103f   : > { %v2435_v44 = vpop.permute.xlu1 %2434  ;;  %v2356_v28 = vsel %vm367_vm0, %v4853_v24, 0.0 }
0x1040   : > { %v4858_v40 = vpop.eup %4001  ;;  %4011 = vpow2.f32 %v2336_v61  ;;  %v2338_v8 = vmul.f32 1.442695, %v2309_v25  ;;  %2357 = vadd.xlane.f32.xlu1 %v2356_v28  ;;  %3669 = vmatprep.subr.bf16.mxu1 %v2435_v44 }
0x1041   : > { %3670 = vmatpush3.bf16.msra.mxu1 %v2435_v44  ;;  %v2494_v60 = vpop.permute.xlu0 %2493  ;;  %v2359_v37 = vsel %vm367_vm0, %v4858_v40, 0.0 }
0x1042   : > { %v4862_v45 = vpop.eup %4003  ;;  %4013 = vpow2.f32 %v2338_v8  ;;  %2360 = vadd.xlane.f32.xlu0 %v2359_v37  ;;  %3675 = vmatprep.subr.bf16.mxu0 %v2494_v60 }
0x1043   : > { %v2496_v47 = vpop.permute.xlu1 %2495  ;;  %3676 = vmatpush3.bf16.msra.mxu0 %v2494_v60  ;;  %v2368_v62 = vsel %vm367_vm0, %v4862_v45, 0.0 }
0x1044   : > { %v4866_v39 = vpop.eup %4005  ;;  %2369 = vadd.xlane.f32.xlu1 %v2368_v62  ;;  %3677 = vmatprep.subr.bf16.mxu0 %v2496_v47 }
0x1045   : > { %v2371_v10 = vsel %vm367_vm0, %v4866_v39, 0.0  ;;  %v4876_v21 = vpop.permute.xlu0 %2615 }
0x1046   : > { %v4870_v18 = vpop.eup %4007  ;;  %2372 = vadd.xlane.f32.xlu0 %v2371_v10 }
0x1047   : > { %v2555_v15 = vpop.permute.xlu1 %2554  ;;  %3678 = vmatpush3.bf16.msra.mxu0 %v2496_v47  ;;  %v2386_v2 = vsel %vm367_vm0, %v4870_v18, 0.0 }
0x1048   : > { %v4874_v1 = vpop.eup %4009  ;;  %2387 = vadd.xlane.f32.xlu1 %v2386_v2  ;;  %3683 = vmatprep.subr.bf16.mxu1 %v2555_v15 }
0x1049   : > { %3691 = vmatprep.subr.bf16.mxu0 %v4876_v21  ;;  %v2389_v22 = vsel %vm367_vm0, %v4874_v1, 0.0 }
0x104a   : > { %v4881_v13 = vpop.eup %4011  ;;  %2390 = vadd.xlane.f32.xlu0 %v2389_v22 }
0x104b   : > { %v2380_v31 = vsel %vm367_vm0, %v4881_v13, 0.0 }
0x104c   : > { %v4885_v46 = vpop.eup %4013  ;;  %2381 = vadd.xlane.f32.xlu1 %v2380_v31 }
0x104d   : > { %v2383_v3 = vsel %vm367_vm0, %v4885_v46, 0.0 }
0x104e   : > { %2384 = vadd.xlane.f32.xlu0 %v2383_v3 }
0x105d   : > { %2556 = vrot.lane.b32.xlu1 %v4681_v34, %s4094_s27 }
0x1064   : > { %2617 = vrot.lane.b32.xlu0 %v4679_v16, %s4094_s27 }
0x1076   : > { %v2355_v57 = vpop.xlane.xlu0 %2354 }
0x1078   : > { %v2352_v17 = vpop.xlane.xlu1 %2351 }
0x1079   : > { %4015 = vrcp.f32 %v2352_v17 }
0x107a   : > { %v2349_v38 = vpop.xlane.xlu0 %2348 }
0x107b   : > { %4017 = vrcp.f32 %v2349_v38 }
0x107c   : > { %4019 = vrcp.f32 %v2355_v57  ;;  %v2346_v5 = vpop.xlane.xlu1 %2345 }
0x107d   : > { %4021 = vrcp.f32 %v2346_v5 }
0x1083   : > { %v4016_v56 = vpop.eup %4015 }
0x1084   : > { %v2410_v12 = vmul.f32 %v4016_v56, %v4812_v42 }
0x1085   : > { %v4018_v49 = vpop.eup %4017 }
0x1086   : > { %v4020_v35 = vpop.eup %4019  ;;  %v2409_v34 = vmul.f32 %v4018_v49, %v4816_v27 }
0x1087   : > { %v4022_v11 = vpop.eup %4021  ;;  %v2411_v16 = vmul.f32 %v4020_v35, %v4810_v43 }
0x1088   : > { %v2408_v48 = vmul.f32 %v4022_v11, %v4820_v26 }
0x1089   : > { %v2425_v58 = vpack.c.bf16 %v2411_v16, %v2410_v12 }
0x108a   : > { %v2424_v55 = vpack.c.bf16 %v2409_v34, %v2408_v48 }
0x108c   : > { %3671 = vmatprep.mubr.msk.bf16.mxu1 %vm367_vm0, %v2424_v55 }
0x108d   : > { %3672 = vmatmul.mubr.msk.bf16.vlgmr.msra.gmra.mrb[40].mxu1 %vm367_vm0, %v2425_v58 }
0x108e   : > { %3684 = vmatpush3.bf16.msra.mxu1 %v2555_v15 }
0x10c5   : > { %v2364_v6 = vpop.xlane.xlu1 %2363 }
0x10c7   : > { %v2367_v9 = vpop.xlane.xlu0 %2366 }
0x10c8   : > { %4023 = vrcp.f32 %v2367_v9 }
0x10c9   : > { %v2376_v23 = vpop.xlane.xlu1 %2375 }
0x10cb   : > { %v2379_v61 = vpop.xlane.xlu0 %2378 }
0x10cd   : > { %v2358_v25 = vpop.xlane.xlu1 %2357 }
0x10ce   : > { %4025 = vrcp.f32 %v2358_v25 }
0x10cf   : > { %4027 = vrcp.f32 %v2364_v6  ;;  %v2361_v42 = vpop.xlane.xlu0 %2360 }
0x10d0   : > { %4029 = vrcp.f32 %v2361_v42 }
0x10d1   : > { %4031 = vrcp.f32 %v2379_v61  ;;  %v2370_v27 = vpop.xlane.xlu1 %2369 }
0x10d2   : > { %4033 = vrcp.f32 %v2370_v27  ;;  %v4024_v44 = vpop.eup %4023 }
0x10d3   : > { %4035 = vrcp.f32 %v2376_v23  ;;  %v2373_v43 = vpop.xlane.xlu0 %2372  ;;  %v2415_v62 = vmul.f32 %v4024_v44, %v4838_v29 }
0x10d4   : > { %4037 = vrcp.f32 %v2373_v43 }
0x10d5   : > { %v2388_v26 = vpop.xlane.xlu1 %2387 }
0x10d7   : > { %v2391_v28 = vpop.xlane.xlu0 %2390 }
0x10d8   : > { %v4026_v8 = vpop.eup %4025  ;;  %4039 = vrcp.f32 %v2391_v28 }
0x10d9   : > { %v4028_v60 = vpop.eup %4027  ;;  %v2382_v37 = vpop.xlane.xlu1 %2381  ;;  %v2412_v2 = vmul.f32 %v4026_v8, %v4853_v24 }
0x10da   : > { %v4030_v47 = vpop.eup %4029  ;;  %4041 = vrcp.f32 %v2382_v37  ;;  %v2414_v3 = vmul.f32 %v4028_v60, %v4833_v54 }
0x10db   : > { %v4032_v10 = vpop.eup %4031  ;;  %4043 = vrcp.f32 %v2388_v26  ;;  %v2385_v15 = vpop.xlane.xlu0 %2384  ;;  %v2413_v22 = vmul.f32 %v4030_v47, %v4858_v40 }
0x10dc   : > { %v4034_v31 = vpop.eup %4033  ;;  %4045 = vrcp.f32 %v2385_v15  ;;  %v2419_v56 = vmul.f32 %v4032_v10, %v4848_v30  ;;  %v2427_v29 = vpack.c.bf16 %v2415_v62, %v2414_v3 }
0x10dd   : > { %v4036_v57 = vpop.eup %4035  ;;  %v2557_v17 = vpop.permute.xlu1 %2556  ;;  %v2426_v38 = vpack.c.bf16 %v2413_v22, %v2412_v2  ;;  %v2416_v24 = vmul.f32 %v4034_v31, %v4862_v45 }
0x10de   : > { %v4038_v5 = vpop.eup %4037  ;;  %3685 = vmatprep.subr.bf16.mxu1 %v2557_v17  ;;  %v2418_v35 = vmul.f32 %v4036_v57, %v4843_v51 }
0x10df   : > { %3679 = vmatprep.mubr.msk.bf16.mxu0 %vm367_vm0, %v2426_v38  ;;  %3686 = vmatpush3.bf16.msra.mxu1 %v2557_v17  ;;  %v2618_v49 = vpop.permute.xlu0 %2617  ;;  %v2417_v40 = vmul.f32 %v4038_v5, %v4866_v39 }
0x10e0   : > { %3680 = vmatmul.mubr.msk.bf16.vlgmr.msra.gmra.mrb[32].mxu0 %vm367_vm0, %v2427_v29  ;;  %v2429_v11 = vpack.c.bf16 %v2419_v56, %v2418_v35 }
0x10e1   : > { %3692 = vmatpush3.bf16.msra.mxu0 %v4876_v21  ;;  %v2428_v54 = vpack.c.bf16 %v2417_v40, %v2416_v24 }
0x10e2   : > { %3693 = vmatprep.subr.bf16.mxu0 %v2618_v49  ;;  %v4040_v30 = vpop.eup %4039 }
0x10e3   : > { %3687 = vmatprep.mubr.msk.bf16.mxu1 %vm367_vm0, %v2428_v54  ;;  %v2423_v39 = vmul.f32 %v4040_v30, %v4874_v1 }
0x10e4   : > { %v4042_v12 = vpop.eup %4041  ;;  %3688 = vmatmul.mubr.msk.bf16.vlgmr.msra.gmra.mrb[44].mxu1 %vm367_vm0, %v2429_v11 }
0x10e5   : > { %v4044_v48 = vpop.eup %4043  ;;  %3694 = vmatpush3.bf16.msra.mxu0 %v2618_v49  ;;  %v2420_v51 = vmul.f32 %v4042_v12, %v4881_v13 }
0x10e6   : > { %v4046_v45 = vpop.eup %4045  ;;  %v2422_v21 = vmul.f32 %v4044_v48, %v4870_v18 }
0x10e7   : > { %v2421_v34 = vmul.f32 %v4046_v45, %v4885_v46 }
0x10e8   : > { %v2431_v55 = vpack.c.bf16 %v2423_v39, %v2422_v21 }
0x10e9   : > { %v2430_v16 = vpack.c.bf16 %v2421_v34, %v2420_v51 }
0x10eb   : > { %3695 = vmatprep.mubr.msk.bf16.mxu0 %vm367_vm0, %v2430_v16 }
0x10ec   : > { %3696 = vmatmul.mubr.msk.bf16.vlgmr.msra.gmra.mrb[36].mxu0 %vm367_vm0, %v2431_v55 }
0x1160   : > { %v3673_v58 = vpop.f32.mrb[40].mxu1 }
0x1161   : > { %v2478_v6 = vpop.f32.mrb[41].mxu1 }
0x1162   : > { %v3674_v9 = vpop.f32.mrb[42].mxu1 }
0x1163   : > { %v2481_v23 = vpop.f32.mrb[43].mxu1 }
0x11b3   : > { %v3681_v61 = vpop.f32.mrb[32].mxu0 }
0x11b4   : > { %v2539_v25 = vpop.f32.mrb[33].mxu0 }
0x11b5   : > { %v3682_v42 = vpop.f32.mrb[34].mxu0 }
0x11b6   : > { %v3844_v1 = vpack.i.bf16 %v3682_v42, %v3681_v61  ;;  %v2542_v27 = vpop.f32.mrb[35].mxu0 }
0x11b7   : > { %v3854_v13 = vpack.i.bf16 %v2542_v27, %v2539_v25  ;;  %v3689_v43 = vpop.f32.mrb[44].mxu1 }
0x11b8   : > { %3845 = vrot.lane.b32.xlu0 %v3844_v1, %s4095_s28  ;;  %v2600_v18 = vpop.f32.mrb[45].mxu1 }
0x11b9   : > { %3855 = vrot.lane.b32.xlu1 %v3854_v13, %s4095_s28  ;;  %v3690_v46 = vpop.f32.mrb[46].mxu1 }
0x11ba   : > { %v3849_v26 = vpack.i.bf16 %v3690_v46, %v3689_v43  ;;  %v2603_v44 = vpop.f32.mrb[47].mxu1 }
0x11bb   : > { %v3859_v28 = vpack.i.bf16 %v2603_v44, %v2600_v18 }
0x11bc   : > { %3850 = vrot.lane.b32.xlu0 %v3849_v26, %s4096_s29 }
0x11bd   : > { %3860 = vrot.lane.b32.xlu1 %v3859_v28, %s4096_s29 }
0x11bf   : > { %v3697_v8 = vpop.f32.mrb[36].mxu0 }
0x11c0   : > { %v2661_v60 = vpop.f32.mrb[37].mxu0  ;;  %2742 = vrot.lane.b32.xlu0 %v4616_v59, %s4097_s30 }
0x11c1   : > { %v3698_v37 = vpop.f32.mrb[38].mxu0 }
0x11c2   : > { %v3869_v47 = vpack.i.bf16 %v3698_v37, %v3697_v8  ;;  %v2664_v62 = vpop.f32.mrb[39].mxu0 }
0x11c3   : > { %v3864_v10 = vpack.i.bf16 %v2664_v62, %v2661_v60 }
0x11c5   : > { %3865 = vrot.lane.b32.xlu1 %v3864_v10, %s4098_s11 }
0x11c9   : > { %3870 = vrot.lane.b32.xlu1 %v3869_v47, %s4098_s11 }
0x122a   : > { %v3846_v15 = vpop.permute.xlu0 %3845 }
0x122b   : > { %v3856_v2 = vpop.permute.xlu1 %3855  ;;  %v3848_v59 = vunpack.i.h.bf16 %v3846_v15  ;;  %v3847_v56 = vunpack.i.l.bf16 %v3846_v15 }
0x122c   : > { %v3858_v57 = vunpack.i.h.bf16 %v3856_v2  ;;  %v3857_v17 = vunpack.i.l.bf16 %v3856_v2 }
0x122d   : > { %v2727_v34 = vsel %vm652_vm2, %v3674_v9, %v3848_v59  ;;  %v2726_v21 = vsel %vm652_vm2, %v3673_v58, %v3847_v56  ;;  %v2741_v9 = vrot.slane %v4645_v0, %v4539_v41 }
0x122e   : > { %v3851_v22 = vpop.permute.xlu0 %3850  ;;  %v2725_v49 = vsel %vm652_vm2, %v2481_v23, %v3858_v57  ;;  %v2724_v24 = vsel %vm652_vm2, %v2478_v6, %v3857_v17 }
0x122f   : > { %v3861_v31 = vpop.permute.xlu1 %3860  ;;  %v3853_v54 = vunpack.i.h.bf16 %v3851_v22  ;;  %v3852_v11 = vunpack.i.l.bf16 %v3851_v22 }
0x1230   : > { %v3863_v38 = vunpack.i.h.bf16 %v3861_v31  ;;  %v3862_v5 = vunpack.i.l.bf16 %v3861_v31 }
0x1231   : > { %v2730_v6 = vsel %vm1427_vm4, %v2726_v21, %v3852_v11  ;;  %v2731_v23 = vsel %vm1427_vm4, %v2727_v34, %v3853_v54 }
0x1232   : > { %v2743_v3 = vpop.permute.xlu0 %2742  ;;  %v2729_v30 = vsel %vm1427_vm4, %v2725_v49, %v3863_v38  ;;  %v2728_v12 = vsel %vm1427_vm4, %v2724_v24, %v3862_v5 }
0x1233   : > { %3699 = vmatprep.subr.bf16.mxu1 %v2743_v3 }
0x1234   : > { %3700 = vmatpush3.bf16.msra.mxu1 %v2743_v3 }
0x1237   : > { %v3866_v29 = vpop.permute.xlu1 %3865 }
0x1238   : > { %v3868_v40 = vunpack.i.h.bf16 %v3866_v29  ;;  %v3867_v35 = vunpack.i.l.bf16 %v3866_v29 }
0x123a   : > { %v2733_v48 = vsel %vm1432_vm5, %v2729_v30, %v3868_v40  ;;  %v2732_v45 = vsel %vm1432_vm5, %v2728_v12, %v3867_v35  ;;  %v3881_v35 = vld [vmem:[%s5053_s5 + $0x8] sm:$0xff]  }
0x123b   : > { %v2736_v39 = vpack.c.bf16 %v2733_v48, %v2732_v45  ;;  %v3871_v51 = vpop.permute.xlu1 %3870  ;;  %3705 = vmatprep.subr.bf16.mxu0 %v3881_v35 }
0x123c   : > { %v3873_v16 = vunpack.i.h.bf16 %v3871_v51  ;;  %v3872_v55 = vunpack.i.l.bf16 %v3871_v51  ;;  %3706 = vmatpush3.bf16.msra.mxu0 %v3881_v35 }
0x123d   : > { %3701 = vmatprep.mubr.msk.bf16.mxu1 %vm542_vm1, %v2736_v39 }
0x123e   : > { %v2734_v61 = vsel %vm1432_vm5, %v2730_v6, %v3872_v55  ;;  %v2735_v25 = vsel %vm1432_vm5, %v2731_v23, %v3873_v16  ;;  %v4960_v6 = vld [vmem:[%s5055_s7 + $0x8] sm:$0xff] }
0x123f   : > { %v2737_v42 = vpack.c.bf16 %v2735_v25, %v2734_v61  ;;  %v2859_v23 = vrot.slane %v4960_v6, %v1560_v50 }
0x1241   : > { %3702 = vmatmul.mubr.msk.bf16.vlgmr.msra.gmra.mrb[48].mxu1 %vm542_vm1, %v2737_v42 }
0x1314   : > { %v3703_v1 = vpop.f32.mrb[48].mxu1 }
0x1315   : > { %v2785_v58 = vpop.f32.mrb[49].mxu1  ;;  %v2794_v27 = vadd.f32 %v3703_v1, %v2741_v9 }
0x1316   : > { %v2786_v13 = vadd.f32 %v2785_v58, %v2741_v9  ;;  %v3704_v43 = vpop.f32.mrb[50].mxu1  ;;  %v2867_v58 = vrot.slane %v4960_v6, %v1568_v33 }
0x1317   : > { %v2788_v18 = vpop.f32.mrb[51].mxu1  ;;  %v2802_v44 = vadd.f32 %v2794_v27, %v4635_v36  ;;  %v2797_v28 = vadd.f32 %v3704_v43, %v2741_v9 }
0x1318   : > { %v2800_v46 = vadd.f32 %v2786_v13, %v4628_v52  ;;  %v2789_v26 = vadd.f32 %v2788_v18, %v2741_v9 }
0x1319   : > { %v2803_v0 = vadd.f32 %v2797_v28, %v4637_v14  ;;  %v2810_v47 = vsel %vm542_vm1, %v2802_v44, 0.0 }
0x131a   : > { %v2801_v8 = vadd.f32 %v2789_v26, %v4630_v53  ;;  %v2804_v60 = vsel %vm542_vm1, %v2800_v46, 0.0 }
0x131b   : > { %2805 = vadd.xlane.f32.xlu0 %v2804_v60  ;;  %v2813_v62 = vsel %vm542_vm1, %v2803_v0, 0.0 }
0x131c   : > { %v2807_v37 = vsel %vm542_vm1, %v2801_v8, 0.0 }
0x131d   : > { %2808 = vadd.xlane.f32.xlu1 %v2807_v37 }
0x131f   : > { %2811 = vadd.xlane.f32.xlu0 %v2810_v47  ;;  %v3883_v47 = vld [vmem:[%s5054_s6 + $0x18] sm:$0xff]  }
0x1323   : > { %2814 = vadd.xlane.f32.xlu0 %v2813_v62  ;;  %v2880_v62 = vrot.slane %v4960_v6, %v1580_v63 }
0x13a8   : > { %v2806_v52 = vpop.xlane.xlu0 %2805 }
0x13a9   : > { %v2816_v10 = vmul.f32 0.0625, %v2806_v52 }
0x13aa   : > { %v2809_v36 = vpop.xlane.xlu1 %2808 }
0x13ab   : > { %v2820_v15 = vsub.f32 %v2800_v46, %v2816_v10  ;;  %v2817_v2 = vmul.f32 0.0625, %v2809_v36 }
0x13ac   : > { %v2812_v53 = vpop.xlane.xlu0 %2811 }
0x13ad   : > { %v2821_v22 = vsub.f32 %v2801_v8, %v2817_v2  ;;  %v2818_v31 = vmul.f32 0.0625, %v2812_v53  ;;  %v2824_v3 = vmul.f32 %v2820_v15, %v2820_v15 }
0x13af   : > { %v2822_v57 = vsub.f32 %v2802_v44, %v2818_v31  ;;  %v2828_v17 = vsel %vm542_vm1, %v2824_v3, 0.0  ;;  %v2825_v38 = vmul.f32 %v2821_v22, %v2821_v22 }
0x13b0   : > { %2829 = vadd.xlane.f32.xlu0 %v2828_v17  ;;  %v2815_v14 = vpop.xlane.xlu0 %2814 }
0x13b1   : > { %v2819_v5 = vmul.f32 0.0625, %v2815_v14  ;;  %v2831_v59 = vsel %vm542_vm1, %v2825_v38, 0.0  ;;  %v2826_v56 = vmul.f32 %v2822_v57, %v2822_v57 }
0x13b2   : > { %2832 = vadd.xlane.f32.xlu1 %v2831_v59 }
0x13b3   : > { %v2823_v29 = vsub.f32 %v2803_v0, %v2819_v5  ;;  %v2834_v49 = vsel %vm542_vm1, %v2826_v56, 0.0  ;;  %v3882_v0 = vld [vmem:[%s5054_s6 + $0x10] sm:$0xff]  }
0x13b4   : > { %2835 = vadd.xlane.f32.xlu0 %v2834_v49  ;;  %3711 = vmatprep.subr.bf16.mxu1 %v3882_v0 }
0x13b5   : > { %v2827_v24 = vmul.f32 %v2823_v29, %v2823_v29  ;;  %3712 = vmatpush3.bf16.msra.mxu1 %v3882_v0 }
0x13b6   : > { %3713 = vmatprep.subr.bf16.mxu1 %v3883_v47 }
0x13b7   : > { %v2837_v40 = vsel %vm542_vm1, %v2827_v24, 0.0 }
0x13b8   : > { %2838 = vadd.xlane.f32.xlu1 %v2837_v40 }
0x13b9   : > { %3714 = vmatpush3.bf16.msra.mxu1 %v3883_v47 }
0x143d   : > { %v2830_v54 = vpop.xlane.xlu0 %2829 }
0x143e   : > { %v2840_v11 = vmul.f32 0.0625, %v2830_v54 }
0x143f   : > { %v2833_v30 = vpop.xlane.xlu1 %2832 }
0x1440   : > { %v2844_v12 = vadd.f32 1e-05, %v2840_v11  ;;  %v2841_v48 = vmul.f32 0.0625, %v2833_v30 }
0x1441   : > { %v2836_v45 = vpop.xlane.xlu0 %2835 }
0x1442   : > { %4047 = vrsqrt.f32 %v2844_v12  ;;  %v2845_v39 = vadd.f32 1e-05, %v2841_v48  ;;  %v2842_v51 = vmul.f32 0.0625, %v2836_v45 }
0x1444   : > { %4049 = vrsqrt.f32 %v2845_v39  ;;  %v2846_v34 = vadd.f32 1e-05, %v2842_v51 }
0x1445   : > { %v2839_v21 = vpop.xlane.xlu1 %2838 }
0x1446   : > { %4051 = vrsqrt.f32 %v2846_v34  ;;  %v2843_v16 = vmul.f32 0.0625, %v2839_v21 }
0x1448   : > { %v2847_v55 = vadd.f32 1e-05, %v2843_v16 }
0x144a   : > { %4053 = vrsqrt.f32 %v2847_v55 }
0x144c   : > { %v4048_v61 = vpop.eup %4047 }
0x144d   : > { %v2852_v25 = vmul.f32 %v4048_v61, %v2820_v15 }
0x144e   : > { %v4050_v42 = vpop.eup %4049 }
0x144f   : > { %v2853_v9 = vmul.f32 %v4050_v42, %v2821_v22  ;;  %v2860_v1 = vmul.f32 %v2859_v23, %v2852_v25 }
0x1450   : > { %v4052_v27 = vpop.eup %4051 }
0x1451   : > { %v2854_v13 = vmul.f32 %v4052_v27, %v2822_v57  ;;  %v2861_v43 = vmul.f32 %v2859_v23, %v2853_v9  ;;  %v4968_v18 = vadd.f32 %v2867_v58, %v2860_v1 }
0x1453   : > { %v4970_v46 = vadd.f32 %v2867_v58, %v2861_v43  ;;  %v2862_v44 = vmul.f32 %v2859_v23, %v2854_v13 }
0x1454   : > { %v4054_v26 = vpop.eup %4053 }
0x1455   : > { %v2855_v28 = vmul.f32 %v4054_v26, %v2823_v29  ;;  %v2872_v50 = vpack.c.bf16 %v4970_v46, %v4968_v18  ;;  %v4975_v60 = vadd.f32 %v2867_v58, %v2862_v44 }
0x1457   : > { %v2863_v8 = vmul.f32 %v2859_v23, %v2855_v28  ;;  %3707 = vmatprep.mubr.msk.bf16.mxu0 %vm542_vm1, %v2872_v50  ;;  %v2988_v28 = vrot.slane %v4960_v6, %v1687_v7 }
0x1459   : > { %v4977_v37 = vadd.f32 %v2867_v58, %v2863_v8 }
0x145b   : > { %v2873_v33 = vpack.c.bf16 %v4977_v37, %v4975_v60 }
0x145d   : > { %3708 = vmatmul.mubr.msk.bf16.vlgmr.msra.gmra.mrb[40].mxu0 %vm542_vm1, %v2873_v33 }
0x1530   : > { %v3709_v52 = vpop.f32.mrb[40].mxu0 }
0x1531   : > { %v2936_v10 = vadd.f32 %v3709_v52, %v2880_v62  ;;  %v2927_v36 = vpop.f32.mrb[41].mxu0 }
0x1532   : > { %v2928_v15 = vadd.f32 %v2927_v36, %v2880_v62  ;;  %v3710_v2 = vpop.f32.mrb[42].mxu0 }
0x1533   : > { %v2944_v53 = vmul.f32 %v2936_v10, %v2936_v10  ;;  %v2939_v22 = vadd.f32 %v3710_v2, %v2880_v62  ;;  %v2930_v31 = vpop.f32.mrb[43].mxu0 }
0x1534   : > { %v2942_v3 = vmul.f32 %v2928_v15, %v2928_v15  ;;  %v2931_v57 = vadd.f32 %v2930_v31, %v2880_v62 }
0x1535   : > { %v2948_v17 = vmul.f32 %v2944_v53, %v2936_v10  ;;  %v2945_v38 = vmul.f32 %v2939_v22, %v2939_v22 }
0x1536   : > { %v2946_v14 = vmul.f32 %v2942_v3, %v2928_v15  ;;  %v2943_v5 = vmul.f32 %v2931_v57, %v2931_v57 }
0x1537   : > { %v2952_v59 = vmul.f32 0.044715, %v2948_v17  ;;  %v2949_v56 = vmul.f32 %v2945_v38, %v2939_v22 }
0x1538   : > { %v2950_v29 = vmul.f32 0.044715, %v2946_v14  ;;  %v2947_v49 = vmul.f32 %v2943_v5, %v2931_v57 }
0x1539   : > { %v2956_v24 = vadd.f32 %v2952_v59, %v2936_v10  ;;  %v2953_v63 = vmul.f32 0.044715, %v2949_v56 }
0x153a   : > { %v2954_v40 = vadd.f32 %v2950_v29, %v2928_v15  ;;  %v2951_v35 = vmul.f32 0.044715, %v2947_v49 }
0x153b   : > { %v2960_v54 = vmul.f32 0.7978846, %v2956_v24  ;;  %v2957_v11 = vadd.f32 %v2953_v63, %v2939_v22 }
0x153c   : > { %v2958_v30 = vmul.f32 0.7978846, %v2954_v40  ;;  %v2955_v12 = vadd.f32 %v2951_v35, %v2931_v57 }
0x153d   : > { %4055 = vtanh.f32 %v2960_v54  ;;  %v2961_v48 = vmul.f32 0.7978846, %v2957_v11 }
0x153e   : > { %4057 = vtanh.f32 %v2958_v30  ;;  %v2959_v45 = vmul.f32 0.7978846, %v2955_v12 }
0x153f   : > { %4059 = vtanh.f32 %v2961_v48 }
0x1540   : > { %4061 = vtanh.f32 %v2959_v45 }
0x1547   : > { %v4056_v39 = vpop.eup %4055 }
0x1548   : > { %v4058_v51 = vpop.eup %4057  ;;  %v2968_v34 = vadd.f32 1.0, %v4056_v39 }
0x1549   : > { %v4060_v21 = vpop.eup %4059  ;;  %v2966_v16 = vadd.f32 1.0, %v4058_v51 }
0x154a   : > { %v4062_v55 = vpop.eup %4061  ;;  %v2972_v23 = vmul.f32 0.5, %v2968_v34  ;;  %v2969_v61 = vadd.f32 1.0, %v4060_v21 }
0x154b   : > { %v2970_v25 = vmul.f32 0.5, %v2966_v16  ;;  %v2967_v42 = vadd.f32 1.0, %v4062_v55 }
0x154c   : > { %v2973_v9 = vmul.f32 0.5, %v2969_v61  ;;  %v2976_v58 = vmul.f32 %v2972_v23, %v2936_v10 }
0x154d   : > { %v2971_v1 = vmul.f32 0.5, %v2967_v42  ;;  %v2974_v13 = vmul.f32 %v2970_v25, %v2928_v15  ;;  %v3115_v42 = vrot.slane %v4960_v6, %v1814_v4 }
0x154e   : > { %v2977_v27 = vmul.f32 %v2973_v9, %v2939_v22 }
0x154f   : > { %v2975_v43 = vmul.f32 %v2971_v1, %v2931_v57 }
0x1550   : > { %v2979_v26 = vpack.c.bf16 %v2977_v27, %v2976_v58  ;;  %v3123_v58 = vrot.slane %v4960_v6, %v1822_v32 }
0x1551   : > { %v2978_v44 = vpack.c.bf16 %v2975_v43, %v2974_v13 }
0x1553   : > { %3715 = vmatprep.mubr.msk.bf16.mxu1 %vm367_vm0, %v2978_v44 }
0x1554   : > { %3716 = vmatmul.mubr.msk.bf16.vlgmr.msra.gmra.mrb[52].mxu1 %vm367_vm0, %v2979_v26 }
0x1627   : > { %v3717_v50 = vpop.f32.mrb[52].mxu1 }
0x1628   : > { %v3041_v8 = vpop.f32.mrb[53].mxu1  ;;  %v3050_v33 = vadd.f32 %v3717_v50, %v2988_v28 }
0x1629   : > { %v3042_v0 = vadd.f32 %v3041_v8, %v2988_v28  ;;  %v3718_v47 = vpop.f32.mrb[54].mxu1 }
0x162a   : > { %v3044_v62 = vpop.f32.mrb[55].mxu1  ;;  %v3053_v10 = vadd.f32 %v3718_v47, %v2988_v28  ;;  %v3058_v15 = vadd.f32 %v3050_v33, %v4975_v60 }
0x162b   : > { %v3056_v52 = vadd.f32 %v3042_v0, %v4968_v18  ;;  %v3045_v36 = vadd.f32 %v3044_v62, %v2988_v28 }
0x162c   : > { %v3059_v22 = vadd.f32 %v3053_v10, %v4977_v37  ;;  %v3066_v31 = vsel %vm542_vm1, %v3058_v15, 0.0 }
0x162d   : > { %v3057_v2 = vadd.f32 %v3045_v36, %v4970_v46  ;;  %v3060_v53 = vsel %vm542_vm1, %v3056_v52, 0.0 }
0x162e   : > { %3061 = vadd.xlane.f32.xlu0 %v3060_v53  ;;  %v3069_v3 = vsel %vm542_vm1, %v3059_v22, 0.0 }
0x162f   : > { %v3063_v7 = vsel %vm542_vm1, %v3057_v2, 0.0 }
0x1630   : > { %3064 = vadd.xlane.f32.xlu1 %v3063_v7 }
0x1632   : > { %3067 = vadd.xlane.f32.xlu0 %v3066_v31 }
0x1634   : > { %3070 = vadd.xlane.f32.xlu1 %v3069_v3 }
0x16bb   : > { %v3062_v18 = vpop.xlane.xlu0 %3061 }
0x16bc   : > { %v3072_v57 = vmul.f32 0.0625, %v3062_v18 }
0x16bd   : > { %v3065_v17 = vpop.xlane.xlu1 %3064 }
0x16be   : > { %v3076_v60 = vsub.f32 %v3056_v52, %v3072_v57  ;;  %v3073_v38 = vmul.f32 0.0625, %v3065_v17 }
0x16bf   : > { %v3068_v46 = vpop.xlane.xlu0 %3067 }
0x16c0   : > { %v3077_v14 = vsub.f32 %v3057_v2, %v3073_v38  ;;  %v3074_v5 = vmul.f32 0.0625, %v3068_v46  ;;  %v3080_v59 = vmul.f32 %v3076_v60, %v3076_v60 }
0x16c1   : > { %v3071_v56 = vpop.xlane.xlu1 %3070 }
0x16c2   : > { %v3078_v37 = vsub.f32 %v3058_v15, %v3074_v5  ;;  %v3075_v29 = vmul.f32 0.0625, %v3071_v56  ;;  %v3084_v49 = vsel %vm542_vm1, %v3080_v59, 0.0  ;;  %v3081_v24 = vmul.f32 %v3077_v14, %v3077_v14 }
0x16c3   : > { %3085 = vadd.xlane.f32.xlu0 %v3084_v49  ;;  %v3886_v49 = vld [vmem:[%s5056_s8 + $0x4] ss:$8 sps:$4 sm:$0xff]  }
0x16c4   : > { %v3079_v63 = vsub.f32 %v3059_v22, %v3075_v29  ;;  %v3087_v40 = vsel %vm542_vm1, %v3081_v24, 0.0  ;;  %v3082_v35 = vmul.f32 %v3078_v37, %v3078_v37  ;;  %v3884_v24 = vld [vmem:[%s5056_s8] ss:$8 sps:$4 sm:$0xff]   ;;  %3230 = vmatprep.subr.bf16.mxu0 %v3886_v49 }
0x16c5   : > { %3088 = vadd.xlane.f32.xlu1 %v3087_v40  ;;  %3231 = vmatpush1.bf16.msra.mxu0 %v3884_v24 }
0x16c6   : > { %v3090_v54 = vsel %vm542_vm1, %v3082_v35, 0.0  ;;  %v3083_v11 = vmul.f32 %v3079_v63, %v3079_v63 }
0x16c7   : > { %3091 = vadd.xlane.f32.xlu0 %v3090_v54 }
0x16c8   : > { %v3093_v30 = vsel %vm542_vm1, %v3083_v11, 0.0 }
0x16c9   : > { %3094 = vadd.xlane.f32.xlu1 %v3093_v30 }
0x1750   : > { %v3086_v12 = vpop.xlane.xlu0 %3085 }
0x1751   : > { %v3096_v48 = vmul.f32 0.0625, %v3086_v12 }
0x1752   : > { %v3089_v45 = vpop.xlane.xlu1 %3088 }
0x1753   : > { %v3100_v39 = vadd.f32 1e-05, %v3096_v48  ;;  %v3097_v51 = vmul.f32 0.0625, %v3089_v45 }
0x1754   : > { %v3092_v34 = vpop.xlane.xlu0 %3091 }
0x1755   : > { %4063 = vrsqrt.f32 %v3100_v39  ;;  %v3101_v21 = vadd.f32 1e-05, %v3097_v51  ;;  %v3098_v16 = vmul.f32 0.0625, %v3092_v34 }
0x1756   : > { %v3095_v55 = vpop.xlane.xlu1 %3094 }
0x1757   : > { %4065 = vrsqrt.f32 %v3101_v21  ;;  %v3102_v23 = vadd.f32 1e-05, %v3098_v16  ;;  %v3099_v61 = vmul.f32 0.0625, %v3095_v55  ;;  %v3427_v55 = vld [vmem:[%s5050_s2 + $0x2] ss:$0 sm:$0xff] }
0x1759   : > { %4067 = vrsqrt.f32 %v3102_v23  ;;  %v3103_v25 = vadd.f32 1e-05, %v3099_v61 }
0x175b   : > { %4069 = vrsqrt.f32 %v3103_v25 }
0x175f   : > { %v4064_v9 = vpop.eup %4063 }
0x1760   : > { %v3108_v1 = vmul.f32 %v4064_v9, %v3076_v60 }
0x1761   : > { %v4066_v27 = vpop.eup %4065 }
0x1762   : > { %v3116_v13 = vmul.f32 %v3115_v42, %v3108_v1  ;;  %v3109_v43 = vmul.f32 %v4066_v27, %v3077_v14  ;;  %v3428_v1 = vld [vmem:[%s5050_s2 + $0x3] ss:$0 sm:$0xff] }
0x1763   : > { %v4068_v26 = vpop.eup %4067 }
0x1764   : > { %v3124_v44 = vadd.f32 %v3123_v58, %v3116_v13  ;;  %v3117_v28 = vmul.f32 %v3115_v42, %v3109_v43  ;;  %v3110_v50 = vmul.f32 %v4068_v26, %v3078_v37 }
0x1765   : > { %v4070_v8 = vpop.eup %4069 }
0x1766   : > { %v3130_v33 = vsel %vm542_vm1, %v3124_v44, 0.0  ;;  %v3125_v0 = vadd.f32 %v3123_v58, %v3117_v28  ;;  %v3118_v47 = vmul.f32 %v3115_v42, %v3110_v50  ;;  %v3111_v62 = vmul.f32 %v4070_v8, %v3079_v63 }
0x1767   : > { %3131 = vadd.xlane.f32.xlu0 %v3130_v33  ;;  %v4099_v63 = vmov 0  }
0x1768   : > { %v3133_v4 = vsel %vm542_vm1, %v3125_v0, 0.0  ;;  %v3126_v52 = vadd.f32 %v3123_v58, %v3118_v47  ;;  %v3119_v19 = vmul.f32 %v3115_v42, %v3111_v62  ;;  %3262 = vmatprep.mubr.bf16.mxu0 %v4099_v63  ;;  %v3202_v62 = vld [vmem:[%s5057_s9] sm:$0x3] }
0x1769   : > { %3134 = vadd.xlane.f32.xlu1 %v3133_v4  ;;  %v3207_v4 = vrot.slane %v3202_v62, %v4231_v20 }
0x176a   : > { %v3136_v32 = vsel %vm542_vm1, %v3126_v52, 0.0  ;;  %v3127_v6 = vadd.f32 %v3123_v58, %v3119_v19 }
0x176b   : > { %3137 = vadd.xlane.f32.xlu0 %v3136_v32 }
0x176c   : > { %v3139_v10 = vsel %vm542_vm1, %v3127_v6, 0.0 }
0x176d   : > { %3140 = vadd.xlane.f32.xlu1 %v3139_v10 }
0x17f4   : > { %v3132_v36 = vpop.xlane.xlu0 %3131 }
0x17f5   : > { %v3142_v15 = vmul.f32 0.0625, %v3132_v36 }
0x17f6   : > { %v3135_v2 = vpop.xlane.xlu1 %3134 }
0x17f7   : > { %v3146_v53 = vsub.f32 %v3124_v44, %v3142_v15  ;;  %v3143_v22 = vmul.f32 0.0625, %v3135_v2 }
0x17f8   : > { %v3138_v7 = vpop.xlane.xlu0 %3137 }
0x17f9   : > { %v3147_v31 = vsub.f32 %v3125_v0, %v3143_v22  ;;  %v3144_v3 = vmul.f32 0.0625, %v3138_v7  ;;  %v3150_v18 = vmul.f32 %v3146_v53, %v3146_v53 }
0x17fa   : > { %v3141_v57 = vpop.xlane.xlu1 %3140 }
0x17fb   : > { %v3148_v17 = vsub.f32 %v3126_v52, %v3144_v3  ;;  %v3145_v60 = vmul.f32 0.0625, %v3141_v57  ;;  %v3154_v38 = vsel %vm542_vm1, %v3150_v18, 0.0  ;;  %v3151_v46 = vmul.f32 %v3147_v31, %v3147_v31 }
0x17fc   : > { %3155 = vadd.xlane.f32.xlu0 %v3154_v38  ;;  %v3211_v52 = vrot.slane %v3202_v62, %v4539_v41 }
0x17fd   : > { %v3149_v14 = vsub.f32 %v3127_v6, %v3145_v60  ;;  %v3157_v5 = vsel %vm542_vm1, %v3151_v46, 0.0  ;;  %v3152_v59 = vmul.f32 %v3148_v17, %v3148_v17 }
0x17fe   : > { %3158 = vadd.xlane.f32.xlu1 %v3157_v5 }
0x17ff   : > { %v3160_v56 = vsel %vm542_vm1, %v3152_v59, 0.0  ;;  %v3153_v37 = vmul.f32 %v3149_v14, %v3149_v14 }
0x1800   : > { %3161 = vadd.xlane.f32.xlu0 %v3160_v56 }
0x1801   : > { %v3163_v29 = vsel %vm542_vm1, %v3153_v37, 0.0 }
0x1802   : > { %3164 = vadd.xlane.f32.xlu1 %v3163_v29 }
0x1889   : > { %v3156_v40 = vpop.xlane.xlu0 %3155 }
0x188a   : > { %v3166_v35 = vmul.f32 0.0625, %v3156_v40 }
0x188b   : > { %v3159_v54 = vpop.xlane.xlu1 %3158 }
0x188c   : > { %v3170_v11 = vadd.f32 1e-05, %v3166_v35  ;;  %v3167_v30 = vmul.f32 0.0625, %v3159_v54 }
0x188d   : > { %v3162_v12 = vpop.xlane.xlu0 %3161 }
0x188e   : > { %4071 = vrsqrt.f32 %v3170_v11  ;;  %v3171_v48 = vadd.f32 1e-05, %v3167_v30  ;;  %v3168_v45 = vmul.f32 0.0625, %v3162_v12 }
0x188f   : > { %v3165_v39 = vpop.xlane.xlu1 %3164 }
0x1890   : > { %4073 = vrsqrt.f32 %v3171_v48  ;;  %v3172_v51 = vadd.f32 1e-05, %v3168_v45  ;;  %v3169_v34 = vmul.f32 0.0625, %v3165_v39 }
0x1892   : > { %4075 = vrsqrt.f32 %v3172_v51  ;;  %v3173_v21 = vadd.f32 1e-05, %v3169_v34 }
0x1894   : > { %4077 = vrsqrt.f32 %v3173_v21 }
0x1898   : > { %v4072_v16 = vpop.eup %4071 }
0x1899   : > { %v3178_v23 = vmul.f32 %v4072_v16, %v3146_v53 }
0x189a   : > { %v4074_v61 = vpop.eup %4073 }
0x189b   : > { %v3186_v25 = vmul.f32 %v3427_v55, %v3178_v23  ;;  %v3179_v42 = vmul.f32 %v4074_v61, %v3147_v31 }
0x189c   : > { %v4076_v9 = vpop.eup %4075 }
0x189d   : > { %v3187_v58 = vmul.f32 %v3427_v55, %v3179_v42  ;;  %v3180_v13 = vmul.f32 %v4076_v9, %v3148_v17  ;;  %v3194_v26 = vadd.f32 %v3428_v1, %v3186_v25 }
0x189e   : > { %v4078_v27 = vpop.eup %4077 }
0x189f   : > { %v3181_v43 = vmul.f32 %v4078_v27, %v3149_v14  ;;  %v3195_v44 = vadd.f32 %v3428_v1, %v3187_v58  ;;  %v3188_v8 = vmul.f32 %v3427_v55, %v3180_v13 }
0x18a1   : > { %v3198_v28 = vpack.c.bf16 %v3195_v44, %v3194_v26  ;;  %v3189_v50 = vmul.f32 %v3427_v55, %v3181_v43  ;;  %v3196_v0 = vadd.f32 %v3428_v1, %v3188_v8 }
0x18a3   : > { %3431 = vmatmul.mubr.msk.bf16.vlgmr.msra.gmra.mrb[44].mxu0 %vm542_vm1, %v3198_v28  ;;  %v3197_v33 = vadd.f32 %v3428_v1, %v3189_v50 }
0x18a4   : > { %3272 = vmatprep.mubr.bf16.mxu0 %v4099_v63 }
0x18a5   : > { %v3199_v47 = vpack.c.bf16 %v3197_v33, %v3196_v0 }
0x18ab   : > { %3432 = vmatmul.mubr.msk.bf16.gmra.mrb[48].mxu0 %vm542_vm1, %v3199_v47 }
0x1976   : > { %v3264_v19 = vpop.f32.mrb[44].mxu0 }
0x1977   : > { %v3265_v32 = vadd.f32 %v3264_v19, %v3207_v4  ;;  %v3266_v6 = vpop.f32.mrb[45].mxu0 }
0x1978   : > { %v3267_v10 = vadd.f32 %v3266_v6, %v3211_v52  ;;  %v3268_v36 = vpop.f32.mrb[46].mxu0 }
0x1979   : > { %3283 = vst [vmem:[%s359_s26] sm:$0xff] %v3265_v32  ;;  %v3269_v15 = vadd.f32 %v3268_v36, %v3207_v4  ;;  %v3270_v2 = vpop.f32.mrb[47].mxu0 }
0x197a   : > { %3284 = vst [vmem:[%s359_s26 + $0x8] sm:$0xff] %v3267_v10  ;;  %v3271_v53 = vadd.f32 %v3270_v2, %v3211_v52 }
0x197b   : > { %3285 = vst [vmem:[%s359_s26 + $0x10] sm:$0xff] %v3269_v15 }
0x197c   : > { %3286 = vst [vmem:[%s359_s26 + $0x18] sm:$0xff] %v3271_v53 }
0x197e   : > { %v3274_v22 = vpop.f32.mrb[48].mxu0 }
0x197f   : > { %v3275_v20 = vadd.f32 %v3274_v22, %v3207_v4  ;;  %v3276_v7 = vpop.f32.mrb[49].mxu0 }
0x1980   : > { %v3277_v41 = vadd.f32 %v3276_v7, %v3211_v52  ;;  %v3278_v31 = vpop.f32.mrb[50].mxu0 }
0x1981   : > { %3287 = vst [vmem:[%s359_s26 + $0x20] sm:$0xff] %v3275_v20  ;;  %v3279_v3 = vadd.f32 %v3278_v31, %v3207_v4  ;;  %v3280_v18 = vpop.f32.mrb[51].mxu0 }
0x1982   : > { %3288 = vst [vmem:[%s359_s26 + $0x28] sm:$0xff] %v3277_v41  ;;  %v3281_v57 = vadd.f32 %v3280_v18, %v3211_v52 }
0x1983   : > { %3289 = vst [vmem:[%s359_s26 + $0x30] sm:$0xff] %v3279_v3 }
0x1984   : > { %3290 = vst [vmem:[%s359_s26 + $0x38] sm:$0xff] %v3281_v57 }
0x1985 PF: > { %s20_s13 = sadd.s32 1, %s4087_s13  }
0x1986   : > { %p17_p4 = scmp.ge.s32.totalorder %s20_s13, 4  }
0x1988   :  { %19 = sbr.rel (!%p17_p4) target bundleno = 1 (0x1), region = 94 }

// kernel: mbae_forward.4
= control target key start
LH: loop header
LB: loop body
LE: loop exit
PB: predicated region body
PF: predicated region fallthrough
CT: control target
= control target key end

     0   :  { %s4118_s17 = smov 0   ;;  %s4973_s0 = inlined_call_operand.vmem [shape: f32[2,4,8], index: 0, kind: input, shape index: {}]   ;;  %s4974_s1 = inlined_call_operand.vmem [shape: f32[2,2,192], index: 1, kind: input, shape index: {}]   ;;  %s4975_s2 = inlined_call_operand.vmem [shape: f32[2,3,32], index: 2, kind: input, shape index: {}]   ;;  %s4976_s3 = inlined_call_operand.vmem [shape: f32[24,32], index: 3, kind: input, shape index: {}]   ;;  %s4977_s4 = inlined_call_operand.vmem [shape: bf16[2,4,32], index: 4, kind: input, shape index: {}]   ;;  %s4978_s5 = inlined_call_operand.vmem [shape: bf16[192,32], index: 5, kind: input, shape index: {}]   ;;  %s4979_s6 = inlined_call_operand.vmem [shape: f32[4,32], index: 6, kind: input, shape index: {}]   ;;  %s4980_s7 = inlined_call_operand.vmem [shape: bf16[2,32,128], index: 7, kind: input, shape index: {}]   ;;  %s4981_s8 = inlined_call_operand.vmem [shape: bf16[2,32,64], index: 8, kind: input, shape index: {}]   ;;  %s4982_s9 = inlined_call_operand.vmem [shape: bf16[2,64,32], index: 9, kind: input, shape index: {}]   ;;  %s4983_s10 = inlined_call_operand.vmem [shape: f32[2,8,96], index: 10, kind: input, shape index: {}]   ;;  %s4984_s11 = inlined_call_operand.vmem [shape: f32[2,24,32], index: 11, kind: output, shape index: {}]  }
   0x1 LB: > { %s3324_s18 = sadd.s32 4294967295, %s4042_s17   ;;  %p3328_p0 = scmp.ge.s32.totalorder %s4042_s17, 1  ;;  %s4042_s17 = sphi %s4118_s17, %s21_s17  }
   0x2   : > { %p355_p1 = scmp.lt.s32.totalorder %s4042_s17, 3 }
   0x4   : > { %p356_p2 = pnand %p3328_p0, %p355_p1 }
   0x5   : > { %v424_v0 = vld [vmem:[%s4977_s4] sm:$0x3] (!%p356_p2)  ;;  %vm429_vm0 = vcmask (!%p356_p2), 1041408   ;;  %p403_p3 = scmp.lt.s32.totalorder (!%p356_p2), %s3324_s18, 1  ;;  %v4044_v1 = vmov (!%p356_p2), 0.0   ;;  %vm4045_vm1 = vmmov (!%p356_p2), 0  }
   0x6   : > { %359 = sbr.rel (%p356_p2) target bundleno = 6363 (0x18db), region = 64  ;;  %3543 = vmatprep.subr.bf16.mxu0 (!%p356_p2), %v4044_v1  ;;  %v431_v2 = vsel (!%p356_p2), %vm429_vm0, %v424_v0, 0  ;;  %3545 = vmatprep.mubr.msk.bf16.mxu0 (!%p356_p2), %vm4045_vm1, %v4044_v1  ;;  %v4046_v3 = vmov (!%p356_p2), 0   ;;  %vm425_vm2 = vcmask (!%p356_p2), 31744   ;;  %v3862_v4 = vld [vmem:[%s4978_s5] sm:$0xff] (!%p356_p2)   ;;  %vm634_vm3 = vcmask (!%p356_p2), 523264  }
   0x7   : > { %3544 = vmatpush3.bf16.msra.mxu0 (!%p356_p2), %v431_v2  ;;  %3549 = vmatprep.subr.bf16.mxu1 (!%p356_p2), %v4044_v1  ;;  %s4047_s30 = smov (!%p356_p2), 124   ;;  %v3863_v10 = vld [vmem:[%s4978_s5 + $0x8] sm:$0xff] (!%p356_p2)   ;;  %v3864_v11 = vld [vmem:[%s4978_s5 + $0x10] sm:$0xff] (!%p356_p2)   ;;  %v3335_v12 = vld [vmem:[%s4977_s4 + $0x2] sm:$0x3] (!%p356_p2)  ;;  %vm688_vm4 = vcmask (!%p356_p2), 1043456  }
   0x8   : > { %638 = vmatprep.subr.bf16.mxu0 (!%p356_p2), %v4046_v3  ;;  %3551 = vmatprep.mubr.msk.bf16.mxu1 (!%p356_p2), %vm4045_vm1, %v4044_v1  ;;  %v3865_v13 = vld [vmem:[%s4978_s5 + $0x18] sm:$0xff] (!%p356_p2)   ;;  %v482_v14 = vsel (!%p356_p2), %vm429_vm0, %v3335_v12, 0  ;;  %v3866_v15 = vld [vmem:[%s4978_s5 + $0x20] sm:$0xff] (!%p356_p2)   ;;  %v3867_v16 = vld [vmem:[%s4978_s5 + $0x28] sm:$0xff] (!%p356_p2)   ;;  %vm707_vm5 = vcmask (!%p356_p2), 261120   ;;  %vm693_vm6 = vcmask (!%p356_p2), 1040384  }
   0x9   : > { %3550 = vmatpush3.bf16.msra.mxu1 (!%p356_p2), %v482_v14  ;;  %v3868_v17 = vld [vmem:[%s4978_s5 + $0x30] sm:$0xff] (!%p356_p2)   ;;  %v3869_v18 = vld [vmem:[%s4978_s5 + $0x38] sm:$0xff] (!%p356_p2)   ;;  %v3870_v19 = vld [vmem:[%s4978_s5 + $0x40] sm:$0xff] (!%p356_p2)   ;;  %vm691_vm7 = vcmask (!%p356_p2), 1045504   ;;  %s4048_s25 = smov (!%p356_p2), 120   ;;  %vm883_vm8 = vcmask (!%p356_p2), 64512  }
   0xa   : > { %v3871_v20 = vld [vmem:[%s4978_s5 + $0x48] sm:$0xff] (!%p356_p2)   ;;  %v3872_v21 = vld [vmem:[%s4978_s5 + $0x50] sm:$0xff] (!%p356_p2)   ;;  %v3873_v22 = vld [vmem:[%s4978_s5 + $0x58] sm:$0xff] (!%p356_p2)   ;;  %s4051_s28 = smov (!%p356_p2), 104   ;;  %vm1166_vm10 = vcmask (!%p356_p2), 195584   ;;  %s4055_s12 = smov (!%p356_p2), 8  }
   0xb   : > { %v695_v27 = vld [vmem:[%s4976_s3] sm:$0xff] (!%p356_p2)  ;;  %v696_v42 = vld [vmem:[%s4976_s3 + $0x8] sm:$0xff] (!%p356_p2)  ;;  %v697_v44 = vld [vmem:[%s4976_s3 + $0x10] sm:$0xff] (!%p356_p2)  ;;  %s4057_s13 = smov (!%p356_p2), 16   ;;  %vm1594_vm11 = vcmask (!%p356_p2), 130048  }
   0xd   : > { %s4986_s18 = smov (!%p403_p3, %s3324_s18), 1 }
   0xe   : > { %s4133_s21 = sshll.u32 %s4986_s18, 2  ;;  %s3779_s15 = smul.u32 24, %s4986_s18 }
   0xf   : > { %s406_s26 = scalar_lea.vmem %s4973_s0, %s4133_s21  ;;  %s411_s29 = scalar_lea.vmem %s4974_s1, %s4133_s21 }
  0x10   : > { %v422_v5 = vld [vmem:[%s406_s26] sm:$0xf]  ;;  %s415_s27 = scalar_lea.vmem %s4975_s2, %s4133_s21  ;;  %s4049_s26 = smov 96  }
  0x11   : > { %v3337_v6 = vld.sshfl [vmem:[%s411_s29] sm:$0x33 pattern:$0x76325410]  ;;  %v423_v7 = vpack.c.bf16 %v422_v5, %v422_v5  ;;  %s4053_s29 = smov 64   ;;  %s4056_s21 = smov 24  }
  0x12   : > { %v533_v8 = vcombine.high %v3337_v6, %v3337_v6  ;;  %v536_v23 = vpack.c.bf16 %v3337_v6, %v3337_v6  ;;  %v678_v38 = vld [vmem:[%s415_s27] sm:$0x7]  ;;  %v4216_v6 = vld [vmem:[%s4980_s7 + $0x8] sm:$0xff]   ;;  %s4050_s27 = smov 112  }
  0x13   : > { %476 = vrot.lane.b32.xlu0 %v423_v7, %s4047_s30  ;;  %3546 = vmatmul.mubr.msk.bf16.vlgmr.msra.gmra.mrb[0].mxu0 %vm425_vm2, %v423_v7  ;;  %v686_v40 = vrot.slane %v678_v38, 2  ;;  %v4210_v5 = vld [vmem:[%s4980_s7] sm:$0xff]   ;;  %s4054_s30 = smov 32  }
  0x14   : > { %v537_v9 = vpack.c.bf16 %v533_v8, %v533_v8  ;;  %639 = vmatpush1.bf16.msra.mxu0 %v3862_v4  ;;  %3555 = vmatprep.subr.bf16.mxu1 %v4210_v5 }
  0x15   : > { %640 = vmatprep.subr.bf16.mxu0 %v4046_v3  ;;  %v694_v43 = vsel %vm693_vm6, %v686_v40, 0.0 }
  0x16   : > { %3350 = vmatprep.mubr.msk.bf16.mxu0 %vm634_vm3, %v537_v9  ;;  %v700_v51 = vadd.f32 %v697_v44, %v694_v43 }
  0x18   : > { %641 = vmatpush1.bf16.msra.mxu0 %v3863_v10  ;;  %v714_v53 = vsel %vm707_vm5, %v700_v51, 0.0 }
  0x19   : > { %642 = vmatprep.subr.bf16.mxu0 %v4046_v3 }
  0x1c   : > { %643 = vmatpush1.bf16.msra.mxu0 %v3864_v11 }
  0x1d   : > { %644 = vmatprep.subr.bf16.mxu0 %v4046_v3 }
  0x20   : > { %645 = vmatpush1.bf16.msra.mxu0 %v3865_v13 }
  0x21   : > { %646 = vmatprep.subr.bf16.mxu0 %v4046_v3 }
  0x24   : > { %647 = vmatpush1.bf16.msra.mxu0 %v3866_v15 }
  0x25   : > { %648 = vmatprep.subr.bf16.mxu0 %v4046_v3 }
  0x28   : > { %649 = vmatpush1.bf16.msra.mxu0 %v3867_v16 }
  0x29   : > { %650 = vmatprep.subr.bf16.mxu0 %v4046_v3 }
  0x2c   : > { %651 = vmatpush1.bf16.msra.mxu0 %v3868_v17 }
  0x2d   : > { %652 = vmatprep.subr.bf16.mxu0 %v4046_v3 }
  0x30   : > { %653 = vmatpush1.bf16.msra.mxu0 %v3869_v18  ;;  %v3351_v18 = vld [vmem:[%s4979_s6] ss:$0 sm:$0xff] }
  0x31   : > { %654 = vmatprep.subr.bf16.mxu0 %v4046_v3 }
  0x34   : > { %655 = vmatpush1.bf16.msra.mxu0 %v3870_v19 }
  0x35   : > { %656 = vmatprep.subr.bf16.mxu0 %v4046_v3 }
  0x38   : > { %657 = vmatpush1.bf16.msra.mxu0 %v3871_v20 }
  0x39   : > { %658 = vmatprep.subr.bf16.mxu0 %v4046_v3 }
  0x3c   : > { %659 = vmatpush1.bf16.msra.mxu0 %v3872_v21 }
  0x3d   : > { %660 = vmatprep.subr.bf16.mxu0 %v4046_v3 }
  0x40   : > { %661 = vmatpush1.bf16.msra.mxu0 %v3873_v22  ;;  %v3352_v22 = vld [vmem:[%s4979_s6 + $0x1] ss:$0 sm:$0xff] }
  0x43   : > { %671 = vmatmul.mubr.bf16.vlgmr.msra.gmra.mrb[4].mxu0 %v536_v23 }
  0x85   : > { %v477_v24 = vpop.permute.xlu0 %476 }
  0x86   : > { %3552 = vmatmul.mubr.msk.bf16.vlgmr.msra.gmra.mrb[0].mxu1 %vm425_vm2, %v477_v24 }
  0x87   : > { %3556 = vmatpush3.bf16.msra.mxu1 %v4210_v5 }
  0x88   : > { %3557 = vmatprep.subr.bf16.mxu1 %v4216_v6 }
  0x8b   : > { %3558 = vmatpush3.bf16.msra.mxu1 %v4216_v6 }
  0xe6   : > { %v467_v25 = vpop.f32.mrb[0].mxu0 }
  0xe7   : > { %v680_v26 = vrot.slane %v467_v25, 4  ;;  %v3547_v28 = vpop.f32.mrb[1].mxu0 }
  0xe8   : > { %v470_v29 = vpop.f32.mrb[2].mxu0 }
  0xe9   : > { %v689_v30 = vsel %vm688_vm4, 0.0, %v680_v26  ;;  %v3548_v31 = vpop.f32.mrb[3].mxu0 }
  0xea   : > { %v698_v32 = vadd.f32 %v695_v27, %v689_v30 }
  0xec   : > { %v708_v33 = vsel %vm707_vm5, %v698_v32, 0.0 }
  0xed   : > { %709 = vadd.xlane.f32.xlu0 %v708_v33 }
 0x116   : > { %v672_v34 = vpop.f32.mrb[4].mxu0 }
 0x117   : > { %v674_v35 = vpop.f32.mrb[5].mxu0  ;;  %v683_v39 = vrot.slane %v672_v34, 4 }
 0x118   : > { %v675_v36 = vpop.f32.mrb[6].mxu0  ;;  %v4246_v35 = vld [vmem:[%s4983_s10] sm:$0xff] }
 0x119   : > { %v676_v37 = vpop.f32.mrb[7].mxu0 }
 0x159   : > { %v518_v41 = vpop.f32.mrb[0].mxu1 }
 0x15a   : > { %v690_v45 = vsel %vm688_vm4, %v518_v41, %v683_v39  ;;  %v3553_v46 = vpop.f32.mrb[1].mxu1 }
 0x15b   : > { %v521_v47 = vpop.f32.mrb[2].mxu1  ;;  %v692_v48 = vsel %vm691_vm7, %v690_v45, %v686_v40 }
 0x15c   : > { %v3554_v49 = vpop.f32.mrb[3].mxu1  ;;  %v699_v50 = vadd.f32 %v696_v42, %v692_v48 }
 0x15e   : > { %v711_v52 = vsel %vm707_vm5, %v699_v50, 0.0 }
 0x15f   : > { %712 = vadd.xlane.f32.xlu1 %v711_v52 }
 0x163   : > { %715 = vadd.xlane.f32.xlu1 %v714_v53 }
 0x17a   : > { %v710_v54 = vpop.xlane.xlu0 %709 }
 0x17b   : > { %v718_v55 = vmul.f32 0.03125, %v710_v54 }
 0x17d   : > { %v721_v56 = vsub.f32 %v698_v32, %v718_v55  ;;  %v701_v32 = vlaneseq }
 0x17f   : > { %v724_v57 = vmul.f32 %v721_v56, %v721_v56  ;;  %v4240_v33 = vshrl.u32 %v701_v32, 7 }
 0x181   : > { %v727_v58 = vsel %vm707_vm5, %v724_v57, 0.0  ;;  %v771_v34 = vsub.s32 0, %v4240_v33 }
 0x182   : > { %728 = vadd.xlane.f32.xlu1 %v727_v58 }
 0x183   : > { %v772_v36 = vrot.slane %v4246_v35, %v771_v34 }
 0x1ec   : > { %v713_v59 = vpop.xlane.xlu1 %712 }
 0x1ed   : > { %v719_v60 = vmul.f32 0.03125, %v713_v59 }
 0x1ef   : > { %v722_v61 = vsub.f32 %v699_v50, %v719_v60 }
 0x1f0   : > { %v716_v62 = vpop.xlane.xlu1 %715 }
 0x1f1   : > { %v720_v63 = vmul.f32 0.03125, %v716_v62  ;;  %v725_v0 = vmul.f32 %v722_v61, %v722_v61 }
 0x1f3   : > { %v723_v1 = vsub.f32 %v700_v51, %v720_v63  ;;  %v730_v2 = vsel %vm707_vm5, %v725_v0, 0.0 }
 0x1f4   : > { %731 = vadd.xlane.f32.xlu1 %v730_v2 }
 0x1f5   : > { %v726_v3 = vmul.f32 %v723_v1, %v723_v1 }
 0x1f7   : > { %v733_v4 = vsel %vm707_vm5, %v726_v3, 0.0 }
 0x1f8   : > { %734 = vadd.xlane.f32.xlu1 %v733_v4 }
 0x20f   : > { %v729_v7 = vpop.xlane.xlu1 %728 }
 0x210   : > { %v736_v8 = vmul.f32 0.03125, %v729_v7 }
 0x212   : > { %v739_v9 = vadd.f32 1e-05, %v736_v8 }
 0x214   : > { %3890 = vrsqrt.f32 %v739_v9 }
 0x21e   : > { %v3891_v16 = vpop.eup %3890 }
 0x21f   : > { %v745_v17 = vmul.f32 %v3891_v16, %v721_v56 }
 0x221   : > { %v752_v21 = vmul.f32 %v3351_v18, %v745_v17 }
 0x223   : > { %v4227_v26 = vadd.f32 %v3352_v22, %v752_v21  ;;  %v4052_v21 = vmov -1e+09  }
 0x281   : > { %v732_v10 = vpop.xlane.xlu1 %731 }
 0x282   : > { %v737_v11 = vmul.f32 0.03125, %v732_v10 }
 0x284   : > { %v740_v12 = vadd.f32 1e-05, %v737_v11 }
 0x285   : > { %v735_v13 = vpop.xlane.xlu1 %734 }
 0x286   : > { %3892 = vrsqrt.f32 %v740_v12  ;;  %v738_v14 = vmul.f32 0.03125, %v735_v13 }
 0x288   : > { %v741_v15 = vadd.f32 1e-05, %v738_v14 }
 0x28a   : > { %3894 = vrsqrt.f32 %v741_v15 }
 0x290   : > { %v3893_v19 = vpop.eup %3892 }
 0x291   : > { %v746_v20 = vmul.f32 %v3893_v19, %v722_v61  ;;  %v702_v19 = vand.u32 127, %v701_v32 }
 0x293   : > { %v753_v23 = vmul.f32 %v3351_v18, %v746_v20  ;;  %vm703_vm9 = vcmp.lt.s32.totalorder %v702_v19, 17 }
 0x294   : > { %v3895_v24 = vpop.eup %3894 }
 0x295   : > { %v747_v25 = vmul.f32 %v3895_v24, %v723_v1  ;;  %v4229_v27 = vadd.f32 %v3352_v22, %v753_v23 }
 0x297   : > { %v767_v28 = vpack.c.bf16 %v4229_v27, %v4227_v26  ;;  %v754_v29 = vmul.f32 %v3351_v18, %v747_v25 }
 0x299   : > { %3559 = vmatprep.mubr.msk.bf16.mxu1 %vm707_vm5, %v767_v28  ;;  %v4234_v30 = vadd.f32 %v3352_v22, %v754_v29  ;;  %v4322_v22 = vsel %vm703_vm9, 0.0, %v4052_v21 }
 0x29b   : > { %v768_v31 = vpack.c.bf16 %v4234_v30, %v4234_v30 }
 0x29d   : > { %3560 = vmatmul.mubr.msk.bf16.vlgmr.msra.gmra.mrb[4].mxu1 %vm707_vm5, %v768_v31 }
 0x370   : > { %v3561_v37 = vpop.f32.mrb[4].mxu1 }
 0x371   : > { %v834_v38 = vadd.f32 %v3561_v37, %v772_v36  ;;  %v825_v39 = vpop.f32.mrb[5].mxu1 }
 0x372   : > { %v3562_v40 = vpop.f32.mrb[6].mxu1  ;;  %v826_v42 = vadd.f32 %v825_v39, %v772_v36 }
 0x373   : > { %846 = vrot.lane.b32.xlu0 %v834_v38, %s4048_s25  ;;  %v828_v41 = vpop.f32.mrb[7].mxu1  ;;  %v4252_v44 = vpack.c.bf16 %v834_v38, %v834_v38 }
 0x374   : > { %v829_v43 = vadd.f32 %v828_v41, %v772_v36 }
 0x376   : > { %v3802_v45 = vpack.i.bf16 %v829_v43, %v826_v42  ;;  %v4254_v46 = vpack.c.bf16 %v829_v43, %v826_v42 }
 0x377   : > { %881 = vrot.lane.b32.xlu0 %v4252_v44, %s4049_s26 }
 0x378   : > { %3803 = vrot.lane.b32.xlu1 %v3802_v45, %s4048_s25  ;;  %3567 = vmatprep.mubr.msk.bf16.mxu1 %vm883_vm8, %v4254_v46 }
 0x37c   : > { %3808 = vrot.lane.b32.xlu1 %v3802_v45, %s4050_s27 }
 0x380   : > { %3813 = vrot.lane.b32.xlu1 %v3802_v45, %s4051_s28 }
 0x384   : > { %855 = vrot.lane.b32.xlu1 %v834_v38, %s4050_s27 }
 0x388   : > { %864 = vrot.lane.b32.xlu1 %v834_v38, %s4051_s28 }
 0x38c   : > { %879 = vrot.lane.b32.xlu1 %v4254_v46, %s4049_s26 }
 0x3e5   : > { %v847_v47 = vpop.permute.xlu0 %846 }
 0x3e6   : > { %v4267_v48 = vpack.c.bf16 %v847_v47, %v847_v47 }
 0x3e8   : > { %948 = vrot.lane.b32.xlu0 %v4267_v48, %s4049_s26 }
 0x3e9   : > { %v882_v3 = vpop.permute.xlu0 %881 }
 0x3ea   : > { %v3804_v49 = vpop.permute.xlu1 %3803  ;;  %v894_v4 = vsel %vm883_vm8, %v882_v3, 0 }
 0x3eb   : > { %v3806_v50 = vunpack.i.h.bf16 %v3804_v49  ;;  %v3805_v51 = vunpack.i.l.bf16 %v3804_v49 }
 0x3ed   : > { %v4271_v52 = vpack.c.bf16 %v3806_v50, %v3805_v51 }
 0x3ee   : > { %v3809_v53 = vpop.permute.xlu1 %3808 }
 0x3ef   : > { %v3811_v54 = vunpack.i.h.bf16 %v3809_v53  ;;  %v3810_v55 = vunpack.i.l.bf16 %v3809_v53  ;;  %946 = vrot.lane.b32.xlu1 %v4271_v52, %s4049_s26 }
 0x3f1   : > { %v4275_v56 = vpack.c.bf16 %v3811_v54, %v3810_v55 }
 0x3f2   : > { %v3814_v57 = vpop.permute.xlu1 %3813 }
 0x3f3   : > { %v3816_v58 = vunpack.i.h.bf16 %v3814_v57  ;;  %v3815_v59 = vunpack.i.l.bf16 %v3814_v57  ;;  %1012 = vrot.lane.b32.xlu1 %v4275_v56, %s4049_s26 }
 0x3f5   : > { %v4279_v60 = vpack.c.bf16 %v3816_v58, %v3815_v59 }
 0x3f6   : > { %v856_v61 = vpop.permute.xlu1 %855 }
 0x3f7   : > { %v4281_v62 = vpack.c.bf16 %v856_v61, %v856_v61  ;;  %1078 = vrot.lane.b32.xlu0 %v4279_v60, %s4049_s26  ;;  %3591 = vmatprep.mubr.msk.bf16.mxu0 %vm883_vm8, %v4279_v60 }
 0x3f9   : > { %1014 = vrot.lane.b32.xlu1 %v4281_v62, %s4049_s26 }
 0x3fa   : > { %v865_v63 = vpop.permute.xlu1 %864 }
 0x3fb   : > { %v4289_v0 = vpack.c.bf16 %v865_v63, %v865_v63 }
 0x3fd   : > { %1080 = vrot.lane.b32.xlu0 %v4289_v0, %s4049_s26 }
 0x3fe   : > { %v880_v1 = vpop.permute.xlu1 %879 }
 0x3ff   : > { %3755 = vmatprep.subr.msk.bf16.mxu1 %vm883_vm8, %v880_v1  ;;  %v891_v2 = vsel %vm883_vm8, %v880_v1, 0 }
 0x400   : > { %3564 = vmatpush3.bf16.xpose.msra.mxu1 %v891_v2 }
 0x401   : > { %3756 = vmatprep.subr.msk.bf16.mxu1 %vm883_vm8, %v882_v3 }
 0x408   : > { %3566 = vmatpush3.bf16.xpose.msra.mxu1 %v894_v4 }
 0x40f   : > { %3568 = vmatmul.mubr.msk.bf16.vlgmr.msra.gmra.mrb[8].mxu1 %vm883_vm8, %v4252_v44 }
 0x410   : > { %3575 = vmatprep.mubr.msk.bf16.mxu1 %vm883_vm8, %v4271_v52 }
 0x45a   : > { %v949_v9 = vpop.permute.xlu0 %948 }
 0x45b   : > { %v960_v12 = vsel %vm883_vm8, %v949_v9, 0 }
 0x461   : > { %v947_v7 = vpop.permute.xlu1 %946 }
 0x462   : > { %3757 = vmatprep.subr.msk.bf16.mxu1 %vm883_vm8, %v947_v7  ;;  %v957_v8 = vsel %vm883_vm8, %v947_v7, 0 }
 0x463   : > { %3572 = vmatpush3.bf16.xpose.msra.mxu1 %v957_v8 }
 0x464   : > { %3758 = vmatprep.subr.msk.bf16.mxu1 %vm883_vm8, %v949_v9 }
 0x465   : > { %v1013_v13 = vpop.permute.xlu1 %1012 }
 0x466   : > { %v1023_v15 = vsel %vm883_vm8, %v1013_v13, 0 }
 0x469   : > { %v1079_v10 = vpop.permute.xlu0 %1078 }
 0x46a   : > { %3761 = vmatprep.subr.msk.bf16.mxu0 %vm883_vm8, %v1079_v10  ;;  %v1089_v11 = vsel %vm883_vm8, %v1079_v10, 0 }
 0x46b   : > { %3588 = vmatpush3.bf16.xpose.msra.mxu0 %v1089_v11  ;;  %3574 = vmatpush3.bf16.xpose.msra.mxu1 %v960_v12  ;;  %v1015_v16 = vpop.permute.xlu1 %1014 }
 0x46c   : > { %3759 = vmatprep.subr.msk.bf16.mxu1 %vm883_vm8, %v1013_v13  ;;  %v1026_v18 = vsel %vm883_vm8, %v1015_v16, 0 }
 0x46f   : > { %v1081_v14 = vpop.permute.xlu0 %1080 }
 0x470   : > { %3762 = vmatprep.subr.msk.bf16.mxu0 %vm883_vm8, %v1081_v14  ;;  %v1092_v17 = vsel %vm883_vm8, %v1081_v14, 0 }
 0x472   : > { %3576 = vmatmul.mubr.msk.bf16.vlgmr.msra.gmra.mrb[12].mxu1 %vm883_vm8, %v4267_v48 }
 0x473   : > { %3580 = vmatpush3.bf16.xpose.msra.mxu1 %v1023_v15  ;;  %3583 = vmatprep.mubr.msk.bf16.mxu1 %vm883_vm8, %v4275_v56 }
 0x474   : > { %3590 = vmatpush3.bf16.xpose.msra.mxu0 %v1092_v17  ;;  %3760 = vmatprep.subr.msk.bf16.mxu1 %vm883_vm8, %v1015_v16 }
 0x47b   : > { %3592 = vmatmul.mubr.msk.bf16.vlgmr.msra.gmra.mrb[8].mxu0 %vm883_vm8, %v4289_v0  ;;  %3582 = vmatpush3.bf16.xpose.msra.mxu1 %v1026_v18 }
 0x482   : > { %3584 = vmatmul.mubr.msk.bf16.vlgmr.msra.gmra.mrb[16].mxu1 %vm883_vm8, %v4281_v62 }
 0x4e2   : > { %v3569_v20 = vpop.f32.mrb[8].mxu1 }
 0x4e3   : > { %v930_v23 = vpop.f32.mrb[9].mxu1  ;;  %v1144_v29 = vmul.f32 0.35355338, %v3569_v20 }
 0x4e4   : > { %v1142_v24 = vmul.f32 0.35355338, %v930_v23  ;;  %v3570_v25 = vpop.f32.mrb[10].mxu1 }
 0x4e5   : > { %v933_v28 = vpop.f32.mrb[11].mxu1  ;;  %v4335_v39 = vadd.f32 %v1144_v29, %v4322_v22 }
 0x4e6   : > { %v1143_v31 = vmul.f32 0.35355338, %v933_v28  ;;  %v4325_v36 = vadd.f32 %v1142_v24, %v4322_v22 }
 0x4e7   : > { %v1173_v40 = vsel %vm1166_vm10, %v4335_v39, -inf }
 0x4e8   : > { %v1167_v37 = vsel %vm1166_vm10, %v4325_v36, -inf  ;;  %v4330_v32 = vadd.f32 %v1143_v31, %v4322_v22 }
 0x4e9   : > { %1168 = vmax.xlane.f32.xlu1 %v1167_v37 }
 0x4ea   : > { %v1170_v38 = vsel %vm1166_vm10, %v4330_v32, -inf }
 0x4eb   : > { %1171 = vmax.xlane.f32.xlu0 %v1170_v38 }
 0x4ef   : > { %1174 = vmax.xlane.f32.xlu0 %v1173_v40 }
 0x545   : > { %v3577_v41 = vpop.f32.mrb[12].mxu1 }
 0x546   : > { %v1147_v42 = vmul.f32 0.35355338, %v3577_v41  ;;  %v996_v43 = vpop.f32.mrb[13].mxu1 }
 0x547   : > { %v1145_v45 = vmul.f32 0.35355338, %v996_v43  ;;  %v3578_v47 = vpop.f32.mrb[14].mxu1 }
 0x548   : > { %v999_v49 = vpop.f32.mrb[15].mxu1  ;;  %v4340_v50 = vadd.f32 %v1147_v42, %v4322_v22 }
 0x549   : > { %v1146_v51 = vmul.f32 0.35355338, %v999_v49  ;;  %v4345_v54 = vadd.f32 %v1145_v45, %v4322_v22 }
 0x54a   : > { %v1182_v53 = vsel %vm1166_vm10, %v4340_v50, -inf }
 0x54b   : > { %1183 = vmax.xlane.f32.xlu1 %v1182_v53  ;;  %v4348_v55 = vadd.f32 %v1146_v51, %v4322_v22  ;;  %v1176_v59 = vsel %vm1166_vm10, %v4345_v54, -inf }
 0x54d   : > { %v1179_v57 = vsel %vm1166_vm10, %v4348_v55, -inf }
 0x54e   : > { %v3593_v58 = vpop.f32.mrb[8].mxu0  ;;  %1180 = vmax.xlane.f32.xlu0 %v1179_v57 }
 0x54f   : > { %v1128_v61 = vpop.f32.mrb[9].mxu0  ;;  %1177 = vmax.xlane.f32.xlu1 %v1176_v59  ;;  %v1153_v63 = vmul.f32 0.35355338, %v3593_v58 }
 0x550   : > { %v1151_v1 = vmul.f32 0.35355338, %v1128_v61  ;;  %v3594_v2 = vpop.f32.mrb[10].mxu0 }
 0x551   : > { %v1131_v3 = vpop.f32.mrb[11].mxu0  ;;  %v4360_v8 = vadd.f32 %v1153_v63, %v4322_v22 }
 0x552   : > { %v4355_v4 = vadd.f32 %v1151_v1, %v4322_v22  ;;  %v1152_v18 = vmul.f32 0.35355338, %v1131_v3 }
 0x553   : > { %v1200_v15 = vsel %vm1166_vm10, %v4360_v8, -inf }
 0x554   : > { %v1194_v7 = vsel %vm1166_vm10, %v4355_v4, -inf  ;;  %v4380_v25 = vadd.f32 %v1152_v18, %v4322_v22 }
 0x555   : > { %1195 = vmax.xlane.f32.xlu1 %v1194_v7  ;;  %v3585_v9 = vpop.f32.mrb[16].mxu1 }
 0x556   : > { %v1150_v10 = vmul.f32 0.35355338, %v3585_v9  ;;  %v1062_v11 = vpop.f32.mrb[17].mxu1  ;;  %v1197_v28 = vsel %vm1166_vm10, %v4380_v25, -inf }
 0x557   : > { %v1148_v12 = vmul.f32 0.35355338, %v1062_v11  ;;  %v3586_v13 = vpop.f32.mrb[18].mxu1 }
 0x558   : > { %v1065_v14 = vpop.f32.mrb[19].mxu1  ;;  %v4365_v16 = vadd.f32 %v1150_v10, %v4322_v22 }
 0x559   : > { %v1149_v17 = vmul.f32 0.35355338, %v1065_v14  ;;  %1201 = vmax.xlane.f32.xlu1 %v1200_v15  ;;  %v4370_v20 = vadd.f32 %v1148_v12, %v4322_v22 }
 0x55a   : > { %v1191_v19 = vsel %vm1166_vm10, %v4365_v16, -inf }
 0x55b   : > { %1192 = vmax.xlane.f32.xlu0 %v1191_v19  ;;  %v4373_v21 = vadd.f32 %v1149_v17, %v4322_v22  ;;  %v1185_v24 = vsel %vm1166_vm10, %v4370_v20, -inf }
 0x55d   : > { %v1188_v23 = vsel %vm1166_vm10, %v4373_v21, -inf }
 0x55e   : > { %1189 = vmax.xlane.f32.xlu1 %v1188_v23 }
 0x55f   : > { %1186 = vmax.xlane.f32.xlu0 %v1185_v24 }
 0x563   : > { %1198 = vmax.xlane.f32.xlu0 %v1197_v28 }
 0x56f   : > { %1309 = vrot.lane.b32.xlu1 %v4252_v44, %s4053_s29 }
 0x573   : > { %1369 = vrot.lane.b32.xlu1 %v4271_v52, %s4053_s29 }
 0x576   : > { %v1169_v52 = vpop.xlane.xlu1 %1168 }
 0x577   : > { %1431 = vrot.lane.b32.xlu1 %v4275_v56, %s4053_s29  ;;  %v1203_v56 = vsub.f32 %v4325_v36, %v1169_v52 }
 0x578   : > { %v1172_v29 = vpop.xlane.xlu0 %1171 }
 0x579   : > { %1307 = vrot.lane.b32.xlu0 %v4254_v46, %s4053_s29  ;;  %v1204_v31 = vsub.f32 %v4330_v32, %v1172_v29  ;;  %v1215_v41 = vmul.f32 1.442695, %v1203_v56 }
 0x57b   : > { %v1217_v44 = vmul.f32 1.442695, %v1204_v31 }
 0x57c   : > { %v1175_v37 = vpop.xlane.xlu0 %1174 }
 0x57d   : > { %1371 = vrot.lane.b32.xlu0 %v4267_v48, %s4053_s29  ;;  %v1205_v38 = vsub.f32 %v4335_v39, %v1175_v37  ;;  %3896 = vpow2.f32 %v1217_v44 }
 0x57f   : > { %v1219_v40 = vmul.f32 1.442695, %v1205_v38 }
 0x581   : > { %1493 = vrot.lane.b32.xlu0 %v4279_v60, %s4053_s29  ;;  %3898 = vpow2.f32 %v1219_v40 }
 0x582   : > { %3900 = vpow2.f32 %v1215_v41 }
 0x587   : > { %v4399_v46 = vpop.eup %3896 }
 0x588   : > { %v1242_v48 = vsel %vm1166_vm10, %v4399_v46, 0.0 }
 0x58b   : > { %v4403_v60 = vpop.eup %3898 }
 0x58c   : > { %v1245_v32 = vsel %vm1166_vm10, %v4403_v60, 0.0  ;;  %v4407_v39 = vpop.eup %3900 }
 0x58d   : > { %v1239_v36 = vsel %vm1166_vm10, %v4407_v39, 0.0 }
 0x59b   : > { %1243 = vadd.xlane.f32.xlu1 %v1242_v48 }
 0x5a0   : > { %1246 = vadd.xlane.f32.xlu0 %v1245_v32 }
 0x5a4   : > { %1240 = vadd.xlane.f32.xlu0 %v1239_v36 }
 0x5d8   : > { %v1184_v42 = vpop.xlane.xlu1 %1183 }
 0x5d9   : > { %v1208_v43 = vsub.f32 %v4340_v50, %v1184_v42 }
 0x5db   : > { %v1225_v45 = vmul.f32 1.442695, %v1208_v43  ;;  %v1181_v47 = vpop.xlane.xlu0 %1180 }
 0x5dc   : > { %v1207_v49 = vsub.f32 %v4348_v55, %v1181_v47  ;;  %v1178_v51 = vpop.xlane.xlu1 %1177 }
 0x5dd   : > { %3902 = vpow2.f32 %v1225_v45  ;;  %v1206_v58 = vsub.f32 %v4345_v54, %v1178_v51 }
 0x5de   : > { %v1223_v53 = vmul.f32 1.442695, %v1207_v49 }
 0x5df   : > { %v1221_v2 = vmul.f32 1.442695, %v1206_v58 }
 0x5e0   : > { %3904 = vpow2.f32 %v1223_v53 }
 0x5e2   : > { %v1196_v57 = vpop.xlane.xlu1 %1195 }
 0x5e3   : > { %v1212_v3 = vsub.f32 %v4355_v4, %v1196_v57 }
 0x5e6   : > { %v1202_v59 = vpop.xlane.xlu1 %1201 }
 0x5e7   : > { %v4414_v61 = vpop.eup %3902  ;;  %v1214_v63 = vsub.f32 %v4360_v8, %v1202_v59  ;;  %v1233_v8 = vmul.f32 1.442695, %v1212_v3 }
 0x5e8   : > { %v1193_v1 = vpop.xlane.xlu0 %1192  ;;  %v1254_v50 = vsel %vm1166_vm10, %v4414_v61, 0.0 }
 0x5e9   : > { %v1237_v55 = vmul.f32 1.442695, %v1214_v63  ;;  %1255 = vadd.xlane.f32.xlu1 %v1254_v50  ;;  %v1211_v12 = vsub.f32 %v4365_v16, %v1193_v1 }
 0x5ea   : > { %v4420_v7 = vpop.eup %3904 }
 0x5eb   : > { %3906 = vpow2.f32 %v1237_v55  ;;  %v1190_v9 = vpop.xlane.xlu1 %1189  ;;  %v1251_v54 = vsel %vm1166_vm10, %v4420_v7, 0.0  ;;  %v1231_v15 = vmul.f32 1.442695, %v1211_v12 }
 0x5ec   : > { %v1210_v10 = vsub.f32 %v4373_v21, %v1190_v9  ;;  %v1187_v11 = vpop.xlane.xlu0 %1186  ;;  %1252 = vadd.xlane.f32.xlu0 %v1251_v54  ;;  %3908 = vpow2.f32 %v1221_v2 }
 0x5ed   : > { %3910 = vpow2.f32 %v1233_v8  ;;  %v1209_v17 = vsub.f32 %v4370_v20, %v1187_v11 }
 0x5ee   : > { %v1229_v13 = vmul.f32 1.442695, %v1210_v10 }
 0x5ef   : > { %v1310_v19 = vpop.permute.xlu1 %1309  ;;  %v1227_v28 = vmul.f32 1.442695, %v1209_v17 }
 0x5f0   : > { %v1199_v14 = vpop.xlane.xlu0 %1198  ;;  %3912 = vpow2.f32 %v1229_v13 }
 0x5f1   : > { %v1213_v4 = vsub.f32 %v4380_v25, %v1199_v14  ;;  %v1319_v25 = vsel %vm688_vm4, %v1310_v19, 0 }
 0x5f3   : > { %v1235_v18 = vmul.f32 1.442695, %v1213_v4  ;;  %v1370_v29 = vpop.permute.xlu1 %1369 }
 0x5f4   : > { %v1308_v23 = vpop.permute.xlu0 %1307 }
 0x5f5   : > { %v4428_v24 = vpop.eup %3906  ;;  %3914 = vpow2.f32 %v1235_v18  ;;  %3595 = vmatprep.subr.bf16.mxu1 %v1308_v23 }
 0x5f6   : > { %v1272_v21 = vsel %vm1166_vm10, %v4428_v24, 0.0  ;;  %3596 = vmatpush3.bf16.msra.mxu1 %v1308_v23  ;;  %v4432_v16 = vpop.eup %3908  ;;  %3916 = vpow2.f32 %v1231_v15 }
 0x5f7   : > { %1273 = vadd.xlane.f32.xlu1 %v1272_v21  ;;  %3763 = vmatprep.subr.msk.bf16.mxu1 %vm688_vm4, %v1310_v19  ;;  %v1248_v31 = vsel %vm1166_vm10, %v4432_v16, 0.0  ;;  %v4438_v37 = vpop.eup %3910  ;;  %3918 = vpow2.f32 %v1227_v28  ;;  %v1432_v43 = vpop.permute.xlu1 %1431 }
 0x5f8   : > { %v1372_v20 = vpop.permute.xlu0 %1371  ;;  %v1266_v52 = vsel %vm1166_vm10, %v4438_v37, 0.0 }
 0x5fa   : > { %3598 = vmatpush3.bf16.msra.mxu1 %v1319_v25  ;;  %v4440_v38 = vpop.eup %3912 }
 0x5fb   : > { %1249 = vadd.xlane.f32.xlu1 %v1248_v31  ;;  %3603 = vmatprep.subr.bf16.mxu1 %v1370_v29  ;;  %v1260_v48 = vsel %vm1166_vm10, %v4440_v38, 0.0 }
 0x5fc   : > { %v1494_v44 = vpop.permute.xlu0 %1493 }
 0x5fd   : > { %3619 = vmatprep.subr.bf16.mxu0 %v1494_v44 }
 0x5fe   : > { %3620 = vmatpush3.bf16.msra.mxu0 %v1494_v44 }
 0x5ff   : > { %v4444_v56 = vpop.eup %3914  ;;  %1267 = vadd.xlane.f32.xlu1 %v1266_v52 }
 0x600   : > { %v1269_v40 = vsel %vm1166_vm10, %v4444_v56, 0.0  ;;  %v4448_v41 = vpop.eup %3916 }
 0x601   : > { %1270 = vadd.xlane.f32.xlu0 %v1269_v40  ;;  %v1263_v32 = vsel %vm1166_vm10, %v4448_v41, 0.0  ;;  %v4454_v36 = vpop.eup %3918 }
 0x602   : > { %v1257_v42 = vsel %vm1166_vm10, %v4454_v36, 0.0 }
 0x603   : > { %1261 = vadd.xlane.f32.xlu1 %v1260_v48 }
 0x605   : > { %1264 = vadd.xlane.f32.xlu0 %v1263_v32 }
 0x609   : > { %1258 = vadd.xlane.f32.xlu0 %v1257_v42 }
 0x614   : > { %1433 = vrot.lane.b32.xlu1 %v4281_v62, %s4053_s29 }
 0x618   : > { %1607 = vrot.lane.b32.xlu1 %v4210_v5, %s4054_s30 }
 0x61f   : > { %1495 = vrot.lane.b32.xlu0 %v4289_v0, %s4053_s29  ;;  %v1381_v0 = vsel %vm688_vm4, %v1372_v20, 0 }
 0x628   : > { %v1244_v45 = vpop.xlane.xlu1 %1243 }
 0x62d   : > { %v1247_v47 = vpop.xlane.xlu0 %1246 }
 0x62e   : > { %3920 = vrcp.f32 %v1247_v47 }
 0x62f   : > { %3922 = vrcp.f32 %v1244_v45 }
 0x631   : > { %v1241_v49 = vpop.xlane.xlu0 %1240 }
 0x632   : > { %3924 = vrcp.f32 %v1241_v49 }
 0x638   : > { %v3921_v51 = vpop.eup %3920 }
 0x639   : > { %v3923_v53 = vpop.eup %3922  ;;  %v1289_v58 = vmul.f32 %v3921_v51, %v4403_v60 }
 0x63a   : > { %v1288_v63 = vmul.f32 %v3923_v53, %v4399_v46 }
 0x63b   : > { %v1300_v1 = vpack.c.bf16 %v1289_v58, %v1289_v58 }
 0x63c   : > { %v3925_v57 = vpop.eup %3924 }
 0x63d   : > { %v1287_v59 = vmul.f32 %v3925_v57, %v4407_v39 }
 0x63f   : > { %v1299_v62 = vpack.c.bf16 %v1288_v63, %v1287_v59 }
 0x641   : > { %3599 = vmatprep.mubr.msk.bf16.mxu1 %vm1166_vm10, %v1299_v62 }
 0x642   : > { %3600 = vmatmul.mubr.msk.bf16.vlgmr.msra.gmra.mrb[20].mxu1 %vm1166_vm10, %v1300_v1 }
 0x643   : > { %3604 = vmatpush3.bf16.msra.mxu1 %v1370_v29 }
 0x644   : > { %3764 = vmatprep.subr.msk.bf16.mxu1 %vm688_vm4, %v1372_v20 }
 0x647   : > { %3606 = vmatpush3.bf16.msra.mxu1 %v1381_v0 }
 0x648   : > { %3611 = vmatprep.subr.bf16.mxu1 %v1432_v43 }
 0x676   : > { %v1256_v50 = vpop.xlane.xlu1 %1255 }
 0x677   : > { %3926 = vrcp.f32 %v1256_v50 }
 0x679   : > { %v1253_v2 = vpop.xlane.xlu0 %1252 }
 0x67a   : > { %3928 = vrcp.f32 %v1253_v2 }
 0x681   : > { %v3927_v55 = vpop.eup %3926 }
 0x682   : > { %v1292_v8 = vmul.f32 %v3927_v55, %v4414_v61 }
 0x684   : > { %v1274_v60 = vpop.xlane.xlu1 %1273  ;;  %v3929_v9 = vpop.eup %3928  ;;  %v1302_v18 = vpack.c.bf16 %v1292_v8, %v1292_v8 }
 0x685   : > { %v1291_v13 = vmul.f32 %v3929_v9, %v4420_v7 }
 0x688   : > { %v1250_v39 = vpop.xlane.xlu1 %1249 }
 0x689   : > { %3930 = vrcp.f32 %v1250_v39 }
 0x68a   : > { %3932 = vrcp.f32 %v1274_v60 }
 0x68c   : > { %v1268_v46 = vpop.xlane.xlu1 %1267 }
 0x68d   : > { %3934 = vrcp.f32 %v1268_v46 }
 0x68e   : > { %v1271_v3 = vpop.xlane.xlu0 %1270 }
 0x68f   : > { %3936 = vrcp.f32 %v1271_v3 }
 0x690   : > { %v1262_v54 = vpop.xlane.xlu1 %1261 }
 0x692   : > { %v1265_v10 = vpop.xlane.xlu0 %1264 }
 0x693   : > { %v3931_v11 = vpop.eup %3930  ;;  %3938 = vrcp.f32 %v1265_v10 }
 0x694   : > { %v1290_v12 = vmul.f32 %v3931_v11, %v4432_v16  ;;  %3940 = vrcp.f32 %v1262_v54  ;;  %v3933_v14 = vpop.eup %3932  ;;  %v1434_v61 = vpop.permute.xlu1 %1433 }
 0x695   : > { %v1298_v23 = vmul.f32 %v3933_v14, %v4428_v24  ;;  %v1443_v24 = vsel %vm688_vm4, %v1434_v61, 0 }
 0x696   : > { %v1259_v4 = vpop.xlane.xlu0 %1258  ;;  %v1301_v15 = vpack.c.bf16 %v1291_v13, %v1290_v12 }
 0x697   : > { %v3935_v17 = vpop.eup %3934  ;;  %3942 = vrcp.f32 %v1259_v4  ;;  %v1306_v25 = vpack.c.bf16 %v1298_v23, %v1298_v23 }
 0x698   : > { %3607 = vmatprep.mubr.msk.bf16.mxu1 %vm1166_vm10, %v1301_v15  ;;  %v1296_v21 = vmul.f32 %v3935_v17, %v4438_v37  ;;  %v1608_v48 = vpop.permute.xlu1 %1607 }
 0x699   : > { %v3937_v19 = vpop.eup %3936  ;;  %3608 = vmatmul.mubr.msk.bf16.vlgmr.msra.gmra.mrb[24].mxu1 %vm1166_vm10, %v1302_v18 }
 0x69a   : > { %3612 = vmatpush3.bf16.msra.mxu1 %v1432_v43  ;;  %v1496_v7 = vpop.permute.xlu0 %1495  ;;  %v1297_v16 = vmul.f32 %v3937_v19, %v4444_v56 }
 0x69b   : > { %3765 = vmatprep.subr.msk.bf16.mxu1 %vm688_vm4, %v1434_v61  ;;  %v1505_v28 = vsel %vm688_vm4, %v1496_v7, 0  ;;  %3766 = vmatprep.subr.msk.bf16.mxu0 %vm688_vm4, %v1496_v7 }
 0x69c   : > { %3622 = vmatpush3.bf16.msra.mxu0 %v1505_v28  ;;  %v1305_v20 = vpack.c.bf16 %v1297_v16, %v1296_v21  ;;  %v1605_v16 = vsub.s32 1, %v4240_v33 }
 0x69d   : > { %v3939_v29 = vpop.eup %3938 }
 0x69e   : > { %3614 = vmatpush3.bf16.msra.mxu1 %v1443_v24  ;;  %3623 = vmatprep.mubr.msk.bf16.mxu0 %vm1166_vm10, %v1305_v20  ;;  %v3941_v5 = vpop.eup %3940  ;;  %v1295_v37 = vmul.f32 %v3939_v29, %v4448_v41  ;;  %v1606_v28 = vrot.slane %v4246_v35, %v1605_v16 }
 0x69f   : > { %3624 = vmatmul.mubr.msk.bf16.vlgmr.msra.gmra.mrb[12].mxu0 %vm1166_vm10, %v1306_v25  ;;  %v1294_v52 = vmul.f32 %v3941_v5, %v4440_v38  ;;  %3627 = vmatprep.subr.bf16.mxu1 %v1608_v48 }
 0x6a0   : > { %v1304_v40 = vpack.c.bf16 %v1295_v37, %v1295_v37 }
 0x6a1   : > { %v3943_v31 = vpop.eup %3942 }
 0x6a2   : > { %v1293_v44 = vmul.f32 %v3943_v31, %v4454_v36 }
 0x6a4   : > { %v1303_v56 = vpack.c.bf16 %v1294_v52, %v1293_v44 }
 0x6a6   : > { %3615 = vmatprep.mubr.msk.bf16.mxu1 %vm1166_vm10, %v1303_v56 }
 0x6a7   : > { %3616 = vmatmul.mubr.msk.bf16.vlgmr.msra.gmra.mrb[28].mxu1 %vm1166_vm10, %v1304_v40 }
 0x6a8   : > { %3628 = vmatpush3.bf16.msra.mxu1 %v1608_v48 }
 0x715   : > { %v3601_v32 = vpop.f32.mrb[20].mxu1 }
 0x716   : > { %v1355_v42 = vpop.f32.mrb[21].mxu1 }
 0x717   : > { %v3602_v43 = vpop.f32.mrb[22].mxu1 }
 0x718   : > { %v1358_v45 = vpop.f32.mrb[23].mxu1 }
 0x76c   : > { %v3609_v47 = vpop.f32.mrb[24].mxu1 }
 0x76d   : > { %1562 = vrot.lane.b32.xlu1 %v3609_v47, %s4055_s12  ;;  %v1417_v41 = vpop.f32.mrb[25].mxu1 }
 0x76e   : > { %v3610_v36 = vpop.f32.mrb[26].mxu1 }
 0x76f   : > { %v1420_v38 = vpop.f32.mrb[27].mxu1 }
 0x770   : > { %v3817_v49 = vpack.i.bf16 %v1420_v38, %v1417_v41 }
 0x772   : > { %3818 = vrot.lane.b32.xlu0 %v3817_v49, %s4055_s12  ;;  %v3625_v51 = vpop.f32.mrb[12].mxu0 }
 0x773   : > { %v1541_v53 = vpop.f32.mrb[13].mxu0 }
 0x774   : > { %v3626_v57 = vpop.f32.mrb[14].mxu0 }
 0x775   : > { %v1544_v58 = vpop.f32.mrb[15].mxu0 }
 0x776   : > { %v3822_v59 = vpack.i.bf16 %v1544_v58, %v1541_v53 }
 0x778   : > { %3823 = vrot.lane.b32.xlu0 %v3822_v59, %s4056_s21  ;;  %v3876_v59 = vld [vmem:[%s4981_s8] sm:$0xff]  }
 0x779   : > { %3635 = vmatprep.subr.bf16.mxu0 %v3876_v59 }
 0x77a   : > { %v3617_v63 = vpop.f32.mrb[28].mxu1  ;;  %3636 = vmatpush3.bf16.msra.mxu0 %v3876_v59 }
 0x77b   : > { %1574 = vrot.lane.b32.xlu1 %v3617_v63, %s4057_s13  ;;  %v1479_v62 = vpop.f32.mrb[29].mxu1  ;;  %v3877_v63 = vld [vmem:[%s4981_s8 + $0x8] sm:$0xff]  }
 0x77c   : > { %v3618_v1 = vpop.f32.mrb[30].mxu1  ;;  %3637 = vmatprep.subr.bf16.mxu0 %v3877_v63 }
 0x77d   : > { %v1482_v0 = vpop.f32.mrb[31].mxu1 }
 0x77e   : > { %v3827_v50 = vpack.i.bf16 %v1482_v0, %v1479_v62  ;;  %3638 = vmatpush3.bf16.msra.mxu0 %v3877_v63 }
 0x77f   : > { %1609 = vrot.lane.b32.xlu1 %v4216_v6, %s4054_s30 }
 0x780   : > { %3828 = vrot.lane.b32.xlu0 %v3827_v50, %s4057_s13 }
 0x784   : > { %1586 = vrot.lane.b32.xlu0 %v3625_v51, %s4056_s21 }
 0x7df   : > { %v1563_v2 = vpop.permute.xlu1 %1562 }
 0x7e0   : > { %v1593_v14 = vsel %vm883_vm8, %v3601_v32, %v1563_v2 }
 0x7e4   : > { %v3819_v60 = vpop.permute.xlu0 %3818 }
 0x7e5   : > { %v3821_v3 = vunpack.i.h.bf16 %v3819_v60  ;;  %v3820_v55 = vunpack.i.l.bf16 %v3819_v60 }
 0x7e7   : > { %v1592_v8 = vsel %vm883_vm8, %v1358_v45, %v3821_v3  ;;  %v1591_v6 = vsel %vm883_vm8, %v1355_v42, %v3820_v55  ;;  %v1711_v55 = vsub.s32 2, %v4240_v33 }
 0x7ea   : > { %v3824_v46 = vpop.permute.xlu0 %3823 }
 0x7eb   : > { %v3826_v12 = vunpack.i.h.bf16 %v3824_v46  ;;  %v3825_v13 = vunpack.i.l.bf16 %v3824_v46 }
 0x7ed   : > { %v1575_v39 = vpop.permute.xlu1 %1574 }
 0x7ee   : > { %v1597_v17 = vsel %vm1594_vm11, %v1593_v14, %v1575_v39 }
 0x7f1   : > { %v1610_v9 = vpop.permute.xlu1 %1609 }
 0x7f2   : > { %v3829_v54 = vpop.permute.xlu0 %3828  ;;  %3629 = vmatprep.subr.bf16.mxu1 %v1610_v9 }
 0x7f3   : > { %v3831_v10 = vunpack.i.h.bf16 %v3829_v54  ;;  %v3830_v11 = vunpack.i.l.bf16 %v3829_v54  ;;  %3630 = vmatpush3.bf16.msra.mxu1 %v1610_v9  ;;  %v1712_v9 = vrot.slane %v4246_v35, %v1711_v55  ;;  %v1718_v54 = vsub.s32 3, %v4240_v33 }
 0x7f5   : > { %v1595_v4 = vsel %vm1594_vm11, %v1591_v6, %v3830_v11  ;;  %v1596_v15 = vsel %vm1594_vm11, %v1592_v8, %v3831_v10 }
 0x7f6   : > { %v1587_v18 = vpop.permute.xlu0 %1586  ;;  %v1598_v19 = vsel %vm1166_vm10, %v1595_v4, %v3825_v13  ;;  %v1599_v23 = vsel %vm1166_vm10, %v1596_v15, %v3826_v12  ;;  %v1719_v13 = vrot.slane %v4246_v35, %v1718_v54 }
 0x7f7   : > { %v1600_v61 = vsel %vm1166_vm10, %v1597_v17, %v1587_v18  ;;  %v1601_v7 = vpack.c.bf16 %v1599_v23, %v1598_v19 }
 0x7f8   : > { %v1602_v21 = vpack.c.bf16 %v1600_v61, %v1600_v61 }
 0x7f9   : > { %3631 = vmatprep.mubr.msk.bf16.mxu1 %vm707_vm5, %v1601_v7 }
 0x7fa   : > { %3632 = vmatmul.mubr.msk.bf16.vlgmr.msra.gmra.mrb[32].mxu1 %vm707_vm5, %v1602_v21  ;;  %v3878_v21 = vld [vmem:[%s4982_s9] sm:$0xff]  }
 0x7fb   : > { %3643 = vmatprep.subr.bf16.mxu1 %v3878_v21 }
 0x7fc   : > { %3644 = vmatpush3.bf16.msra.mxu1 %v3878_v21 }
 0x8cd   : > { %v3633_v20 = vpop.f32.mrb[32].mxu1 }
 0x8ce   : > { %v1653_v24 = vpop.f32.mrb[33].mxu1  ;;  %v1662_v31 = vadd.f32 %v3633_v20, %v1606_v28  ;;  %v3880_v20 = vld [vmem:[%s4982_s9 + $0x10] sm:$0xff]  }
 0x8cf   : > { %v1654_v25 = vadd.f32 %v1653_v24, %v1606_v28  ;;  %v3634_v29 = vpop.f32.mrb[34].mxu1  ;;  %v3881_v24 = vld [vmem:[%s4982_s9 + $0x18] sm:$0xff]  }
 0x8d0   : > { %v1656_v5 = vpop.f32.mrb[35].mxu1  ;;  %v1669_v48 = vadd.f32 %v1662_v31, %v4234_v30 }
 0x8d1   : > { %v1657_v37 = vadd.f32 %v1656_v5, %v1606_v28  ;;  %v1667_v44 = vadd.f32 %v1654_v25, %v4227_v26  ;;  %v3879_v28 = vld [vmem:[%s4982_s9 + $0x8] sm:$0xff]   ;;  %v1731_v25 = vsub.s32 4, %v4240_v33 }
 0x8d2   : > { %v1676_v32 = vsel %vm707_vm5, %v1669_v48, 0.0  ;;  %3645 = vmatprep.subr.bf16.mxu1 %v3879_v28 }
 0x8d3   : > { %v1670_v52 = vsel %vm707_vm5, %v1667_v44, 0.0  ;;  %v1668_v56 = vadd.f32 %v1657_v37, %v4229_v27  ;;  %3646 = vmatpush3.bf16.msra.mxu1 %v3879_v28  ;;  %v1732_v29 = vrot.slane %v4246_v35, %v1731_v25 }
 0x8d4   : > { %1671 = vadd.xlane.f32.xlu1 %v1670_v52  ;;  %3647 = vmatprep.subr.bf16.mxu1 %v3880_v20 }
 0x8d5   : > { %v1673_v40 = vsel %vm707_vm5, %v1668_v56, 0.0 }
 0x8d6   : > { %1674 = vadd.xlane.f32.xlu0 %v1673_v40 }
 0x8d7   : > { %3648 = vmatpush3.bf16.msra.mxu1 %v3880_v20 }
 0x8d8   : > { %3649 = vmatprep.subr.bf16.mxu1 %v3881_v24 }
 0x8da   : > { %1677 = vadd.xlane.f32.xlu0 %v1676_v32 }
 0x8db   : > { %3650 = vmatpush3.bf16.msra.mxu1 %v3881_v24 }
 0x961   : > { %v1672_v42 = vpop.xlane.xlu1 %1671 }
 0x962   : > { %v1679_v43 = vmul.f32 0.03125, %v1672_v42 }
 0x963   : > { %v1675_v45 = vpop.xlane.xlu0 %1674 }
 0x964   : > { %v1682_v47 = vsub.f32 %v1667_v44, %v1679_v43  ;;  %v1680_v41 = vmul.f32 0.03125, %v1675_v45 }
 0x966   : > { %v1683_v36 = vsub.f32 %v1668_v56, %v1680_v41  ;;  %v1685_v26 = vmul.f32 %v1682_v47, %v1682_v47 }
 0x967   : > { %v1678_v38 = vpop.xlane.xlu0 %1677 }
 0x968   : > { %v1681_v49 = vmul.f32 0.03125, %v1678_v38  ;;  %v1688_v27 = vsel %vm707_vm5, %v1685_v26, 0.0  ;;  %v1686_v51 = vmul.f32 %v1683_v36, %v1683_v36 }
 0x969   : > { %1689 = vadd.xlane.f32.xlu1 %v1688_v27 }
 0x96a   : > { %v1684_v53 = vsub.f32 %v1669_v48, %v1681_v49  ;;  %v1691_v30 = vsel %vm707_vm5, %v1686_v51, 0.0 }
 0x96b   : > { %1692 = vadd.xlane.f32.xlu0 %v1691_v30 }
 0x96c   : > { %v1687_v57 = vmul.f32 %v1684_v53, %v1684_v53 }
 0x96e   : > { %v1694_v58 = vsel %vm707_vm5, %v1687_v57, 0.0 }
 0x96f   : > { %1695 = vadd.xlane.f32.xlu1 %v1694_v58 }
 0x9f6   : > { %v1690_v62 = vpop.xlane.xlu1 %1689 }
 0x9f7   : > { %v1697_v1 = vmul.f32 0.03125, %v1690_v62 }
 0x9f8   : > { %v1693_v0 = vpop.xlane.xlu0 %1692 }
 0x9f9   : > { %v1700_v50 = vadd.f32 1e-05, %v1697_v1  ;;  %v1698_v2 = vmul.f32 0.03125, %v1693_v0 }
 0x9fb   : > { %3944 = vrsqrt.f32 %v1700_v50  ;;  %v1701_v60 = vadd.f32 1e-05, %v1698_v2 }
 0x9fc   : > { %v1696_v39 = vpop.xlane.xlu1 %1695 }
 0x9fd   : > { %3946 = vrsqrt.f32 %v1701_v60  ;;  %v1699_v46 = vmul.f32 0.03125, %v1696_v39 }
 0x9ff   : > { %v1702_v3 = vadd.f32 1e-05, %v1699_v46 }
 0xa01   : > { %3948 = vrsqrt.f32 %v1702_v3 }
 0xa05   : > { %v3945_v10 = vpop.eup %3944 }
 0xa06   : > { %v1706_v11 = vmul.f32 %v3945_v10, %v1682_v47  ;;  %v4034_v10 = vld [vmem:[%s4983_s10] sm:$0xff] }
 0xa07   : > { %v3947_v8 = vpop.eup %3946 }
 0xa08   : > { %v1707_v6 = vmul.f32 %v3947_v8, %v1683_v36  ;;  %v1713_v12 = vmul.f32 %v1712_v9, %v1706_v11 }
 0xa0a   : > { %v1714_v14 = vmul.f32 %v1712_v9, %v1707_v6  ;;  %v4536_v17 = vadd.f32 %v1719_v13, %v1713_v12 }
 0xa0b   : > { %v3949_v4 = vpop.eup %3948 }
 0xa0c   : > { %v1708_v15 = vmul.f32 %v3949_v4, %v1684_v53  ;;  %v4538_v18 = vadd.f32 %v1719_v13, %v1714_v14 }
 0xa0e   : > { %v1715_v19 = vmul.f32 %v1712_v9, %v1708_v15  ;;  %v1723_v23 = vpack.c.bf16 %v4538_v18, %v4536_v17  ;;  %v1838_v9 = vsub.s32 5, %v4240_v33 }
 0xa10   : > { %3639 = vmatprep.mubr.msk.bf16.mxu0 %vm707_vm5, %v1723_v23  ;;  %v4543_v61 = vadd.f32 %v1719_v13, %v1715_v19  ;;  %v1839_v11 = vrot.slane %v4034_v10, %v1838_v9 }
 0xa12   : > { %v1724_v7 = vpack.c.bf16 %v4543_v61, %v4543_v61 }
 0xa14   : > { %3640 = vmatmul.mubr.msk.bf16.vlgmr.msra.gmra.mrb[16].mxu0 %vm707_vm5, %v1724_v7 }
 0xae7   : > { %v3641_v5 = vpop.f32.mrb[16].mxu0 }
 0xae8   : > { %v1794_v31 = vadd.f32 %v3641_v5, %v1732_v29  ;;  %v1785_v37 = vpop.f32.mrb[17].mxu0 }
 0xae9   : > { %v1786_v44 = vadd.f32 %v1785_v37, %v1732_v29  ;;  %v3642_v52 = vpop.f32.mrb[18].mxu0 }
 0xaea   : > { %v1801_v56 = vmul.f32 %v1794_v31, %v1794_v31  ;;  %v1788_v40 = vpop.f32.mrb[19].mxu0 }
 0xaeb   : > { %v1799_v48 = vmul.f32 %v1786_v44, %v1786_v44  ;;  %v1789_v32 = vadd.f32 %v1788_v40, %v1732_v29 }
 0xaec   : > { %v1804_v42 = vmul.f32 %v1801_v56, %v1794_v31 }
 0xaed   : > { %v1802_v43 = vmul.f32 %v1799_v48, %v1786_v44  ;;  %v1800_v45 = vmul.f32 %v1789_v32, %v1789_v32 }
 0xaee   : > { %v1807_v47 = vmul.f32 0.044715, %v1804_v42 }
 0xaef   : > { %v1805_v41 = vmul.f32 0.044715, %v1802_v43  ;;  %v1803_v36 = vmul.f32 %v1800_v45, %v1789_v32  ;;  %v4584_v43 = vld [vmem:[%s4980_s7 + $0x10] sm:$0xff]   ;;  %v4590_v45 = vld [vmem:[%s4980_s7 + $0x18] sm:$0xff]  }
 0xaf0   : > { %v1810_v26 = vadd.f32 %v1807_v47, %v1794_v31  ;;  %3655 = vmatprep.subr.bf16.mxu0 %v4584_v43 }
 0xaf1   : > { %v1808_v38 = vadd.f32 %v1805_v41, %v1786_v44  ;;  %v1806_v49 = vmul.f32 0.044715, %v1803_v36  ;;  %3656 = vmatpush3.bf16.msra.mxu0 %v4584_v43 }
 0xaf2   : > { %v1813_v27 = vmul.f32 0.7978846, %v1810_v26  ;;  %3657 = vmatprep.subr.bf16.mxu0 %v4590_v45 }
 0xaf3   : > { %v1811_v35 = vmul.f32 0.7978846, %v1808_v38  ;;  %v1809_v51 = vadd.f32 %v1806_v49, %v1789_v32 }
 0xaf4   : > { %3950 = vtanh.f32 %v1813_v27 }
 0xaf5   : > { %3952 = vtanh.f32 %v1811_v35  ;;  %v1812_v53 = vmul.f32 0.7978846, %v1809_v51  ;;  %3658 = vmatpush3.bf16.msra.mxu0 %v4590_v45 }
 0xaf7   : > { %3954 = vtanh.f32 %v1812_v53  ;;  %v1962_v53 = vsub.s32 6, %v4240_v33 }
 0xafe   : > { %v3951_v30 = vpop.eup %3950 }
 0xaff   : > { %v3953_v57 = vpop.eup %3952  ;;  %v1819_v58 = vadd.f32 1.0, %v3951_v30  ;;  %v1963_v30 = vrot.slane %v4034_v10, %v1962_v53 }
 0xb00   : > { %v1817_v59 = vadd.f32 1.0, %v3953_v57  ;;  %v1969_v57 = vsub.s32 7, %v4240_v33 }
 0xb01   : > { %v3955_v63 = vpop.eup %3954  ;;  %v1822_v62 = vmul.f32 0.5, %v1819_v58 }
 0xb02   : > { %v1820_v1 = vmul.f32 0.5, %v1817_v59  ;;  %v1818_v0 = vadd.f32 1.0, %v3955_v63 }
 0xb03   : > { %v1825_v2 = vmul.f32 %v1822_v62, %v1794_v31 }
 0xb04   : > { %v1821_v50 = vmul.f32 0.5, %v1818_v0  ;;  %v1823_v60 = vmul.f32 %v1820_v1, %v1786_v44  ;;  %v1970_v0 = vrot.slane %v4034_v10, %v1969_v57  ;;  %v4616_v10 = vld [vmem:[%s4983_s10 + $0x8] sm:$0xff] }
 0xb05   : > { %v1827_v3 = vpack.c.bf16 %v1825_v2, %v1825_v2 }
 0xb06   : > { %v1824_v39 = vmul.f32 %v1821_v50, %v1789_v32 }
 0xb08   : > { %v1826_v46 = vpack.c.bf16 %v1824_v39, %v1823_v60 }
 0xb0a   : > { %3651 = vmatprep.mubr.msk.bf16.mxu1 %vm634_vm3, %v1826_v46 }
 0xb0b   : > { %3652 = vmatmul.mubr.msk.bf16.vlgmr.msra.gmra.mrb[36].mxu1 %vm634_vm3, %v1827_v3 }
 0xbde   : > { %v3653_v8 = vpop.f32.mrb[36].mxu1 }
 0xbdf   : > { %v1904_v6 = vpop.f32.mrb[37].mxu1  ;;  %v1913_v12 = vadd.f32 %v3653_v8, %v1839_v11 }
 0xbe0   : > { %v1905_v13 = vadd.f32 %v1904_v6, %v1839_v11  ;;  %v3654_v14 = vpop.f32.mrb[38].mxu1 }
 0xbe1   : > { %v1907_v4 = vpop.f32.mrb[39].mxu1  ;;  %v1920_v21 = vadd.f32 %v1913_v12, %v4543_v61  ;;  %v1986_v12 = vrot.slane %v4616_v10, %v771_v34 }
 0xbe2   : > { %v1908_v15 = vadd.f32 %v1907_v4, %v1839_v11  ;;  %v1918_v19 = vadd.f32 %v1905_v13, %v4536_v17 }
 0xbe3   : > { %v1927_v20 = vsel %vm707_vm5, %v1920_v21, 0.0 }
 0xbe4   : > { %v1921_v23 = vsel %vm707_vm5, %v1918_v19, 0.0  ;;  %v1919_v7 = vadd.f32 %v1908_v15, %v4538_v18 }
 0xbe5   : > { %1922 = vadd.xlane.f32.xlu0 %v1921_v23 }
 0xbe6   : > { %v1924_v28 = vsel %vm707_vm5, %v1919_v7, 0.0 }
 0xbe7   : > { %1925 = vadd.xlane.f32.xlu1 %v1924_v28 }
 0xbe9   : > { %1928 = vadd.xlane.f32.xlu0 %v1927_v20 }
 0xc72   : > { %v1923_v24 = vpop.xlane.xlu0 %1922 }
 0xc73   : > { %v1930_v29 = vmul.f32 0.03125, %v1923_v24 }
 0xc74   : > { %v1926_v5 = vpop.xlane.xlu1 %1925 }
 0xc75   : > { %v1933_v31 = vsub.f32 %v1918_v19, %v1930_v29  ;;  %v1931_v37 = vmul.f32 0.03125, %v1926_v5 }
 0xc76   : > { %v1929_v44 = vpop.xlane.xlu0 %1928 }
 0xc77   : > { %v1934_v17 = vsub.f32 %v1919_v7, %v1931_v37  ;;  %v1932_v52 = vmul.f32 0.03125, %v1929_v44  ;;  %v1936_v56 = vmul.f32 %v1933_v31, %v1933_v31 }
 0xc79   : > { %v1935_v40 = vsub.f32 %v1920_v21, %v1932_v52  ;;  %v1939_v18 = vsel %vm707_vm5, %v1936_v56, 0.0  ;;  %v1937_v61 = vmul.f32 %v1934_v17, %v1934_v17 }
 0xc7a   : > { %1940 = vadd.xlane.f32.xlu1 %v1939_v18 }
 0xc7b   : > { %v1942_v48 = vsel %vm707_vm5, %v1937_v61, 0.0  ;;  %v1938_v32 = vmul.f32 %v1935_v40, %v1935_v40 }
 0xc7c   : > { %1943 = vadd.xlane.f32.xlu0 %v1942_v48 }
 0xc7d   : > { %v1945_v42 = vsel %vm707_vm5, %v1938_v32, 0.0 }
 0xc7e   : > { %1946 = vadd.xlane.f32.xlu1 %v1945_v42 }
 0xd07   : > { %v1941_v47 = vpop.xlane.xlu1 %1940 }
 0xd08   : > { %v1948_v41 = vmul.f32 0.03125, %v1941_v47 }
 0xd09   : > { %v1944_v36 = vpop.xlane.xlu0 %1943 }
 0xd0a   : > { %v1951_v26 = vadd.f32 1e-05, %v1948_v41  ;;  %v1949_v38 = vmul.f32 0.03125, %v1944_v36 }
 0xd0b   : > { %v1947_v49 = vpop.xlane.xlu1 %1946 }
 0xd0c   : > { %3956 = vrsqrt.f32 %v1951_v26  ;;  %v1952_v27 = vadd.f32 1e-05, %v1949_v38  ;;  %v1950_v35 = vmul.f32 0.03125, %v1947_v49 }
 0xd0e   : > { %3958 = vrsqrt.f32 %v1952_v27  ;;  %v1953_v51 = vadd.f32 1e-05, %v1950_v35 }
 0xd10   : > { %3960 = vrsqrt.f32 %v1953_v51 }
 0xd16   : > { %v3957_v58 = vpop.eup %3956 }
 0xd17   : > { %v1957_v59 = vmul.f32 %v3957_v58, %v1933_v31 }
 0xd18   : > { %v3959_v63 = vpop.eup %3958 }
 0xd19   : > { %v1958_v62 = vmul.f32 %v3959_v63, %v1934_v17  ;;  %v1964_v1 = vmul.f32 %v1963_v30, %v1957_v59 }
 0xd1a   : > { %v3961_v50 = vpop.eup %3960 }
 0xd1b   : > { %v1959_v2 = vmul.f32 %v3961_v50, %v1935_v40  ;;  %v1965_v60 = vmul.f32 %v1963_v30, %v1958_v62  ;;  %v4601_v46 = vadd.f32 %v1970_v0, %v1964_v1 }
 0xd1d   : > { %v1966_v39 = vmul.f32 %v1963_v30, %v1959_v2  ;;  %v4603_v3 = vadd.f32 %v1970_v0, %v1965_v60 }
 0xd1f   : > { %v1981_v11 = vpack.c.bf16 %v4603_v3, %v4601_v46  ;;  %v4607_v8 = vadd.f32 %v1970_v0, %v1966_v39 }
 0xd21   : > { %3659 = vmatprep.mubr.msk.bf16.mxu0 %vm707_vm5, %v1981_v11  ;;  %v1982_v6 = vpack.c.bf16 %v4607_v8, %v4607_v8 }
 0xd23   : > { %3660 = vmatmul.mubr.msk.bf16.vlgmr.msra.gmra.mrb[20].mxu0 %vm707_vm5, %v1982_v6 }
 0xdf6   : > { %v3661_v13 = vpop.f32.mrb[20].mxu0 }
 0xdf7   : > { %v2048_v14 = vadd.f32 %v3661_v13, %v1986_v12  ;;  %v2039_v4 = vpop.f32.mrb[21].mxu0 }
 0xdf8   : > { %v3662_v15 = vpop.f32.mrb[22].mxu0  ;;  %v2040_v23 = vadd.f32 %v2039_v4, %v1986_v12 }
 0xdf9   : > { %2060 = vrot.lane.b32.xlu1 %v2048_v14, %s4048_s25  ;;  %v2042_v19 = vpop.f32.mrb[23].mxu0  ;;  %v4633_v34 = vpack.c.bf16 %v2048_v14, %v2048_v14 }
 0xdfa   : > { %v2043_v7 = vadd.f32 %v2042_v19, %v1986_v12 }
 0xdfc   : > { %v3837_v21 = vpack.i.bf16 %v2043_v7, %v2040_v23  ;;  %v4622_v28 = vpack.c.bf16 %v2043_v7, %v2040_v23 }
 0xdfe   : > { %3838 = vrot.lane.b32.xlu1 %v3837_v21, %s4050_s27  ;;  %3833 = vrot.lane.b32.xlu0 %v3837_v21, %s4048_s25 }
 0xdff   : > { %3667 = vmatprep.mubr.msk.bf16.mxu0 %vm883_vm8, %v4622_v28 }
 0xe02   : > { %2069 = vrot.lane.b32.xlu1 %v2048_v14, %s4050_s27  ;;  %3843 = vrot.lane.b32.xlu0 %v3837_v21, %s4051_s28 }
 0xe06   : > { %2078 = vrot.lane.b32.xlu0 %v2048_v14, %s4051_s28  ;;  %2093 = vrot.lane.b32.xlu1 %v4622_v28, %s4049_s26 }
 0xe0a   : > { %2095 = vrot.lane.b32.xlu1 %v4633_v34, %s4049_s26 }
 0xe6b   : > { %v2061_v20 = vpop.permute.xlu1 %2060 }
 0xe6c   : > { %v4647_v18 = vpack.c.bf16 %v2061_v20, %v2061_v20 }
 0xe70   : > { %v3839_v24 = vpop.permute.xlu1 %3838  ;;  %v3834_v29 = vpop.permute.xlu0 %3833 }
 0xe71   : > { %v3841_v5 = vunpack.i.h.bf16 %v3839_v24  ;;  %v3840_v31 = vunpack.i.l.bf16 %v3839_v24  ;;  %v3836_v37 = vunpack.i.h.bf16 %v3834_v29  ;;  %v3835_v44 = vunpack.i.l.bf16 %v3834_v29 }
 0xe73   : > { %v4637_v17 = vpack.c.bf16 %v3841_v5, %v3840_v31  ;;  %v4639_v52 = vpack.c.bf16 %v3836_v37, %v3835_v44 }
 0xe74   : > { %v2070_v56 = vpop.permute.xlu1 %2069  ;;  %v3844_v40 = vpop.permute.xlu0 %3843 }
 0xe75   : > { %2159 = vrot.lane.b32.xlu0 %v4639_v52, %s4049_s26  ;;  %3675 = vmatprep.mubr.msk.bf16.mxu1 %vm883_vm8, %v4639_v52  ;;  %v3846_v61 = vunpack.i.h.bf16 %v3844_v40  ;;  %v3845_v48 = vunpack.i.l.bf16 %v3844_v40  ;;  %v4649_v32 = vpack.c.bf16 %v2070_v56, %v2070_v56 }
 0xe76   : > { %2225 = vrot.lane.b32.xlu1 %v4637_v17, %s4049_s26 }
 0xe77   : > { %v4657_v41 = vpack.c.bf16 %v3846_v61, %v3845_v48 }
 0xe78   : > { %v2094_v42 = vpop.permute.xlu1 %2093  ;;  %v2079_v36 = vpop.permute.xlu0 %2078 }
 0xe79   : > { %v2104_v47 = vsel %vm883_vm8, %v2094_v42, 0  ;;  %2161 = vrot.lane.b32.xlu0 %v4647_v18, %s4049_s26  ;;  %3767 = vmatprep.subr.msk.bf16.mxu0 %vm883_vm8, %v2094_v42  ;;  %v4662_v38 = vpack.c.bf16 %v2079_v36, %v2079_v36 }
 0xe7a   : > { %2227 = vrot.lane.b32.xlu1 %v4649_v32, %s4049_s26  ;;  %3664 = vmatpush3.bf16.xpose.msra.mxu0 %v2104_v47 }
 0xe7c   : > { %v2096_v26 = vpop.permute.xlu1 %2095 }
 0xe7d   : > { %2291 = vrot.lane.b32.xlu0 %v4657_v41, %s4049_s26  ;;  %3768 = vmatprep.subr.msk.bf16.mxu0 %vm883_vm8, %v2096_v26  ;;  %v2107_v49 = vsel %vm883_vm8, %v2096_v26, 0 }
 0xe81   : > { %2293 = vrot.lane.b32.xlu0 %v4662_v38, %s4049_s26 }
 0xe82   : > { %3666 = vmatpush3.bf16.xpose.msra.mxu0 %v2107_v49 }
 0xe89   : > { %3668 = vmatmul.mubr.msk.bf16.vlgmr.msra.gmra.mrb[24].mxu0 %vm883_vm8, %v4633_v34 }
 0xe8a   : > { %3683 = vmatprep.mubr.msk.bf16.mxu0 %vm883_vm8, %v4637_v17 }
 0xee7   : > { %v2160_v27 = vpop.permute.xlu0 %2159 }
 0xee8   : > { %v2170_v35 = vsel %vm883_vm8, %v2160_v27, 0  ;;  %v2226_v51 = vpop.permute.xlu1 %2225  ;;  %3769 = vmatprep.subr.msk.bf16.mxu1 %vm883_vm8, %v2160_v27 }
 0xee9   : > { %v2236_v30 = vsel %vm883_vm8, %v2226_v51, 0  ;;  %3771 = vmatprep.subr.msk.bf16.mxu0 %vm883_vm8, %v2226_v51  ;;  %3672 = vmatpush3.bf16.xpose.msra.mxu1 %v2170_v35 }
 0xeea   : > { %3680 = vmatpush3.bf16.xpose.msra.mxu0 %v2236_v30 }
 0xeeb   : > { %v2162_v58 = vpop.permute.xlu0 %2161 }
 0xeec   : > { %v2228_v59 = vpop.permute.xlu1 %2227  ;;  %3770 = vmatprep.subr.msk.bf16.mxu1 %vm883_vm8, %v2162_v58  ;;  %v2173_v63 = vsel %vm883_vm8, %v2162_v58, 0 }
 0xeed   : > { %3772 = vmatprep.subr.msk.bf16.mxu0 %vm883_vm8, %v2228_v59  ;;  %v2239_v62 = vsel %vm883_vm8, %v2228_v59, 0 }
 0xeef   : > { %v2292_v1 = vpop.permute.xlu0 %2291 }
 0xef0   : > { %v2302_v0 = vsel %vm883_vm8, %v2292_v1, 0 }
 0xef1   : > { %3674 = vmatpush3.bf16.xpose.msra.mxu1 %v2173_v63 }
 0xef2   : > { %3682 = vmatpush3.bf16.xpose.msra.mxu0 %v2239_v62  ;;  %3773 = vmatprep.subr.msk.bf16.mxu1 %vm883_vm8, %v2292_v1 }
 0xef3   : > { %v2294_v50 = vpop.permute.xlu0 %2293 }
 0xef4   : > { %v2305_v2 = vsel %vm883_vm8, %v2294_v50, 0 }
 0xef8   : > { %3676 = vmatmul.mubr.msk.bf16.vlgmr.msra.gmra.mrb[40].mxu1 %vm883_vm8, %v4647_v18 }
 0xef9   : > { %3684 = vmatmul.mubr.msk.bf16.vlgmr.msra.gmra.mrb[28].mxu0 %vm883_vm8, %v4649_v32  ;;  %3688 = vmatpush3.bf16.xpose.msra.mxu1 %v2302_v0 }
 0xefa   : > { %3691 = vmatprep.mubr.msk.bf16.mxu1 %vm883_vm8, %v4657_v41  ;;  %3774 = vmatprep.subr.msk.bf16.mxu1 %vm883_vm8, %v2294_v50 }
 0xf01   : > { %3690 = vmatpush3.bf16.xpose.msra.mxu1 %v2305_v2 }
 0xf08   : > { %3692 = vmatmul.mubr.msk.bf16.vlgmr.msra.gmra.mrb[44].mxu1 %vm883_vm8, %v4662_v38 }
 0xf5c   : > { %v3669_v60 = vpop.f32.mrb[24].mxu0 }
 0xf5d   : > { %v2357_v39 = vmul.f32 0.35355338, %v3669_v60  ;;  %v2143_v11 = vpop.f32.mrb[25].mxu0 }
 0xf5e   : > { %v2355_v6 = vmul.f32 0.35355338, %v2143_v11  ;;  %v3670_v12 = vpop.f32.mrb[26].mxu0 }
 0xf5f   : > { %v2146_v13 = vpop.f32.mrb[27].mxu0  ;;  %v4692_v14 = vadd.f32 %v2357_v39, %v4322_v22 }
 0xf60   : > { %v2356_v4 = vmul.f32 0.35355338, %v2146_v13  ;;  %v4695_v15 = vadd.f32 %v2355_v6, %v4322_v22 }
 0xf61   : > { %v2385_v19 = vsel %vm1166_vm10, %v4692_v14, -inf }
 0xf62   : > { %2386 = vmax.xlane.f32.xlu0 %v2385_v19  ;;  %v2379_v23 = vsel %vm1166_vm10, %v4695_v15, -inf  ;;  %v4702_v7 = vadd.f32 %v2356_v4, %v4322_v22 }
 0xf63   : > { %2380 = vmax.xlane.f32.xlu1 %v2379_v23 }
 0xf64   : > { %v2382_v21 = vsel %vm1166_vm10, %v4702_v7, -inf }
 0xf66   : > { %2383 = vmax.xlane.f32.xlu0 %v2382_v21 }
 0xfcb   : > { %v3677_v20 = vpop.f32.mrb[40].mxu1 }
 0xfcc   : > { %v2360_v24 = vmul.f32 0.35355338, %v3677_v20  ;;  %v3685_v29 = vpop.f32.mrb[28].mxu0  ;;  %v2209_v5 = vpop.f32.mrb[41].mxu1 }
 0xfcd   : > { %v2358_v31 = vmul.f32 0.35355338, %v2209_v5  ;;  %v2275_v37 = vpop.f32.mrb[29].mxu0  ;;  %v3678_v44 = vpop.f32.mrb[42].mxu1  ;;  %v2363_v35 = vmul.f32 0.35355338, %v3685_v29 }
 0xfce   : > { %v2361_v56 = vmul.f32 0.35355338, %v2275_v37  ;;  %v3686_v40 = vpop.f32.mrb[30].mxu0  ;;  %v2212_v61 = vpop.f32.mrb[43].mxu1  ;;  %v4707_v48 = vadd.f32 %v2360_v24, %v4322_v22 }
 0xfcf   : > { %v2359_v42 = vmul.f32 0.35355338, %v2212_v61  ;;  %v2278_v47 = vpop.f32.mrb[31].mxu0  ;;  %v4710_v36 = vadd.f32 %v2358_v31, %v4322_v22  ;;  %v4730_v62 = vadd.f32 %v2363_v35, %v4322_v22 }
 0xfd0   : > { %v2362_v26 = vmul.f32 0.35355338, %v2278_v47  ;;  %v2394_v49 = vsel %vm1166_vm10, %v4707_v48, -inf  ;;  %v4715_v27 = vadd.f32 %v2361_v56, %v4322_v22 }
 0xfd1   : > { %2395 = vmax.xlane.f32.xlu1 %v2394_v49  ;;  %v4720_v30 = vadd.f32 %v2359_v42, %v4322_v22  ;;  %v2388_v59 = vsel %vm1166_vm10, %v4710_v36, -inf  ;;  %v2403_v0 = vsel %vm1166_vm10, %v4730_v62, -inf }
 0xfd2   : > { %v2397_v51 = vsel %vm1166_vm10, %v4715_v27, -inf  ;;  %v4723_v58 = vadd.f32 %v2362_v26, %v4322_v22 }
 0xfd3   : > { %2398 = vmax.xlane.f32.xlu0 %v2397_v51  ;;  %v2391_v63 = vsel %vm1166_vm10, %v4720_v30, -inf }
 0xfd4   : > { %v2400_v1 = vsel %vm1166_vm10, %v4723_v58, -inf }
 0xfd5   : > { %2389 = vmax.xlane.f32.xlu1 %v2388_v59 }
 0xfd7   : > { %2392 = vmax.xlane.f32.xlu0 %v2391_v63 }
 0xfd9   : > { %2401 = vmax.xlane.f32.xlu1 %v2400_v1 }
 0xfdb   : > { %2404 = vmax.xlane.f32.xlu0 %v2403_v0  ;;  %v3693_v50 = vpop.f32.mrb[44].mxu1 }
 0xfdc   : > { %v2341_v2 = vpop.f32.mrb[45].mxu1  ;;  %v2366_v60 = vmul.f32 0.35355338, %v3693_v50 }
 0xfdd   : > { %v2364_v39 = vmul.f32 0.35355338, %v2341_v2  ;;  %v3694_v11 = vpop.f32.mrb[46].mxu1 }
 0xfde   : > { %v2344_v6 = vpop.f32.mrb[47].mxu1  ;;  %v4740_v4 = vadd.f32 %v2366_v60, %v4322_v22 }
 0xfdf   : > { %v4737_v12 = vadd.f32 %v2364_v39, %v4322_v22  ;;  %v2365_v13 = vmul.f32 0.35355338, %v2344_v6 }
 0xfe0   : > { %v2412_v20 = vsel %vm1166_vm10, %v4740_v4, -inf }
 0xfe1   : > { %v2406_v19 = vsel %vm1166_vm10, %v4737_v12, -inf  ;;  %v4745_v23 = vadd.f32 %v2365_v13, %v4322_v22 }
 0xfe2   : > { %2407 = vmax.xlane.f32.xlu1 %v2406_v19 }
 0xfe3   : > { %v2409_v21 = vsel %vm1166_vm10, %v4745_v23, -inf }
 0xfe4   : > { %2410 = vmax.xlane.f32.xlu0 %v2409_v21 }
 0xfe6   : > { %2413 = vmax.xlane.f32.xlu1 %v2412_v20 }
 0xfef   : > { %v2387_v22 = vpop.xlane.xlu0 %2386 }
 0xff0   : > { %v2417_v29 = vsub.f32 %v4692_v14, %v2387_v22 }
 0xff3   : > { %v2384_v24 = vpop.xlane.xlu0 %2383 }
 0xff4   : > { %v2416_v5 = vsub.f32 %v4702_v7, %v2384_v24 }
 0xff7   : > { %2581 = vrot.lane.b32.xlu1 %v4639_v52, %s4053_s29  ;;  %v2381_v52 = vpop.xlane.xlu1 %2380 }
 0xff8   : > { %v2415_v31 = vsub.f32 %v4695_v15, %v2381_v52 }
 0xffa   : > { %2519 = vrot.lane.b32.xlu0 %v4622_v28, %s4053_s29  ;;  %v2431_v28 = vmul.f32 1.442695, %v2417_v29  ;;  %v2427_v37 = vmul.f32 1.442695, %v2415_v31 }
 0xffb   : > { %2521 = vrot.lane.b32.xlu1 %v4633_v34, %s4053_s29  ;;  %v2429_v34 = vmul.f32 1.442695, %v2416_v5 }
 0xffc   : > { %3962 = vpow2.f32 %v2431_v28 }
 0xffd   : > { %3964 = vpow2.f32 %v2429_v34 }
 0xffe   : > { %2583 = vrot.lane.b32.xlu0 %v4647_v18, %s4053_s29  ;;  %3966 = vpow2.f32 %v2427_v37 }
 0xfff   : > { %2643 = vrot.lane.b32.xlu1 %v4637_v17, %s4053_s29 }
0x1002   : > { %2705 = vrot.lane.b32.xlu0 %v4657_v41, %s4053_s29 }
0x1006   : > { %v4766_v18 = vpop.eup %3962 }
0x1007   : > { %v4768_v17 = vpop.eup %3964  ;;  %v2457_v41 = vsel %vm1166_vm10, %v4766_v18, 0.0 }
0x1008   : > { %v4772_v44 = vpop.eup %3966  ;;  %v2454_v14 = vsel %vm1166_vm10, %v4768_v17, 0.0 }
0x1009   : > { %v2451_v15 = vsel %vm1166_vm10, %v4772_v44, 0.0 }
0x1021   : > { %2458 = vadd.xlane.f32.xlu0 %v2457_v41 }
0x1023   : > { %2455 = vadd.xlane.f32.xlu1 %v2454_v14 }
0x1025   : > { %2452 = vadd.xlane.f32.xlu0 %v2451_v15 }
0x105e   : > { %v2396_v7 = vpop.xlane.xlu1 %2395 }
0x105f   : > { %v2420_v56 = vsub.f32 %v4707_v48, %v2396_v7 }
0x1060   : > { %v2399_v40 = vpop.xlane.xlu0 %2398 }
0x1061   : > { %v2437_v61 = vmul.f32 1.442695, %v2420_v56  ;;  %v2421_v51 = vsub.f32 %v4715_v27, %v2399_v40 }
0x1062   : > { %v2390_v42 = vpop.xlane.xlu1 %2389 }
0x1063   : > { %3968 = vpow2.f32 %v2437_v61  ;;  %v2418_v47 = vsub.f32 %v4710_v36, %v2390_v42  ;;  %v2439_v50 = vmul.f32 1.442695, %v2421_v51 }
0x1064   : > { %v2393_v26 = vpop.xlane.xlu0 %2392 }
0x1065   : > { %v2433_v49 = vmul.f32 1.442695, %v2418_v47  ;;  %v2419_v48 = vsub.f32 %v4720_v30, %v2393_v26 }
0x1066   : > { %v2402_v35 = vpop.xlane.xlu1 %2401 }
0x1067   : > { %3970 = vpow2.f32 %v2433_v49  ;;  %v2422_v59 = vsub.f32 %v4723_v58, %v2402_v35  ;;  %v2435_v27 = vmul.f32 1.442695, %v2419_v48 }
0x1068   : > { %v2405_v63 = vpop.xlane.xlu0 %2404 }
0x1069   : > { %v2441_v1 = vmul.f32 1.442695, %v2422_v59  ;;  %v2423_v0 = vsub.f32 %v4730_v62, %v2405_v63 }
0x106b   : > { %3972 = vpow2.f32 %v2441_v1  ;;  %v2443_v2 = vmul.f32 1.442695, %v2423_v0 }
0x106d   : > { %v4784_v60 = vpop.eup %3968  ;;  %3974 = vpow2.f32 %v2443_v2 }
0x106e   : > { %v2466_v36 = vsel %vm1166_vm10, %v4784_v60, 0.0  ;;  %3976 = vpow2.f32 %v2439_v50 }
0x106f   : > { %2467 = vadd.xlane.f32.xlu1 %v2466_v36  ;;  %v2408_v39 = vpop.xlane.xlu1 %2407  ;;  %3978 = vpow2.f32 %v2435_v27 }
0x1070   : > { %v2424_v62 = vsub.f32 %v4737_v12, %v2408_v39 }
0x1071   : > { %v4788_v58 = vpop.eup %3970  ;;  %v2411_v11 = vpop.xlane.xlu0 %2410 }
0x1072   : > { %v2425_v6 = vsub.f32 %v4745_v23, %v2411_v11  ;;  %v2460_v30 = vsel %vm1166_vm10, %v4788_v58, 0.0  ;;  %v2445_v24 = vmul.f32 1.442695, %v2424_v62 }
0x1073   : > { %2461 = vadd.xlane.f32.xlu1 %v2460_v30  ;;  %v2414_v13 = vpop.xlane.xlu1 %2413 }
0x1074   : > { %v2447_v19 = vmul.f32 1.442695, %v2425_v6  ;;  %v2426_v21 = vsub.f32 %v4740_v4, %v2414_v13 }
0x1075   : > { %v4795_v20 = vpop.eup %3972  ;;  %v2520_v22 = vpop.permute.xlu0 %2519 }
0x1076   : > { %v2449_v29 = vmul.f32 1.442695, %v2426_v21  ;;  %3695 = vmatprep.subr.bf16.mxu0 %v2520_v22  ;;  %v2472_v12 = vsel %vm1166_vm10, %v4795_v20, 0.0  ;;  %3980 = vpow2.f32 %v2447_v19 }
0x1077   : > { %v4799_v52 = vpop.eup %3974  ;;  %3696 = vmatpush3.bf16.msra.mxu0 %v2520_v22  ;;  %2473 = vadd.xlane.f32.xlu1 %v2472_v12  ;;  %v2582_v23 = vpop.permute.xlu1 %2581 }
0x1078   : > { %3982 = vpow2.f32 %v2449_v29  ;;  %v2475_v5 = vsel %vm1166_vm10, %v4799_v52, 0.0  ;;  %3703 = vmatprep.subr.bf16.mxu1 %v2582_v23  ;;  %v4803_v4 = vpop.eup %3976 }
0x1079   : > { %2476 = vadd.xlane.f32.xlu0 %v2475_v5  ;;  %v2584_v28 = vpop.permute.xlu0 %2583  ;;  %3704 = vmatpush3.bf16.msra.mxu1 %v2582_v23  ;;  %3984 = vpow2.f32 %v2445_v24  ;;  %v2469_v37 = vsel %vm1166_vm10, %v4803_v4, 0.0  ;;  %v4810_v41 = vpop.eup %3978 }
0x107a   : > { %3776 = vmatprep.subr.msk.bf16.mxu1 %vm688_vm4, %v2584_v28  ;;  %v2593_v14 = vsel %vm688_vm4, %v2584_v28, 0  ;;  %v2463_v56 = vsel %vm1166_vm10, %v4810_v41, 0.0 }
0x107b   : > { %v2522_v31 = vpop.permute.xlu1 %2521 }
0x107c   : > { %v2531_v34 = vsel %vm688_vm4, %v2522_v31, 0  ;;  %3775 = vmatprep.subr.msk.bf16.mxu0 %vm688_vm4, %v2522_v31 }
0x107d   : > { %2470 = vadd.xlane.f32.xlu0 %v2469_v37  ;;  %v4813_v15 = vpop.permute.xlu0 %2705  ;;  %3698 = vmatpush3.bf16.msra.mxu0 %v2531_v34 }
0x107e   : > { %3706 = vmatpush3.bf16.msra.mxu1 %v2593_v14 }
0x107f   : > { %3719 = vmatprep.subr.bf16.mxu1 %v4813_v15  ;;  %v2644_v7 = vpop.permute.xlu1 %2643 }
0x1080   : > { %3711 = vmatprep.subr.bf16.mxu0 %v2644_v7  ;;  %v4818_v40 = vpop.eup %3980 }
0x1081   : > { %2464 = vadd.xlane.f32.xlu0 %v2463_v56  ;;  %v2481_v26 = vsel %vm1166_vm10, %v4818_v40, 0.0 }
0x1082   : > { %v4820_v61 = vpop.eup %3982 }
0x1083   : > { %v2484_v42 = vsel %vm1166_vm10, %v4820_v61, 0.0  ;;  %v4824_v47 = vpop.eup %3984 }
0x1084   : > { %2485 = vadd.xlane.f32.xlu1 %v2484_v42  ;;  %v2478_v49 = vsel %vm1166_vm10, %v4824_v47, 0.0 }
0x1085   : > { %2482 = vadd.xlane.f32.xlu0 %v2481_v26 }
0x1088   : > { %2479 = vadd.xlane.f32.xlu1 %v2478_v49 }
0x1099   : > { %2645 = vrot.lane.b32.xlu1 %v4649_v32, %s4053_s29 }
0x109b   : > { %2707 = vrot.lane.b32.xlu0 %v4662_v38, %s4053_s29  ;;  %s420_s29 = scalar_lea.vmem %s4984_s11, %s3779_s15 }
0x109d   : > { %2818 = vrot.lane.b32.xlu1 %v4584_v43, %s4054_s30 }
0x10ae   : > { %v2459_v35 = vpop.xlane.xlu0 %2458 }
0x10af   : > { %3986 = vrcp.f32 %v2459_v35 }
0x10b0   : > { %v2456_v51 = vpop.xlane.xlu1 %2455 }
0x10b1   : > { %3988 = vrcp.f32 %v2456_v51 }
0x10b2   : > { %v2453_v59 = vpop.xlane.xlu0 %2452 }
0x10b3   : > { %3990 = vrcp.f32 %v2453_v59 }
0x10b9   : > { %v3987_v63 = vpop.eup %3986 }
0x10ba   : > { %v2501_v50 = vmul.f32 %v3987_v63, %v4766_v18 }
0x10bb   : > { %v3989_v1 = vpop.eup %3988 }
0x10bc   : > { %v2500_v32 = vmul.f32 %v3989_v1, %v4768_v17  ;;  %v2512_v38 = vpack.c.bf16 %v2501_v50, %v2501_v50 }
0x10bd   : > { %v3991_v0 = vpop.eup %3990 }
0x10be   : > { %v2499_v48 = vmul.f32 %v3991_v0, %v4772_v44 }
0x10c0   : > { %v2511_v2 = vpack.c.bf16 %v2500_v32, %v2499_v48 }
0x10c2   : > { %3699 = vmatprep.mubr.msk.bf16.mxu0 %vm1166_vm10, %v2511_v2 }
0x10c3   : > { %3700 = vmatmul.mubr.msk.bf16.vlgmr.msra.gmra.mrb[32].mxu0 %vm1166_vm10, %v2512_v38 }
0x10c4   : > { %3712 = vmatpush3.bf16.msra.mxu0 %v2644_v7 }
0x10fc   : > { %v2468_v43 = vpop.xlane.xlu1 %2467 }
0x1100   : > { %v2462_v36 = vpop.xlane.xlu1 %2461 }
0x1104   : > { %v2474_v27 = vpop.xlane.xlu1 %2473 }
0x1105   : > { %3992 = vrcp.f32 %v2474_v27 }
0x1106   : > { %v2477_v39 = vpop.xlane.xlu0 %2476 }
0x1107   : > { %3994 = vrcp.f32 %v2477_v39 }
0x110a   : > { %v2471_v11 = vpop.xlane.xlu0 %2470 }
0x110b   : > { %3996 = vrcp.f32 %v2471_v11 }
0x110c   : > { %3998 = vrcp.f32 %v2468_v43 }
0x110d   : > { %4000 = vrcp.f32 %v2462_v36 }
0x110e   : > { %v2465_v18 = vpop.xlane.xlu0 %2464 }
0x110f   : > { %4002 = vrcp.f32 %v2465_v18  ;;  %v3993_v62 = vpop.eup %3992 }
0x1110   : > { %v2506_v22 = vmul.f32 %v3993_v62, %v4795_v20 }
0x1111   : > { %v2486_v17 = vpop.xlane.xlu1 %2485  ;;  %v3995_v6 = vpop.eup %3994 }
0x1112   : > { %v2483_v44 = vpop.xlane.xlu0 %2482  ;;  %4004 = vrcp.f32 %v2486_v17  ;;  %v2507_v29 = vmul.f32 %v3995_v6, %v4799_v52 }
0x1113   : > { %4006 = vrcp.f32 %v2483_v44 }
0x1114   : > { %v2516_v37 = vpack.c.bf16 %v2507_v29, %v2507_v29 }
0x1115   : > { %v3997_v30 = vpop.eup %3996  ;;  %v2480_v13 = vpop.xlane.xlu1 %2479 }
0x1116   : > { %v3999_v19 = vpop.eup %3998  ;;  %4008 = vrcp.f32 %v2480_v13  ;;  %v2505_v21 = vmul.f32 %v3997_v30, %v4803_v4  ;;  %v2708_v56 = vpop.permute.xlu0 %2707 }
0x1117   : > { %v4001_v24 = vpop.eup %4000  ;;  %v2504_v5 = vmul.f32 %v3999_v19, %v4784_v60  ;;  %v2717_v26 = vsel %vm688_vm4, %v2708_v56, 0 }
0x1118   : > { %v2515_v12 = vpack.c.bf16 %v2506_v22, %v2505_v21  ;;  %v2502_v34 = vmul.f32 %v4001_v24, %v4788_v58 }
0x1119   : > { %v4003_v23 = vpop.eup %4002  ;;  %v2646_v28 = vpop.permute.xlu1 %2645  ;;  %v2514_v52 = vpack.c.bf16 %v2504_v5, %v2504_v5 }
0x111a   : > { %3715 = vmatprep.mubr.msk.bf16.mxu0 %vm1166_vm10, %v2515_v12  ;;  %v2655_v31 = vsel %vm688_vm4, %v2646_v28, 0  ;;  %3777 = vmatprep.subr.msk.bf16.mxu0 %vm688_vm4, %v2646_v28  ;;  %v2503_v4 = vmul.f32 %v4003_v23, %v4810_v41 }
0x111b   : > { %3714 = vmatpush3.bf16.msra.mxu0 %v2655_v31 }
0x111c   : > { %v2513_v20 = vpack.c.bf16 %v2503_v4, %v2502_v34  ;;  %v4005_v14 = vpop.eup %4004 }
0x111d   : > { %v4007_v7 = vpop.eup %4006  ;;  %v2510_v58 = vmul.f32 %v4005_v14, %v4820_v61  ;;  %v2819_v51 = vpop.permute.xlu1 %2818 }
0x111e   : > { %3707 = vmatprep.mubr.msk.bf16.mxu1 %vm1166_vm10, %v2513_v20  ;;  %3716 = vmatmul.mubr.msk.bf16.vlgmr.msra.gmra.mrb[36].mxu0 %vm1166_vm10, %v2516_v37  ;;  %v2509_v42 = vmul.f32 %v4007_v7, %v4818_v40 }
0x111f   : > { %3708 = vmatmul.mubr.msk.bf16.vlgmr.msra.gmra.mrb[48].mxu1 %vm1166_vm10, %v2514_v52  ;;  %v2518_v35 = vpack.c.bf16 %v2510_v58, %v2510_v58  ;;  %3727 = vmatprep.subr.bf16.mxu0 %v2819_v51 }
0x1120   : > { %v4009_v60 = vpop.eup %4008  ;;  %3720 = vmatpush3.bf16.msra.mxu1 %v4813_v15  ;;  %3728 = vmatpush3.bf16.msra.mxu0 %v2819_v51 }
0x1121   : > { %3778 = vmatprep.subr.msk.bf16.mxu1 %vm688_vm4, %v2708_v56  ;;  %v2508_v41 = vmul.f32 %v4009_v60, %v4824_v47  ;;  %v2817_v60 = vrot.slane %v4616_v10, %v1605_v16 }
0x1123   : > { %v2517_v49 = vpack.c.bf16 %v2509_v42, %v2508_v41 }
0x1124   : > { %3722 = vmatpush3.bf16.msra.mxu1 %v2717_v26 }
0x1125   : > { %3723 = vmatprep.mubr.msk.bf16.mxu1 %vm1166_vm10, %v2517_v49 }
0x1127   : > { %3724 = vmatmul.mubr.msk.bf16.vlgmr.msra.gmra.mrb[52].mxu1 %vm1166_vm10, %v2518_v35 }
0x1196   : > { %v3701_v15 = vpop.f32.mrb[32].mxu0 }
0x1197   : > { %v2567_v61 = vpop.f32.mrb[33].mxu0 }
0x1198   : > { %v3702_v59 = vpop.f32.mrb[34].mxu0 }
0x1199   : > { %v2570_v63 = vpop.f32.mrb[35].mxu0 }
0x11f1   : > { %v3717_v1 = vpop.f32.mrb[36].mxu0 }
0x11f2   : > { %v3709_v47 = vpop.f32.mrb[48].mxu1  ;;  %v2691_v0 = vpop.f32.mrb[37].mxu0 }
0x11f3   : > { %2774 = vrot.lane.b32.xlu1 %v3709_v47, %s4055_s12  ;;  %v2629_v40 = vpop.f32.mrb[49].mxu1  ;;  %v3718_v50 = vpop.f32.mrb[38].mxu0 }
0x11f4   : > { %v3710_v48 = vpop.f32.mrb[50].mxu1  ;;  %v2694_v32 = vpop.f32.mrb[39].mxu0 }
0x11f5   : > { %v2632_v2 = vpop.f32.mrb[51].mxu1  ;;  %v3852_v38 = vpack.i.bf16 %v2694_v32, %v2691_v0 }
0x11f6   : > { %v3847_v43 = vpack.i.bf16 %v2632_v2, %v2629_v40 }
0x11f7   : > { %2786 = vrot.lane.b32.xlu1 %v3717_v1, %s4057_s13 }
0x11f8   : > { %3848 = vrot.lane.b32.xlu0 %v3847_v43, %s4055_s12 }
0x11fa   : > { %v3725_v36 = vpop.f32.mrb[52].mxu1 }
0x11fb   : > { %v2753_v27 = vpop.f32.mrb[53].mxu1  ;;  %2820 = vrot.lane.b32.xlu1 %v4590_v45, %s4054_s30 }
0x11fc   : > { %v3726_v39 = vpop.f32.mrb[54].mxu1  ;;  %3853 = vrot.lane.b32.xlu0 %v3852_v38, %s4057_s13 }
0x11fd   : > { %v2756_v11 = vpop.f32.mrb[55].mxu1  ;;  %v3884_v39 = vld [vmem:[%s4981_s8 + $0x10] sm:$0xff]  }
0x11fe   : > { %v3857_v18 = vpack.i.bf16 %v2756_v11, %v2753_v27  ;;  %3735 = vmatprep.subr.bf16.mxu1 %v3884_v39  ;;  %v3885_v11 = vld [vmem:[%s4981_s8 + $0x18] sm:$0xff]  }
0x11ff   : > { %3736 = vmatpush3.bf16.msra.mxu1 %v3884_v39 }
0x1200   : > { %3858 = vrot.lane.b32.xlu0 %v3857_v18, %s4056_s21  ;;  %3737 = vmatprep.subr.bf16.mxu1 %v3885_v11 }
0x1203   : > { %3738 = vmatpush3.bf16.msra.mxu1 %v3885_v11 }
0x1204   : > { %2798 = vrot.lane.b32.xlu0 %v3725_v36, %s4056_s21 }
0x1265   : > { %v2775_v17 = vpop.permute.xlu1 %2774 }
0x1266   : > { %v2805_v31 = vsel %vm883_vm8, %v3701_v15, %v2775_v17 }
0x1269   : > { %v2787_v44 = vpop.permute.xlu1 %2786 }
0x126a   : > { %v3849_v62 = vpop.permute.xlu0 %3848  ;;  %v2808_v20 = vsel %vm1594_vm11, %v2805_v31, %v2787_v44 }
0x126b   : > { %v3851_v13 = vunpack.i.h.bf16 %v3849_v62  ;;  %v3850_v19 = vunpack.i.l.bf16 %v3849_v62 }
0x126d   : > { %v2821_v6 = vpop.permute.xlu1 %2820  ;;  %v2804_v24 = vsel %vm883_vm8, %v2570_v63, %v3851_v13  ;;  %v2803_v29 = vsel %vm883_vm8, %v2567_v61, %v3850_v19 }
0x126e   : > { %v3854_v30 = vpop.permute.xlu0 %3853  ;;  %3729 = vmatprep.subr.bf16.mxu0 %v2821_v6 }
0x126f   : > { %3730 = vmatpush3.bf16.msra.mxu0 %v2821_v6  ;;  %v3856_v21 = vunpack.i.h.bf16 %v3854_v30  ;;  %v3855_v45 = vunpack.i.l.bf16 %v3854_v30 }
0x1271   : > { %v2807_v5 = vsel %vm1594_vm11, %v2804_v24, %v3856_v21  ;;  %v2806_v28 = vsel %vm1594_vm11, %v2803_v29, %v3855_v45  ;;  %v2923_v45 = vrot.slane %v4616_v10, %v1711_v55 }
0x1272   : > { %v3859_v22 = vpop.permute.xlu0 %3858 }
0x1273   : > { %v3861_v12 = vunpack.i.h.bf16 %v3859_v22  ;;  %v3860_v23 = vunpack.i.l.bf16 %v3859_v22 }
0x1275   : > { %v2809_v34 = vsel %vm1166_vm10, %v2806_v28, %v3860_v23  ;;  %v2810_v4 = vsel %vm1166_vm10, %v2807_v5, %v3861_v12  ;;  %v2930_v5 = vrot.slane %v4616_v10, %v1718_v54  ;;  %v3886_v54 = vld [vmem:[%s4982_s9 + $0x20] sm:$0xff]  }
0x1276   : > { %v2812_v37 = vpack.c.bf16 %v2810_v4, %v2809_v34  ;;  %v2799_v14 = vpop.permute.xlu0 %2798  ;;  %3743 = vmatprep.subr.bf16.mxu0 %v3886_v54 }
0x1277   : > { %v2811_v52 = vsel %vm1166_vm10, %v2808_v20, %v2799_v14 }
0x1278   : > { %v2813_v7 = vpack.c.bf16 %v2811_v52, %v2811_v52  ;;  %3731 = vmatprep.mubr.msk.bf16.mxu0 %vm707_vm5, %v2812_v37 }
0x127a   : > { %3732 = vmatmul.mubr.msk.bf16.vlgmr.msra.gmra.mrb[40].mxu0 %vm707_vm5, %v2813_v7  ;;  %v3887_v7 = vld [vmem:[%s4982_s9 + $0x28] sm:$0xff]  }
0x127b   : > { %3744 = vmatpush3.bf16.msra.mxu0 %v3886_v54 }
0x127c   : > { %3745 = vmatprep.subr.bf16.mxu0 %v3887_v7 }
0x127f   : > { %3746 = vmatpush3.bf16.msra.mxu0 %v3887_v7 }
0x134d   : > { %v3733_v56 = vpop.f32.mrb[40].mxu0 }
0x134e   : > { %v2864_v58 = vpop.f32.mrb[41].mxu0  ;;  %v2873_v49 = vadd.f32 %v3733_v56, %v2817_v60  ;;  %v3889_v56 = vld [vmem:[%s4982_s9 + $0x38] sm:$0xff]  }
0x134f   : > { %v2865_v41 = vadd.f32 %v2864_v58, %v2817_v60  ;;  %v3734_v42 = vpop.f32.mrb[42].mxu0  ;;  %v2944_v58 = vrot.slane %v4616_v10, %v1731_v25 }
0x1350   : > { %v2867_v26 = vpop.f32.mrb[43].mxu0  ;;  %v2880_v59 = vadd.f32 %v2873_v49, %v4607_v8 }
0x1351   : > { %v2878_v35 = vadd.f32 %v2865_v41, %v4601_v46  ;;  %v2868_v51 = vadd.f32 %v2867_v26, %v2817_v60  ;;  %v3888_v60 = vld [vmem:[%s4982_s9 + $0x30] sm:$0xff]  }
0x1352   : > { %v2887_v16 = vsel %vm707_vm5, %v2880_v59, 0.0  ;;  %3747 = vmatprep.subr.bf16.mxu0 %v3888_v60 }
0x1353   : > { %v2879_v15 = vadd.f32 %v2868_v51, %v4603_v3  ;;  %v2881_v61 = vsel %vm707_vm5, %v2878_v35, 0.0  ;;  %3748 = vmatpush3.bf16.msra.mxu0 %v3888_v60 }
0x1354   : > { %2882 = vadd.xlane.f32.xlu1 %v2881_v61  ;;  %3749 = vmatprep.subr.bf16.mxu0 %v3889_v56 }
0x1355   : > { %v2884_v63 = vsel %vm707_vm5, %v2879_v15, 0.0 }
0x1356   : > { %2885 = vadd.xlane.f32.xlu0 %v2884_v63 }
0x1357   : > { %3750 = vmatpush3.bf16.msra.mxu0 %v3889_v56 }
0x135a   : > { %2888 = vadd.xlane.f32.xlu0 %v2887_v16 }
0x13e1   : > { %v2883_v1 = vpop.xlane.xlu1 %2882 }
0x13e2   : > { %v2890_v47 = vmul.f32 0.03125, %v2883_v1 }
0x13e3   : > { %v2886_v0 = vpop.xlane.xlu0 %2885 }
0x13e4   : > { %v2893_v40 = vsub.f32 %v2878_v35, %v2890_v47  ;;  %v2891_v50 = vmul.f32 0.03125, %v2886_v0 }
0x13e6   : > { %v2894_v46 = vsub.f32 %v2879_v15, %v2891_v50  ;;  %v2896_v48 = vmul.f32 %v2893_v40, %v2893_v40 }
0x13e7   : > { %v2889_v32 = vpop.xlane.xlu0 %2888 }
0x13e8   : > { %v2892_v3 = vmul.f32 0.03125, %v2889_v32  ;;  %v2899_v2 = vsel %vm707_vm5, %v2896_v48, 0.0  ;;  %v2897_v38 = vmul.f32 %v2894_v46, %v2894_v46 }
0x13e9   : > { %2900 = vadd.xlane.f32.xlu1 %v2899_v2 }
0x13ea   : > { %v2895_v8 = vsub.f32 %v2880_v59, %v2892_v3  ;;  %v2902_v43 = vsel %vm707_vm5, %v2897_v38, 0.0 }
0x13eb   : > { %2903 = vadd.xlane.f32.xlu0 %v2902_v43 }
0x13ec   : > { %v2898_v36 = vmul.f32 %v2895_v8, %v2895_v8 }
0x13ee   : > { %v2905_v27 = vsel %vm707_vm5, %v2898_v36, 0.0 }
0x13ef   : > { %2906 = vadd.xlane.f32.xlu1 %v2905_v27 }
0x1476   : > { %v2901_v18 = vpop.xlane.xlu1 %2900 }
0x1477   : > { %v2908_v17 = vmul.f32 0.03125, %v2901_v18 }
0x1478   : > { %v2904_v44 = vpop.xlane.xlu0 %2903 }
0x1479   : > { %v2911_v62 = vadd.f32 1e-05, %v2908_v17  ;;  %v2909_v6 = vmul.f32 0.03125, %v2904_v44 }
0x147b   : > { %4010 = vrsqrt.f32 %v2911_v62  ;;  %v2912_v30 = vadd.f32 1e-05, %v2909_v6 }
0x147c   : > { %v2907_v13 = vpop.xlane.xlu1 %2906 }
0x147d   : > { %4012 = vrsqrt.f32 %v2912_v30  ;;  %v2910_v19 = vmul.f32 0.03125, %v2907_v13  ;;  %v4035_v13 = vld [vmem:[%s4983_s10 + $0x8] sm:$0xff] }
0x147f   : > { %v2913_v21 = vadd.f32 1e-05, %v2910_v19  ;;  %v3052_v19 = vrot.slane %v4035_v13, %v1838_v9 }
0x1481   : > { %4014 = vrsqrt.f32 %v2913_v21 }
0x1485   : > { %v4011_v22 = vpop.eup %4010 }
0x1486   : > { %v2917_v24 = vmul.f32 %v4011_v22, %v2893_v40 }
0x1487   : > { %v4013_v29 = vpop.eup %4012 }
0x1488   : > { %v2918_v12 = vmul.f32 %v4013_v29, %v2894_v46  ;;  %v2924_v23 = vmul.f32 %v2923_v45, %v2917_v24 }
0x148a   : > { %v2925_v28 = vmul.f32 %v2923_v45, %v2918_v12  ;;  %v4904_v4 = vadd.f32 %v2930_v5, %v2924_v23 }
0x148b   : > { %v4015_v31 = vpop.eup %4014 }
0x148c   : > { %v2919_v34 = vmul.f32 %v4015_v31, %v2895_v8  ;;  %v4906_v20 = vadd.f32 %v2930_v5, %v2925_v28 }
0x148e   : > { %v2926_v37 = vmul.f32 %v2923_v45, %v2919_v34  ;;  %v2934_v55 = vpack.c.bf16 %v4906_v20, %v4904_v4 }
0x1490   : > { %3739 = vmatprep.mubr.msk.bf16.mxu1 %vm707_vm5, %v2934_v55  ;;  %v4911_v14 = vadd.f32 %v2930_v5, %v2926_v37 }
0x1492   : > { %v2935_v52 = vpack.c.bf16 %v4911_v14, %v4911_v14 }
0x1494   : > { %3740 = vmatmul.mubr.msk.bf16.vlgmr.msra.gmra.mrb[56].mxu1 %vm707_vm5, %v2935_v52 }
0x1567   : > { %v3741_v41 = vpop.f32.mrb[56].mxu1 }
0x1568   : > { %v3006_v42 = vadd.f32 %v3741_v41, %v2944_v58  ;;  %v2997_v26 = vpop.f32.mrb[57].mxu1 }
0x1569   : > { %v2998_v49 = vadd.f32 %v2997_v26, %v2944_v58  ;;  %v3742_v35 = vpop.f32.mrb[58].mxu1 }
0x156a   : > { %v3013_v51 = vmul.f32 %v3006_v42, %v3006_v42  ;;  %v3000_v15 = vpop.f32.mrb[59].mxu1 }
0x156b   : > { %v3011_v61 = vmul.f32 %v2998_v49, %v2998_v49  ;;  %v3001_v59 = vadd.f32 %v3000_v15, %v2944_v58 }
0x156c   : > { %v3016_v63 = vmul.f32 %v3013_v51, %v3006_v42 }
0x156d   : > { %v3014_v16 = vmul.f32 %v3011_v61, %v2998_v49  ;;  %v3012_v1 = vmul.f32 %v3001_v59, %v3001_v59 }
0x156e   : > { %v3019_v47 = vmul.f32 0.044715, %v3016_v63 }
0x156f   : > { %v3017_v0 = vmul.f32 0.044715, %v3014_v16  ;;  %v3015_v40 = vmul.f32 %v3012_v1, %v3001_v59 }
0x1570   : > { %v3022_v50 = vadd.f32 %v3019_v47, %v3006_v42 }
0x1571   : > { %v3020_v46 = vadd.f32 %v3017_v0, %v2998_v49  ;;  %v3018_v48 = vmul.f32 0.044715, %v3015_v40  ;;  %v3176_v40 = vrot.slane %v4035_v13, %v1962_v53 }
0x1572   : > { %v3025_v32 = vmul.f32 0.7978846, %v3022_v50 }
0x1573   : > { %v3023_v25 = vmul.f32 0.7978846, %v3020_v46  ;;  %v3021_v10 = vadd.f32 %v3018_v48, %v3001_v59  ;;  %v3183_v48 = vrot.slane %v4035_v13, %v1969_v57 }
0x1574   : > { %4016 = vtanh.f32 %v3025_v32 }
0x1575   : > { %4018 = vtanh.f32 %v3023_v25  ;;  %v3024_v3 = vmul.f32 0.7978846, %v3021_v10 }
0x1577   : > { %4020 = vtanh.f32 %v3024_v3 }
0x157e   : > { %v4017_v2 = vpop.eup %4016 }
0x157f   : > { %v4019_v38 = vpop.eup %4018  ;;  %v3031_v8 = vadd.f32 1.0, %v4017_v2 }
0x1580   : > { %v3029_v43 = vadd.f32 1.0, %v4019_v38 }
0x1581   : > { %v4021_v36 = vpop.eup %4020  ;;  %v3034_v27 = vmul.f32 0.5, %v3031_v8 }
0x1582   : > { %v3032_v39 = vmul.f32 0.5, %v3029_v43  ;;  %v3030_v11 = vadd.f32 1.0, %v4021_v36 }
0x1583   : > { %v3037_v17 = vmul.f32 %v3034_v27, %v3006_v42 }
0x1584   : > { %v3033_v18 = vmul.f32 0.5, %v3030_v11  ;;  %v3035_v44 = vmul.f32 %v3032_v39, %v2998_v49 }
0x1585   : > { %v3039_v30 = vpack.c.bf16 %v3037_v17, %v3037_v17 }
0x1586   : > { %v3036_v62 = vmul.f32 %v3033_v18, %v3001_v59 }
0x1588   : > { %v3038_v6 = vpack.c.bf16 %v3036_v62, %v3035_v44 }
0x158a   : > { %3751 = vmatprep.mubr.msk.bf16.mxu0 %vm634_vm3, %v3038_v6 }
0x158b   : > { %3752 = vmatmul.mubr.msk.bf16.vlgmr.msra.gmra.mrb[44].mxu0 %vm634_vm3, %v3039_v30 }
0x165e   : > { %v3753_v21 = vpop.f32.mrb[44].mxu0 }
0x165f   : > { %v3117_v45 = vpop.f32.mrb[45].mxu0  ;;  %v3126_v22 = vadd.f32 %v3753_v21, %v3052_v19 }
0x1660   : > { %v3118_v24 = vadd.f32 %v3117_v45, %v3052_v19  ;;  %v3754_v29 = vpop.f32.mrb[46].mxu0 }
0x1661   : > { %v3120_v12 = vpop.f32.mrb[47].mxu0  ;;  %v3133_v28 = vadd.f32 %v3126_v22, %v4911_v14 }
0x1662   : > { %v3131_v23 = vadd.f32 %v3118_v24, %v4904_v4  ;;  %v3121_v5 = vadd.f32 %v3120_v12, %v3052_v19 }
0x1663   : > { %v3140_v9 = vsel %vm707_vm5, %v3133_v28, 0.0 }
0x1664   : > { %v3132_v31 = vadd.f32 %v3121_v5, %v4906_v20  ;;  %v3134_v34 = vsel %vm707_vm5, %v3131_v23, 0.0 }
0x1665   : > { %3135 = vadd.xlane.f32.xlu0 %v3134_v34 }
0x1666   : > { %v3137_v37 = vsel %vm707_vm5, %v3132_v31, 0.0 }
0x1667   : > { %3138 = vadd.xlane.f32.xlu1 %v3137_v37 }
0x1669   : > { %3141 = vadd.xlane.f32.xlu0 %v3140_v9 }
0x16f2   : > { %v3136_v55 = vpop.xlane.xlu0 %3135 }
0x16f3   : > { %v3143_v52 = vmul.f32 0.03125, %v3136_v55 }
0x16f4   : > { %v3139_v54 = vpop.xlane.xlu1 %3138 }
0x16f5   : > { %v3146_v7 = vsub.f32 %v3131_v23, %v3143_v52  ;;  %v3144_v60 = vmul.f32 0.03125, %v3139_v54  ;;  %v3434_v54 = vld [vmem:[%s4979_s6 + $0x2] ss:$0 sm:$0xff] }
0x16f6   : > { %v3142_v4 = vpop.xlane.xlu0 %3141 }
0x16f7   : > { %v3147_v56 = vsub.f32 %v3132_v31, %v3144_v60  ;;  %v3145_v58 = vmul.f32 0.03125, %v3142_v4  ;;  %v3149_v14 = vmul.f32 %v3146_v7, %v3146_v7  ;;  %v3435_v4 = vld [vmem:[%s4979_s6 + $0x3] ss:$0 sm:$0xff] }
0x16f9   : > { %v3148_v41 = vsub.f32 %v3133_v28, %v3145_v58  ;;  %v3152_v20 = vsel %vm707_vm5, %v3149_v14, 0.0  ;;  %v3150_v42 = vmul.f32 %v3147_v56, %v3147_v56 }
0x16fa   : > { %3153 = vadd.xlane.f32.xlu1 %v3152_v20 }
0x16fb   : > { %v3155_v26 = vsel %vm707_vm5, %v3150_v42, 0.0  ;;  %v3151_v49 = vmul.f32 %v3148_v41, %v3148_v41 }
0x16fc   : > { %3156 = vadd.xlane.f32.xlu0 %v3155_v26 }
0x16fd   : > { %v3158_v35 = vsel %vm707_vm5, %v3151_v49, 0.0 }
0x16fe   : > { %3159 = vadd.xlane.f32.xlu1 %v3158_v35 }
0x1787   : > { %v3154_v51 = vpop.xlane.xlu1 %3153 }
0x1788   : > { %v3161_v15 = vmul.f32 0.03125, %v3154_v51 }
0x1789   : > { %v3157_v61 = vpop.xlane.xlu0 %3156 }
0x178a   : > { %v3164_v59 = vadd.f32 1e-05, %v3161_v15  ;;  %v3162_v63 = vmul.f32 0.03125, %v3157_v61 }
0x178b   : > { %v3160_v16 = vpop.xlane.xlu1 %3159 }
0x178c   : > { %4022 = vrsqrt.f32 %v3164_v59  ;;  %v3165_v1 = vadd.f32 1e-05, %v3162_v63  ;;  %v3163_v47 = vmul.f32 0.03125, %v3160_v16 }
0x178e   : > { %4024 = vrsqrt.f32 %v3165_v1  ;;  %v3166_v0 = vadd.f32 1e-05, %v3163_v47 }
0x1790   : > { %4026 = vrsqrt.f32 %v3166_v0 }
0x1796   : > { %v4023_v50 = vpop.eup %4022 }
0x1797   : > { %v3170_v46 = vmul.f32 %v4023_v50, %v3146_v7 }
0x1798   : > { %v4025_v32 = vpop.eup %4024 }
0x1799   : > { %v3177_v25 = vmul.f32 %v3176_v40, %v3170_v46  ;;  %v3171_v10 = vmul.f32 %v4025_v32, %v3147_v56 }
0x179a   : > { %v4027_v3 = vpop.eup %4026 }
0x179b   : > { %v3184_v2 = vadd.f32 %v3183_v48, %v3177_v25  ;;  %v3178_v38 = vmul.f32 %v3176_v40, %v3171_v10  ;;  %v3172_v8 = vmul.f32 %v4027_v3, %v3148_v41 }
0x179d   : > { %v3189_v43 = vsel %vm707_vm5, %v3184_v2, 0.0  ;;  %v3185_v36 = vadd.f32 %v3183_v48, %v3178_v38  ;;  %v3179_v27 = vmul.f32 %v3176_v40, %v3172_v8 }
0x179e   : > { %3190 = vadd.xlane.f32.xlu0 %v3189_v43 }
0x179f   : > { %v3192_v39 = vsel %vm707_vm5, %v3185_v36, 0.0  ;;  %v3186_v53 = vadd.f32 %v3183_v48, %v3179_v27 }
0x17a0   : > { %3193 = vadd.xlane.f32.xlu1 %v3192_v39 }
0x17a1   : > { %v3195_v11 = vsel %vm707_vm5, %v3186_v53, 0.0 }
0x17a2   : > { %3196 = vadd.xlane.f32.xlu0 %v3195_v11 }
0x182b   : > { %v3191_v33 = vpop.xlane.xlu0 %3190 }
0x182c   : > { %v3198_v57 = vmul.f32 0.03125, %v3191_v33 }
0x182d   : > { %v3194_v18 = vpop.xlane.xlu1 %3193 }
0x182e   : > { %v3201_v17 = vsub.f32 %v3184_v2, %v3198_v57  ;;  %v3199_v44 = vmul.f32 0.03125, %v3194_v18 }
0x182f   : > { %v3197_v62 = vpop.xlane.xlu0 %3196 }
0x1830   : > { %v3202_v6 = vsub.f32 %v3185_v36, %v3199_v44  ;;  %v3200_v30 = vmul.f32 0.03125, %v3197_v62  ;;  %v3204_v13 = vmul.f32 %v3201_v17, %v3201_v17 }
0x1832   : > { %v3203_v19 = vsub.f32 %v3186_v53, %v3200_v30  ;;  %v3207_v21 = vsel %vm707_vm5, %v3204_v13, 0.0  ;;  %v3205_v45 = vmul.f32 %v3202_v6, %v3202_v6 }
0x1833   : > { %3208 = vadd.xlane.f32.xlu1 %v3207_v21 }
0x1834   : > { %v3210_v22 = vsel %vm707_vm5, %v3205_v45, 0.0  ;;  %v3206_v24 = vmul.f32 %v3203_v19, %v3203_v19 }
0x1835   : > { %3211 = vadd.xlane.f32.xlu0 %v3210_v22 }
0x1836   : > { %v3213_v29 = vsel %vm707_vm5, %v3206_v24, 0.0 }
0x1837   : > { %3214 = vadd.xlane.f32.xlu1 %v3213_v29 }
0x18c0   : > { %v3209_v12 = vpop.xlane.xlu1 %3208 }
0x18c1   : > { %v3216_v23 = vmul.f32 0.03125, %v3209_v12 }
0x18c2   : > { %v3212_v5 = vpop.xlane.xlu0 %3211 }
0x18c3   : > { %v3219_v28 = vadd.f32 1e-05, %v3216_v23  ;;  %v3217_v31 = vmul.f32 0.03125, %v3212_v5 }
0x18c4   : > { %v3215_v34 = vpop.xlane.xlu1 %3214 }
0x18c5   : > { %4028 = vrsqrt.f32 %v3219_v28  ;;  %v3220_v37 = vadd.f32 1e-05, %v3217_v31  ;;  %v3218_v9 = vmul.f32 0.03125, %v3215_v34 }
0x18c7   : > { %4030 = vrsqrt.f32 %v3220_v37  ;;  %v3221_v55 = vadd.f32 1e-05, %v3218_v9 }
0x18c9   : > { %4032 = vrsqrt.f32 %v3221_v55 }
0x18cf   : > { %v4029_v52 = vpop.eup %4028 }
0x18d0   : > { %v3225_v7 = vmul.f32 %v4029_v52, %v3201_v17 }
0x18d1   : > { %v4031_v60 = vpop.eup %4030 }
0x18d2   : > { %v3232_v56 = vmul.f32 %v3434_v54, %v3225_v7  ;;  %v3226_v58 = vmul.f32 %v4031_v60, %v3202_v6 }
0x18d3   : > { %v4033_v14 = vpop.eup %4032 }
0x18d4   : > { %v3239_v41 = vadd.f32 %v3435_v4, %v3232_v56  ;;  %v3233_v20 = vmul.f32 %v3434_v54, %v3226_v58  ;;  %v3227_v42 = vmul.f32 %v4033_v14, %v3203_v19 }
0x18d6   : > { %3242 = vst.msk [vmem:[%s420_s29] sm:$0xff] %vm707_vm5, %v3239_v41  ;;  %v3240_v26 = vadd.f32 %v3435_v4, %v3233_v20  ;;  %v3234_v49 = vmul.f32 %v3434_v54, %v3227_v42 }
0x18d8   : > { %3243 = vst.msk [vmem:[%s420_s29 + $0x8] sm:$0xff] %vm707_vm5, %v3240_v26  ;;  %v3241_v35 = vadd.f32 %v3435_v4, %v3234_v49 }
0x18da   : > { %3244 = vst.msk [vmem:[%s420_s29 + $0x10] sm:$0xff] %vm707_vm5, %v3241_v35 }
0x18db PF: > { %s21_s17 = sadd.s32 1, %s4042_s17  }
0x18dc   : > { %p18_p4 = scmp.ge.s32.totalorder %s21_s17, 4  }
0x18de   :  { %20 = sbr.rel (!%p18_p4) target bundleno = 1 (0x1), region = 105 }

</bundles_post_ra>
